<compile_context>
chip_gen: v7x
topology: tpu7x:2x2x1
jax: 0.10.0
libtpu: 0.0.40
codegen_flags: <defaults>
</compile_context>

<pallas_src>
import functools

import jax
import jax.numpy as jnp
from jax.experimental import pallas as pl
from jax.experimental.pallas import tpu as pltpu

NUM_CLASSES = 10
BN_EPS = 1e-5
ACT_DTYPE = jnp.bfloat16

_TM = 256   # output-row tile
_TN = 256   # output-channel tile (multiple of 128)


def _round_up(x, m):
    return ((x + m - 1) // m) * m


# ----------------------------------------------------------------------------
# Pallas kernels
# ----------------------------------------------------------------------------
def _mm_kernel(a_ref, w_ref, scale_ref, shift_ref, o_ref, acc_ref, *, relu):
    """Tiled matmul, K-axis reduction on the grid, fused BN affine (+ReLU)."""
    @pl.when(pl.program_id(2) == 0)
    def _():
        acc_ref[...] = jnp.zeros_like(acc_ref)

    acc_ref[...] += jnp.dot(a_ref[...], w_ref[...],
                            preferred_element_type=jnp.float32)

    @pl.when(pl.program_id(2) == pl.num_programs(2) - 1)
    def _():
        out = acc_ref[...] * scale_ref[...] + shift_ref[...]
        if relu:
            out = jnp.maximum(out, 0.0)
        o_ref[...] = out.astype(o_ref.dtype)


def _mm_res_kernel(a_ref, w_ref, scale_ref, shift_ref, res_ref, o_ref, acc_ref,
                   *, relu):
    """Same as _mm_kernel but with a fused residual add in the epilogue."""
    @pl.when(pl.program_id(2) == 0)
    def _():
        acc_ref[...] = jnp.zeros_like(acc_ref)

    acc_ref[...] += jnp.dot(a_ref[...], w_ref[...],
                            preferred_element_type=jnp.float32)

    @pl.when(pl.program_id(2) == pl.num_programs(2) - 1)
    def _():
        out = acc_ref[...] * scale_ref[...] + shift_ref[...]
        out = out + res_ref[...].astype(jnp.float32)
        if relu:
            out = jnp.maximum(out, 0.0)
        o_ref[...] = out.astype(o_ref.dtype)


def _maxpool_kernel(p_ref, o_ref, *, oh, ow):
    """3x3 / stride-2 max pool from 4 even/odd planes of one padded image.

    Tap (di, dj) of the window lives in plane (di%2, dj%2) at offset
    (di//2, dj//2), so only unit-stride static slices are needed in-kernel.
    """
    res = None
    for di in range(3):
        for dj in range(3):
            pidx = (di % 2) * 2 + (dj % 2)
            r0, c0 = di // 2, dj // 2
            v = p_ref[pidx, r0:r0 + oh, c0:c0 + ow, :]
            res = v if res is None else jnp.maximum(res, v)
    o_ref[0] = res


def _head_kernel(x_ref, w1_ref, b1_ref, w2_ref, b2_ref, w3_ref, b3_ref, o_ref):
    """Fused Dropout(id) + Linear(512,100) -> Linear(100,100) -> Linear(100,nc).

    All hidden/output dims are zero-padded to 128 lanes; padded columns stay
    exactly zero through the chain, so slicing the result back is exact.
    """
    h = jnp.dot(x_ref[...], w1_ref[...], preferred_element_type=jnp.float32)
    h = h + b1_ref[...]
    h = jnp.dot(h.astype(jnp.bfloat16), w2_ref[...],
                preferred_element_type=jnp.float32)
    h = h + b2_ref[...]
    h = jnp.dot(h.astype(jnp.bfloat16), w3_ref[...],
                preferred_element_type=jnp.float32)
    o_ref[...] = h + b3_ref[...]


# ----------------------------------------------------------------------------
# Pallas wrappers
# ----------------------------------------------------------------------------
def _pick_k_tile(K):
    """K tile: either covers K entirely (no padding) or a 128-multiple divisor."""
    if K % 128 != 0 or K <= 512:
        return K
    for tk in (512, 384, 256, 128):
        if K % tk == 0:
            return tk
    return 128


def fused_matmul(a, w, scale, shift, residual=None, relu=False,
                 out_dtype=ACT_DTYPE):
    """out = act((a @ w) * scale + shift [+ residual]).

    a:(M,K), w:(K,N) fed to the MXU in bf16; scale/shift:(1,N) f32;
    residual:(M,N).  Tiled over (M/tm, N/tn, K/tk) with an f32 VMEM accumulator.
    """
    M, K = a.shape
    _, N = w.shape

    Np = _round_up(N, 128)                     # lane-dense output stores
    tn = _TN if Np % _TN == 0 else 128
    if M > _TM:
        Mp, tm = _round_up(M, _TM), _TM
    else:
        Mp, tm = M, M                          # full-extent block is allowed
    tk = _pick_k_tile(K)

    a = a.astype(jnp.bfloat16)
    w = w.astype(jnp.bfloat16)
    scale = scale.astype(jnp.float32)
    shift = shift.astype(jnp.float32)
    if Mp != M:
        a = jnp.pad(a, ((0, Mp - M), (0, 0)))
    if Np != N:
        w = jnp.pad(w, ((0, 0), (0, Np - N)))
        scale = jnp.pad(scale, ((0, 0), (0, Np - N)))
        shift = jnp.pad(shift, ((0, 0), (0, Np - N)))

    in_specs = [
        pl.BlockSpec((tm, tk), lambda i, j, k: (i, k)),
        pl.BlockSpec((tk, tn), lambda i, j, k: (k, j)),
        pl.BlockSpec((1, tn), lambda i, j, k: (0, j)),   # resident across K
        pl.BlockSpec((1, tn), lambda i, j, k: (0, j)),
    ]
    args = [a, w, scale, shift]
    if residual is None:
        kernel = functools.partial(_mm_kernel, relu=relu)
    else:
        res = residual.astype(ACT_DTYPE)
        if Mp != M or Np != N:
            res = jnp.pad(res, ((0, Mp - M), (0, Np - N)))
        in_specs.append(pl.BlockSpec((tm, tn), lambda i, j, k: (i, j)))
        args.append(res)
        kernel = functools.partial(_mm_res_kernel, relu=relu)

    out = pl.pallas_call(
        kernel,
        out_shape=jax.ShapeDtypeStruct((Mp, Np), out_dtype),
        grid=(Mp // tm, Np // tn, K // tk),
        in_specs=in_specs,
        out_specs=pl.BlockSpec((tm, tn), lambda i, j, k: (i, j)),
        scratch_shapes=[pltpu.VMEM((tm, tn), jnp.float32)],
        compiler_params=pltpu.CompilerParams(
            dimension_semantics=("parallel", "parallel", "arbitrary")),
    )(*args)

    if Mp != M or Np != N:
        out = out[:M, :N]
    return out


def maxpool3x3_s2(x):
    """PyTorch MaxPool2d(kernel=3, stride=2, padding=1) on NHWC input."""
    N, H, W, C = x.shape
    neg = float(jnp.finfo(x.dtype).min)
    xp = jnp.pad(x, ((0, 0), (1, 1), (1, 1), (0, 0)), constant_values=neg)
    Hp, Wp = H + 2, W + 2
    oh = (Hp - 3) // 2 + 1
    ow = (Wp - 3) // 2 + 1
    Hs = max(-(-Hp // 2), oh + 1)
    Ws = max(-(-Wp // 2), ow + 1)
    xp = jnp.pad(xp, ((0, 0), (0, 2 * Hs - Hp), (0, 2 * Ws - Wp), (0, 0)),
                 constant_values=neg)
    # split once into even/odd row/col planes (single XLA transpose, 1x traffic)
    planes = xp.reshape(N, Hs, 2, Ws, 2, C).transpose(0, 2, 4, 1, 3, 5)
    planes = planes.reshape(N * 4, Hs, Ws, C)
    return pl.pallas_call(
        functools.partial(_maxpool_kernel, oh=oh, ow=ow),
        out_shape=jax.ShapeDtypeStruct((N, oh, ow, C), x.dtype),
        grid=(N,),
        in_specs=[pl.BlockSpec((4, Hs, Ws, C), lambda n: (n, 0, 0, 0))],
        out_specs=pl.BlockSpec((1, oh, ow, C), lambda n: (n, 0, 0, 0)),
        compiler_params=pltpu.CompilerParams(
            dimension_semantics=("parallel",)),
    )(planes)


def _full_spec(shape):
    return pl.BlockSpec(shape, lambda i: tuple(0 for _ in shape))


def head_forward(feat, head_params, num_classes):
    """avgpool features (N,512) -> fused 3-linear head -> (N, num_classes)."""
    (w1, b1), (w2, b2), (w3, b3) = head_params
    Nb = feat.shape[0]
    Mp = _round_up(max(Nb, 8), 8)
    x = jnp.zeros((Mp, w1.shape[0]), ACT_DTYPE).at[:Nb].set(
        feat.astype(ACT_DTYPE))
    out = pl.pallas_call(
        _head_kernel,
        out_shape=jax.ShapeDtypeStruct((Mp, w3.shape[1]), jnp.float32),
        grid=(1,),
        in_specs=[_full_spec(x.shape), _full_spec(w1.shape), _full_spec(b1.shape),
                  _full_spec(w2.shape), _full_spec(b2.shape),
                  _full_spec(w3.shape), _full_spec(b3.shape)],
        out_specs=_full_spec((Mp, w3.shape[1])),
    )(x, w1, b1, w2, b2, w3, b3)
    return out[:Nb, :num_classes]


# ----------------------------------------------------------------------------
# Plain-JAX glue (layout plumbing only)
# ----------------------------------------------------------------------------
def im2col(x, kh, kw, stride, pad):
    """x:(N,H,W,C) NHWC -> patches:(N*OH*OW, kh*kw*C) bf16, plus OH, OW."""
    N, H, W, C = x.shape
    xp = jnp.pad(x, ((0, 0), (pad, pad), (pad, pad), (0, 0)))
    Hp, Wp = H + 2 * pad, W + 2 * pad
    oh = (Hp - kh) // stride + 1
    ow = (Wp - kw) // stride + 1
    cols = []
    for i in range(kh):
        for j in range(kw):
            win = xp[:, i:i + stride * oh:stride, j:j + stride * ow:stride, :]
            cols.append(win[:, :oh, :ow, :])
    patches = jnp.stack(cols, axis=3)               # (N, oh, ow, kh*kw, C)
    return patches.reshape(N * oh * ow, kh * kw * C).astype(ACT_DTYPE), oh, ow


# ----------------------------------------------------------------------------
# Deterministic parameter init (shapes follow torchvision resnet18)
# ----------------------------------------------------------------------------
def conv_bn_params(key, kh, kw, cin, cout):
    k1, k2, k3, k4, k5 = jax.random.split(key, 5)
    fan_in = kh * kw * cin
    w = jax.random.normal(k1, (kh, kw, cin, cout), jnp.float32) * (1.0 / fan_in) ** 0.5
    gamma = 1.0 + 0.1 * jax.random.normal(k2, (cout,), jnp.float32)
    beta = 0.1 * jax.random.normal(k3, (cout,), jnp.float32)
    mean = 0.1 * jax.random.normal(k4, (cout,), jnp.float32)
    var = 1.0 + 0.1 * jax.random.uniform(k5, (cout,), jnp.float32)
    scale = gamma / jnp.sqrt(var + BN_EPS)          # folded eval-mode BatchNorm
    shift = beta - mean * scale
    return (w.reshape(kh * kw * cin, cout).astype(jnp.bfloat16),
            scale.reshape(1, cout).astype(jnp.float32),
            shift.reshape(1, cout).astype(jnp.float32))


def linear_params(key, cin, cout, pad_in, pad_out):
    k1, k2 = jax.random.split(key)
    bound = 1.0 / (cin ** 0.5)
    w = jax.random.uniform(k1, (cin, cout), jnp.float32, -bound, bound)
    b = jax.random.uniform(k2, (cout,), jnp.float32, -bound, bound)
    wp = jnp.zeros((pad_in, pad_out), jnp.float32).at[:cin, :cout].set(w)
    bp = jnp.zeros((1, pad_out), jnp.float32).at[0, :cout].set(b)
    return wp.astype(jnp.bfloat16), bp


# (in_channels, out_channels, stride) per stage; 2 BasicBlocks each (resnet18)
STAGES = [(64, 64, 1), (64, 128, 2), (128, 256, 2), (256, 512, 2)]


def block_configs():
    cfgs = []
    for cin, cout, stride in STAGES:
        for b in range(2):
            s = stride if b == 0 else 1
            in_c = cin if b == 0 else cout
            cfgs.append((in_c, cout, s, (s != 1 or in_c != cout)))
    return cfgs


def init_cnn_network_params(key):
    keys = iter(jax.random.split(key, 64))
    params = {"conv1": conv_bn_params(next(keys), 7, 7, 3, 64)}
    blocks = []
    for in_c, cout, s, has_down in block_configs():
        blk = {"conv1": conv_bn_params(next(keys), 3, 3, in_c, cout),
               "conv2": conv_bn_params(next(keys), 3, 3, cout, cout)}
        if has_down:
            blk["down"] = conv_bn_params(next(keys), 1, 1, in_c, cout)
        blocks.append(blk)
    params["blocks"] = blocks
    h1 = _round_up(100, 128)
    hc = _round_up(NUM_CLASSES, 128)
    params["head"] = (
        linear_params(next(keys), 512, 100, 512, h1),            # Dropout + Linear(512,100)
        linear_params(next(keys), 100, 100, h1, h1),             # fclayer1
        linear_params(next(keys), 100, NUM_CLASSES, h1, hc),     # fclayer2
    )
    return params


# ----------------------------------------------------------------------------
# Forward pass
# ----------------------------------------------------------------------------
def basic_block(x, blk, stride, has_down):
    N, H, W, C = x.shape
    cout = blk["conv1"][0].shape[1]
    # conv1 (3x3, stride s) + bn + relu
    a, oh, ow = im2col(x, 3, 3, stride, 1)
    out1 = fused_matmul(a, *blk["conv1"], relu=True)
    # identity / downsample path (1x1 conv needs no im2col)
    if has_down:
        xs = x[:, ::stride, ::stride, :] if stride > 1 else x
        identity = fused_matmul(xs.reshape(N * oh * ow, C), *blk["down"],
                                relu=False)
    else:
        identity = x.reshape(N * H * W, C)
    # conv2 (3x3, stride 1) + bn + residual add + relu (fused epilogue)
    a2, _, _ = im2col(out1.reshape(N, oh, ow, cout), 3, 3, 1, 1)
    out2 = fused_matmul(a2, *blk["conv2"], residual=identity, relu=True)
    return out2.reshape(N, oh, ow, cout)


@jax.jit
def cnn_network_forward(img_nchw, params):
    x = jnp.transpose(img_nchw, (0, 2, 3, 1)).astype(ACT_DTYPE)  # NCHW -> NHWC
    N = x.shape[0]
    # stem: conv 7x7/2 + bn + relu, maxpool 3x3/2
    a, oh, ow = im2col(x, 7, 7, 2, 3)
    x = fused_matmul(a, *params["conv1"], relu=True).reshape(N, oh, ow, 64)
    x = maxpool3x3_s2(x)
    # residual stages
    for blk, (_, _, s, has_down) in zip(params["blocks"], block_configs()):
        x = basic_block(x, blk, s, has_down)
    # adaptive average pool to (1,1) -> (N, 512)   (tiny reduction, left to XLA)
    feat = jnp.mean(x.astype(jnp.float32), axis=(1, 2))
    # head: (Dropout=identity) Linear(512,100) -> Linear(100,100) -> Linear(100,nc)
    return head_forward(feat, params["head"], NUM_CLASSES)


# ----------------------------------------------------------------------------
if __name__ == "__main__":
    key = jax.random.PRNGKey(0)
    k_param, k_img = jax.random.split(key)
    params = init_cnn_network_params(k_param)
    # Small NCHW image batch (resnet18 needs 3 input channels); 32x32 spatial
    # shrinks to 1x1 by layer4, matching AdaptiveAvgPool2d((1,1)) semantics.
    img = jax.random.normal(k_img, (2, 3, 32, 32), jnp.float32)
    out = cnn_network_forward(img, params)
    out = jax.block_until_ready(out)
    assert out.shape == (2, NUM_CLASSES) and out.dtype == jnp.float32
    assert bool(jnp.all(jnp.isfinite(out)))
    print("KERNEL_OK")
</pallas_src>

<mosaic_0001>
module attributes {stable_mosaic.version = 11 : i64} {
  func.func @_mm_kernel(%arg0: i32, %arg1: i32, %arg2: i32, %arg3: memref<256x147xbf16, #tpu.memory_space<vmem>>, %arg4: memref<147x128xbf16, #tpu.memory_space<vmem>>, %arg5: memref<1x128xf32, #tpu.memory_space<vmem>>, %arg6: memref<1x128xf32, #tpu.memory_space<vmem>>, %arg7: memref<256x128xbf16, #tpu.memory_space<vmem>>, %arg8: memref<256x128xf32, #tpu.memory_space<vmem>>) attributes {dimension_semantics = [#tpu.dimension_semantics<parallel>, #tpu.dimension_semantics<parallel>, #tpu.dimension_semantics<arbitrary>], iteration_bounds = array<i64: 2, 1, 1>, scalar_prefetch = 0 : i64, scratch_operands = 1 : i64, tpu.core_type = #tpu.core_type<tc>, window_params = [{transform_indices = @transform_0, window_bounds = array<i64: 256, 147>}, {transform_indices = @transform_1, window_bounds = array<i64: 147, 128>}, {transform_indices = @transform_2, window_bounds = array<i64: 1, 128>}, {transform_indices = @transform_3, window_bounds = array<i64: 1, 128>}, {transform_indices = @transform_4, window_bounds = array<i64: 256, 128>}]} {
    %c0_i32 = arith.constant 0 : i32
    %0 = arith.cmpi eq, %arg2, %c0_i32 : i32
    %1 = arith.extui %0 : i1 to i32
    %c0_i32_0 = arith.constant 0 : i32
    %2 = arith.cmpi ne, %1, %c0_i32_0 : i32
    scf.if %2 {
      %cst_10 = arith.constant 0.000000e+00 : f32
      %12 = vector.broadcast %cst_10 : f32 to vector<256x128xf32>
      %c0_11 = arith.constant 0 : index
      %c0_12 = arith.constant 0 : index
      %13 = vector.load %arg8[%c0_11, %c0_12] : memref<256x128xf32, #tpu.memory_space<vmem>>, vector<256x128xf32>
      tpu.vector_store %arg8[%c0_11, %c0_12], %12 {strides = array<i32>} : memref<256x128xf32, #tpu.memory_space<vmem>>, vector<256x128xf32>,
    } else {
    }
    %c0 = arith.constant 0 : index
    %c0_1 = arith.constant 0 : index
    %3 = vector.load %arg8[%c0, %c0_1] : memref<256x128xf32, #tpu.memory_space<vmem>>, vector<256x128xf32>
    %c0_2 = arith.constant 0 : index
    %c0_3 = arith.constant 0 : index
    %4 = vector.load %arg3[%c0_2, %c0_3] : memref<256x147xbf16, #tpu.memory_space<vmem>>, vector<256x147xbf16>
    %c0_4 = arith.constant 0 : index
    %c0_5 = arith.constant 0 : index
    %5 = vector.load %arg4[%c0_4, %c0_5] : memref<147x128xbf16, #tpu.memory_space<vmem>>, vector<147x128xbf16>
    %cst = arith.constant dense<0.000000e+00> : vector<256x128xf32>
    %6 = tpu.matmul %4, %5, %cst {dimension_numbers = #tpu.dot_dimension_numbers<[1], [0], [0], [1], [0, 0, 1, 1], [], []>} : vector<256x147xbf16>, vector<147x128xbf16>, vector<256x128xf32> -> vector<256x128xf32>
    %7 = arith.addf %3, %6 : vector<256x128xf32>
    %c0_6 = arith.constant 0 : index
    %c0_7 = arith.constant 0 : index
    %8 = vector.load %arg8[%c0_6, %c0_7] : memref<256x128xf32, #tpu.memory_space<vmem>>, vector<256x128xf32>
    tpu.vector_store %arg8[%c0_6, %c0_7], %7 {strides = array<i32>} : memref<256x128xf32, #tpu.memory_space<vmem>>, vector<256x128xf32>,
    %c0_i32_8 = arith.constant 0 : i32
    %9 = arith.cmpi eq, %arg2, %c0_i32_8 : i32
    %10 = arith.extui %9 : i1 to i32
    %c0_i32_9 = arith.constant 0 : i32
    %11 = arith.cmpi ne, %10, %c0_i32_9 : i32
    scf.if %11 {
      %c0_10 = arith.constant 0 : index
      %c0_11 = arith.constant 0 : index
      %12 = vector.load %arg8[%c0_10, %c0_11] : memref<256x128xf32, #tpu.memory_space<vmem>>, vector<256x128xf32>
      %c0_12 = arith.constant 0 : index
      %c0_13 = arith.constant 0 : index
      %13 = vector.load %arg5[%c0_12, %c0_13] : memref<1x128xf32, #tpu.memory_space<vmem>>, vector<1x128xf32>
      %14 = vector.broadcast %13 : vector<1x128xf32> to vector<256x128xf32>
      %15 = arith.mulf %12, %14 : vector<256x128xf32>
      %c0_14 = arith.constant 0 : index
      %c0_15 = arith.constant 0 : index
      %16 = vector.load %arg6[%c0_14, %c0_15] : memref<1x128xf32, #tpu.memory_space<vmem>>, vector<1x128xf32>
      %17 = vector.broadcast %16 : vector<1x128xf32> to vector<256x128xf32>
      %18 = arith.addf %15, %17 : vector<256x128xf32>
      %cst_16 = arith.constant 0.000000e+00 : f32
      %19 = vector.broadcast %cst_16 : f32 to vector<256x128xf32>
      %20 = arith.maximumf %18, %19 : vector<256x128xf32>
      %21 = arith.truncf %20 : vector<256x128xf32> to vector<256x128xbf16>
      %c0_17 = arith.constant 0 : index
      %c0_18 = arith.constant 0 : index
      %22 = vector.load %arg7[%c0_17, %c0_18] : memref<256x128xbf16, #tpu.memory_space<vmem>>, vector<256x128xbf16>
      tpu.vector_store %arg7[%c0_17, %c0_18], %21 {strides = array<i32>} : memref<256x128xbf16, #tpu.memory_space<vmem>>, vector<256x128xbf16>,
    } else {
    }
    return
  }
  func.func @transform_0(%arg0: i32, %arg1: i32, %arg2: i32) -> (i32, i32) {
    %c0_i32 = arith.constant 0 : i32
    return %arg0, %arg2 : i32, i32
  }
  func.func @transform_1(%arg0: i32, %arg1: i32, %arg2: i32) -> (i32, i32) {
    %c0_i32 = arith.constant 0 : i32
    return %arg2, %arg1 : i32, i32
  }
  func.func @transform_2(%arg0: i32, %arg1: i32, %arg2: i32) -> (i32, i32) {
    %c0_i32 = arith.constant 0 : i32
    %c0_i32_0 = arith.constant 0 : i32
    return %c0_i32, %arg1 : i32, i32
  }
  func.func @transform_3(%arg0: i32, %arg1: i32, %arg2: i32) -> (i32, i32) {
    %c0_i32 = arith.constant 0 : i32
    %c0_i32_0 = arith.constant 0 : i32
    return %c0_i32, %arg1 : i32, i32
  }
  func.func @transform_4(%arg0: i32, %arg1: i32, %arg2: i32) -> (i32, i32) {
    %c0_i32 = arith.constant 0 : i32
    return %arg0, %arg1 : i32, i32
  }
}

module attributes {stable_mosaic.version = 11 : i64} {
  func.func @_maxpool_kernel(%arg0: i32, %arg1: memref<4x9x9x64xbf16, #tpu.memory_space<vmem>>, %arg2: memref<1x8x8x64xbf16, #tpu.memory_space<vmem>>) attributes {dimension_semantics = [#tpu.dimension_semantics<parallel>], iteration_bounds = array<i64: 2>, scalar_prefetch = 0 : i64, scratch_operands = 0 : i64, tpu.core_type = #tpu.core_type<tc>, window_params = [{transform_indices = @transform_0, window_bounds = array<i64: 4, 9, 9, 64>}, {transform_indices = @transform_1, window_bounds = array<i64: 1, 8, 8, 64>}]} {
    %c0 = arith.constant 0 : index
    %c0_0 = arith.constant 0 : index
    %c0_1 = arith.constant 0 : index
    %c0_2 = arith.constant 0 : index
    %0 = vector.load %arg1[%c0, %c0_0, %c0_1, %c0_2] : memref<4x9x9x64xbf16, #tpu.memory_space<vmem>>, vector<1x8x8x64xbf16>
    %1 = vector.shape_cast %0 : vector<1x8x8x64xbf16> to vector<8x8x64xbf16>
    %c1 = arith.constant 1 : index
    %c0_3 = arith.constant 0 : index
    %c0_4 = arith.constant 0 : index
    %c0_5 = arith.constant 0 : index
    %2 = vector.load %arg1[%c1, %c0_3, %c0_4, %c0_5] : memref<4x9x9x64xbf16, #tpu.memory_space<vmem>>, vector<1x8x8x64xbf16>
    %3 = vector.shape_cast %2 : vector<1x8x8x64xbf16> to vector<8x8x64xbf16>
    %4 = arith.maximumf %1, %3 : vector<8x8x64xbf16>
    %c0_6 = arith.constant 0 : index
    %c0_7 = arith.constant 0 : index
    %c1_8 = arith.constant 1 : index
    %c0_9 = arith.constant 0 : index
    %5 = vector.load %arg1[%c0_6, %c0_7, %c1_8, %c0_9] : memref<4x9x9x64xbf16, #tpu.memory_space<vmem>>, vector<1x8x8x64xbf16>
    %6 = vector.shape_cast %5 : vector<1x8x8x64xbf16> to vector<8x8x64xbf16>
    %7 = arith.maximumf %4, %6 : vector<8x8x64xbf16>
    %c2 = arith.constant 2 : index
    %c0_10 = arith.constant 0 : index
    %c0_11 = arith.constant 0 : index
    %c0_12 = arith.constant 0 : index
    %8 = vector.load %arg1[%c2, %c0_10, %c0_11, %c0_12] : memref<4x9x9x64xbf16, #tpu.memory_space<vmem>>, vector<1x8x8x64xbf16>
    %9 = vector.shape_cast %8 : vector<1x8x8x64xbf16> to vector<8x8x64xbf16>
    %10 = arith.maximumf %7, %9 : vector<8x8x64xbf16>
    %c3 = arith.constant 3 : index
    %c0_13 = arith.constant 0 : index
    %c0_14 = arith.constant 0 : index
    %c0_15 = arith.constant 0 : index
    %11 = vector.load %arg1[%c3, %c0_13, %c0_14, %c0_15] : memref<4x9x9x64xbf16, #tpu.memory_space<vmem>>, vector<1x8x8x64xbf16>
    %12 = vector.shape_cast %11 : vector<1x8x8x64xbf16> to vector<8x8x64xbf16>
    %13 = arith.maximumf %10, %12 : vector<8x8x64xbf16>
    %c2_16 = arith.constant 2 : index
    %c0_17 = arith.constant 0 : index
    %c1_18 = arith.constant 1 : index
    %c0_19 = arith.constant 0 : index
    %14 = vector.load %arg1[%c2_16, %c0_17, %c1_18, %c0_19] : memref<4x9x9x64xbf16, #tpu.memory_space<vmem>>, vector<1x8x8x64xbf16>
    %15 = vector.shape_cast %14 : vector<1x8x8x64xbf16> to vector<8x8x64xbf16>
    %16 = arith.maximumf %13, %15 : vector<8x8x64xbf16>
    %c0_20 = arith.constant 0 : index
    %c1_21 = arith.constant 1 : index
    %c0_22 = arith.constant 0 : index
    %c0_23 = arith.constant 0 : index
    %17 = vector.load %arg1[%c0_20, %c1_21, %c0_22, %c0_23] : memref<4x9x9x64xbf16, #tpu.memory_space<vmem>>, vector<1x8x8x64xbf16>
    %18 = vector.shape_cast %17 : vector<1x8x8x64xbf16> to vector<8x8x64xbf16>
    %19 = arith.maximumf %16, %18 : vector<8x8x64xbf16>
    %c1_24 = arith.constant 1 : index
    %c1_25 = arith.constant 1 : index
    %c0_26 = arith.constant 0 : index
    %c0_27 = arith.constant 0 : index
    %20 = vector.load %arg1[%c1_24, %c1_25, %c0_26, %c0_27] : memref<4x9x9x64xbf16, #tpu.memory_space<vmem>>, vector<1x8x8x64xbf16>
    %21 = vector.shape_cast %20 : vector<1x8x8x64xbf16> to vector<8x8x64xbf16>
    %22 = arith.maximumf %19, %21 : vector<8x8x64xbf16>
    %c0_28 = arith.constant 0 : index
    %c1_29 = arith.constant 1 : index
    %c1_30 = arith.constant 1 : index
    %c0_31 = arith.constant 0 : index
    %23 = vector.load %arg1[%c0_28, %c1_29, %c1_30, %c0_31] : memref<4x9x9x64xbf16, #tpu.memory_space<vmem>>, vector<1x8x8x64xbf16>
    %24 = vector.shape_cast %23 : vector<1x8x8x64xbf16> to vector<8x8x64xbf16>
    %25 = arith.maximumf %22, %24 : vector<8x8x64xbf16>
    %c0_32 = arith.constant 0 : index
    %c0_33 = arith.constant 0 : index
    %c0_34 = arith.constant 0 : index
    %c0_35 = arith.constant 0 : index
    %26 = vector.load %arg2[%c0_32, %c0_33, %c0_34, %c0_35] : memref<1x8x8x64xbf16, #tpu.memory_space<vmem>>, vector<1x8x8x64xbf16>
    %27 = vector.shape_cast %26 : vector<1x8x8x64xbf16> to vector<8x8x64xbf16>
    %28 = vector.shape_cast %25 : vector<8x8x64xbf16> to vector<1x8x8x64xbf16>
    tpu.vector_store %arg2[%c0_32, %c0_33, %c0_34, %c0_35], %28 {strides = array<i32>} : memref<1x8x8x64xbf16, #tpu.memory_space<vmem>>, vector<1x8x8x64xbf16>,
    return
  }
  func.func @transform_0(%arg0: i32) -> (i32, i32, i32, i32) {
    %c0_i32 = arith.constant 0 : i32
    %c0_i32_0 = arith.constant 0 : i32
    %c0_i32_1 = arith.constant 0 : i32
    %c0_i32_2 = arith.constant 0 : i32
    return %arg0, %c0_i32, %c0_i32_0, %c0_i32_1 : i32, i32, i32, i32
  }
  func.func @transform_1(%arg0: i32) -> (i32, i32, i32, i32) {
    %c0_i32 = arith.constant 0 : i32
    %c0_i32_0 = arith.constant 0 : i32
    %c0_i32_1 = arith.constant 0 : i32
    %c0_i32_2 = arith.constant 0 : i32
    return %arg0, %c0_i32, %c0_i32_0, %c0_i32_1 : i32, i32, i32, i32
  }
}

module attributes {stable_mosaic.version = 11 : i64} {
  func.func @_mm_kernel(%arg0: i32, %arg1: i32, %arg2: i32, %arg3: memref<128x576xbf16, #tpu.memory_space<vmem>>, %arg4: memref<576x128xbf16, #tpu.memory_space<vmem>>, %arg5: memref<1x128xf32, #tpu.memory_space<vmem>>, %arg6: memref<1x128xf32, #tpu.memory_space<vmem>>, %arg7: memref<128x128xbf16, #tpu.memory_space<vmem>>, %arg8: memref<128x128xf32, #tpu.memory_space<vmem>>) attributes {dimension_semantics = [#tpu.dimension_semantics<parallel>, #tpu.dimension_semantics<parallel>, #tpu.dimension_semantics<arbitrary>], iteration_bounds = array<i64: 1, 1, 1>, scalar_prefetch = 0 : i64, scratch_operands = 1 : i64, tpu.core_type = #tpu.core_type<tc>, window_params = [{transform_indices = @transform_0, window_bounds = array<i64: 128, 576>}, {transform_indices = @transform_1, window_bounds = array<i64: 576, 128>}, {transform_indices = @transform_2, window_bounds = array<i64: 1, 128>}, {transform_indices = @transform_3, window_bounds = array<i64: 1, 128>}, {transform_indices = @transform_4, window_bounds = array<i64: 128, 128>}]} {
    %c0_i32 = arith.constant 0 : i32
    %0 = arith.cmpi eq, %arg2, %c0_i32 : i32
    %1 = arith.extui %0 : i1 to i32
    %c0_i32_0 = arith.constant 0 : i32
    %2 = arith.cmpi ne, %1, %c0_i32_0 : i32
    scf.if %2 {
      %cst_10 = arith.constant 0.000000e+00 : f32
      %12 = vector.broadcast %cst_10 : f32 to vector<128x128xf32>
      %c0_11 = arith.constant 0 : index
      %c0_12 = arith.constant 0 : index
      %13 = vector.load %arg8[%c0_11, %c0_12] : memref<128x128xf32, #tpu.memory_space<vmem>>, vector<128x128xf32>
      tpu.vector_store %arg8[%c0_11, %c0_12], %12 {strides = array<i32>} : memref<128x128xf32, #tpu.memory_space<vmem>>, vector<128x128xf32>,
    } else {
    }
    %c0 = arith.constant 0 : index
    %c0_1 = arith.constant 0 : index
    %3 = vector.load %arg8[%c0, %c0_1] : memref<128x128xf32, #tpu.memory_space<vmem>>, vector<128x128xf32>
    %c0_2 = arith.constant 0 : index
    %c0_3 = arith.constant 0 : index
    %4 = vector.load %arg3[%c0_2, %c0_3] : memref<128x576xbf16, #tpu.memory_space<vmem>>, vector<128x576xbf16>
    %c0_4 = arith.constant 0 : index
    %c0_5 = arith.constant 0 : index
    %5 = vector.load %arg4[%c0_4, %c0_5] : memref<576x128xbf16, #tpu.memory_space<vmem>>, vector<576x128xbf16>
    %cst = arith.constant dense<0.000000e+00> : vector<128x128xf32>
    %6 = tpu.matmul %4, %5, %cst {dimension_numbers = #tpu.dot_dimension_numbers<[1], [0], [0], [1], [0, 0, 1, 1], [], []>} : vector<128x576xbf16>, vector<576x128xbf16>, vector<128x128xf32> -> vector<128x128xf32>
    %7 = arith.addf %3, %6 : vector<128x128xf32>
    %c0_6 = arith.constant 0 : index
    %c0_7 = arith.constant 0 : index
    %8 = vector.load %arg8[%c0_6, %c0_7] : memref<128x128xf32, #tpu.memory_space<vmem>>, vector<128x128xf32>
    tpu.vector_store %arg8[%c0_6, %c0_7], %7 {strides = array<i32>} : memref<128x128xf32, #tpu.memory_space<vmem>>, vector<128x128xf32>,
    %c0_i32_8 = arith.constant 0 : i32
    %9 = arith.cmpi eq, %arg2, %c0_i32_8 : i32
    %10 = arith.extui %9 : i1 to i32
    %c0_i32_9 = arith.constant 0 : i32
    %11 = arith.cmpi ne, %10, %c0_i32_9 : i32
    scf.if %11 {
      %c0_10 = arith.constant 0 : index
      %c0_11 = arith.constant 0 : index
      %12 = vector.load %arg8[%c0_10, %c0_11] : memref<128x128xf32, #tpu.memory_space<vmem>>, vector<128x128xf32>
      %c0_12 = arith.constant 0 : index
      %c0_13 = arith.constant 0 : index
      %13 = vector.load %arg5[%c0_12, %c0_13] : memref<1x128xf32, #tpu.memory_space<vmem>>, vector<1x128xf32>
      %14 = vector.broadcast %13 : vector<1x128xf32> to vector<128x128xf32>
      %15 = arith.mulf %12, %14 : vector<128x128xf32>
      %c0_14 = arith.constant 0 : index
      %c0_15 = arith.constant 0 : index
      %16 = vector.load %arg6[%c0_14, %c0_15] : memref<1x128xf32, #tpu.memory_space<vmem>>, vector<1x128xf32>
      %17 = vector.broadcast %16 : vector<1x128xf32> to vector<128x128xf32>
      %18 = arith.addf %15, %17 : vector<128x128xf32>
      %cst_16 = arith.constant 0.000000e+00 : f32
      %19 = vector.broadcast %cst_16 : f32 to vector<128x128xf32>
      %20 = arith.maximumf %18, %19 : vector<128x128xf32>
      %21 = arith.truncf %20 : vector<128x128xf32> to vector<128x128xbf16>
      %c0_17 = arith.constant 0 : index
      %c0_18 = arith.constant 0 : index
      %22 = vector.load %arg7[%c0_17, %c0_18] : memref<128x128xbf16, #tpu.memory_space<vmem>>, vector<128x128xbf16>
      tpu.vector_store %arg7[%c0_17, %c0_18], %21 {strides = array<i32>} : memref<128x128xbf16, #tpu.memory_space<vmem>>, vector<128x128xbf16>,
    } else {
    }
    return
  }
  func.func @transform_0(%arg0: i32, %arg1: i32, %arg2: i32) -> (i32, i32) {
    %c0_i32 = arith.constant 0 : i32
    return %arg0, %arg2 : i32, i32
  }
  func.func @transform_1(%arg0: i32, %arg1: i32, %arg2: i32) -> (i32, i32) {
    %c0_i32 = arith.constant 0 : i32
    return %arg2, %arg1 : i32, i32
  }
  func.func @transform_2(%arg0: i32, %arg1: i32, %arg2: i32) -> (i32, i32) {
    %c0_i32 = arith.constant 0 : i32
    %c0_i32_0 = arith.constant 0 : i32
    return %c0_i32, %arg1 : i32, i32
  }
  func.func @transform_3(%arg0: i32, %arg1: i32, %arg2: i32) -> (i32, i32) {
    %c0_i32 = arith.constant 0 : i32
    %c0_i32_0 = arith.constant 0 : i32
    return %c0_i32, %arg1 : i32, i32
  }
  func.func @transform_4(%arg0: i32, %arg1: i32, %arg2: i32) -> (i32, i32) {
    %c0_i32 = arith.constant 0 : i32
    return %arg0, %arg1 : i32, i32
  }
}

module attributes {stable_mosaic.version = 11 : i64} {
  func.func @_mm_res_kernel(%arg0: i32, %arg1: i32, %arg2: i32, %arg3: memref<128x576xbf16, #tpu.memory_space<vmem>>, %arg4: memref<576x128xbf16, #tpu.memory_space<vmem>>, %arg5: memref<1x128xf32, #tpu.memory_space<vmem>>, %arg6: memref<1x128xf32, #tpu.memory_space<vmem>>, %arg7: memref<128x128xbf16, #tpu.memory_space<vmem>>, %arg8: memref<128x128xbf16, #tpu.memory_space<vmem>>, %arg9: memref<128x128xf32, #tpu.memory_space<vmem>>) attributes {dimension_semantics = [#tpu.dimension_semantics<parallel>, #tpu.dimension_semantics<parallel>, #tpu.dimension_semantics<arbitrary>], iteration_bounds = array<i64: 1, 1, 1>, scalar_prefetch = 0 : i64, scratch_operands = 1 : i64, tpu.core_type = #tpu.core_type<tc>, window_params = [{transform_indices = @transform_0, window_bounds = array<i64: 128, 576>}, {transform_indices = @transform_1, window_bounds = array<i64: 576, 128>}, {transform_indices = @transform_2, window_bounds = array<i64: 1, 128>}, {transform_indices = @transform_3, window_bounds = array<i64: 1, 128>}, {transform_indices = @transform_4, window_bounds = array<i64: 128, 128>}, {transform_indices = @transform_5, window_bounds = array<i64: 128, 128>}]} {
    %c0_i32 = arith.constant 0 : i32
    %0 = arith.cmpi eq, %arg2, %c0_i32 : i32
    %1 = arith.extui %0 : i1 to i32
    %c0_i32_0 = arith.constant 0 : i32
    %2 = arith.cmpi ne, %1, %c0_i32_0 : i32
    scf.if %2 {
      %cst_10 = arith.constant 0.000000e+00 : f32
      %12 = vector.broadcast %cst_10 : f32 to vector<128x128xf32>
      %c0_11 = arith.constant 0 : index
      %c0_12 = arith.constant 0 : index
      %13 = vector.load %arg9[%c0_11, %c0_12] : memref<128x128xf32, #tpu.memory_space<vmem>>, vector<128x128xf32>
      tpu.vector_store %arg9[%c0_11, %c0_12], %12 {strides = array<i32>} : memref<128x128xf32, #tpu.memory_space<vmem>>, vector<128x128xf32>,
    } else {
    }
    %c0 = arith.constant 0 : index
    %c0_1 = arith.constant 0 : index
    %3 = vector.load %arg9[%c0, %c0_1] : memref<128x128xf32, #tpu.memory_space<vmem>>, vector<128x128xf32>
    %c0_2 = arith.constant 0 : index
    %c0_3 = arith.constant 0 : index
    %4 = vector.load %arg3[%c0_2, %c0_3] : memref<128x576xbf16, #tpu.memory_space<vmem>>, vector<128x576xbf16>
    %c0_4 = arith.constant 0 : index
    %c0_5 = arith.constant 0 : index
    %5 = vector.load %arg4[%c0_4, %c0_5] : memref<576x128xbf16, #tpu.memory_space<vmem>>, vector<576x128xbf16>
    %cst = arith.constant dense<0.000000e+00> : vector<128x128xf32>
    %6 = tpu.matmul %4, %5, %cst {dimension_numbers = #tpu.dot_dimension_numbers<[1], [0], [0], [1], [0, 0, 1, 1], [], []>} : vector<128x576xbf16>, vector<576x128xbf16>, vector<128x128xf32> -> vector<128x128xf32>
    %7 = arith.addf %3, %6 : vector<128x128xf32>
    %c0_6 = arith.constant 0 : index
    %c0_7 = arith.constant 0 : index
    %8 = vector.load %arg9[%c0_6, %c0_7] : memref<128x128xf32, #tpu.memory_space<vmem>>, vector<128x128xf32>
    tpu.vector_store %arg9[%c0_6, %c0_7], %7 {strides = array<i32>} : memref<128x128xf32, #tpu.memory_space<vmem>>, vector<128x128xf32>,
    %c0_i32_8 = arith.constant 0 : i32
    %9 = arith.cmpi eq, %arg2, %c0_i32_8 : i32
    %10 = arith.extui %9 : i1 to i32
    %c0_i32_9 = arith.constant 0 : i32
    %11 = arith.cmpi ne, %10, %c0_i32_9 : i32
    scf.if %11 {
      %c0_10 = arith.constant 0 : index
      %c0_11 = arith.constant 0 : index
      %12 = vector.load %arg9[%c0_10, %c0_11] : memref<128x128xf32, #tpu.memory_space<vmem>>, vector<128x128xf32>
      %c0_12 = arith.constant 0 : index
      %c0_13 = arith.constant 0 : index
      %13 = vector.load %arg5[%c0_12, %c0_13] : memref<1x128xf32, #tpu.memory_space<vmem>>, vector<1x128xf32>
      %14 = vector.broadcast %13 : vector<1x128xf32> to vector<128x128xf32>
      %15 = arith.mulf %12, %14 : vector<128x128xf32>
      %c0_14 = arith.constant 0 : index
      %c0_15 = arith.constant 0 : index
      %16 = vector.load %arg6[%c0_14, %c0_15] : memref<1x128xf32, #tpu.memory_space<vmem>>, vector<1x128xf32>
      %17 = vector.broadcast %16 : vector<1x128xf32> to vector<128x128xf32>
      %18 = arith.addf %15, %17 : vector<128x128xf32>
      %c0_16 = arith.constant 0 : index
      %c0_17 = arith.constant 0 : index
      %19 = vector.load %arg7[%c0_16, %c0_17] : memref<128x128xbf16, #tpu.memory_space<vmem>>, vector<128x128xbf16>
      %20 = arith.extf %19 : vector<128x128xbf16> to vector<128x128xf32>
      %21 = arith.addf %18, %20 : vector<128x128xf32>
      %cst_18 = arith.constant 0.000000e+00 : f32
      %22 = vector.broadcast %cst_18 : f32 to vector<128x128xf32>
      %23 = arith.maximumf %21, %22 : vector<128x128xf32>
      %24 = arith.truncf %23 : vector<128x128xf32> to vector<128x128xbf16>
      %c0_19 = arith.constant 0 : index
      %c0_20 = arith.constant 0 : index
      %25 = vector.load %arg8[%c0_19, %c0_20] : memref<128x128xbf16, #tpu.memory_space<vmem>>, vector<128x128xbf16>
      tpu.vector_store %arg8[%c0_19, %c0_20], %24 {strides = array<i32>} : memref<128x128xbf16, #tpu.memory_space<vmem>>, vector<128x128xbf16>,
    } else {
    }
    return
  }
  func.func @transform_0(%arg0: i32, %arg1: i32, %arg2: i32) -> (i32, i32) {
    %c0_i32 = arith.constant 0 : i32
    return %arg0, %arg2 : i32, i32
  }
  func.func @transform_1(%arg0: i32, %arg1: i32, %arg2: i32) -> (i32, i32) {
    %c0_i32 = arith.constant 0 : i32
    return %arg2, %arg1 : i32, i32
  }
  func.func @transform_2(%arg0: i32, %arg1: i32, %arg2: i32) -> (i32, i32) {
    %c0_i32 = arith.constant 0 : i32
    %c0_i32_0 = arith.constant 0 : i32
    return %c0_i32, %arg1 : i32, i32
  }
  func.func @transform_3(%arg0: i32, %arg1: i32, %arg2: i32) -> (i32, i32) {
    %c0_i32 = arith.constant 0 : i32
    %c0_i32_0 = arith.constant 0 : i32
    return %c0_i32, %arg1 : i32, i32
  }
  func.func @transform_4(%arg0: i32, %arg1: i32, %arg2: i32) -> (i32, i32) {
    %c0_i32 = arith.constant 0 : i32
    return %arg0, %arg1 : i32, i32
  }
  func.func @transform_5(%arg0: i32, %arg1: i32, %arg2: i32) -> (i32, i32) {
    %c0_i32 = arith.constant 0 : i32
    return %arg0, %arg1 : i32, i32
  }
}

module attributes {stable_mosaic.version = 11 : i64} {
  func.func @_mm_kernel(%arg0: i32, %arg1: i32, %arg2: i32, %arg3: memref<32x576xbf16, #tpu.memory_space<vmem>>, %arg4: memref<576x128xbf16, #tpu.memory_space<vmem>>, %arg5: memref<1x128xf32, #tpu.memory_space<vmem>>, %arg6: memref<1x128xf32, #tpu.memory_space<vmem>>, %arg7: memref<32x128xbf16, #tpu.memory_space<vmem>>, %arg8: memref<32x128xf32, #tpu.memory_space<vmem>>) attributes {dimension_semantics = [#tpu.dimension_semantics<parallel>, #tpu.dimension_semantics<parallel>, #tpu.dimension_semantics<arbitrary>], iteration_bounds = array<i64: 1, 1, 1>, scalar_prefetch = 0 : i64, scratch_operands = 1 : i64, tpu.core_type = #tpu.core_type<tc>, window_params = [{transform_indices = @transform_0, window_bounds = array<i64: 32, 576>}, {transform_indices = @transform_1, window_bounds = array<i64: 576, 128>}, {transform_indices = @transform_2, window_bounds = array<i64: 1, 128>}, {transform_indices = @transform_3, window_bounds = array<i64: 1, 128>}, {transform_indices = @transform_4, window_bounds = array<i64: 32, 128>}]} {
    %c0_i32 = arith.constant 0 : i32
    %0 = arith.cmpi eq, %arg2, %c0_i32 : i32
    %1 = arith.extui %0 : i1 to i32
    %c0_i32_0 = arith.constant 0 : i32
    %2 = arith.cmpi ne, %1, %c0_i32_0 : i32
    scf.if %2 {
      %cst_10 = arith.constant 0.000000e+00 : f32
      %12 = vector.broadcast %cst_10 : f32 to vector<32x128xf32>
      %c0_11 = arith.constant 0 : index
      %c0_12 = arith.constant 0 : index
      %13 = vector.load %arg8[%c0_11, %c0_12] : memref<32x128xf32, #tpu.memory_space<vmem>>, vector<32x128xf32>
      tpu.vector_store %arg8[%c0_11, %c0_12], %12 {strides = array<i32>} : memref<32x128xf32, #tpu.memory_space<vmem>>, vector<32x128xf32>,
    } else {
    }
    %c0 = arith.constant 0 : index
    %c0_1 = arith.constant 0 : index
    %3 = vector.load %arg8[%c0, %c0_1] : memref<32x128xf32, #tpu.memory_space<vmem>>, vector<32x128xf32>
    %c0_2 = arith.constant 0 : index
    %c0_3 = arith.constant 0 : index
    %4 = vector.load %arg3[%c0_2, %c0_3] : memref<32x576xbf16, #tpu.memory_space<vmem>>, vector<32x576xbf16>
    %c0_4 = arith.constant 0 : index
    %c0_5 = arith.constant 0 : index
    %5 = vector.load %arg4[%c0_4, %c0_5] : memref<576x128xbf16, #tpu.memory_space<vmem>>, vector<576x128xbf16>
    %cst = arith.constant dense<0.000000e+00> : vector<32x128xf32>
    %6 = tpu.matmul %4, %5, %cst {dimension_numbers = #tpu.dot_dimension_numbers<[1], [0], [0], [1], [0, 0, 1, 1], [], []>} : vector<32x576xbf16>, vector<576x128xbf16>, vector<32x128xf32> -> vector<32x128xf32>
    %7 = arith.addf %3, %6 : vector<32x128xf32>
    %c0_6 = arith.constant 0 : index
    %c0_7 = arith.constant 0 : index
    %8 = vector.load %arg8[%c0_6, %c0_7] : memref<32x128xf32, #tpu.memory_space<vmem>>, vector<32x128xf32>
    tpu.vector_store %arg8[%c0_6, %c0_7], %7 {strides = array<i32>} : memref<32x128xf32, #tpu.memory_space<vmem>>, vector<32x128xf32>,
    %c0_i32_8 = arith.constant 0 : i32
    %9 = arith.cmpi eq, %arg2, %c0_i32_8 : i32
    %10 = arith.extui %9 : i1 to i32
    %c0_i32_9 = arith.constant 0 : i32
    %11 = arith.cmpi ne, %10, %c0_i32_9 : i32
    scf.if %11 {
      %c0_10 = arith.constant 0 : index
      %c0_11 = arith.constant 0 : index
      %12 = vector.load %arg8[%c0_10, %c0_11] : memref<32x128xf32, #tpu.memory_space<vmem>>, vector<32x128xf32>
      %c0_12 = arith.constant 0 : index
      %c0_13 = arith.constant 0 : index
      %13 = vector.load %arg5[%c0_12, %c0_13] : memref<1x128xf32, #tpu.memory_space<vmem>>, vector<1x128xf32>
      %14 = vector.broadcast %13 : vector<1x128xf32> to vector<32x128xf32>
      %15 = arith.mulf %12, %14 : vector<32x128xf32>
      %c0_14 = arith.constant 0 : index
      %c0_15 = arith.constant 0 : index
      %16 = vector.load %arg6[%c0_14, %c0_15] : memref<1x128xf32, #tpu.memory_space<vmem>>, vector<1x128xf32>
      %17 = vector.broadcast %16 : vector<1x128xf32> to vector<32x128xf32>
      %18 = arith.addf %15, %17 : vector<32x128xf32>
      %cst_16 = arith.constant 0.000000e+00 : f32
      %19 = vector.broadcast %cst_16 : f32 to vector<32x128xf32>
      %20 = arith.maximumf %18, %19 : vector<32x128xf32>
      %21 = arith.truncf %20 : vector<32x128xf32> to vector<32x128xbf16>
      %c0_17 = arith.constant 0 : index
      %c0_18 = arith.constant 0 : index
      %22 = vector.load %arg7[%c0_17, %c0_18] : memref<32x128xbf16, #tpu.memory_space<vmem>>, vector<32x128xbf16>
      tpu.vector_store %arg7[%c0_17, %c0_18], %21 {strides = array<i32>} : memref<32x128xbf16, #tpu.memory_space<vmem>>, vector<32x128xbf16>,
    } else {
    }
    return
  }
  func.func @transform_0(%arg0: i32, %arg1: i32, %arg2: i32) -> (i32, i32) {
    %c0_i32 = arith.constant 0 : i32
    return %arg0, %arg2 : i32, i32
  }
  func.func @transform_1(%arg0: i32, %arg1: i32, %arg2: i32) -> (i32, i32) {
    %c0_i32 = arith.constant 0 : i32
    return %arg2, %arg1 : i32, i32
  }
  func.func @transform_2(%arg0: i32, %arg1: i32, %arg2: i32) -> (i32, i32) {
    %c0_i32 = arith.constant 0 : i32
    %c0_i32_0 = arith.constant 0 : i32
    return %c0_i32, %arg1 : i32, i32
  }
  func.func @transform_3(%arg0: i32, %arg1: i32, %arg2: i32) -> (i32, i32) {
    %c0_i32 = arith.constant 0 : i32
    %c0_i32_0 = arith.constant 0 : i32
    return %c0_i32, %arg1 : i32, i32
  }
  func.func @transform_4(%arg0: i32, %arg1: i32, %arg2: i32) -> (i32, i32) {
    %c0_i32 = arith.constant 0 : i32
    return %arg0, %arg1 : i32, i32
  }
}

module attributes {stable_mosaic.version = 11 : i64} {
  func.func @_mm_kernel(%arg0: i32, %arg1: i32, %arg2: i32, %arg3: memref<32x64xbf16, #tpu.memory_space<vmem>>, %arg4: memref<64x128xbf16, #tpu.memory_space<vmem>>, %arg5: memref<1x128xf32, #tpu.memory_space<vmem>>, %arg6: memref<1x128xf32, #tpu.memory_space<vmem>>, %arg7: memref<32x128xbf16, #tpu.memory_space<vmem>>, %arg8: memref<32x128xf32, #tpu.memory_space<vmem>>) attributes {dimension_semantics = [#tpu.dimension_semantics<parallel>, #tpu.dimension_semantics<parallel>, #tpu.dimension_semantics<arbitrary>], iteration_bounds = array<i64: 1, 1, 1>, scalar_prefetch = 0 : i64, scratch_operands = 1 : i64, tpu.core_type = #tpu.core_type<tc>, window_params = [{transform_indices = @transform_0, window_bounds = array<i64: 32, 64>}, {transform_indices = @transform_1, window_bounds = array<i64: 64, 128>}, {transform_indices = @transform_2, window_bounds = array<i64: 1, 128>}, {transform_indices = @transform_3, window_bounds = array<i64: 1, 128>}, {transform_indices = @transform_4, window_bounds = array<i64: 32, 128>}]} {
    %c0_i32 = arith.constant 0 : i32
    %0 = arith.cmpi eq, %arg2, %c0_i32 : i32
    %1 = arith.extui %0 : i1 to i32
    %c0_i32_0 = arith.constant 0 : i32
    %2 = arith.cmpi ne, %1, %c0_i32_0 : i32
    scf.if %2 {
      %cst_10 = arith.constant 0.000000e+00 : f32
      %12 = vector.broadcast %cst_10 : f32 to vector<32x128xf32>
      %c0_11 = arith.constant 0 : index
      %c0_12 = arith.constant 0 : index
      %13 = vector.load %arg8[%c0_11, %c0_12] : memref<32x128xf32, #tpu.memory_space<vmem>>, vector<32x128xf32>
      tpu.vector_store %arg8[%c0_11, %c0_12], %12 {strides = array<i32>} : memref<32x128xf32, #tpu.memory_space<vmem>>, vector<32x128xf32>,
    } else {
    }
    %c0 = arith.constant 0 : index
    %c0_1 = arith.constant 0 : index
    %3 = vector.load %arg8[%c0, %c0_1] : memref<32x128xf32, #tpu.memory_space<vmem>>, vector<32x128xf32>
    %c0_2 = arith.constant 0 : index
    %c0_3 = arith.constant 0 : index
    %4 = vector.load %arg3[%c0_2, %c0_3] : memref<32x64xbf16, #tpu.memory_space<vmem>>, vector<32x64xbf16>
    %c0_4 = arith.constant 0 : index
    %c0_5 = arith.constant 0 : index
    %5 = vector.load %arg4[%c0_4, %c0_5] : memref<64x128xbf16, #tpu.memory_space<vmem>>, vector<64x128xbf16>
    %cst = arith.constant dense<0.000000e+00> : vector<32x128xf32>
    %6 = tpu.matmul %4, %5, %cst {dimension_numbers = #tpu.dot_dimension_numbers<[1], [0], [0], [1], [0, 0, 1, 1], [], []>} : vector<32x64xbf16>, vector<64x128xbf16>, vector<32x128xf32> -> vector<32x128xf32>
    %7 = arith.addf %3, %6 : vector<32x128xf32>
    %c0_6 = arith.constant 0 : index
    %c0_7 = arith.constant 0 : index
    %8 = vector.load %arg8[%c0_6, %c0_7] : memref<32x128xf32, #tpu.memory_space<vmem>>, vector<32x128xf32>
    tpu.vector_store %arg8[%c0_6, %c0_7], %7 {strides = array<i32>} : memref<32x128xf32, #tpu.memory_space<vmem>>, vector<32x128xf32>,
    %c0_i32_8 = arith.constant 0 : i32
    %9 = arith.cmpi eq, %arg2, %c0_i32_8 : i32
    %10 = arith.extui %9 : i1 to i32
    %c0_i32_9 = arith.constant 0 : i32
    %11 = arith.cmpi ne, %10, %c0_i32_9 : i32
    scf.if %11 {
      %c0_10 = arith.constant 0 : index
      %c0_11 = arith.constant 0 : index
      %12 = vector.load %arg8[%c0_10, %c0_11] : memref<32x128xf32, #tpu.memory_space<vmem>>, vector<32x128xf32>
      %c0_12 = arith.constant 0 : index
      %c0_13 = arith.constant 0 : index
      %13 = vector.load %arg5[%c0_12, %c0_13] : memref<1x128xf32, #tpu.memory_space<vmem>>, vector<1x128xf32>
      %14 = vector.broadcast %13 : vector<1x128xf32> to vector<32x128xf32>
      %15 = arith.mulf %12, %14 : vector<32x128xf32>
      %c0_14 = arith.constant 0 : index
      %c0_15 = arith.constant 0 : index
      %16 = vector.load %arg6[%c0_14, %c0_15] : memref<1x128xf32, #tpu.memory_space<vmem>>, vector<1x128xf32>
      %17 = vector.broadcast %16 : vector<1x128xf32> to vector<32x128xf32>
      %18 = arith.addf %15, %17 : vector<32x128xf32>
      %19 = arith.truncf %18 : vector<32x128xf32> to vector<32x128xbf16>
      %c0_16 = arith.constant 0 : index
      %c0_17 = arith.constant 0 : index
      %20 = vector.load %arg7[%c0_16, %c0_17] : memref<32x128xbf16, #tpu.memory_space<vmem>>, vector<32x128xbf16>
      tpu.vector_store %arg7[%c0_16, %c0_17], %19 {strides = array<i32>} : memref<32x128xbf16, #tpu.memory_space<vmem>>, vector<32x128xbf16>,
    } else {
    }
    return
  }
  func.func @transform_0(%arg0: i32, %arg1: i32, %arg2: i32) -> (i32, i32) {
    %c0_i32 = arith.constant 0 : i32
    return %arg0, %arg2 : i32, i32
  }
  func.func @transform_1(%arg0: i32, %arg1: i32, %arg2: i32) -> (i32, i32) {
    %c0_i32 = arith.constant 0 : i32
    return %arg2, %arg1 : i32, i32
  }
  func.func @transform_2(%arg0: i32, %arg1: i32, %arg2: i32) -> (i32, i32) {
    %c0_i32 = arith.constant 0 : i32
    %c0_i32_0 = arith.constant 0 : i32
    return %c0_i32, %arg1 : i32, i32
  }
  func.func @transform_3(%arg0: i32, %arg1: i32, %arg2: i32) -> (i32, i32) {
    %c0_i32 = arith.constant 0 : i32
    %c0_i32_0 = arith.constant 0 : i32
    return %c0_i32, %arg1 : i32, i32
  }
  func.func @transform_4(%arg0: i32, %arg1: i32, %arg2: i32) -> (i32, i32) {
    %c0_i32 = arith.constant 0 : i32
    return %arg0, %arg1 : i32, i32
  }
}

module attributes {stable_mosaic.version = 11 : i64} {
  func.func @_mm_res_kernel(%arg0: i32, %arg1: i32, %arg2: i32, %arg3: memref<32x384xbf16, #tpu.memory_space<vmem>>, %arg4: memref<384x128xbf16, #tpu.memory_space<vmem>>, %arg5: memref<1x128xf32, #tpu.memory_space<vmem>>, %arg6: memref<1x128xf32, #tpu.memory_space<vmem>>, %arg7: memref<32x128xbf16, #tpu.memory_space<vmem>>, %arg8: memref<32x128xbf16, #tpu.memory_space<vmem>>, %arg9: memref<32x128xf32, #tpu.memory_space<vmem>>) attributes {dimension_semantics = [#tpu.dimension_semantics<parallel>, #tpu.dimension_semantics<parallel>, #tpu.dimension_semantics<arbitrary>], iteration_bounds = array<i64: 1, 1, 3>, scalar_prefetch = 0 : i64, scratch_operands = 1 : i64, tpu.core_type = #tpu.core_type<tc>, window_params = [{transform_indices = @transform_0, window_bounds = array<i64: 32, 384>}, {transform_indices = @transform_1, window_bounds = array<i64: 384, 128>}, {transform_indices = @transform_2, window_bounds = array<i64: 1, 128>}, {transform_indices = @transform_3, window_bounds = array<i64: 1, 128>}, {transform_indices = @transform_4, window_bounds = array<i64: 32, 128>}, {transform_indices = @transform_5, window_bounds = array<i64: 32, 128>}]} {
    %c0_i32 = arith.constant 0 : i32
    %0 = arith.cmpi eq, %arg2, %c0_i32 : i32
    %1 = arith.extui %0 : i1 to i32
    %c0_i32_0 = arith.constant 0 : i32
    %2 = arith.cmpi ne, %1, %c0_i32_0 : i32
    scf.if %2 {
      %cst_9 = arith.constant 0.000000e+00 : f32
      %12 = vector.broadcast %cst_9 : f32 to vector<32x128xf32>
      %c0_10 = arith.constant 0 : index
      %c0_11 = arith.constant 0 : index
      %13 = vector.load %arg9[%c0_10, %c0_11] : memref<32x128xf32, #tpu.memory_space<vmem>>, vector<32x128xf32>
      tpu.vector_store %arg9[%c0_10, %c0_11], %12 {strides = array<i32>} : memref<32x128xf32, #tpu.memory_space<vmem>>, vector<32x128xf32>,
    } else {
    }
    %c0 = arith.constant 0 : index
    %c0_1 = arith.constant 0 : index
    %3 = vector.load %arg9[%c0, %c0_1] : memref<32x128xf32, #tpu.memory_space<vmem>>, vector<32x128xf32>
    %c0_2 = arith.constant 0 : index
    %c0_3 = arith.constant 0 : index
    %4 = vector.load %arg3[%c0_2, %c0_3] : memref<32x384xbf16, #tpu.memory_space<vmem>>, vector<32x384xbf16>
    %c0_4 = arith.constant 0 : index
    %c0_5 = arith.constant 0 : index
    %5 = vector.load %arg4[%c0_4, %c0_5] : memref<384x128xbf16, #tpu.memory_space<vmem>>, vector<384x128xbf16>
    %cst = arith.constant dense<0.000000e+00> : vector<32x128xf32>
    %6 = tpu.matmul %4, %5, %cst {dimension_numbers = #tpu.dot_dimension_numbers<[1], [0], [0], [1], [0, 0, 1, 1], [], []>} : vector<32x384xbf16>, vector<384x128xbf16>, vector<32x128xf32> -> vector<32x128xf32>
    %7 = arith.addf %3, %6 : vector<32x128xf32>
    %c0_6 = arith.constant 0 : index
    %c0_7 = arith.constant 0 : index
    %8 = vector.load %arg9[%c0_6, %c0_7] : memref<32x128xf32, #tpu.memory_space<vmem>>, vector<32x128xf32>
    tpu.vector_store %arg9[%c0_6, %c0_7], %7 {strides = array<i32>} : memref<32x128xf32, #tpu.memory_space<vmem>>, vector<32x128xf32>,
    %c2_i32 = arith.constant 2 : i32
    %9 = arith.cmpi eq, %arg2, %c2_i32 : i32
    %10 = arith.extui %9 : i1 to i32
    %c0_i32_8 = arith.constant 0 : i32
    %11 = arith.cmpi ne, %10, %c0_i32_8 : i32
    scf.if %11 {
      %c0_9 = arith.constant 0 : index
      %c0_10 = arith.constant 0 : index
      %12 = vector.load %arg9[%c0_9, %c0_10] : memref<32x128xf32, #tpu.memory_space<vmem>>, vector<32x128xf32>
      %c0_11 = arith.constant 0 : index
      %c0_12 = arith.constant 0 : index
      %13 = vector.load %arg5[%c0_11, %c0_12] : memref<1x128xf32, #tpu.memory_space<vmem>>, vector<1x128xf32>
      %14 = vector.broadcast %13 : vector<1x128xf32> to vector<32x128xf32>
      %15 = arith.mulf %12, %14 : vector<32x128xf32>
      %c0_13 = arith.constant 0 : index
      %c0_14 = arith.constant 0 : index
      %16 = vector.load %arg6[%c0_13, %c0_14] : memref<1x128xf32, #tpu.memory_space<vmem>>, vector<1x128xf32>
      %17 = vector.broadcast %16 : vector<1x128xf32> to vector<32x128xf32>
      %18 = arith.addf %15, %17 : vector<32x128xf32>
      %c0_15 = arith.constant 0 : index
      %c0_16 = arith.constant 0 : index
      %19 = vector.load %arg7[%c0_15, %c0_16] : memref<32x128xbf16, #tpu.memory_space<vmem>>, vector<32x128xbf16>
      %20 = arith.extf %19 : vector<32x128xbf16> to vector<32x128xf32>
      %21 = arith.addf %18, %20 : vector<32x128xf32>
      %cst_17 = arith.constant 0.000000e+00 : f32
      %22 = vector.broadcast %cst_17 : f32 to vector<32x128xf32>
      %23 = arith.maximumf %21, %22 : vector<32x128xf32>
      %24 = arith.truncf %23 : vector<32x128xf32> to vector<32x128xbf16>
      %c0_18 = arith.constant 0 : index
      %c0_19 = arith.constant 0 : index
      %25 = vector.load %arg8[%c0_18, %c0_19] : memref<32x128xbf16, #tpu.memory_space<vmem>>, vector<32x128xbf16>
      tpu.vector_store %arg8[%c0_18, %c0_19], %24 {strides = array<i32>} : memref<32x128xbf16, #tpu.memory_space<vmem>>, vector<32x128xbf16>,
    } else {
    }
    return
  }
  func.func @transform_0(%arg0: i32, %arg1: i32, %arg2: i32) -> (i32, i32) {
    %c0_i32 = arith.constant 0 : i32
    return %arg0, %arg2 : i32, i32
  }
  func.func @transform_1(%arg0: i32, %arg1: i32, %arg2: i32) -> (i32, i32) {
    %c0_i32 = arith.constant 0 : i32
    return %arg2, %arg1 : i32, i32
  }
  func.func @transform_2(%arg0: i32, %arg1: i32, %arg2: i32) -> (i32, i32) {
    %c0_i32 = arith.constant 0 : i32
    %c0_i32_0 = arith.constant 0 : i32
    return %c0_i32, %arg1 : i32, i32
  }
  func.func @transform_3(%arg0: i32, %arg1: i32, %arg2: i32) -> (i32, i32) {
    %c0_i32 = arith.constant 0 : i32
    %c0_i32_0 = arith.constant 0 : i32
    return %c0_i32, %arg1 : i32, i32
  }
  func.func @transform_4(%arg0: i32, %arg1: i32, %arg2: i32) -> (i32, i32) {
    %c0_i32 = arith.constant 0 : i32
    return %arg0, %arg1 : i32, i32
  }
  func.func @transform_5(%arg0: i32, %arg1: i32, %arg2: i32) -> (i32, i32) {
    %c0_i32 = arith.constant 0 : i32
    return %arg0, %arg1 : i32, i32
  }
}

module attributes {stable_mosaic.version = 11 : i64} {
  func.func @_mm_kernel(%arg0: i32, %arg1: i32, %arg2: i32, %arg3: memref<32x384xbf16, #tpu.memory_space<vmem>>, %arg4: memref<384x128xbf16, #tpu.memory_space<vmem>>, %arg5: memref<1x128xf32, #tpu.memory_space<vmem>>, %arg6: memref<1x128xf32, #tpu.memory_space<vmem>>, %arg7: memref<32x128xbf16, #tpu.memory_space<vmem>>, %arg8: memref<32x128xf32, #tpu.memory_space<vmem>>) attributes {dimension_semantics = [#tpu.dimension_semantics<parallel>, #tpu.dimension_semantics<parallel>, #tpu.dimension_semantics<arbitrary>], iteration_bounds = array<i64: 1, 1, 3>, scalar_prefetch = 0 : i64, scratch_operands = 1 : i64, tpu.core_type = #tpu.core_type<tc>, window_params = [{transform_indices = @transform_0, window_bounds = array<i64: 32, 384>}, {transform_indices = @transform_1, window_bounds = array<i64: 384, 128>}, {transform_indices = @transform_2, window_bounds = array<i64: 1, 128>}, {transform_indices = @transform_3, window_bounds = array<i64: 1, 128>}, {transform_indices = @transform_4, window_bounds = array<i64: 32, 128>}]} {
    %c0_i32 = arith.constant 0 : i32
    %0 = arith.cmpi eq, %arg2, %c0_i32 : i32
    %1 = arith.extui %0 : i1 to i32
    %c0_i32_0 = arith.constant 0 : i32
    %2 = arith.cmpi ne, %1, %c0_i32_0 : i32
    scf.if %2 {
      %cst_9 = arith.constant 0.000000e+00 : f32
      %12 = vector.broadcast %cst_9 : f32 to vector<32x128xf32>
      %c0_10 = arith.constant 0 : index
      %c0_11 = arith.constant 0 : index
      %13 = vector.load %arg8[%c0_10, %c0_11] : memref<32x128xf32, #tpu.memory_space<vmem>>, vector<32x128xf32>
      tpu.vector_store %arg8[%c0_10, %c0_11], %12 {strides = array<i32>} : memref<32x128xf32, #tpu.memory_space<vmem>>, vector<32x128xf32>,
    } else {
    }
    %c0 = arith.constant 0 : index
    %c0_1 = arith.constant 0 : index
    %3 = vector.load %arg8[%c0, %c0_1] : memref<32x128xf32, #tpu.memory_space<vmem>>, vector<32x128xf32>
    %c0_2 = arith.constant 0 : index
    %c0_3 = arith.constant 0 : index
    %4 = vector.load %arg3[%c0_2, %c0_3] : memref<32x384xbf16, #tpu.memory_space<vmem>>, vector<32x384xbf16>
    %c0_4 = arith.constant 0 : index
    %c0_5 = arith.constant 0 : index
    %5 = vector.load %arg4[%c0_4, %c0_5] : memref<384x128xbf16, #tpu.memory_space<vmem>>, vector<384x128xbf16>
    %cst = arith.constant dense<0.000000e+00> : vector<32x128xf32>
    %6 = tpu.matmul %4, %5, %cst {dimension_numbers = #tpu.dot_dimension_numbers<[1], [0], [0], [1], [0, 0, 1, 1], [], []>} : vector<32x384xbf16>, vector<384x128xbf16>, vector<32x128xf32> -> vector<32x128xf32>
    %7 = arith.addf %3, %6 : vector<32x128xf32>
    %c0_6 = arith.constant 0 : index
    %c0_7 = arith.constant 0 : index
    %8 = vector.load %arg8[%c0_6, %c0_7] : memref<32x128xf32, #tpu.memory_space<vmem>>, vector<32x128xf32>
    tpu.vector_store %arg8[%c0_6, %c0_7], %7 {strides = array<i32>} : memref<32x128xf32, #tpu.memory_space<vmem>>, vector<32x128xf32>,
    %c2_i32 = arith.constant 2 : i32
    %9 = arith.cmpi eq, %arg2, %c2_i32 : i32
    %10 = arith.extui %9 : i1 to i32
    %c0_i32_8 = arith.constant 0 : i32
    %11 = arith.cmpi ne, %10, %c0_i32_8 : i32
    scf.if %11 {
      %c0_9 = arith.constant 0 : index
      %c0_10 = arith.constant 0 : index
      %12 = vector.load %arg8[%c0_9, %c0_10] : memref<32x128xf32, #tpu.memory_space<vmem>>, vector<32x128xf32>
      %c0_11 = arith.constant 0 : index
      %c0_12 = arith.constant 0 : index
      %13 = vector.load %arg5[%c0_11, %c0_12] : memref<1x128xf32, #tpu.memory_space<vmem>>, vector<1x128xf32>
      %14 = vector.broadcast %13 : vector<1x128xf32> to vector<32x128xf32>
      %15 = arith.mulf %12, %14 : vector<32x128xf32>
      %c0_13 = arith.constant 0 : index
      %c0_14 = arith.constant 0 : index
      %16 = vector.load %arg6[%c0_13, %c0_14] : memref<1x128xf32, #tpu.memory_space<vmem>>, vector<1x128xf32>
      %17 = vector.broadcast %16 : vector<1x128xf32> to vector<32x128xf32>
      %18 = arith.addf %15, %17 : vector<32x128xf32>
      %cst_15 = arith.constant 0.000000e+00 : f32
      %19 = vector.broadcast %cst_15 : f32 to vector<32x128xf32>
      %20 = arith.maximumf %18, %19 : vector<32x128xf32>
      %21 = arith.truncf %20 : vector<32x128xf32> to vector<32x128xbf16>
      %c0_16 = arith.constant 0 : index
      %c0_17 = arith.constant 0 : index
      %22 = vector.load %arg7[%c0_16, %c0_17] : memref<32x128xbf16, #tpu.memory_space<vmem>>, vector<32x128xbf16>
      tpu.vector_store %arg7[%c0_16, %c0_17], %21 {strides = array<i32>} : memref<32x128xbf16, #tpu.memory_space<vmem>>, vector<32x128xbf16>,
    } else {
    }
    return
  }
  func.func @transform_0(%arg0: i32, %arg1: i32, %arg2: i32) -> (i32, i32) {
    %c0_i32 = arith.constant 0 : i32
    return %arg0, %arg2 : i32, i32
  }
  func.func @transform_1(%arg0: i32, %arg1: i32, %arg2: i32) -> (i32, i32) {
    %c0_i32 = arith.constant 0 : i32
    return %arg2, %arg1 : i32, i32
  }
  func.func @transform_2(%arg0: i32, %arg1: i32, %arg2: i32) -> (i32, i32) {
    %c0_i32 = arith.constant 0 : i32
    %c0_i32_0 = arith.constant 0 : i32
    return %c0_i32, %arg1 : i32, i32
  }
  func.func @transform_3(%arg0: i32, %arg1: i32, %arg2: i32) -> (i32, i32) {
    %c0_i32 = arith.constant 0 : i32
    %c0_i32_0 = arith.constant 0 : i32
    return %c0_i32, %arg1 : i32, i32
  }
  func.func @transform_4(%arg0: i32, %arg1: i32, %arg2: i32) -> (i32, i32) {
    %c0_i32 = arith.constant 0 : i32
    return %arg0, %arg1 : i32, i32
  }
}

module attributes {stable_mosaic.version = 11 : i64} {
  func.func @_mm_kernel(%arg0: i32, %arg1: i32, %arg2: i32, %arg3: memref<8x384xbf16, #tpu.memory_space<vmem>>, %arg4: memref<384x256xbf16, #tpu.memory_space<vmem>>, %arg5: memref<1x256xf32, #tpu.memory_space<vmem>>, %arg6: memref<1x256xf32, #tpu.memory_space<vmem>>, %arg7: memref<8x256xbf16, #tpu.memory_space<vmem>>, %arg8: memref<8x256xf32, #tpu.memory_space<vmem>>) attributes {dimension_semantics = [#tpu.dimension_semantics<parallel>, #tpu.dimension_semantics<parallel>, #tpu.dimension_semantics<arbitrary>], iteration_bounds = array<i64: 1, 1, 3>, scalar_prefetch = 0 : i64, scratch_operands = 1 : i64, tpu.core_type = #tpu.core_type<tc>, window_params = [{transform_indices = @transform_0, window_bounds = array<i64: 8, 384>}, {transform_indices = @transform_1, window_bounds = array<i64: 384, 256>}, {transform_indices = @transform_2, window_bounds = array<i64: 1, 256>}, {transform_indices = @transform_3, window_bounds = array<i64: 1, 256>}, {transform_indices = @transform_4, window_bounds = array<i64: 8, 256>}]} {
    %c0_i32 = arith.constant 0 : i32
    %0 = arith.cmpi eq, %arg2, %c0_i32 : i32
    %1 = arith.extui %0 : i1 to i32
    %c0_i32_0 = arith.constant 0 : i32
    %2 = arith.cmpi ne, %1, %c0_i32_0 : i32
    scf.if %2 {
      %cst_9 = arith.constant 0.000000e+00 : f32
      %12 = vector.broadcast %cst_9 : f32 to vector<8x256xf32>
      %c0_10 = arith.constant 0 : index
      %c0_11 = arith.constant 0 : index
      %13 = vector.load %arg8[%c0_10, %c0_11] : memref<8x256xf32, #tpu.memory_space<vmem>>, vector<8x256xf32>
      tpu.vector_store %arg8[%c0_10, %c0_11], %12 {strides = array<i32>} : memref<8x256xf32, #tpu.memory_space<vmem>>, vector<8x256xf32>,
    } else {
    }
    %c0 = arith.constant 0 : index
    %c0_1 = arith.constant 0 : index
    %3 = vector.load %arg8[%c0, %c0_1] : memref<8x256xf32, #tpu.memory_space<vmem>>, vector<8x256xf32>
    %c0_2 = arith.constant 0 : index
    %c0_3 = arith.constant 0 : index
    %4 = vector.load %arg3[%c0_2, %c0_3] : memref<8x384xbf16, #tpu.memory_space<vmem>>, vector<8x384xbf16>
    %c0_4 = arith.constant 0 : index
    %c0_5 = arith.constant 0 : index
    %5 = vector.load %arg4[%c0_4, %c0_5] : memref<384x256xbf16, #tpu.memory_space<vmem>>, vector<384x256xbf16>
    %cst = arith.constant dense<0.000000e+00> : vector<8x256xf32>
    %6 = tpu.matmul %4, %5, %cst {dimension_numbers = #tpu.dot_dimension_numbers<[1], [0], [0], [1], [0, 0, 1, 1], [], []>} : vector<8x384xbf16>, vector<384x256xbf16>, vector<8x256xf32> -> vector<8x256xf32>
    %7 = arith.addf %3, %6 : vector<8x256xf32>
    %c0_6 = arith.constant 0 : index
    %c0_7 = arith.constant 0 : index
    %8 = vector.load %arg8[%c0_6, %c0_7] : memref<8x256xf32, #tpu.memory_space<vmem>>, vector<8x256xf32>
    tpu.vector_store %arg8[%c0_6, %c0_7], %7 {strides = array<i32>} : memref<8x256xf32, #tpu.memory_space<vmem>>, vector<8x256xf32>,
    %c2_i32 = arith.constant 2 : i32
    %9 = arith.cmpi eq, %arg2, %c2_i32 : i32
    %10 = arith.extui %9 : i1 to i32
    %c0_i32_8 = arith.constant 0 : i32
    %11 = arith.cmpi ne, %10, %c0_i32_8 : i32
    scf.if %11 {
      %c0_9 = arith.constant 0 : index
      %c0_10 = arith.constant 0 : index
      %12 = vector.load %arg8[%c0_9, %c0_10] : memref<8x256xf32, #tpu.memory_space<vmem>>, vector<8x256xf32>
      %c0_11 = arith.constant 0 : index
      %c0_12 = arith.constant 0 : index
      %13 = vector.load %arg5[%c0_11, %c0_12] : memref<1x256xf32, #tpu.memory_space<vmem>>, vector<1x256xf32>
      %14 = vector.broadcast %13 : vector<1x256xf32> to vector<8x256xf32>
      %15 = arith.mulf %12, %14 : vector<8x256xf32>
      %c0_13 = arith.constant 0 : index
      %c0_14 = arith.constant 0 : index
      %16 = vector.load %arg6[%c0_13, %c0_14] : memref<1x256xf32, #tpu.memory_space<vmem>>, vector<1x256xf32>
      %17 = vector.broadcast %16 : vector<1x256xf32> to vector<8x256xf32>
      %18 = arith.addf %15, %17 : vector<8x256xf32>
      %cst_15 = arith.constant 0.000000e+00 : f32
      %19 = vector.broadcast %cst_15 : f32 to vector<8x256xf32>
      %20 = arith.maximumf %18, %19 : vector<8x256xf32>
      %21 = arith.truncf %20 : vector<8x256xf32> to vector<8x256xbf16>
      %c0_16 = arith.constant 0 : index
      %c0_17 = arith.constant 0 : index
      %22 = vector.load %arg7[%c0_16, %c0_17] : memref<8x256xbf16, #tpu.memory_space<vmem>>, vector<8x256xbf16>
      tpu.vector_store %arg7[%c0_16, %c0_17], %21 {strides = array<i32>} : memref<8x256xbf16, #tpu.memory_space<vmem>>, vector<8x256xbf16>,
    } else {
    }
    return
  }
  func.func @transform_0(%arg0: i32, %arg1: i32, %arg2: i32) -> (i32, i32) {
    %c0_i32 = arith.constant 0 : i32
    return %arg0, %arg2 : i32, i32
  }
  func.func @transform_1(%arg0: i32, %arg1: i32, %arg2: i32) -> (i32, i32) {
    %c0_i32 = arith.constant 0 : i32
    return %arg2, %arg1 : i32, i32
  }
  func.func @transform_2(%arg0: i32, %arg1: i32, %arg2: i32) -> (i32, i32) {
    %c0_i32 = arith.constant 0 : i32
    %c0_i32_0 = arith.constant 0 : i32
    return %c0_i32, %arg1 : i32, i32
  }
  func.func @transform_3(%arg0: i32, %arg1: i32, %arg2: i32) -> (i32, i32) {
    %c0_i32 = arith.constant 0 : i32
    %c0_i32_0 = arith.constant 0 : i32
    return %c0_i32, %arg1 : i32, i32
  }
  func.func @transform_4(%arg0: i32, %arg1: i32, %arg2: i32) -> (i32, i32) {
    %c0_i32 = arith.constant 0 : i32
    return %arg0, %arg1 : i32, i32
  }
}

module attributes {stable_mosaic.version = 11 : i64} {
  func.func @_mm_kernel(%arg0: i32, %arg1: i32, %arg2: i32, %arg3: memref<8x128xbf16, #tpu.memory_space<vmem>>, %arg4: memref<128x256xbf16, #tpu.memory_space<vmem>>, %arg5: memref<1x256xf32, #tpu.memory_space<vmem>>, %arg6: memref<1x256xf32, #tpu.memory_space<vmem>>, %arg7: memref<8x256xbf16, #tpu.memory_space<vmem>>, %arg8: memref<8x256xf32, #tpu.memory_space<vmem>>) attributes {dimension_semantics = [#tpu.dimension_semantics<parallel>, #tpu.dimension_semantics<parallel>, #tpu.dimension_semantics<arbitrary>], iteration_bounds = array<i64: 1, 1, 1>, scalar_prefetch = 0 : i64, scratch_operands = 1 : i64, tpu.core_type = #tpu.core_type<tc>, window_params = [{transform_indices = @transform_0, window_bounds = array<i64: 8, 128>}, {transform_indices = @transform_1, window_bounds = array<i64: 128, 256>}, {transform_indices = @transform_2, window_bounds = array<i64: 1, 256>}, {transform_indices = @transform_3, window_bounds = array<i64: 1, 256>}, {transform_indices = @transform_4, window_bounds = array<i64: 8, 256>}]} {
    %c0_i32 = arith.constant 0 : i32
    %0 = arith.cmpi eq, %arg2, %c0_i32 : i32
    %1 = arith.extui %0 : i1 to i32
    %c0_i32_0 = arith.constant 0 : i32
    %2 = arith.cmpi ne, %1, %c0_i32_0 : i32
    scf.if %2 {
      %cst_10 = arith.constant 0.000000e+00 : f32
      %12 = vector.broadcast %cst_10 : f32 to vector<8x256xf32>
      %c0_11 = arith.constant 0 : index
      %c0_12 = arith.constant 0 : index
      %13 = vector.load %arg8[%c0_11, %c0_12] : memref<8x256xf32, #tpu.memory_space<vmem>>, vector<8x256xf32>
      tpu.vector_store %arg8[%c0_11, %c0_12], %12 {strides = array<i32>} : memref<8x256xf32, #tpu.memory_space<vmem>>, vector<8x256xf32>,
    } else {
    }
    %c0 = arith.constant 0 : index
    %c0_1 = arith.constant 0 : index
    %3 = vector.load %arg8[%c0, %c0_1] : memref<8x256xf32, #tpu.memory_space<vmem>>, vector<8x256xf32>
    %c0_2 = arith.constant 0 : index
    %c0_3 = arith.constant 0 : index
    %4 = vector.load %arg3[%c0_2, %c0_3] : memref<8x128xbf16, #tpu.memory_space<vmem>>, vector<8x128xbf16>
    %c0_4 = arith.constant 0 : index
    %c0_5 = arith.constant 0 : index
    %5 = vector.load %arg4[%c0_4, %c0_5] : memref<128x256xbf16, #tpu.memory_space<vmem>>, vector<128x256xbf16>
    %cst = arith.constant dense<0.000000e+00> : vector<8x256xf32>
    %6 = tpu.matmul %4, %5, %cst {dimension_numbers = #tpu.dot_dimension_numbers<[1], [0], [0], [1], [0, 0, 1, 1], [], []>} : vector<8x128xbf16>, vector<128x256xbf16>, vector<8x256xf32> -> vector<8x256xf32>
    %7 = arith.addf %3, %6 : vector<8x256xf32>
    %c0_6 = arith.constant 0 : index
    %c0_7 = arith.constant 0 : index
    %8 = vector.load %arg8[%c0_6, %c0_7] : memref<8x256xf32, #tpu.memory_space<vmem>>, vector<8x256xf32>
    tpu.vector_store %arg8[%c0_6, %c0_7], %7 {strides = array<i32>} : memref<8x256xf32, #tpu.memory_space<vmem>>, vector<8x256xf32>,
    %c0_i32_8 = arith.constant 0 : i32
    %9 = arith.cmpi eq, %arg2, %c0_i32_8 : i32
    %10 = arith.extui %9 : i1 to i32
    %c0_i32_9 = arith.constant 0 : i32
    %11 = arith.cmpi ne, %10, %c0_i32_9 : i32
    scf.if %11 {
      %c0_10 = arith.constant 0 : index
      %c0_11 = arith.constant 0 : index
      %12 = vector.load %arg8[%c0_10, %c0_11] : memref<8x256xf32, #tpu.memory_space<vmem>>, vector<8x256xf32>
      %c0_12 = arith.constant 0 : index
      %c0_13 = arith.constant 0 : index
      %13 = vector.load %arg5[%c0_12, %c0_13] : memref<1x256xf32, #tpu.memory_space<vmem>>, vector<1x256xf32>
      %14 = vector.broadcast %13 : vector<1x256xf32> to vector<8x256xf32>
      %15 = arith.mulf %12, %14 : vector<8x256xf32>
      %c0_14 = arith.constant 0 : index
      %c0_15 = arith.constant 0 : index
      %16 = vector.load %arg6[%c0_14, %c0_15] : memref<1x256xf32, #tpu.memory_space<vmem>>, vector<1x256xf32>
      %17 = vector.broadcast %16 : vector<1x256xf32> to vector<8x256xf32>
      %18 = arith.addf %15, %17 : vector<8x256xf32>
      %19 = arith.truncf %18 : vector<8x256xf32> to vector<8x256xbf16>
      %c0_16 = arith.constant 0 : index
      %c0_17 = arith.constant 0 : index
      %20 = vector.load %arg7[%c0_16, %c0_17] : memref<8x256xbf16, #tpu.memory_space<vmem>>, vector<8x256xbf16>
      tpu.vector_store %arg7[%c0_16, %c0_17], %19 {strides = array<i32>} : memref<8x256xbf16, #tpu.memory_space<vmem>>, vector<8x256xbf16>,
    } else {
    }
    return
  }
  func.func @transform_0(%arg0: i32, %arg1: i32, %arg2: i32) -> (i32, i32) {
    %c0_i32 = arith.constant 0 : i32
    return %arg0, %arg2 : i32, i32
  }
  func.func @transform_1(%arg0: i32, %arg1: i32, %arg2: i32) -> (i32, i32) {
    %c0_i32 = arith.constant 0 : i32
    return %arg2, %arg1 : i32, i32
  }
  func.func @transform_2(%arg0: i32, %arg1: i32, %arg2: i32) -> (i32, i32) {
    %c0_i32 = arith.constant 0 : i32
    %c0_i32_0 = arith.constant 0 : i32
    return %c0_i32, %arg1 : i32, i32
  }
  func.func @transform_3(%arg0: i32, %arg1: i32, %arg2: i32) -> (i32, i32) {
    %c0_i32 = arith.constant 0 : i32
    %c0_i32_0 = arith.constant 0 : i32
    return %c0_i32, %arg1 : i32, i32
  }
  func.func @transform_4(%arg0: i32, %arg1: i32, %arg2: i32) -> (i32, i32) {
    %c0_i32 = arith.constant 0 : i32
    return %arg0, %arg1 : i32, i32
  }
}

module attributes {stable_mosaic.version = 11 : i64} {
  func.func @_mm_res_kernel(%arg0: i32, %arg1: i32, %arg2: i32, %arg3: memref<8x384xbf16, #tpu.memory_space<vmem>>, %arg4: memref<384x256xbf16, #tpu.memory_space<vmem>>, %arg5: memref<1x256xf32, #tpu.memory_space<vmem>>, %arg6: memref<1x256xf32, #tpu.memory_space<vmem>>, %arg7: memref<8x256xbf16, #tpu.memory_space<vmem>>, %arg8: memref<8x256xbf16, #tpu.memory_space<vmem>>, %arg9: memref<8x256xf32, #tpu.memory_space<vmem>>) attributes {dimension_semantics = [#tpu.dimension_semantics<parallel>, #tpu.dimension_semantics<parallel>, #tpu.dimension_semantics<arbitrary>], iteration_bounds = array<i64: 1, 1, 6>, scalar_prefetch = 0 : i64, scratch_operands = 1 : i64, tpu.core_type = #tpu.core_type<tc>, window_params = [{transform_indices = @transform_0, window_bounds = array<i64: 8, 384>}, {transform_indices = @transform_1, window_bounds = array<i64: 384, 256>}, {transform_indices = @transform_2, window_bounds = array<i64: 1, 256>}, {transform_indices = @transform_3, window_bounds = array<i64: 1, 256>}, {transform_indices = @transform_4, window_bounds = array<i64: 8, 256>}, {transform_indices = @transform_5, window_bounds = array<i64: 8, 256>}]} {
    %c0_i32 = arith.constant 0 : i32
    %0 = arith.cmpi eq, %arg2, %c0_i32 : i32
    %1 = arith.extui %0 : i1 to i32
    %c0_i32_0 = arith.constant 0 : i32
    %2 = arith.cmpi ne, %1, %c0_i32_0 : i32
    scf.if %2 {
      %cst_9 = arith.constant 0.000000e+00 : f32
      %12 = vector.broadcast %cst_9 : f32 to vector<8x256xf32>
      %c0_10 = arith.constant 0 : index
      %c0_11 = arith.constant 0 : index
      %13 = vector.load %arg9[%c0_10, %c0_11] : memref<8x256xf32, #tpu.memory_space<vmem>>, vector<8x256xf32>
      tpu.vector_store %arg9[%c0_10, %c0_11], %12 {strides = array<i32>} : memref<8x256xf32, #tpu.memory_space<vmem>>, vector<8x256xf32>,
    } else {
    }
    %c0 = arith.constant 0 : index
    %c0_1 = arith.constant 0 : index
    %3 = vector.load %arg9[%c0, %c0_1] : memref<8x256xf32, #tpu.memory_space<vmem>>, vector<8x256xf32>
    %c0_2 = arith.constant 0 : index
    %c0_3 = arith.constant 0 : index
    %4 = vector.load %arg3[%c0_2, %c0_3] : memref<8x384xbf16, #tpu.memory_space<vmem>>, vector<8x384xbf16>
    %c0_4 = arith.constant 0 : index
    %c0_5 = arith.constant 0 : index
    %5 = vector.load %arg4[%c0_4, %c0_5] : memref<384x256xbf16, #tpu.memory_space<vmem>>, vector<384x256xbf16>
    %cst = arith.constant dense<0.000000e+00> : vector<8x256xf32>
    %6 = tpu.matmul %4, %5, %cst {dimension_numbers = #tpu.dot_dimension_numbers<[1], [0], [0], [1], [0, 0, 1, 1], [], []>} : vector<8x384xbf16>, vector<384x256xbf16>, vector<8x256xf32> -> vector<8x256xf32>
    %7 = arith.addf %3, %6 : vector<8x256xf32>
    %c0_6 = arith.constant 0 : index
    %c0_7 = arith.constant 0 : index
    %8 = vector.load %arg9[%c0_6, %c0_7] : memref<8x256xf32, #tpu.memory_space<vmem>>, vector<8x256xf32>
    tpu.vector_store %arg9[%c0_6, %c0_7], %7 {strides = array<i32>} : memref<8x256xf32, #tpu.memory_space<vmem>>, vector<8x256xf32>,
    %c5_i32 = arith.constant 5 : i32
    %9 = arith.cmpi eq, %arg2, %c5_i32 : i32
    %10 = arith.extui %9 : i1 to i32
    %c0_i32_8 = arith.constant 0 : i32
    %11 = arith.cmpi ne, %10, %c0_i32_8 : i32
    scf.if %11 {
      %c0_9 = arith.constant 0 : index
      %c0_10 = arith.constant 0 : index
      %12 = vector.load %arg9[%c0_9, %c0_10] : memref<8x256xf32, #tpu.memory_space<vmem>>, vector<8x256xf32>
      %c0_11 = arith.constant 0 : index
      %c0_12 = arith.constant 0 : index
      %13 = vector.load %arg5[%c0_11, %c0_12] : memref<1x256xf32, #tpu.memory_space<vmem>>, vector<1x256xf32>
      %14 = vector.broadcast %13 : vector<1x256xf32> to vector<8x256xf32>
      %15 = arith.mulf %12, %14 : vector<8x256xf32>
      %c0_13 = arith.constant 0 : index
      %c0_14 = arith.constant 0 : index
      %16 = vector.load %arg6[%c0_13, %c0_14] : memref<1x256xf32, #tpu.memory_space<vmem>>, vector<1x256xf32>
      %17 = vector.broadcast %16 : vector<1x256xf32> to vector<8x256xf32>
      %18 = arith.addf %15, %17 : vector<8x256xf32>
      %c0_15 = arith.constant 0 : index
      %c0_16 = arith.constant 0 : index
      %19 = vector.load %arg7[%c0_15, %c0_16] : memref<8x256xbf16, #tpu.memory_space<vmem>>, vector<8x256xbf16>
      %20 = arith.extf %19 : vector<8x256xbf16> to vector<8x256xf32>
      %21 = arith.addf %18, %20 : vector<8x256xf32>
      %cst_17 = arith.constant 0.000000e+00 : f32
      %22 = vector.broadcast %cst_17 : f32 to vector<8x256xf32>
      %23 = arith.maximumf %21, %22 : vector<8x256xf32>
      %24 = arith.truncf %23 : vector<8x256xf32> to vector<8x256xbf16>
      %c0_18 = arith.constant 0 : index
      %c0_19 = arith.constant 0 : index
      %25 = vector.load %arg8[%c0_18, %c0_19] : memref<8x256xbf16, #tpu.memory_space<vmem>>, vector<8x256xbf16>
      tpu.vector_store %arg8[%c0_18, %c0_19], %24 {strides = array<i32>} : memref<8x256xbf16, #tpu.memory_space<vmem>>, vector<8x256xbf16>,
    } else {
    }
    return
  }
  func.func @transform_0(%arg0: i32, %arg1: i32, %arg2: i32) -> (i32, i32) {
    %c0_i32 = arith.constant 0 : i32
    return %arg0, %arg2 : i32, i32
  }
  func.func @transform_1(%arg0: i32, %arg1: i32, %arg2: i32) -> (i32, i32) {
    %c0_i32 = arith.constant 0 : i32
    return %arg2, %arg1 : i32, i32
  }
  func.func @transform_2(%arg0: i32, %arg1: i32, %arg2: i32) -> (i32, i32) {
    %c0_i32 = arith.constant 0 : i32
    %c0_i32_0 = arith.constant 0 : i32
    return %c0_i32, %arg1 : i32, i32
  }
  func.func @transform_3(%arg0: i32, %arg1: i32, %arg2: i32) -> (i32, i32) {
    %c0_i32 = arith.constant 0 : i32
    %c0_i32_0 = arith.constant 0 : i32
    return %c0_i32, %arg1 : i32, i32
  }
  func.func @transform_4(%arg0: i32, %arg1: i32, %arg2: i32) -> (i32, i32) {
    %c0_i32 = arith.constant 0 : i32
    return %arg0, %arg1 : i32, i32
  }
  func.func @transform_5(%arg0: i32, %arg1: i32, %arg2: i32) -> (i32, i32) {
    %c0_i32 = arith.constant 0 : i32
    return %arg0, %arg1 : i32, i32
  }
}

module attributes {stable_mosaic.version = 11 : i64} {
  func.func @_mm_kernel(%arg0: i32, %arg1: i32, %arg2: i32, %arg3: memref<8x384xbf16, #tpu.memory_space<vmem>>, %arg4: memref<384x256xbf16, #tpu.memory_space<vmem>>, %arg5: memref<1x256xf32, #tpu.memory_space<vmem>>, %arg6: memref<1x256xf32, #tpu.memory_space<vmem>>, %arg7: memref<8x256xbf16, #tpu.memory_space<vmem>>, %arg8: memref<8x256xf32, #tpu.memory_space<vmem>>) attributes {dimension_semantics = [#tpu.dimension_semantics<parallel>, #tpu.dimension_semantics<parallel>, #tpu.dimension_semantics<arbitrary>], iteration_bounds = array<i64: 1, 1, 6>, scalar_prefetch = 0 : i64, scratch_operands = 1 : i64, tpu.core_type = #tpu.core_type<tc>, window_params = [{transform_indices = @transform_0, window_bounds = array<i64: 8, 384>}, {transform_indices = @transform_1, window_bounds = array<i64: 384, 256>}, {transform_indices = @transform_2, window_bounds = array<i64: 1, 256>}, {transform_indices = @transform_3, window_bounds = array<i64: 1, 256>}, {transform_indices = @transform_4, window_bounds = array<i64: 8, 256>}]} {
    %c0_i32 = arith.constant 0 : i32
    %0 = arith.cmpi eq, %arg2, %c0_i32 : i32
    %1 = arith.extui %0 : i1 to i32
    %c0_i32_0 = arith.constant 0 : i32
    %2 = arith.cmpi ne, %1, %c0_i32_0 : i32
    scf.if %2 {
      %cst_9 = arith.constant 0.000000e+00 : f32
      %12 = vector.broadcast %cst_9 : f32 to vector<8x256xf32>
      %c0_10 = arith.constant 0 : index
      %c0_11 = arith.constant 0 : index
      %13 = vector.load %arg8[%c0_10, %c0_11] : memref<8x256xf32, #tpu.memory_space<vmem>>, vector<8x256xf32>
      tpu.vector_store %arg8[%c0_10, %c0_11], %12 {strides = array<i32>} : memref<8x256xf32, #tpu.memory_space<vmem>>, vector<8x256xf32>,
    } else {
    }
    %c0 = arith.constant 0 : index
    %c0_1 = arith.constant 0 : index
    %3 = vector.load %arg8[%c0, %c0_1] : memref<8x256xf32, #tpu.memory_space<vmem>>, vector<8x256xf32>
    %c0_2 = arith.constant 0 : index
    %c0_3 = arith.constant 0 : index
    %4 = vector.load %arg3[%c0_2, %c0_3] : memref<8x384xbf16, #tpu.memory_space<vmem>>, vector<8x384xbf16>
    %c0_4 = arith.constant 0 : index
    %c0_5 = arith.constant 0 : index
    %5 = vector.load %arg4[%c0_4, %c0_5] : memref<384x256xbf16, #tpu.memory_space<vmem>>, vector<384x256xbf16>
    %cst = arith.constant dense<0.000000e+00> : vector<8x256xf32>
    %6 = tpu.matmul %4, %5, %cst {dimension_numbers = #tpu.dot_dimension_numbers<[1], [0], [0], [1], [0, 0, 1, 1], [], []>} : vector<8x384xbf16>, vector<384x256xbf16>, vector<8x256xf32> -> vector<8x256xf32>
    %7 = arith.addf %3, %6 : vector<8x256xf32>
    %c0_6 = arith.constant 0 : index
    %c0_7 = arith.constant 0 : index
    %8 = vector.load %arg8[%c0_6, %c0_7] : memref<8x256xf32, #tpu.memory_space<vmem>>, vector<8x256xf32>
    tpu.vector_store %arg8[%c0_6, %c0_7], %7 {strides = array<i32>} : memref<8x256xf32, #tpu.memory_space<vmem>>, vector<8x256xf32>,
    %c5_i32 = arith.constant 5 : i32
    %9 = arith.cmpi eq, %arg2, %c5_i32 : i32
    %10 = arith.extui %9 : i1 to i32
    %c0_i32_8 = arith.constant 0 : i32
    %11 = arith.cmpi ne, %10, %c0_i32_8 : i32
    scf.if %11 {
      %c0_9 = arith.constant 0 : index
      %c0_10 = arith.constant 0 : index
      %12 = vector.load %arg8[%c0_9, %c0_10] : memref<8x256xf32, #tpu.memory_space<vmem>>, vector<8x256xf32>
      %c0_11 = arith.constant 0 : index
      %c0_12 = arith.constant 0 : index
      %13 = vector.load %arg5[%c0_11, %c0_12] : memref<1x256xf32, #tpu.memory_space<vmem>>, vector<1x256xf32>
      %14 = vector.broadcast %13 : vector<1x256xf32> to vector<8x256xf32>
      %15 = arith.mulf %12, %14 : vector<8x256xf32>
      %c0_13 = arith.constant 0 : index
      %c0_14 = arith.constant 0 : index
      %16 = vector.load %arg6[%c0_13, %c0_14] : memref<1x256xf32, #tpu.memory_space<vmem>>, vector<1x256xf32>
      %17 = vector.broadcast %16 : vector<1x256xf32> to vector<8x256xf32>
      %18 = arith.addf %15, %17 : vector<8x256xf32>
      %cst_15 = arith.constant 0.000000e+00 : f32
      %19 = vector.broadcast %cst_15 : f32 to vector<8x256xf32>
      %20 = arith.maximumf %18, %19 : vector<8x256xf32>
      %21 = arith.truncf %20 : vector<8x256xf32> to vector<8x256xbf16>
      %c0_16 = arith.constant 0 : index
      %c0_17 = arith.constant 0 : index
      %22 = vector.load %arg7[%c0_16, %c0_17] : memref<8x256xbf16, #tpu.memory_space<vmem>>, vector<8x256xbf16>
      tpu.vector_store %arg7[%c0_16, %c0_17], %21 {strides = array<i32>} : memref<8x256xbf16, #tpu.memory_space<vmem>>, vector<8x256xbf16>,
    } else {
    }
    return
  }
  func.func @transform_0(%arg0: i32, %arg1: i32, %arg2: i32) -> (i32, i32) {
    %c0_i32 = arith.constant 0 : i32
    return %arg0, %arg2 : i32, i32
  }
  func.func @transform_1(%arg0: i32, %arg1: i32, %arg2: i32) -> (i32, i32) {
    %c0_i32 = arith.constant 0 : i32
    return %arg2, %arg1 : i32, i32
  }
  func.func @transform_2(%arg0: i32, %arg1: i32, %arg2: i32) -> (i32, i32) {
    %c0_i32 = arith.constant 0 : i32
    %c0_i32_0 = arith.constant 0 : i32
    return %c0_i32, %arg1 : i32, i32
  }
  func.func @transform_3(%arg0: i32, %arg1: i32, %arg2: i32) -> (i32, i32) {
    %c0_i32 = arith.constant 0 : i32
    %c0_i32_0 = arith.constant 0 : i32
    return %c0_i32, %arg1 : i32, i32
  }
  func.func @transform_4(%arg0: i32, %arg1: i32, %arg2: i32) -> (i32, i32) {
    %c0_i32 = arith.constant 0 : i32
    return %arg0, %arg1 : i32, i32
  }
}

module attributes {stable_mosaic.version = 11 : i64} {
  func.func @_mm_res_kernel(%arg0: i32, %arg1: i32, %arg2: i32, %arg3: memref<2x512xbf16, #tpu.memory_space<vmem>>, %arg4: memref<512x256xbf16, #tpu.memory_space<vmem>>, %arg5: memref<1x256xf32, #tpu.memory_space<vmem>>, %arg6: memref<1x256xf32, #tpu.memory_space<vmem>>, %arg7: memref<2x256xbf16, #tpu.memory_space<vmem>>, %arg8: memref<2x256xbf16, #tpu.memory_space<vmem>>, %arg9: memref<2x256xf32, #tpu.memory_space<vmem>>) attributes {dimension_semantics = [#tpu.dimension_semantics<parallel>, #tpu.dimension_semantics<parallel>, #tpu.dimension_semantics<arbitrary>], iteration_bounds = array<i64: 1, 2, 9>, scalar_prefetch = 0 : i64, scratch_operands = 1 : i64, tpu.core_type = #tpu.core_type<tc>, window_params = [{transform_indices = @transform_0, window_bounds = array<i64: 2, 512>}, {transform_indices = @transform_1, window_bounds = array<i64: 512, 256>}, {transform_indices = @transform_2, window_bounds = array<i64: 1, 256>}, {transform_indices = @transform_3, window_bounds = array<i64: 1, 256>}, {transform_indices = @transform_4, window_bounds = array<i64: 2, 256>}, {transform_indices = @transform_5, window_bounds = array<i64: 2, 256>}]} {
    %c0_i32 = arith.constant 0 : i32
    %0 = arith.cmpi eq, %arg2, %c0_i32 : i32
    %1 = arith.extui %0 : i1 to i32
    %c0_i32_0 = arith.constant 0 : i32
    %2 = arith.cmpi ne, %1, %c0_i32_0 : i32
    scf.if %2 {
      %cst_9 = arith.constant 0.000000e+00 : f32
      %12 = vector.broadcast %cst_9 : f32 to vector<2x256xf32>
      %c0_10 = arith.constant 0 : index
      %c0_11 = arith.constant 0 : index
      %13 = vector.load %arg9[%c0_10, %c0_11] : memref<2x256xf32, #tpu.memory_space<vmem>>, vector<2x256xf32>
      tpu.vector_store %arg9[%c0_10, %c0_11], %12 {strides = array<i32>} : memref<2x256xf32, #tpu.memory_space<vmem>>, vector<2x256xf32>,
    } else {
    }
    %c0 = arith.constant 0 : index
    %c0_1 = arith.constant 0 : index
    %3 = vector.load %arg9[%c0, %c0_1] : memref<2x256xf32, #tpu.memory_space<vmem>>, vector<2x256xf32>
    %c0_2 = arith.constant 0 : index
    %c0_3 = arith.constant 0 : index
    %4 = vector.load %arg3[%c0_2, %c0_3] : memref<2x512xbf16, #tpu.memory_space<vmem>>, vector<2x512xbf16>
    %c0_4 = arith.constant 0 : index
    %c0_5 = arith.constant 0 : index
    %5 = vector.load %arg4[%c0_4, %c0_5] : memref<512x256xbf16, #tpu.memory_space<vmem>>, vector<512x256xbf16>
    %cst = arith.constant dense<0.000000e+00> : vector<2x256xf32>
    %6 = tpu.matmul %4, %5, %cst {dimension_numbers = #tpu.dot_dimension_numbers<[1], [0], [0], [1], [0, 0, 1, 1], [], []>} : vector<2x512xbf16>, vector<512x256xbf16>, vector<2x256xf32> -> vector<2x256xf32>
    %7 = arith.addf %3, %6 : vector<2x256xf32>
    %c0_6 = arith.constant 0 : index
    %c0_7 = arith.constant 0 : index
    %8 = vector.load %arg9[%c0_6, %c0_7] : memref<2x256xf32, #tpu.memory_space<vmem>>, vector<2x256xf32>
    tpu.vector_store %arg9[%c0_6, %c0_7], %7 {strides = array<i32>} : memref<2x256xf32, #tpu.memory_space<vmem>>, vector<2x256xf32>,
    %c8_i32 = arith.constant 8 : i32
    %9 = arith.cmpi eq, %arg2, %c8_i32 : i32
    %10 = arith.extui %9 : i1 to i32
    %c0_i32_8 = arith.constant 0 : i32
    %11 = arith.cmpi ne, %10, %c0_i32_8 : i32
    scf.if %11 {
      %c0_9 = arith.constant 0 : index
      %c0_10 = arith.constant 0 : index
      %12 = vector.load %arg9[%c0_9, %c0_10] : memref<2x256xf32, #tpu.memory_space<vmem>>, vector<2x256xf32>
      %c0_11 = arith.constant 0 : index
      %c0_12 = arith.constant 0 : index
      %13 = vector.load %arg5[%c0_11, %c0_12] : memref<1x256xf32, #tpu.memory_space<vmem>>, vector<1x256xf32>
      %14 = vector.broadcast %13 : vector<1x256xf32> to vector<2x256xf32>
      %15 = arith.mulf %12, %14 : vector<2x256xf32>
      %c0_13 = arith.constant 0 : index
      %c0_14 = arith.constant 0 : index
      %16 = vector.load %arg6[%c0_13, %c0_14] : memref<1x256xf32, #tpu.memory_space<vmem>>, vector<1x256xf32>
      %17 = vector.broadcast %16 : vector<1x256xf32> to vector<2x256xf32>
      %18 = arith.addf %15, %17 : vector<2x256xf32>
      %c0_15 = arith.constant 0 : index
      %c0_16 = arith.constant 0 : index
      %19 = vector.load %arg7[%c0_15, %c0_16] : memref<2x256xbf16, #tpu.memory_space<vmem>>, vector<2x256xbf16>
      %20 = arith.extf %19 : vector<2x256xbf16> to vector<2x256xf32>
      %21 = arith.addf %18, %20 : vector<2x256xf32>
      %cst_17 = arith.constant 0.000000e+00 : f32
      %22 = vector.broadcast %cst_17 : f32 to vector<2x256xf32>
      %23 = arith.maximumf %21, %22 : vector<2x256xf32>
      %24 = arith.truncf %23 : vector<2x256xf32> to vector<2x256xbf16>
      %c0_18 = arith.constant 0 : index
      %c0_19 = arith.constant 0 : index
      %25 = vector.load %arg8[%c0_18, %c0_19] : memref<2x256xbf16, #tpu.memory_space<vmem>>, vector<2x256xbf16>
      tpu.vector_store %arg8[%c0_18, %c0_19], %24 {strides = array<i32>} : memref<2x256xbf16, #tpu.memory_space<vmem>>, vector<2x256xbf16>,
    } else {
    }
    return
  }
  func.func @transform_0(%arg0: i32, %arg1: i32, %arg2: i32) -> (i32, i32) {
    %c0_i32 = arith.constant 0 : i32
    return %arg0, %arg2 : i32, i32
  }
  func.func @transform_1(%arg0: i32, %arg1: i32, %arg2: i32) -> (i32, i32) {
    %c0_i32 = arith.constant 0 : i32
    return %arg2, %arg1 : i32, i32
  }
  func.func @transform_2(%arg0: i32, %arg1: i32, %arg2: i32) -> (i32, i32) {
    %c0_i32 = arith.constant 0 : i32
    %c0_i32_0 = arith.constant 0 : i32
    return %c0_i32, %arg1 : i32, i32
  }
  func.func @transform_3(%arg0: i32, %arg1: i32, %arg2: i32) -> (i32, i32) {
    %c0_i32 = arith.constant 0 : i32
    %c0_i32_0 = arith.constant 0 : i32
    return %c0_i32, %arg1 : i32, i32
  }
  func.func @transform_4(%arg0: i32, %arg1: i32, %arg2: i32) -> (i32, i32) {
    %c0_i32 = arith.constant 0 : i32
    return %arg0, %arg1 : i32, i32
  }
  func.func @transform_5(%arg0: i32, %arg1: i32, %arg2: i32) -> (i32, i32) {
    %c0_i32 = arith.constant 0 : i32
    return %arg0, %arg1 : i32, i32
  }
}

module attributes {stable_mosaic.version = 11 : i64} {
  func.func @_mm_kernel(%arg0: i32, %arg1: i32, %arg2: i32, %arg3: memref<2x384xbf16, #tpu.memory_space<vmem>>, %arg4: memref<384x256xbf16, #tpu.memory_space<vmem>>, %arg5: memref<1x256xf32, #tpu.memory_space<vmem>>, %arg6: memref<1x256xf32, #tpu.memory_space<vmem>>, %arg7: memref<2x256xbf16, #tpu.memory_space<vmem>>, %arg8: memref<2x256xf32, #tpu.memory_space<vmem>>) attributes {dimension_semantics = [#tpu.dimension_semantics<parallel>, #tpu.dimension_semantics<parallel>, #tpu.dimension_semantics<arbitrary>], iteration_bounds = array<i64: 1, 2, 6>, scalar_prefetch = 0 : i64, scratch_operands = 1 : i64, tpu.core_type = #tpu.core_type<tc>, window_params = [{transform_indices = @transform_0, window_bounds = array<i64: 2, 384>}, {transform_indices = @transform_1, window_bounds = array<i64: 384, 256>}, {transform_indices = @transform_2, window_bounds = array<i64: 1, 256>}, {transform_indices = @transform_3, window_bounds = array<i64: 1, 256>}, {transform_indices = @transform_4, window_bounds = array<i64: 2, 256>}]} {
    %c0_i32 = arith.constant 0 : i32
    %0 = arith.cmpi eq, %arg2, %c0_i32 : i32
    %1 = arith.extui %0 : i1 to i32
    %c0_i32_0 = arith.constant 0 : i32
    %2 = arith.cmpi ne, %1, %c0_i32_0 : i32
    scf.if %2 {
      %cst_9 = arith.constant 0.000000e+00 : f32
      %12 = vector.broadcast %cst_9 : f32 to vector<2x256xf32>
      %c0_10 = arith.constant 0 : index
      %c0_11 = arith.constant 0 : index
      %13 = vector.load %arg8[%c0_10, %c0_11] : memref<2x256xf32, #tpu.memory_space<vmem>>, vector<2x256xf32>
      tpu.vector_store %arg8[%c0_10, %c0_11], %12 {strides = array<i32>} : memref<2x256xf32, #tpu.memory_space<vmem>>, vector<2x256xf32>,
    } else {
    }
    %c0 = arith.constant 0 : index
    %c0_1 = arith.constant 0 : index
    %3 = vector.load %arg8[%c0, %c0_1] : memref<2x256xf32, #tpu.memory_space<vmem>>, vector<2x256xf32>
    %c0_2 = arith.constant 0 : index
    %c0_3 = arith.constant 0 : index
    %4 = vector.load %arg3[%c0_2, %c0_3] : memref<2x384xbf16, #tpu.memory_space<vmem>>, vector<2x384xbf16>
    %c0_4 = arith.constant 0 : index
    %c0_5 = arith.constant 0 : index
    %5 = vector.load %arg4[%c0_4, %c0_5] : memref<384x256xbf16, #tpu.memory_space<vmem>>, vector<384x256xbf16>
    %cst = arith.constant dense<0.000000e+00> : vector<2x256xf32>
    %6 = tpu.matmul %4, %5, %cst {dimension_numbers = #tpu.dot_dimension_numbers<[1], [0], [0], [1], [0, 0, 1, 1], [], []>} : vector<2x384xbf16>, vector<384x256xbf16>, vector<2x256xf32> -> vector<2x256xf32>
    %7 = arith.addf %3, %6 : vector<2x256xf32>
    %c0_6 = arith.constant 0 : index
    %c0_7 = arith.constant 0 : index
    %8 = vector.load %arg8[%c0_6, %c0_7] : memref<2x256xf32, #tpu.memory_space<vmem>>, vector<2x256xf32>
    tpu.vector_store %arg8[%c0_6, %c0_7], %7 {strides = array<i32>} : memref<2x256xf32, #tpu.memory_space<vmem>>, vector<2x256xf32>,
    %c5_i32 = arith.constant 5 : i32
    %9 = arith.cmpi eq, %arg2, %c5_i32 : i32
    %10 = arith.extui %9 : i1 to i32
    %c0_i32_8 = arith.constant 0 : i32
    %11 = arith.cmpi ne, %10, %c0_i32_8 : i32
    scf.if %11 {
      %c0_9 = arith.constant 0 : index
      %c0_10 = arith.constant 0 : index
      %12 = vector.load %arg8[%c0_9, %c0_10] : memref<2x256xf32, #tpu.memory_space<vmem>>, vector<2x256xf32>
      %c0_11 = arith.constant 0 : index
      %c0_12 = arith.constant 0 : index
      %13 = vector.load %arg5[%c0_11, %c0_12] : memref<1x256xf32, #tpu.memory_space<vmem>>, vector<1x256xf32>
      %14 = vector.broadcast %13 : vector<1x256xf32> to vector<2x256xf32>
      %15 = arith.mulf %12, %14 : vector<2x256xf32>
      %c0_13 = arith.constant 0 : index
      %c0_14 = arith.constant 0 : index
      %16 = vector.load %arg6[%c0_13, %c0_14] : memref<1x256xf32, #tpu.memory_space<vmem>>, vector<1x256xf32>
      %17 = vector.broadcast %16 : vector<1x256xf32> to vector<2x256xf32>
      %18 = arith.addf %15, %17 : vector<2x256xf32>
      %cst_15 = arith.constant 0.000000e+00 : f32
      %19 = vector.broadcast %cst_15 : f32 to vector<2x256xf32>
      %20 = arith.maximumf %18, %19 : vector<2x256xf32>
      %21 = arith.truncf %20 : vector<2x256xf32> to vector<2x256xbf16>
      %c0_16 = arith.constant 0 : index
      %c0_17 = arith.constant 0 : index
      %22 = vector.load %arg7[%c0_16, %c0_17] : memref<2x256xbf16, #tpu.memory_space<vmem>>, vector<2x256xbf16>
      tpu.vector_store %arg7[%c0_16, %c0_17], %21 {strides = array<i32>} : memref<2x256xbf16, #tpu.memory_space<vmem>>, vector<2x256xbf16>,
    } else {
    }
    return
  }
  func.func @transform_0(%arg0: i32, %arg1: i32, %arg2: i32) -> (i32, i32) {
    %c0_i32 = arith.constant 0 : i32
    return %arg0, %arg2 : i32, i32
  }
  func.func @transform_1(%arg0: i32, %arg1: i32, %arg2: i32) -> (i32, i32) {
    %c0_i32 = arith.constant 0 : i32
    return %arg2, %arg1 : i32, i32
  }
  func.func @transform_2(%arg0: i32, %arg1: i32, %arg2: i32) -> (i32, i32) {
    %c0_i32 = arith.constant 0 : i32
    %c0_i32_0 = arith.constant 0 : i32
    return %c0_i32, %arg1 : i32, i32
  }
  func.func @transform_3(%arg0: i32, %arg1: i32, %arg2: i32) -> (i32, i32) {
    %c0_i32 = arith.constant 0 : i32
    %c0_i32_0 = arith.constant 0 : i32
    return %c0_i32, %arg1 : i32, i32
  }
  func.func @transform_4(%arg0: i32, %arg1: i32, %arg2: i32) -> (i32, i32) {
    %c0_i32 = arith.constant 0 : i32
    return %arg0, %arg1 : i32, i32
  }
}

module attributes {stable_mosaic.version = 11 : i64} {
  func.func @_mm_kernel(%arg0: i32, %arg1: i32, %arg2: i32, %arg3: memref<2x256xbf16, #tpu.memory_space<vmem>>, %arg4: memref<256x256xbf16, #tpu.memory_space<vmem>>, %arg5: memref<1x256xf32, #tpu.memory_space<vmem>>, %arg6: memref<1x256xf32, #tpu.memory_space<vmem>>, %arg7: memref<2x256xbf16, #tpu.memory_space<vmem>>, %arg8: memref<2x256xf32, #tpu.memory_space<vmem>>) attributes {dimension_semantics = [#tpu.dimension_semantics<parallel>, #tpu.dimension_semantics<parallel>, #tpu.dimension_semantics<arbitrary>], iteration_bounds = array<i64: 1, 2, 1>, scalar_prefetch = 0 : i64, scratch_operands = 1 : i64, tpu.core_type = #tpu.core_type<tc>, window_params = [{transform_indices = @transform_0, window_bounds = array<i64: 2, 256>}, {transform_indices = @transform_1, window_bounds = array<i64: 256, 256>}, {transform_indices = @transform_2, window_bounds = array<i64: 1, 256>}, {transform_indices = @transform_3, window_bounds = array<i64: 1, 256>}, {transform_indices = @transform_4, window_bounds = array<i64: 2, 256>}]} {
    %c0_i32 = arith.constant 0 : i32
    %0 = arith.cmpi eq, %arg2, %c0_i32 : i32
    %1 = arith.extui %0 : i1 to i32
    %c0_i32_0 = arith.constant 0 : i32
    %2 = arith.cmpi ne, %1, %c0_i32_0 : i32
    scf.if %2 {
      %cst_10 = arith.constant 0.000000e+00 : f32
      %12 = vector.broadcast %cst_10 : f32 to vector<2x256xf32>
      %c0_11 = arith.constant 0 : index
      %c0_12 = arith.constant 0 : index
      %13 = vector.load %arg8[%c0_11, %c0_12] : memref<2x256xf32, #tpu.memory_space<vmem>>, vector<2x256xf32>
      tpu.vector_store %arg8[%c0_11, %c0_12], %12 {strides = array<i32>} : memref<2x256xf32, #tpu.memory_space<vmem>>, vector<2x256xf32>,
    } else {
    }
    %c0 = arith.constant 0 : index
    %c0_1 = arith.constant 0 : index
    %3 = vector.load %arg8[%c0, %c0_1] : memref<2x256xf32, #tpu.memory_space<vmem>>, vector<2x256xf32>
    %c0_2 = arith.constant 0 : index
    %c0_3 = arith.constant 0 : index
    %4 = vector.load %arg3[%c0_2, %c0_3] : memref<2x256xbf16, #tpu.memory_space<vmem>>, vector<2x256xbf16>
    %c0_4 = arith.constant 0 : index
    %c0_5 = arith.constant 0 : index
    %5 = vector.load %arg4[%c0_4, %c0_5] : memref<256x256xbf16, #tpu.memory_space<vmem>>, vector<256x256xbf16>
    %cst = arith.constant dense<0.000000e+00> : vector<2x256xf32>
    %6 = tpu.matmul %4, %5, %cst {dimension_numbers = #tpu.dot_dimension_numbers<[1], [0], [0], [1], [0, 0, 1, 1], [], []>} : vector<2x256xbf16>, vector<256x256xbf16>, vector<2x256xf32> -> vector<2x256xf32>
    %7 = arith.addf %3, %6 : vector<2x256xf32>
    %c0_6 = arith.constant 0 : index
    %c0_7 = arith.constant 0 : index
    %8 = vector.load %arg8[%c0_6, %c0_7] : memref<2x256xf32, #tpu.memory_space<vmem>>, vector<2x256xf32>
    tpu.vector_store %arg8[%c0_6, %c0_7], %7 {strides = array<i32>} : memref<2x256xf32, #tpu.memory_space<vmem>>, vector<2x256xf32>,
    %c0_i32_8 = arith.constant 0 : i32
    %9 = arith.cmpi eq, %arg2, %c0_i32_8 : i32
    %10 = arith.extui %9 : i1 to i32
    %c0_i32_9 = arith.constant 0 : i32
    %11 = arith.cmpi ne, %10, %c0_i32_9 : i32
    scf.if %11 {
      %c0_10 = arith.constant 0 : index
      %c0_11 = arith.constant 0 : index
      %12 = vector.load %arg8[%c0_10, %c0_11] : memref<2x256xf32, #tpu.memory_space<vmem>>, vector<2x256xf32>
      %c0_12 = arith.constant 0 : index
      %c0_13 = arith.constant 0 : index
      %13 = vector.load %arg5[%c0_12, %c0_13] : memref<1x256xf32, #tpu.memory_space<vmem>>, vector<1x256xf32>
      %14 = vector.broadcast %13 : vector<1x256xf32> to vector<2x256xf32>
      %15 = arith.mulf %12, %14 : vector<2x256xf32>
      %c0_14 = arith.constant 0 : index
      %c0_15 = arith.constant 0 : index
      %16 = vector.load %arg6[%c0_14, %c0_15] : memref<1x256xf32, #tpu.memory_space<vmem>>, vector<1x256xf32>
      %17 = vector.broadcast %16 : vector<1x256xf32> to vector<2x256xf32>
      %18 = arith.addf %15, %17 : vector<2x256xf32>
      %19 = arith.truncf %18 : vector<2x256xf32> to vector<2x256xbf16>
      %c0_16 = arith.constant 0 : index
      %c0_17 = arith.constant 0 : index
      %20 = vector.load %arg7[%c0_16, %c0_17] : memref<2x256xbf16, #tpu.memory_space<vmem>>, vector<2x256xbf16>
      tpu.vector_store %arg7[%c0_16, %c0_17], %19 {strides = array<i32>} : memref<2x256xbf16, #tpu.memory_space<vmem>>, vector<2x256xbf16>,
    } else {
    }
    return
  }
  func.func @transform_0(%arg0: i32, %arg1: i32, %arg2: i32) -> (i32, i32) {
    %c0_i32 = arith.constant 0 : i32
    return %arg0, %arg2 : i32, i32
  }
  func.func @transform_1(%arg0: i32, %arg1: i32, %arg2: i32) -> (i32, i32) {
    %c0_i32 = arith.constant 0 : i32
    return %arg2, %arg1 : i32, i32
  }
  func.func @transform_2(%arg0: i32, %arg1: i32, %arg2: i32) -> (i32, i32) {
    %c0_i32 = arith.constant 0 : i32
    %c0_i32_0 = arith.constant 0 : i32
    return %c0_i32, %arg1 : i32, i32
  }
  func.func @transform_3(%arg0: i32, %arg1: i32, %arg2: i32) -> (i32, i32) {
    %c0_i32 = arith.constant 0 : i32
    %c0_i32_0 = arith.constant 0 : i32
    return %c0_i32, %arg1 : i32, i32
  }
  func.func @transform_4(%arg0: i32, %arg1: i32, %arg2: i32) -> (i32, i32) {
    %c0_i32 = arith.constant 0 : i32
    return %arg0, %arg1 : i32, i32
  }
}

module attributes {stable_mosaic.version = 11 : i64} {
  func.func @_mm_kernel(%arg0: i32, %arg1: i32, %arg2: i32, %arg3: memref<2x512xbf16, #tpu.memory_space<vmem>>, %arg4: memref<512x256xbf16, #tpu.memory_space<vmem>>, %arg5: memref<1x256xf32, #tpu.memory_space<vmem>>, %arg6: memref<1x256xf32, #tpu.memory_space<vmem>>, %arg7: memref<2x256xbf16, #tpu.memory_space<vmem>>, %arg8: memref<2x256xf32, #tpu.memory_space<vmem>>) attributes {dimension_semantics = [#tpu.dimension_semantics<parallel>, #tpu.dimension_semantics<parallel>, #tpu.dimension_semantics<arbitrary>], iteration_bounds = array<i64: 1, 2, 9>, scalar_prefetch = 0 : i64, scratch_operands = 1 : i64, tpu.core_type = #tpu.core_type<tc>, window_params = [{transform_indices = @transform_0, window_bounds = array<i64: 2, 512>}, {transform_indices = @transform_1, window_bounds = array<i64: 512, 256>}, {transform_indices = @transform_2, window_bounds = array<i64: 1, 256>}, {transform_indices = @transform_3, window_bounds = array<i64: 1, 256>}, {transform_indices = @transform_4, window_bounds = array<i64: 2, 256>}]} {
    %c0_i32 = arith.constant 0 : i32
    %0 = arith.cmpi eq, %arg2, %c0_i32 : i32
    %1 = arith.extui %0 : i1 to i32
    %c0_i32_0 = arith.constant 0 : i32
    %2 = arith.cmpi ne, %1, %c0_i32_0 : i32
    scf.if %2 {
      %cst_9 = arith.constant 0.000000e+00 : f32
      %12 = vector.broadcast %cst_9 : f32 to vector<2x256xf32>
      %c0_10 = arith.constant 0 : index
      %c0_11 = arith.constant 0 : index
      %13 = vector.load %arg8[%c0_10, %c0_11] : memref<2x256xf32, #tpu.memory_space<vmem>>, vector<2x256xf32>
      tpu.vector_store %arg8[%c0_10, %c0_11], %12 {strides = array<i32>} : memref<2x256xf32, #tpu.memory_space<vmem>>, vector<2x256xf32>,
    } else {
    }
    %c0 = arith.constant 0 : index
    %c0_1 = arith.constant 0 : index
    %3 = vector.load %arg8[%c0, %c0_1] : memref<2x256xf32, #tpu.memory_space<vmem>>, vector<2x256xf32>
    %c0_2 = arith.constant 0 : index
    %c0_3 = arith.constant 0 : index
    %4 = vector.load %arg3[%c0_2, %c0_3] : memref<2x512xbf16, #tpu.memory_space<vmem>>, vector<2x512xbf16>
    %c0_4 = arith.constant 0 : index
    %c0_5 = arith.constant 0 : index
    %5 = vector.load %arg4[%c0_4, %c0_5] : memref<512x256xbf16, #tpu.memory_space<vmem>>, vector<512x256xbf16>
    %cst = arith.constant dense<0.000000e+00> : vector<2x256xf32>
    %6 = tpu.matmul %4, %5, %cst {dimension_numbers = #tpu.dot_dimension_numbers<[1], [0], [0], [1], [0, 0, 1, 1], [], []>} : vector<2x512xbf16>, vector<512x256xbf16>, vector<2x256xf32> -> vector<2x256xf32>
    %7 = arith.addf %3, %6 : vector<2x256xf32>
    %c0_6 = arith.constant 0 : index
    %c0_7 = arith.constant 0 : index
    %8 = vector.load %arg8[%c0_6, %c0_7] : memref<2x256xf32, #tpu.memory_space<vmem>>, vector<2x256xf32>
    tpu.vector_store %arg8[%c0_6, %c0_7], %7 {strides = array<i32>} : memref<2x256xf32, #tpu.memory_space<vmem>>, vector<2x256xf32>,
    %c8_i32 = arith.constant 8 : i32
    %9 = arith.cmpi eq, %arg2, %c8_i32 : i32
    %10 = arith.extui %9 : i1 to i32
    %c0_i32_8 = arith.constant 0 : i32
    %11 = arith.cmpi ne, %10, %c0_i32_8 : i32
    scf.if %11 {
      %c0_9 = arith.constant 0 : index
      %c0_10 = arith.constant 0 : index
      %12 = vector.load %arg8[%c0_9, %c0_10] : memref<2x256xf32, #tpu.memory_space<vmem>>, vector<2x256xf32>
      %c0_11 = arith.constant 0 : index
      %c0_12 = arith.constant 0 : index
      %13 = vector.load %arg5[%c0_11, %c0_12] : memref<1x256xf32, #tpu.memory_space<vmem>>, vector<1x256xf32>
      %14 = vector.broadcast %13 : vector<1x256xf32> to vector<2x256xf32>
      %15 = arith.mulf %12, %14 : vector<2x256xf32>
      %c0_13 = arith.constant 0 : index
      %c0_14 = arith.constant 0 : index
      %16 = vector.load %arg6[%c0_13, %c0_14] : memref<1x256xf32, #tpu.memory_space<vmem>>, vector<1x256xf32>
      %17 = vector.broadcast %16 : vector<1x256xf32> to vector<2x256xf32>
      %18 = arith.addf %15, %17 : vector<2x256xf32>
      %cst_15 = arith.constant 0.000000e+00 : f32
      %19 = vector.broadcast %cst_15 : f32 to vector<2x256xf32>
      %20 = arith.maximumf %18, %19 : vector<2x256xf32>
      %21 = arith.truncf %20 : vector<2x256xf32> to vector<2x256xbf16>
      %c0_16 = arith.constant 0 : index
      %c0_17 = arith.constant 0 : index
      %22 = vector.load %arg7[%c0_16, %c0_17] : memref<2x256xbf16, #tpu.memory_space<vmem>>, vector<2x256xbf16>
      tpu.vector_store %arg7[%c0_16, %c0_17], %21 {strides = array<i32>} : memref<2x256xbf16, #tpu.memory_space<vmem>>, vector<2x256xbf16>,
    } else {
    }
    return
  }
  func.func @transform_0(%arg0: i32, %arg1: i32, %arg2: i32) -> (i32, i32) {
    %c0_i32 = arith.constant 0 : i32
    return %arg0, %arg2 : i32, i32
  }
  func.func @transform_1(%arg0: i32, %arg1: i32, %arg2: i32) -> (i32, i32) {
    %c0_i32 = arith.constant 0 : i32
    return %arg2, %arg1 : i32, i32
  }
  func.func @transform_2(%arg0: i32, %arg1: i32, %arg2: i32) -> (i32, i32) {
    %c0_i32 = arith.constant 0 : i32
    %c0_i32_0 = arith.constant 0 : i32
    return %c0_i32, %arg1 : i32, i32
  }
  func.func @transform_3(%arg0: i32, %arg1: i32, %arg2: i32) -> (i32, i32) {
    %c0_i32 = arith.constant 0 : i32
    %c0_i32_0 = arith.constant 0 : i32
    return %c0_i32, %arg1 : i32, i32
  }
  func.func @transform_4(%arg0: i32, %arg1: i32, %arg2: i32) -> (i32, i32) {
    %c0_i32 = arith.constant 0 : i32
    return %arg0, %arg1 : i32, i32
  }
}

module attributes {stable_mosaic.version = 11 : i64} {
  func.func @_head_kernel(%arg0: i32, %arg1: memref<8x512xbf16, #tpu.memory_space<vmem>>, %arg2: memref<512x128xbf16, #tpu.memory_space<vmem>>, %arg3: memref<1x128xf32, #tpu.memory_space<vmem>>, %arg4: memref<128x128xbf16, #tpu.memory_space<vmem>>, %arg5: memref<1x128xf32, #tpu.memory_space<vmem>>, %arg6: memref<128x128xbf16, #tpu.memory_space<vmem>>, %arg7: memref<1x128xf32, #tpu.memory_space<vmem>>, %arg8: memref<8x128xf32, #tpu.memory_space<vmem>>) attributes {dimension_semantics = [#tpu.dimension_semantics<arbitrary>], iteration_bounds = array<i64: 1>, scalar_prefetch = 0 : i64, scratch_operands = 0 : i64, tpu.core_type = #tpu.core_type<tc>, window_params = [{pipeline_mode = #tpu.pipeline_mode<synchronous>, transform_indices = @transform_0, window_bounds = array<i64: 8, 512>}, {pipeline_mode = #tpu.pipeline_mode<synchronous>, transform_indices = @transform_1, window_bounds = array<i64: 512, 128>}, {pipeline_mode = #tpu.pipeline_mode<synchronous>, transform_indices = @transform_2, window_bounds = array<i64: 1, 128>}, {pipeline_mode = #tpu.pipeline_mode<synchronous>, transform_indices = @transform_3, window_bounds = array<i64: 128, 128>}, {pipeline_mode = #tpu.pipeline_mode<synchronous>, transform_indices = @transform_4, window_bounds = array<i64: 1, 128>}, {pipeline_mode = #tpu.pipeline_mode<synchronous>, transform_indices = @transform_5, window_bounds = array<i64: 128, 128>}, {pipeline_mode = #tpu.pipeline_mode<synchronous>, transform_indices = @transform_6, window_bounds = array<i64: 1, 128>}, {pipeline_mode = #tpu.pipeline_mode<synchronous>, transform_indices = @transform_7, window_bounds = array<i64: 8, 128>}]} {
    %c0 = arith.constant 0 : index
    %c0_0 = arith.constant 0 : index
    %0 = vector.load %arg1[%c0, %c0_0] : memref<8x512xbf16, #tpu.memory_space<vmem>>, vector<8x512xbf16>
    %c0_1 = arith.constant 0 : index
    %c0_2 = arith.constant 0 : index
    %1 = vector.load %arg2[%c0_1, %c0_2] : memref<512x128xbf16, #tpu.memory_space<vmem>>, vector<512x128xbf16>
    %cst = arith.constant dense<0.000000e+00> : vector<8x128xf32>
    %2 = tpu.matmul %0, %1, %cst {dimension_numbers = #tpu.dot_dimension_numbers<[1], [0], [0], [1], [0, 0, 1, 1], [], []>} : vector<8x512xbf16>, vector<512x128xbf16>, vector<8x128xf32> -> vector<8x128xf32>
    %c0_3 = arith.constant 0 : index
    %c0_4 = arith.constant 0 : index
    %3 = vector.load %arg3[%c0_3, %c0_4] : memref<1x128xf32, #tpu.memory_space<vmem>>, vector<1x128xf32>
    %4 = vector.broadcast %3 : vector<1x128xf32> to vector<8x128xf32>
    %5 = arith.addf %2, %4 : vector<8x128xf32>
    %6 = arith.truncf %5 : vector<8x128xf32> to vector<8x128xbf16>
    %c0_5 = arith.constant 0 : index
    %c0_6 = arith.constant 0 : index
    %7 = vector.load %arg4[%c0_5, %c0_6] : memref<128x128xbf16, #tpu.memory_space<vmem>>, vector<128x128xbf16>
    %cst_7 = arith.constant dense<0.000000e+00> : vector<8x128xf32>
    %8 = tpu.matmul %6, %7, %cst_7 {dimension_numbers = #tpu.dot_dimension_numbers<[1], [0], [0], [1], [0, 0, 1, 1], [], []>} : vector<8x128xbf16>, vector<128x128xbf16>, vector<8x128xf32> -> vector<8x128xf32>
    %c0_8 = arith.constant 0 : index
    %c0_9 = arith.constant 0 : index
    %9 = vector.load %arg5[%c0_8, %c0_9] : memref<1x128xf32, #tpu.memory_space<vmem>>, vector<1x128xf32>
    %10 = vector.broadcast %9 : vector<1x128xf32> to vector<8x128xf32>
    %11 = arith.addf %8, %10 : vector<8x128xf32>
    %12 = arith.truncf %11 : vector<8x128xf32> to vector<8x128xbf16>
    %c0_10 = arith.constant 0 : index
    %c0_11 = arith.constant 0 : index
    %13 = vector.load %arg6[%c0_10, %c0_11] : memref<128x128xbf16, #tpu.memory_space<vmem>>, vector<128x128xbf16>
    %cst_12 = arith.constant dense<0.000000e+00> : vector<8x128xf32>
    %14 = tpu.matmul %12, %13, %cst_12 {dimension_numbers = #tpu.dot_dimension_numbers<[1], [0], [0], [1], [0, 0, 1, 1], [], []>} : vector<8x128xbf16>, vector<128x128xbf16>, vector<8x128xf32> -> vector<8x128xf32>
    %c0_13 = arith.constant 0 : index
    %c0_14 = arith.constant 0 : index
    %15 = vector.load %arg7[%c0_13, %c0_14] : memref<1x128xf32, #tpu.memory_space<vmem>>, vector<1x128xf32>
    %16 = vector.broadcast %15 : vector<1x128xf32> to vector<8x128xf32>
    %17 = arith.addf %14, %16 : vector<8x128xf32>
    %c0_15 = arith.constant 0 : index
    %c0_16 = arith.constant 0 : index
    %18 = vector.load %arg8[%c0_15, %c0_16] : memref<8x128xf32, #tpu.memory_space<vmem>>, vector<8x128xf32>
    tpu.vector_store %arg8[%c0_15, %c0_16], %17 {strides = array<i32>} : memref<8x128xf32, #tpu.memory_space<vmem>>, vector<8x128xf32>,
    return
  }
  func.func @transform_0(%arg0: i32) -> (i32, i32) {
    %c0_i32 = arith.constant 0 : i32
    %c0_i32_0 = arith.constant 0 : i32
    %c0_i32_1 = arith.constant 0 : i32
    return %c0_i32, %c0_i32_0 : i32, i32
  }
  func.func @transform_1(%arg0: i32) -> (i32, i32) {
    %c0_i32 = arith.constant 0 : i32
    %c0_i32_0 = arith.constant 0 : i32
    %c0_i32_1 = arith.constant 0 : i32
    return %c0_i32, %c0_i32_0 : i32, i32
  }
  func.func @transform_2(%arg0: i32) -> (i32, i32) {
    %c0_i32 = arith.constant 0 : i32
    %c0_i32_0 = arith.constant 0 : i32
    %c0_i32_1 = arith.constant 0 : i32
    return %c0_i32, %c0_i32_0 : i32, i32
  }
  func.func @transform_3(%arg0: i32) -> (i32, i32) {
    %c0_i32 = arith.constant 0 : i32
    %c0_i32_0 = arith.constant 0 : i32
    %c0_i32_1 = arith.constant 0 : i32
    return %c0_i32, %c0_i32_0 : i32, i32
  }
  func.func @transform_4(%arg0: i32) -> (i32, i32) {
    %c0_i32 = arith.constant 0 : i32
    %c0_i32_0 = arith.constant 0 : i32
    %c0_i32_1 = arith.constant 0 : i32
    return %c0_i32, %c0_i32_0 : i32, i32
  }
  func.func @transform_5(%arg0: i32) -> (i32, i32) {
    %c0_i32 = arith.constant 0 : i32
    %c0_i32_0 = arith.constant 0 : i32
    %c0_i32_1 = arith.constant 0 : i32
    return %c0_i32, %c0_i32_0 : i32, i32
  }
  func.func @transform_6(%arg0: i32) -> (i32, i32) {
    %c0_i32 = arith.constant 0 : i32
    %c0_i32_0 = arith.constant 0 : i32
    %c0_i32_1 = arith.constant 0 : i32
    return %c0_i32, %c0_i32_0 : i32, i32
  }
  func.func @transform_7(%arg0: i32) -> (i32, i32) {
    %c0_i32 = arith.constant 0 : i32
    %c0_i32_0 = arith.constant 0 : i32
    %c0_i32_1 = arith.constant 0 : i32
    return %c0_i32, %c0_i32_0 : i32, i32
  }
}

</mosaic_0001>

<bundles_post_ra>
// kernel: cnn_network_forward.24
= control target key start
LH: loop header
LB: loop body
LE: loop exit
PB: predicated region body
PF: predicated region fallthrough
CT: control target
= control target key end

     0   :  { %s1731_s15 = smov 0   ;;  %s1733_s16 = smov 0   ;;  %s1940_s0 = inlined_call_operand.vmem [shape: bf16[512,147], index: 0, kind: input, shape index: {}]   ;;  %s1941_s1 = inlined_call_operand.vmem [shape: bf16[147,128], index: 1, kind: input, shape index: {}]   ;;  %s1942_s2 = inlined_call_operand.vmem [shape: f32[1,128], index: 2, kind: input, shape index: {}]   ;;  %s1943_s3 = inlined_call_operand.vmem [shape: f32[1,128], index: 3, kind: input, shape index: {}]   ;;  %s1944_s4 = inlined_call_operand.vmem [shape: bf16[512,128], index: 4, kind: output, shape index: {}]  }
   0x1   :  { %s1735_s17 = smov 0  }
   0x2 LB: > { %s33_s18 = sadd.s32 1, %s1698_s16  ;;  %p1348_p0 = scmp.ge.s32.totalorder %s1702_s17, 1  ;;  %s1702_s17 = sphi %s1735_s17, %s14_s17   ;;  %s1698_s16 = sphi %s1733_s16, %s1946_s16   ;;  %s1694_s15 = sphi %s1731_s15, %s1945_s15  }
   0x3   : > { %p35_p1 = scmp.ge.s32.totalorder %s33_s18, 2  ;;  %p224_p2 = scmp.lt.s32.totalorder %s1702_s17, 3 }
   0x5   : > { %s1948_s18 = smov (%p35_p1, %s33_s18), 0  ;;  %p225_p3 = pnand %p1348_p0, %p224_p2 }
   0x6   : > { %v1622_v0 = vld [vmem:[%s1941_s1] sm:$0xff] (!%p225_p3)   ;;  %v1704_v1 = vmov (!%p225_p3), 0   ;;  %v1623_v2 = vld [vmem:[%s1941_s1 + $0x8] sm:$0xff] (!%p225_p3)   ;;  %v1624_v3 = vld [vmem:[%s1941_s1 + $0x10] sm:$0xff] (!%p225_p3)   ;;  %s1349_s25 = sshll.u32 (!%p225_p3), %s1694_s15, 5  ;;  %vm629_vm0 = vcmask (!%p225_p3), 154624  }
   0x7   : > { %228 = sbr.rel (%p225_p3) target bundleno = 327 (0x147), region = 36  ;;  %685 = vmatprep.subr.bf16.mxu0 (!%p225_p3), %v1704_v1  ;;  %1576 = vmatprep.subr.bf16.mxu1 (!%p225_p3), %v1704_v1  ;;  %p274_p4 = scmp.lt.s32.totalorder (!%p225_p3), %s1349_s25, 63  ;;  %v1625_v4 = vld [vmem:[%s1941_s1 + $0x18] sm:$0xff] (!%p225_p3)   ;;  %v1626_v5 = vld [vmem:[%s1941_s1 + $0x20] sm:$0xff] (!%p225_p3)   ;;  %v1627_v8 = vld [vmem:[%s1941_s1 + $0x28] sm:$0xff] (!%p225_p3)   ;;  %vm678_vm1 = vcmask (!%p225_p3), 1040384  }
   0x8   : > { %686 = vmatpush1.bf16.msra.mxu0 (!%p225_p3), %v1622_v0  ;;  %1586 = vmatpush1.bf16.msra.mxu1 (!%p225_p3), %v1622_v0  ;;  %v1628_v9 = vld [vmem:[%s1941_s1 + $0x30] sm:$0xff] (!%p225_p3)   ;;  %v1629_v10 = vld [vmem:[%s1941_s1 + $0x38] sm:$0xff] (!%p225_p3)   ;;  %vm679_vm2 = vcmask (!%p225_p3), 1041408   ;;  %v1705_v11 = vmov (!%p225_p3), 65535   ;;  %v1630_v13 = vld [vmem:[%s1941_s1 + $0x40] sm:$0xff] (!%p225_p3)  }
   0x9   : > { %687 = vmatprep.subr.bf16.mxu0 (!%p225_p3), %v1704_v1  ;;  %1577 = vmatprep.subr.bf16.mxu1 (!%p225_p3), %v1704_v1  ;;  %v680_v12 = vsel (!%p225_p3), %vm678_vm1, 4294967295, %v1705_v11  ;;  %v1631_v14 = vld [vmem:[%s1941_s1 + $0x48] ss:$0 sps:$4 sm:$0x33] (!%p225_p3)   ;;  %v1838_v47 = vld [vmem:[%s1942_s2] ss:$0 sm:$0xff] (!%p225_p3) }
   0xa   : > { %v681_v15 = vsel (!%p225_p3), %vm679_vm2, %v680_v12, 0  ;;  %v1843_v49 = vld [vmem:[%s1943_s3] ss:$0 sm:$0xff] (!%p225_p3) }
   0xb   : > { %v683_v16 = vand.u32 (!%p225_p3), %v1631_v14, %v681_v15 }
   0xc   : > { %688 = vmatpush1.bf16.msra.mxu0 (!%p225_p3), %v1623_v2  ;;  %1587 = vmatpush1.bf16.msra.mxu1 (!%p225_p3), %v1623_v2 }
   0xd   : > { %689 = vmatprep.subr.bf16.mxu0 (!%p225_p3), %v1704_v1  ;;  %1578 = vmatprep.subr.bf16.mxu1 (!%p225_p3), %v1704_v1 }
   0xe   : > { %s1950_s25 = smov (!%p274_p4, %s1349_s25), 63 }
   0xf   : > { %s1448_s28 = sshll.u32 %s1950_s25, 3  ;;  %s1353_s26 = sshll.u32 %s1950_s25, 2 }
  0x10   : > { %690 = vmatpush1.bf16.msra.mxu0 %v1624_v3  ;;  %1588 = vmatpush1.bf16.msra.mxu1 %v1624_v3  ;;  %s1767_s5 = scalar_lea.vmem %s1940_s0, %s1448_s28  ;;  %s1857_s29 = scalar_lea.vmem %s1944_s4, %s1353_s26 }
  0x11   : > { %691 = vmatprep.subr.bf16.mxu0 %v1704_v1  ;;  %1579 = vmatprep.subr.bf16.mxu1 %v1704_v1  ;;  %v1634_v6 = vld [vmem:[%s1767_s5 + $0x4] ss:$8 sps:$4 sm:$0xff]   ;;  %v1632_v17 = vld [vmem:[%s1767_s5] ss:$8 sps:$4 sm:$0xff]   ;;  %v1638_v19 = vld [vmem:[%s1767_s5 + $0x14] ss:$8 sps:$4 sm:$0xff]  }
  0x12   : > { %v1637_v7 = vld [vmem:[%s1767_s5 + $0x84] ss:$8 sps:$4 sm:$0xff]   ;;  %1396 = vmatprep.mubr.msk.bf16.mxu0 %vm629_vm0, %v1634_v6  ;;  %v1635_v18 = vld [vmem:[%s1767_s5 + $0x80] ss:$8 sps:$4 sm:$0xff]   ;;  %v1640_v20 = vld [vmem:[%s1767_s5 + $0x94] ss:$8 sps:$4 sm:$0xff]  }
  0x13   : > { %1404 = vmatprep.mubr.msk.bf16.mxu1 %vm629_vm0, %v1637_v7  ;;  %v1642_v21 = vld [vmem:[%s1767_s5 + $0x10] ss:$8 sps:$4 sm:$0xff]   ;;  %v1644_v23 = vld [vmem:[%s1767_s5 + $0x24] ss:$8 sps:$4 sm:$0xff]   ;;  %v1648_v25 = vld [vmem:[%s1767_s5 + $0x20] ss:$8 sps:$4 sm:$0xff]  }
  0x14   : > { %692 = vmatpush1.bf16.msra.mxu0 %v1625_v4  ;;  %1589 = vmatpush1.bf16.msra.mxu1 %v1625_v4  ;;  %v1643_v22 = vld [vmem:[%s1767_s5 + $0x90] ss:$8 sps:$4 sm:$0xff]   ;;  %v1646_v24 = vld [vmem:[%s1767_s5 + $0xa4] ss:$8 sps:$4 sm:$0xff]   ;;  %v1649_v26 = vld [vmem:[%s1767_s5 + $0xa0] ss:$8 sps:$4 sm:$0xff]  }
  0x15   : > { %693 = vmatprep.subr.bf16.mxu0 %v1704_v1  ;;  %1580 = vmatprep.subr.bf16.mxu1 %v1704_v1  ;;  %v1650_v27 = vld [vmem:[%s1767_s5 + $0x34] ss:$8 sps:$4 sm:$0xff]   ;;  %v1654_v29 = vld [vmem:[%s1767_s5 + $0x30] ss:$8 sps:$4 sm:$0xff]   ;;  %v1656_v31 = vld [vmem:[%s1767_s5 + $0x44] ss:$8 sps:$4 sm:$0xff]  }
  0x16   : > { %v1652_v28 = vld [vmem:[%s1767_s5 + $0xb4] ss:$8 sps:$4 sm:$0xff]   ;;  %v1655_v30 = vld [vmem:[%s1767_s5 + $0xb0] ss:$8 sps:$4 sm:$0xff]   ;;  %v1658_v32 = vld [vmem:[%s1767_s5 + $0xc4] ss:$8 sps:$4 sm:$0xff]  }
  0x17   : > { %v1660_v33 = vld [vmem:[%s1767_s5 + $0x40] ss:$8 sps:$4 sm:$0xff]   ;;  %v1662_v35 = vld [vmem:[%s1767_s5 + $0x54] ss:$8 sps:$4 sm:$0xff]   ;;  %v1666_v37 = vld [vmem:[%s1767_s5 + $0x50] ss:$8 sps:$4 sm:$0xff]  }
  0x18   : > { %694 = vmatpush1.bf16.msra.mxu0 %v1626_v5  ;;  %1590 = vmatpush1.bf16.msra.mxu1 %v1626_v5  ;;  %v1661_v34 = vld [vmem:[%s1767_s5 + $0xc0] ss:$8 sps:$4 sm:$0xff]   ;;  %v1664_v36 = vld [vmem:[%s1767_s5 + $0xd4] ss:$8 sps:$4 sm:$0xff]   ;;  %v1667_v38 = vld [vmem:[%s1767_s5 + $0xd0] ss:$8 sps:$4 sm:$0xff]  }
  0x19   : > { %695 = vmatprep.subr.bf16.mxu0 %v1704_v1  ;;  %1581 = vmatprep.subr.bf16.mxu1 %v1704_v1  ;;  %v1668_v39 = vld [vmem:[%s1767_s5 + $0x64] ss:$8 sps:$4 sm:$0xff]   ;;  %v1672_v41 = vld [vmem:[%s1767_s5 + $0x60] ss:$8 sps:$4 sm:$0xff]   ;;  %v1674_v43 = vld [vmem:[%s1767_s5 + $0x74] ss:$8 sps:$4 sm:$0xff]  }
  0x1a   : > { %v1670_v40 = vld [vmem:[%s1767_s5 + $0xe4] ss:$8 sps:$4 sm:$0xff]   ;;  %v1673_v42 = vld [vmem:[%s1767_s5 + $0xe0] ss:$8 sps:$4 sm:$0xff]   ;;  %v1676_v44 = vld [vmem:[%s1767_s5 + $0xf4] ss:$8 sps:$4 sm:$0xff]  }
  0x1b   : > { %v1678_v45 = vld [vmem:[%s1767_s5 + $0x70] ss:$8 sps:$4 sm:$0xff]  }
  0x1c   : > { %696 = vmatpush1.bf16.msra.mxu0 %v1627_v8  ;;  %1591 = vmatpush1.bf16.msra.mxu1 %v1627_v8  ;;  %v1679_v46 = vld [vmem:[%s1767_s5 + $0xf0] ss:$8 sps:$4 sm:$0xff]  }
  0x1d   : > { %697 = vmatprep.subr.bf16.mxu0 %v1704_v1  ;;  %1582 = vmatprep.subr.bf16.mxu1 %v1704_v1 }
  0x20   : > { %698 = vmatpush1.bf16.msra.mxu0 %v1628_v9  ;;  %1592 = vmatpush1.bf16.msra.mxu1 %v1628_v9 }
  0x21   : > { %699 = vmatprep.subr.bf16.mxu0 %v1704_v1  ;;  %1583 = vmatprep.subr.bf16.mxu1 %v1704_v1 }
  0x24   : > { %700 = vmatpush1.bf16.msra.mxu0 %v1629_v10  ;;  %1593 = vmatpush1.bf16.msra.mxu1 %v1629_v10 }
  0x25   : > { %701 = vmatprep.subr.bf16.mxu0 %v1704_v1  ;;  %1584 = vmatprep.subr.bf16.mxu1 %v1704_v1 }
  0x28   : > { %702 = vmatpush1.bf16.msra.mxu0 %v1630_v13  ;;  %1594 = vmatpush1.bf16.msra.mxu1 %v1630_v13 }
  0x29   : > { %703 = vmatprep.subr.bf16.mxu0 %v1704_v1  ;;  %1585 = vmatprep.subr.bf16.mxu1 %v1704_v1 }
  0x2c   : > { %704 = vmatpush1.bf16.msra.mxu0 %v683_v16  ;;  %1595 = vmatpush1.bf16.msra.mxu1 %v683_v16 }
  0x2f   : > { %718 = vmatmul.mubr.bf16.vlgmr.msra.gmra.mrb[0].mxu0 %v1632_v17  ;;  %782 = vmatmul.mubr.bf16.vlgmr.msra.gmra.mrb[0].mxu1 %v1635_v18 }
  0x30   : > { %1397 = vmatprep.mubr.msk.bf16.mxu0 %vm629_vm0, %v1638_v19  ;;  %1405 = vmatprep.mubr.msk.bf16.mxu1 %vm629_vm0, %v1640_v20 }
  0x37   : > { %726 = vmatmul.mubr.bf16.gmra.mrb[4].mxu0 %v1642_v21  ;;  %790 = vmatmul.mubr.bf16.gmra.mrb[4].mxu1 %v1643_v22 }
  0x38   : > { %1398 = vmatprep.mubr.msk.bf16.mxu0 %vm629_vm0, %v1644_v23  ;;  %1406 = vmatprep.mubr.msk.bf16.mxu1 %vm629_vm0, %v1646_v24 }
  0x3f   : > { %734 = vmatmul.mubr.bf16.gmra.mrb[8].mxu0 %v1648_v25  ;;  %798 = vmatmul.mubr.bf16.gmra.mrb[8].mxu1 %v1649_v26 }
  0x40   : > { %1399 = vmatprep.mubr.msk.bf16.mxu0 %vm629_vm0, %v1650_v27  ;;  %1407 = vmatprep.mubr.msk.bf16.mxu1 %vm629_vm0, %v1652_v28 }
  0x47   : > { %742 = vmatmul.mubr.bf16.gmra.mrb[12].mxu0 %v1654_v29  ;;  %806 = vmatmul.mubr.bf16.gmra.mrb[12].mxu1 %v1655_v30 }
  0x48   : > { %1400 = vmatprep.mubr.msk.bf16.mxu0 %vm629_vm0, %v1656_v31  ;;  %1408 = vmatprep.mubr.msk.bf16.mxu1 %vm629_vm0, %v1658_v32 }
  0x4f   : > { %750 = vmatmul.mubr.bf16.gmra.mrb[16].mxu0 %v1660_v33  ;;  %814 = vmatmul.mubr.bf16.gmra.mrb[16].mxu1 %v1661_v34 }
  0x50   : > { %1401 = vmatprep.mubr.msk.bf16.mxu0 %vm629_vm0, %v1662_v35  ;;  %1409 = vmatprep.mubr.msk.bf16.mxu1 %vm629_vm0, %v1664_v36 }
  0x57   : > { %758 = vmatmul.mubr.bf16.gmra.mrb[20].mxu0 %v1666_v37  ;;  %822 = vmatmul.mubr.bf16.gmra.mrb[20].mxu1 %v1667_v38 }
  0x58   : > { %1402 = vmatprep.mubr.msk.bf16.mxu0 %vm629_vm0, %v1668_v39  ;;  %1410 = vmatprep.mubr.msk.bf16.mxu1 %vm629_vm0, %v1670_v40 }
  0x5f   : > { %766 = vmatmul.mubr.bf16.gmra.mrb[24].mxu0 %v1672_v41  ;;  %830 = vmatmul.mubr.bf16.gmra.mrb[24].mxu1 %v1673_v42 }
  0x60   : > { %1403 = vmatprep.mubr.msk.bf16.mxu0 %vm629_vm0, %v1674_v43  ;;  %1411 = vmatprep.mubr.msk.bf16.mxu1 %vm629_vm0, %v1676_v44 }
  0x67   : > { %774 = vmatmul.mubr.bf16.gmra.mrb[28].mxu0 %v1678_v45  ;;  %838 = vmatmul.mubr.bf16.gmra.mrb[28].mxu1 %v1679_v46 }
 0x102   : > { %v719_v48 = vpop.f32.mrb[0].mxu0  ;;  %v783_v50 = vpop.f32.mrb[0].mxu1 }
 0x103   : > { %v952_v51 = vmul.f32 %v1838_v47, %v719_v48  ;;  %v968_v52 = vmul.f32 %v1838_v47, %v783_v50  ;;  %v721_v53 = vpop.f32.mrb[1].mxu0  ;;  %v785_v54 = vpop.f32.mrb[1].mxu1 }
 0x104   : > { %v722_v55 = vpop.f32.mrb[2].mxu0  ;;  %v786_v56 = vpop.f32.mrb[2].mxu1 }
 0x105   : > { %v991_v57 = vadd.f32 %v1843_v49, %v952_v51  ;;  %v1007_v58 = vadd.f32 %v1843_v49, %v968_v52  ;;  %v953_v59 = vmul.f32 %v1838_v47, %v722_v55  ;;  %v969_v60 = vmul.f32 %v1838_v47, %v786_v56  ;;  %v724_v61 = vpop.f32.mrb[3].mxu0  ;;  %v788_v62 = vpop.f32.mrb[3].mxu1 }
 0x107   : > { %v992_v63 = vadd.f32 %v1843_v49, %v953_v59  ;;  %v1008_v0 = vadd.f32 %v1843_v49, %v969_v60  ;;  %v1023_v1 = vmax.f32 %v991_v57, 0.0  ;;  %v1039_v2 = vmax.f32 %v1007_v58, 0.0 }
 0x109   : > { %v1024_v3 = vmax.f32 %v992_v63, 0.0  ;;  %v1040_v4 = vmax.f32 %v1008_v0, 0.0 }
 0x10a   : > { %v727_v5 = vpop.f32.mrb[4].mxu0  ;;  %v791_v6 = vpop.f32.mrb[4].mxu1 }
 0x10b   : > { %v1484_v7 = vpack.c.bf16 %v1024_v3, %v1023_v1  ;;  %v1524_v8 = vpack.c.bf16 %v1040_v4, %v1039_v2  ;;  %v954_v9 = vmul.f32 %v1838_v47, %v727_v5  ;;  %v970_v10 = vmul.f32 %v1838_v47, %v791_v6  ;;  %v729_v11 = vpop.f32.mrb[5].mxu0  ;;  %v793_v12 = vpop.f32.mrb[5].mxu1 }
 0x10c   : > { %v730_v13 = vpop.f32.mrb[6].mxu0  ;;  %v794_v14 = vpop.f32.mrb[6].mxu1 }
 0x10d   : > { %1485 = vst [vmem:[%s1857_s29] sm:$0xff] %v1484_v7   ;;  %1568 = vst [vmem:[%s1857_s29 + $0x40] sm:$0xff] %v1524_v8   ;;  %v993_v15 = vadd.f32 %v1843_v49, %v954_v9  ;;  %v1009_v16 = vadd.f32 %v1843_v49, %v970_v10  ;;  %v955_v17 = vmul.f32 %v1838_v47, %v730_v13  ;;  %v732_v19 = vpop.f32.mrb[7].mxu0  ;;  %v796_v20 = vpop.f32.mrb[7].mxu1 }
 0x10e   : > { %v971_v18 = vmul.f32 %v1838_v47, %v794_v14 }
 0x10f   : > { %v994_v21 = vadd.f32 %v1843_v49, %v955_v17  ;;  %v1025_v23 = vmax.f32 %v993_v15, 0.0  ;;  %v1041_v24 = vmax.f32 %v1009_v16, 0.0 }
 0x110   : > { %v1010_v22 = vadd.f32 %v1843_v49, %v971_v18 }
 0x111   : > { %v1026_v25 = vmax.f32 %v994_v21, 0.0 }
 0x112   : > { %v1042_v26 = vmax.f32 %v1010_v22, 0.0  ;;  %v735_v27 = vpop.f32.mrb[8].mxu0  ;;  %v799_v28 = vpop.f32.mrb[8].mxu1 }
 0x113   : > { %v1489_v29 = vpack.c.bf16 %v1026_v25, %v1025_v23  ;;  %v956_v31 = vmul.f32 %v1838_v47, %v735_v27  ;;  %v972_v32 = vmul.f32 %v1838_v47, %v799_v28  ;;  %v737_v33 = vpop.f32.mrb[9].mxu0  ;;  %v801_v34 = vpop.f32.mrb[9].mxu1 }
 0x114   : > { %v1529_v30 = vpack.c.bf16 %v1042_v26, %v1041_v24  ;;  %v738_v35 = vpop.f32.mrb[10].mxu0  ;;  %v802_v36 = vpop.f32.mrb[10].mxu1 }
 0x115   : > { %1561 = vst [vmem:[%s1857_s29 + $0x8] sm:$0xff] %v1489_v29   ;;  %v995_v37 = vadd.f32 %v1843_v49, %v956_v31  ;;  %v1011_v38 = vadd.f32 %v1843_v49, %v972_v32  ;;  %v957_v39 = vmul.f32 %v1838_v47, %v738_v35  ;;  %v973_v40 = vmul.f32 %v1838_v47, %v802_v36  ;;  %v740_v41 = vpop.f32.mrb[11].mxu0  ;;  %v804_v42 = vpop.f32.mrb[11].mxu1 }
 0x116   : > { %1569 = vst [vmem:[%s1857_s29 + $0x48] sm:$0xff] %v1529_v30  }
 0x117   : > { %v996_v43 = vadd.f32 %v1843_v49, %v957_v39  ;;  %v1012_v44 = vadd.f32 %v1843_v49, %v973_v40  ;;  %v1027_v45 = vmax.f32 %v995_v37, 0.0  ;;  %v1043_v46 = vmax.f32 %v1011_v38, 0.0 }
 0x119   : > { %v1028_v48 = vmax.f32 %v996_v43, 0.0  ;;  %v1044_v50 = vmax.f32 %v1012_v44, 0.0 }
 0x11a   : > { %v743_v51 = vpop.f32.mrb[12].mxu0  ;;  %v807_v52 = vpop.f32.mrb[12].mxu1 }
 0x11b   : > { %v1494_v53 = vpack.c.bf16 %v1028_v48, %v1027_v45  ;;  %v1534_v54 = vpack.c.bf16 %v1044_v50, %v1043_v46  ;;  %v958_v55 = vmul.f32 %v1838_v47, %v743_v51  ;;  %v974_v56 = vmul.f32 %v1838_v47, %v807_v52  ;;  %v745_v57 = vpop.f32.mrb[13].mxu0  ;;  %v809_v58 = vpop.f32.mrb[13].mxu1 }
 0x11c   : > { %v746_v59 = vpop.f32.mrb[14].mxu0  ;;  %v810_v60 = vpop.f32.mrb[14].mxu1 }
 0x11d   : > { %1562 = vst [vmem:[%s1857_s29 + $0x10] sm:$0xff] %v1494_v53   ;;  %1570 = vst [vmem:[%s1857_s29 + $0x50] sm:$0xff] %v1534_v54   ;;  %v997_v61 = vadd.f32 %v1843_v49, %v958_v55  ;;  %v1013_v62 = vadd.f32 %v1843_v49, %v974_v56  ;;  %v959_v63 = vmul.f32 %v1838_v47, %v746_v59  ;;  %v748_v1 = vpop.f32.mrb[15].mxu0  ;;  %v812_v2 = vpop.f32.mrb[15].mxu1 }
 0x11e   : > { %v975_v0 = vmul.f32 %v1838_v47, %v810_v60 }
 0x11f   : > { %v998_v3 = vadd.f32 %v1843_v49, %v959_v63  ;;  %v1029_v5 = vmax.f32 %v997_v61, 0.0  ;;  %v1045_v6 = vmax.f32 %v1013_v62, 0.0 }
 0x120   : > { %v1014_v4 = vadd.f32 %v1843_v49, %v975_v0 }
 0x121   : > { %v1030_v7 = vmax.f32 %v998_v3, 0.0 }
 0x122   : > { %v1046_v8 = vmax.f32 %v1014_v4, 0.0  ;;  %v751_v9 = vpop.f32.mrb[16].mxu0  ;;  %v815_v10 = vpop.f32.mrb[16].mxu1 }
 0x123   : > { %v1499_v11 = vpack.c.bf16 %v1030_v7, %v1029_v5  ;;  %v960_v13 = vmul.f32 %v1838_v47, %v751_v9  ;;  %v976_v14 = vmul.f32 %v1838_v47, %v815_v10  ;;  %v753_v15 = vpop.f32.mrb[17].mxu0  ;;  %v817_v16 = vpop.f32.mrb[17].mxu1 }
 0x124   : > { %v1539_v12 = vpack.c.bf16 %v1046_v8, %v1045_v6  ;;  %v754_v17 = vpop.f32.mrb[18].mxu0  ;;  %v818_v18 = vpop.f32.mrb[18].mxu1 }
 0x125   : > { %1563 = vst [vmem:[%s1857_s29 + $0x18] sm:$0xff] %v1499_v11   ;;  %v999_v19 = vadd.f32 %v1843_v49, %v960_v13  ;;  %v1015_v20 = vadd.f32 %v1843_v49, %v976_v14  ;;  %v961_v21 = vmul.f32 %v1838_v47, %v754_v17  ;;  %v977_v22 = vmul.f32 %v1838_v47, %v818_v18  ;;  %v756_v23 = vpop.f32.mrb[19].mxu0  ;;  %v820_v24 = vpop.f32.mrb[19].mxu1 }
 0x126   : > { %1571 = vst [vmem:[%s1857_s29 + $0x58] sm:$0xff] %v1539_v12  }
 0x127   : > { %v1000_v25 = vadd.f32 %v1843_v49, %v961_v21  ;;  %v1016_v26 = vadd.f32 %v1843_v49, %v977_v22  ;;  %v1031_v27 = vmax.f32 %v999_v19, 0.0  ;;  %v1047_v28 = vmax.f32 %v1015_v20, 0.0 }
 0x129   : > { %v1032_v29 = vmax.f32 %v1000_v25, 0.0  ;;  %v1048_v30 = vmax.f32 %v1016_v26, 0.0 }
 0x12a   : > { %v759_v31 = vpop.f32.mrb[20].mxu0  ;;  %v823_v32 = vpop.f32.mrb[20].mxu1 }
 0x12b   : > { %v1504_v33 = vpack.c.bf16 %v1032_v29, %v1031_v27  ;;  %v1544_v34 = vpack.c.bf16 %v1048_v30, %v1047_v28  ;;  %v962_v35 = vmul.f32 %v1838_v47, %v759_v31  ;;  %v978_v36 = vmul.f32 %v1838_v47, %v823_v32  ;;  %v761_v37 = vpop.f32.mrb[21].mxu0  ;;  %v825_v38 = vpop.f32.mrb[21].mxu1 }
 0x12c   : > { %v762_v39 = vpop.f32.mrb[22].mxu0  ;;  %v826_v40 = vpop.f32.mrb[22].mxu1 }
 0x12d   : > { %1564 = vst [vmem:[%s1857_s29 + $0x20] sm:$0xff] %v1504_v33   ;;  %1572 = vst [vmem:[%s1857_s29 + $0x60] sm:$0xff] %v1544_v34   ;;  %v1001_v41 = vadd.f32 %v1843_v49, %v962_v35  ;;  %v1017_v42 = vadd.f32 %v1843_v49, %v978_v36  ;;  %v963_v43 = vmul.f32 %v1838_v47, %v762_v39  ;;  %v764_v45 = vpop.f32.mrb[23].mxu0  ;;  %v828_v46 = vpop.f32.mrb[23].mxu1 }
 0x12e   : > { %v979_v44 = vmul.f32 %v1838_v47, %v826_v40 }
 0x12f   : > { %v1002_v48 = vadd.f32 %v1843_v49, %v963_v43  ;;  %v1033_v51 = vmax.f32 %v1001_v41, 0.0  ;;  %v1049_v52 = vmax.f32 %v1017_v42, 0.0 }
 0x130   : > { %v1018_v50 = vadd.f32 %v1843_v49, %v979_v44 }
 0x131   : > { %v1034_v53 = vmax.f32 %v1002_v48, 0.0 }
 0x132   : > { %v1050_v54 = vmax.f32 %v1018_v50, 0.0  ;;  %v767_v55 = vpop.f32.mrb[24].mxu0  ;;  %v831_v56 = vpop.f32.mrb[24].mxu1 }
 0x133   : > { %v1509_v57 = vpack.c.bf16 %v1034_v53, %v1033_v51  ;;  %v964_v59 = vmul.f32 %v1838_v47, %v767_v55  ;;  %v980_v60 = vmul.f32 %v1838_v47, %v831_v56  ;;  %v769_v61 = vpop.f32.mrb[25].mxu0  ;;  %v833_v62 = vpop.f32.mrb[25].mxu1 }
 0x134   : > { %v1549_v58 = vpack.c.bf16 %v1050_v54, %v1049_v52  ;;  %v770_v63 = vpop.f32.mrb[26].mxu0  ;;  %v834_v0 = vpop.f32.mrb[26].mxu1 }
 0x135   : > { %1565 = vst [vmem:[%s1857_s29 + $0x28] sm:$0xff] %v1509_v57   ;;  %v1003_v1 = vadd.f32 %v1843_v49, %v964_v59  ;;  %v1019_v2 = vadd.f32 %v1843_v49, %v980_v60  ;;  %v965_v3 = vmul.f32 %v1838_v47, %v770_v63  ;;  %v981_v4 = vmul.f32 %v1838_v47, %v834_v0  ;;  %v772_v5 = vpop.f32.mrb[27].mxu0  ;;  %v836_v6 = vpop.f32.mrb[27].mxu1 }
 0x136   : > { %1573 = vst [vmem:[%s1857_s29 + $0x68] sm:$0xff] %v1549_v58  }
 0x137   : > { %v1004_v7 = vadd.f32 %v1843_v49, %v965_v3  ;;  %v1020_v8 = vadd.f32 %v1843_v49, %v981_v4  ;;  %v1035_v9 = vmax.f32 %v1003_v1, 0.0  ;;  %v1051_v10 = vmax.f32 %v1019_v2, 0.0 }
 0x139   : > { %v1036_v11 = vmax.f32 %v1004_v7, 0.0  ;;  %v1052_v12 = vmax.f32 %v1020_v8, 0.0 }
 0x13a   : > { %v775_v13 = vpop.f32.mrb[28].mxu0  ;;  %v839_v14 = vpop.f32.mrb[28].mxu1 }
 0x13b   : > { %v1514_v15 = vpack.c.bf16 %v1036_v11, %v1035_v9  ;;  %v1554_v16 = vpack.c.bf16 %v1052_v12, %v1051_v10  ;;  %v966_v17 = vmul.f32 %v1838_v47, %v775_v13  ;;  %v982_v18 = vmul.f32 %v1838_v47, %v839_v14  ;;  %v777_v19 = vpop.f32.mrb[29].mxu0  ;;  %v841_v20 = vpop.f32.mrb[29].mxu1 }
 0x13c   : > { %v778_v21 = vpop.f32.mrb[30].mxu0  ;;  %v842_v22 = vpop.f32.mrb[30].mxu1 }
 0x13d   : > { %1566 = vst [vmem:[%s1857_s29 + $0x30] sm:$0xff] %v1514_v15   ;;  %1574 = vst [vmem:[%s1857_s29 + $0x70] sm:$0xff] %v1554_v16   ;;  %v1005_v23 = vadd.f32 %v1843_v49, %v966_v17  ;;  %v1021_v24 = vadd.f32 %v1843_v49, %v982_v18  ;;  %v967_v25 = vmul.f32 %v1838_v47, %v778_v21  ;;  %v780_v27 = vpop.f32.mrb[31].mxu0  ;;  %v844_v28 = vpop.f32.mrb[31].mxu1 }
 0x13e   : > { %v983_v26 = vmul.f32 %v1838_v47, %v842_v22 }
 0x13f   : > { %v1006_v29 = vadd.f32 %v1843_v49, %v967_v25  ;;  %v1037_v31 = vmax.f32 %v1005_v23, 0.0  ;;  %v1053_v32 = vmax.f32 %v1021_v24, 0.0 }
 0x140   : > { %v1022_v30 = vadd.f32 %v1843_v49, %v983_v26 }
 0x141   : > { %v1038_v33 = vmax.f32 %v1006_v29, 0.0 }
 0x142   : > { %v1054_v34 = vmax.f32 %v1022_v30, 0.0 }
 0x143   : > { %v1519_v35 = vpack.c.bf16 %v1038_v33, %v1037_v31 }
 0x144   : > { %v1559_v36 = vpack.c.bf16 %v1054_v34, %v1053_v32 }
 0x145   : > { %1567 = vst [vmem:[%s1857_s29 + $0x38] sm:$0xff] %v1519_v35  }
 0x146   : > { %1575 = vst [vmem:[%s1857_s29 + $0x78] sm:$0xff] %v1559_v36  }
 0x147 PF: > { %s14_s17 = sadd.s32 1, %s1702_s17   ;;  %s1945_s15 = smov %s1698_s16 }
 0x148   : > { %p11_p5 = scmp.ge.s32.totalorder %s14_s17, 4   ;;  %s1946_s16 = smov %s1948_s18 }
 0x14a   :  { %13 = sbr.rel (!%p11_p5) target bundleno = 2 (0x2), region = 83 }

// kernel: cnn_network_forward.25
= control target key start
LH: loop header
LB: loop body
LE: loop exit
PB: predicated region body
PF: predicated region fallthrough
CT: control target
= control target key end

     0   :  { %s785_s6 = smov 0   ;;  %s1055_s0 = inlined_call_operand.vmem [shape: bf16[8,9,9,64], index: 0, kind: input, shape index: {}]   ;;  %s1056_s1 = inlined_call_operand.vmem [shape: bf16[2,8,8,64], index: 1, kind: output, shape index: {}]  }
   0x1 LB: > { %s791_s7 = sadd.s32 4294967295, %s773_s6   ;;  %p694_p0 = scmp.ge.s32.totalorder %s773_s6, 1  ;;  %s773_s6 = sphi %s785_s6, %s11_s6  }
   0x2   : > { %p89_p1 = scmp.lt.s32.totalorder %s773_s6, 3 }
   0x4   : > { %p90_p2 = pnand %p694_p0, %p89_p1 }
   0x5   : > { %s695_s8 = sshll.u32 (!%p90_p2), %s791_s7, 2  ;;  %vm155_vm0 = vsmask.f32 (!%p90_p2), 3328  ;;  %vm156_vm1 = vsmask.f32 (!%p90_p2), 7440  ;;  %p117_p4 = scmp.lt.s32.totalorder (!%p90_p2), %s791_s7, 1 }
   0x6   : > { %93 = sbr.rel (%p90_p2) target bundleno = 100 (0x64), region = 24  ;;  %p111_p3 = scmp.lt.s32.totalorder (!%p90_p2), %s695_s8, 7  ;;  %vm815_vm2 = vmor (!%p90_p2), %vm155_vm0, %vm156_vm1  ;;  %vm626_vm3 = vcmask (!%p90_p2), 519168  }
   0xd   : > { %s1060_s8 = smov (!%p111_p3, %s695_s8), 7  ;;  %s1062_s7 = smov (!%p117_p4, %s791_s7), 1 }
   0xe   : > { %s758_s9 = smul.u32 72, %s1060_s8  ;;  %s757_s13 = sshll.u32 %s1062_s7, 5 }
   0xf   : > { %s880_s16 = scalar_lea.vmem %s1056_s1, %s757_s13 }
  0x10   : > { %s799_s12 = scalar_lea.vmem %s1055_s0, %s758_s9 }
  0x11   : > { %v122_v0 = vld [vmem:[%s799_s12] sm:$0xf]  ;;  %v147_v1 = vld [vmem:[%s799_s12 + $0x4] sm:$0x1]  ;;  %v707_v5 = vld [vmem:[%s799_s12 + $0x90] sm:$0xf] }
  0x12   : > { %v159_v2 = vshrl.u32 %v122_v0, 16  ;;  %v162_v3 = vshll.u32 %v122_v0, 16  ;;  %v168_v4 = vshll.u32 %v147_v1, 16  ;;  %v699_v6 = vld [vmem:[%s799_s12 + $0x48] sm:$0xf]  ;;  %v329_v8 = vshrl.u32 %v707_v5, 16 }
  0x13   : > { %v723_v7 = vld [vmem:[%s799_s12 + $0x94] sm:$0x1]  ;;  %v332_v9 = vshll.u32 %v707_v5, 16  ;;  %v807_v13 = vld [vmem:[%s799_s12 + $0x8] sm:$0xf]  ;;  %v139_v22 = vmax.bf16 %v699_v6, %v122_v0 }
  0x14   : > { %v161_v10 = vrot.slane %v159_v2, 4  ;;  %v164_v11 = vrot.slane %v162_v3, 5  ;;  %v338_v12 = vshll.u32 %v723_v7, 16  ;;  %v331_v14 = vrot.slane %v329_v8, 4  ;;  %v747_v16 = vld [vmem:[%s799_s12 + $0xc] sm:$0x1] }
  0x15   : > { %v334_v15 = vrot.slane %v332_v9, 5  ;;  %v170_v18 = vrot.slane %v168_v4, 5  ;;  %v499_v19 = vshrl.u32 %v807_v13, 16  ;;  %v502_v20 = vshll.u32 %v807_v13, 16  ;;  %v123_v21 = vld [vmem:[%s799_s12 + $0x8] sm:$0xf] }
  0x16   : > { %v165_v17 = vor.u32 %v164_v11, %v161_v10  ;;  %v508_v25 = vshll.u32 %v747_v16, 16  ;;  %v700_v26 = vld [vmem:[%s799_s12 + $0x50] sm:$0xf]  ;;  %v148_v27 = vld [vmem:[%s799_s12 + $0xc] sm:$0x1]  ;;  %v173_v28 = vshrl.u32 %v123_v21, 16 }
  0x17   : > { %v335_v24 = vor.u32 %v334_v15, %v331_v14  ;;  %v340_v30 = vrot.slane %v338_v12, 5  ;;  %v501_v31 = vrot.slane %v499_v19, 4  ;;  %v504_v32 = vrot.slane %v502_v20, 5  ;;  %v822_v33 = vld [vmem:[%s799_s12 + $0x98] sm:$0xf] }
  0x18   : > { %v166_v29 = vrot.slane %v165_v17, 4  ;;  %v140_v35 = vmax.bf16 %v700_v26, %v123_v21  ;;  %v175_v36 = vrot.slane %v173_v28, 4  ;;  %v176_v37 = vshll.u32 %v123_v21, 16  ;;  %v724_v41 = vld [vmem:[%s799_s12 + $0x9c] sm:$0x1] }
  0x19   : > { %v336_v34 = vrot.slane %v335_v24, 4  ;;  %v505_v39 = vor.u32 %v504_v32, %v501_v31  ;;  %v182_v40 = vshll.u32 %v148_v27, 16  ;;  %v343_v42 = vshrl.u32 %v822_v33, 16  ;;  %v830_v43 = vld [vmem:[%s799_s12 + $0x10] sm:$0xf] }
  0x1a   : > { %v171_v38 = vsel %vm815_vm2, %v166_v29, %v170_v18  ;;  %v832_v45 = vrot.slane %v508_v25, 5  ;;  %v178_v46 = vrot.slane %v176_v37, 5  ;;  %v346_v47 = vshll.u32 %v822_v33, 16  ;;  %v748_v48 = vld [vmem:[%s799_s12 + $0x14] sm:$0x1] }
  0x1b   : > { %v278_v44 = vmax.bf16 %v171_v38, %v139_v22  ;;  %v715_v49 = vld [vmem:[%s799_s12 + $0xd8] sm:$0xf]  ;;  %v506_v50 = vrot.slane %v505_v39, 4  ;;  %v184_v51 = vrot.slane %v182_v40, 5  ;;  %v345_v52 = vrot.slane %v343_v42, 4 }
  0x1c   : > { %v352_v53 = vshll.u32 %v724_v41, 16  ;;  %v179_v55 = vor.u32 %v178_v46, %v175_v36  ;;  %v348_v56 = vrot.slane %v346_v47, 5  ;;  %v513_v57 = vshrl.u32 %v830_v43, 16  ;;  %v844_v58 = vld [vmem:[%s799_s12 + $0x10] sm:$0xf] }
  0x1d   : > { %v295_v54 = vmax.bf16 %v707_v5, %v278_v44  ;;  %v341_v59 = vsel %vm815_vm2, %v336_v34, %v340_v30  ;;  %v516_v61 = vshll.u32 %v830_v43, 16  ;;  %v522_v62 = vshll.u32 %v748_v48, 16  ;;  %v149_v3 = vld [vmem:[%s799_s12 + $0x14] sm:$0x1]  ;;  %v857_v8 = vld [vmem:[%s799_s12 + $0xa0] sm:$0xf] }
  0x1e   : > { %v354_v60 = vrot.slane %v352_v53, 5  ;;  %v180_v0 = vrot.slane %v179_v55, 4  ;;  %v349_v1 = vor.u32 %v348_v56, %v345_v52  ;;  %v515_v2 = vrot.slane %v513_v57, 4  ;;  %v739_v10 = vld [vmem:[%s799_s12 + $0x50] sm:$0xf] }
  0x1f   : > { %v312_v63 = vmax.bf16 %v715_v49, %v295_v54  ;;  %v511_v4 = vsel %vm815_vm2, %v506_v50, %v832_v45  ;;  %v518_v5 = vrot.slane %v516_v61, 5  ;;  %v853_v6 = vrot.slane %v522_v62, 5  ;;  %v716_v16 = vld [vmem:[%s799_s12 + $0xe0] sm:$0xf]  ;;  %v725_v20 = vld [vmem:[%s799_s12 + $0xa4] sm:$0x1] }
  0x20   : > { %v187_v7 = vshrl.u32 %v844_v58, 16  ;;  %v185_v11 = vsel %vm815_vm2, %v180_v0, %v184_v51  ;;  %v350_v12 = vrot.slane %v349_v1, 4  ;;  %v190_v14 = vshll.u32 %v844_v58, 16  ;;  %v701_v24 = vld [vmem:[%s799_s12 + $0x58] sm:$0xf] }
  0x21   : > { %v448_v9 = vmax.bf16 %v341_v59, %v312_v63  ;;  %v279_v15 = vmax.bf16 %v185_v11, %v140_v35  ;;  %v519_v17 = vor.u32 %v518_v5, %v515_v2  ;;  %v196_v19 = vshll.u32 %v149_v3, 16  ;;  %v872_v27 = vld [vmem:[%s799_s12 + $0x18] sm:$0xf]  ;;  %v749_v36 = vld [vmem:[%s799_s12 + $0x1c] sm:$0x1] }
  0x22   : > { %v189_v18 = vrot.slane %v187_v7, 4  ;;  %v355_v22 = vsel %vm815_vm2, %v350_v12, %v354_v60  ;;  %v192_v25 = vrot.slane %v190_v14, 5  ;;  %v357_v26 = vshrl.u32 %v857_v8, 16  ;;  %v885_v40 = vld [vmem:[%s799_s12 + $0x18] sm:$0xf] }
  0x23   : > { %v465_v21 = vmax.bf16 %v807_v13, %v448_v9  ;;  %v296_v28 = vmax.bf16 %v822_v33, %v279_v15  ;;  %v520_v29 = vrot.slane %v519_v17, 4  ;;  %v198_v30 = vrot.slane %v196_v19, 5  ;;  %v892_v46 = vld [vmem:[%s799_s12 + $0x60] sm:$0xf]  ;;  %v740_v48 = vld [vmem:[%s799_s12 + $0x58] sm:$0xf] }
  0x24   : > { %v360_v31 = vshll.u32 %v857_v8, 16  ;;  %v193_v34 = vor.u32 %v192_v25, %v189_v18  ;;  %v359_v13 = vrot.slane %v357_v26, 4  ;;  %v366_v35 = vshll.u32 %v725_v20, 16  ;;  %v150_v52 = vld [vmem:[%s799_s12 + $0x1c] sm:$0x1] }
  0x25   : > { %v482_v32 = vmax.bf16 %v739_v10, %v465_v21  ;;  %v313_v37 = vmax.bf16 %v716_v16, %v296_v28  ;;  %v141_v33 = vmax.bf16 %v701_v24, %v844_v58  ;;  %v527_v39 = vshrl.u32 %v872_v27, 16  ;;  %v902_v57 = vld [vmem:[%s799_s12 + $0xa8] sm:$0xf]  ;;  %v726_v3 = vld [vmem:[%s799_s12 + $0xac] sm:$0x1] }
  0x26   : > { %v362_v38 = vrot.slane %v360_v31, 5  ;;  %v525_v42 = vsel %vm815_vm2, %v520_v29, %v853_v6  ;;  %v194_v44 = vrot.slane %v193_v34, 4  ;;  %v530_v45 = vshll.u32 %v872_v27, 16  ;;  %v717_v60 = vld [vmem:[%s799_s12 + $0xe8] sm:$0xf] }
  0x27   : > { %v618_v41 = vmax.bf16 %v511_v4, %v482_v32  ;;  %v449_v47 = vmax.bf16 %v355_v22, %v313_v37  ;;  %v529_v50 = vrot.slane %v527_v39, 4  ;;  %v536_v51 = vshll.u32 %v749_v36, 16  ;;  %v913_v7 = vld [vmem:[%s799_s12 + $0x20] sm:$0xf]  ;;  %v750_v14 = vld [vmem:[%s799_s12 + $0x24] sm:$0x1] }
  0x28   : > { %v363_v49 = vor.u32 %v362_v38, %v359_v13  ;;  %v199_v53 = vsel %vm815_vm2, %v194_v44, %v198_v30  ;;  %v368_v54 = vrot.slane %v366_v35, 5  ;;  %v532_v55 = vrot.slane %v530_v45, 5  ;;  %v921_v22 = vld [vmem:[%s799_s12 + $0x20] sm:$0xf]  ;;  %v151_v29 = vld [vmem:[%s799_s12 + $0x24] sm:$0x1] }
  0x29   : > { %627 = vst.msk [vmem:[%s880_s16] sm:$0xf] %vm626_vm3, %v618_v41  ;;  %v201_v56 = vshrl.u32 %v885_v40, 16  ;;  %v466_v58 = vmax.bf16 %v830_v43, %v449_v47  ;;  %v280_v59 = vmax.bf16 %v199_v53, %v141_v33  ;;  %v142_v62 = vmax.bf16 %v892_v46, %v885_v40  ;;  %v741_v30 = vld [vmem:[%s799_s12 + $0x60] sm:$0xf] }
  0x2a   : > { %v364_v61 = vrot.slane %v363_v49, 4  ;;  %v533_v63 = vor.u32 %v532_v55, %v529_v50  ;;  %v204_v1 = vshll.u32 %v885_v40, 16  ;;  %v210_v2 = vshll.u32 %v150_v52, 16  ;;  %v935_v38 = vld [vmem:[%s799_s12 + $0xb0] sm:$0xf] }
  0x2b   : > { %v203_v0 = vrot.slane %v201_v56, 4  ;;  %v483_v4 = vmax.bf16 %v740_v48, %v466_v58  ;;  %v297_v5 = vmax.bf16 %v857_v8, %v280_v59  ;;  %v538_v6 = vrot.slane %v536_v51, 5  ;;  %v718_v40 = vld [vmem:[%s799_s12 + $0xf0] sm:$0xf]  ;;  %v727_v48 = vld [vmem:[%s799_s12 + $0xb4] sm:$0x1] }
  0x2c   : > { %v371_v43 = vshrl.u32 %v902_v57, 16  ;;  %v369_v9 = vsel %vm815_vm2, %v364_v61, %v368_v54  ;;  %v534_v10 = vrot.slane %v533_v63, 4  ;;  %v206_v11 = vrot.slane %v204_v1, 5  ;;  %v943_v49 = vld [vmem:[%s799_s12 + $0x28] sm:$0xf] }
  0x2d   : > { %v374_v12 = vshll.u32 %v902_v57, 16  ;;  %v619_v15 = vmax.bf16 %v525_v42, %v483_v4  ;;  %v314_v16 = vmax.bf16 %v717_v60, %v297_v5  ;;  %v380_v17 = vshll.u32 %v726_v3, 16  ;;  %v703_v51 = vld [vmem:[%s799_s12 + $0x68] sm:$0xf]  ;;  %v751_v63 = vld [vmem:[%s799_s12 + $0x2c] sm:$0x1] }
  0x2e   : > { %v373_v8 = vrot.slane %v371_v43, 4  ;;  %v207_v18 = vor.u32 %v206_v11, %v203_v0  ;;  %v212_v19 = vrot.slane %v210_v2, 5  ;;  %v541_v21 = vshrl.u32 %v913_v7, 16  ;;  %v127_v4 = vld [vmem:[%s799_s12 + $0x28] sm:$0xf] }
  0x2f   : > { %v376_v20 = vrot.slane %v374_v12, 5  ;;  %628 = vst.msk [vmem:[%s880_s16 + $0x4] sm:$0xf] %vm626_vm3, %v619_v15  ;;  %v450_v24 = vmax.bf16 %v369_v9, %v314_v16  ;;  %v539_v25 = vsel %vm815_vm2, %v534_v10, %v538_v6  ;;  %v544_v26 = vshll.u32 %v913_v7, 16  ;;  %v704_v5 = vld [vmem:[%s799_s12 + $0x70] sm:$0xf] }
  0x30   : > { %v550_v28 = vshll.u32 %v750_v14, 16  ;;  %v208_v31 = vrot.slane %v207_v18, 4  ;;  %v382_v34 = vrot.slane %v380_v17, 5  ;;  %v543_v13 = vrot.slane %v541_v21, 4  ;;  %v152_v16 = vld [vmem:[%s799_s12 + $0x2c] sm:$0x1] }
  0x31   : > { %v377_v32 = vor.u32 %v376_v20, %v373_v8  ;;  %v467_v35 = vmax.bf16 %v872_v27, %v450_v24  ;;  %v546_v36 = vrot.slane %v544_v26, 5  ;;  %v215_v33 = vshrl.u32 %v921_v22, 16  ;;  %v964_v8 = vld [vmem:[%s799_s12 + $0xb8] sm:$0xf]  ;;  %v742_v17 = vld [vmem:[%s799_s12 + $0x68] sm:$0xf] }
  0x32   : > { %v931_v37 = vrot.slane %v550_v28, 5  ;;  %v213_v39 = vsel %vm815_vm2, %v208_v31, %v212_v19  ;;  %v218_v42 = vshll.u32 %v921_v22, 16  ;;  %v224_v44 = vshll.u32 %v151_v29, 16 }
  0x33   : > { %v378_v41 = vrot.slane %v377_v32, 4  ;;  %v484_v45 = vmax.bf16 %v741_v30, %v467_v35  ;;  %v281_v46 = vmax.bf16 %v213_v39, %v142_v62  ;;  %v547_v47 = vor.u32 %v546_v36, %v543_v13  ;;  %v728_v32 = vld [vmem:[%s799_s12 + $0xbc] sm:$0x1] }
  0x34   : > { %v217_v27 = vrot.slane %v215_v33, 4  ;;  %v220_v52 = vrot.slane %v218_v42, 5  ;;  %v226_v53 = vrot.slane %v224_v44, 5  ;;  %v385_v54 = vshrl.u32 %v935_v38, 16  ;;  %v752_v42 = vld [vmem:[%s799_s12 + $0x34] sm:$0x1] }
  0x35   : > { %v383_v50 = vsel %vm815_vm2, %v378_v41, %v382_v34  ;;  %v620_v55 = vmax.bf16 %v539_v25, %v484_v45  ;;  %v298_v56 = vmax.bf16 %v902_v57, %v281_v46  ;;  %v548_v58 = vrot.slane %v547_v47, 4  ;;  %v719_v25 = vld [vmem:[%s799_s12 + $0xf8] sm:$0xf] }
  0x36   : > { %v388_v59 = vshll.u32 %v935_v38, 16  ;;  %v221_v60 = vor.u32 %v220_v52, %v217_v27  ;;  %v387_v61 = vrot.slane %v385_v54, 4  ;;  %v394_v62 = vshll.u32 %v727_v48, 16 }
  0x37   : > { %v555_v0 = vshrl.u32 %v943_v49, 16  ;;  %629 = vst.msk [vmem:[%s880_s16 + $0x8] sm:$0xf] %vm626_vm3, %v620_v55  ;;  %v315_v1 = vmax.bf16 %v718_v40, %v298_v56  ;;  %v143_v2 = vmax.bf16 %v703_v51, %v921_v22  ;;  %v558_v57 = vshll.u32 %v943_v49, 16  ;;  %v984_v51 = vld [vmem:[%s799_s12 + $0x30] sm:$0xf] }
  0x38   : > { %v390_v3 = vrot.slane %v388_v59, 5  ;;  %v553_v6 = vsel %vm815_vm2, %v548_v58, %v931_v37  ;;  %v222_v43 = vrot.slane %v221_v60, 4  ;;  %v396_v9 = vrot.slane %v394_v62, 5  ;;  %v153_v55 = vld [vmem:[%s799_s12 + $0x34] sm:$0x1] }
  0x39   : > { %v557_v10 = vrot.slane %v555_v0, 4  ;;  %v451_v11 = vmax.bf16 %v383_v50, %v315_v1  ;;  %v560_v14 = vrot.slane %v558_v57, 5  ;;  %v564_v15 = vshll.u32 %v751_v63, 16  ;;  %v743_v56 = vld [vmem:[%s799_s12 + $0x70] sm:$0xf] }
  0x3a   : > { %v391_v12 = vor.u32 %v390_v3, %v387_v61  ;;  %v227_v18 = vsel %vm815_vm2, %v222_v43, %v226_v53  ;;  %v144_v19 = vmax.bf16 %v704_v5, %v127_v4  ;;  %v229_v20 = vshrl.u32 %v127_v4, 16  ;;  %v993_v62 = vld [vmem:[%s799_s12 + $0xc0] sm:$0xf] }
  0x3b   : > { %v232_v21 = vshll.u32 %v127_v4, 16  ;;  %v468_v22 = vmax.bf16 %v913_v7, %v451_v11  ;;  %v282_v24 = vmax.bf16 %v227_v18, %v143_v2  ;;  %v561_v28 = vor.u32 %v560_v14, %v557_v10  ;;  %v977_v7 = vld [vmem:[%s799_s12 + $0x30] sm:$0xf]  ;;  %v720_v3 = vld [vmem:[%s799_s12 + $0x100] sm:$0xf] }
  0x3c   : > { %v392_v26 = vrot.slane %v391_v12, 4  ;;  %v231_v29 = vrot.slane %v229_v20, 4  ;;  %v238_v31 = vshll.u32 %v152_v16, 16  ;;  %v399_v34 = vshrl.u32 %v964_v8, 16  ;;  %v1005_v12 = vld [vmem:[%s799_s12 + $0x38] sm:$0xf] }
  0x3d   : > { %v234_v30 = vrot.slane %v232_v21, 5  ;;  %v485_v13 = vmax.bf16 %v742_v17, %v468_v22  ;;  %v299_v35 = vmax.bf16 %v935_v38, %v282_v24  ;;  %v566_v37 = vrot.slane %v564_v15, 5  ;;  %v705_v17 = vld [vmem:[%s799_s12 + $0x78] sm:$0xf]  ;;  %v753_v22 = vld [vmem:[%s799_s12 + $0x3c] sm:$0x1] }
  0x3e   : > { %v397_v36 = vsel %vm815_vm2, %v392_v26, %v396_v9  ;;  %v240_v39 = vrot.slane %v238_v31, 5  ;;  %v401_v40 = vrot.slane %v399_v34, 4  ;;  %v402_v41 = vshll.u32 %v964_v8, 16  ;;  %v744_v24 = vld [vmem:[%s799_s12 + $0x78] sm:$0xf] }
  0x3f   : > { %v235_v33 = vor.u32 %v234_v30, %v231_v29  ;;  %v621_v44 = vmax.bf16 %v553_v6, %v485_v13  ;;  %v316_v45 = vmax.bf16 %v719_v25, %v299_v35  ;;  %v562_v46 = vrot.slane %v561_v28, 4  ;;  %v129_v13 = vld [vmem:[%s799_s12 + $0x38] sm:$0xf]  ;;  %v154_v35 = vld [vmem:[%s799_s12 + $0x3c] sm:$0x1] }
  0x40   : > { %v408_v38 = vshll.u32 %v728_v32, 16  ;;  %v404_v27 = vrot.slane %v402_v41, 5  ;;  %v569_v48 = vshrl.u32 %v977_v7, 16  ;;  %v572_v50 = vshll.u32 %v977_v7, 16 }
  0x41   : > { %v236_v47 = vrot.slane %v235_v33, 4  ;;  %630 = vst.msk [vmem:[%s880_s16 + $0xc] sm:$0xf] %vm626_vm3, %v621_v44  ;;  %v452_v52 = vmax.bf16 %v397_v36, %v316_v45  ;;  %v578_v54 = vshll.u32 %v752_v42, 16  ;;  %v567_v0 = vsel %vm815_vm2, %v562_v46, %v566_v37  ;;  %v714_v46 = vld [vmem:[%s799_s12 + $0xc8] sm:$0xf] }
  0x42   : > { %v410_v53 = vrot.slane %v408_v38, 5  ;;  %v405_v59 = vor.u32 %v404_v27, %v401_v40  ;;  %v571_v60 = vrot.slane %v569_v48, 4  ;;  %v574_v61 = vrot.slane %v572_v50, 5  ;;  %v706_v40 = vld [vmem:[%s799_s12 + $0x80] sm:$0xf] }
  0x43   : > { %v241_v58 = vsel %vm815_vm2, %v236_v47, %v240_v39  ;;  %v469_v63 = vmax.bf16 %v943_v49, %v452_v52  ;;  %v243_v2 = vshrl.u32 %v984_v51, 16  ;;  %v246_v5 = vshll.u32 %v984_v51, 16  ;;  %v729_v49 = vld [vmem:[%s799_s12 + $0xc4] sm:$0x1]  ;;  %v721_v52 = vld [vmem:[%s799_s12 + $0x108] sm:$0xf] }
  0x44   : > { %v283_v1 = vmax.bf16 %v241_v58, %v144_v19  ;;  %v406_v57 = vrot.slane %v405_v59, 4  ;;  %v575_v4 = vor.u32 %v574_v61, %v571_v60  ;;  %v252_v6 = vshll.u32 %v153_v55, 16  ;;  %v730_v55 = vld [vmem:[%s799_s12 + $0xcc] sm:$0x1]  ;;  %v738_v60 = vld [vmem:[%s799_s12 + $0x40] sm:$0xf] }
  0x45   : > { %v486_v43 = vmax.bf16 %v743_v56, %v469_v63  ;;  %v245_v10 = vrot.slane %v243_v2, 4  ;;  %v413_v11 = vshrl.u32 %v993_v62, 16  ;;  %v580_v16 = vrot.slane %v578_v54, 5  ;;  %v754_v2 = vld [vmem:[%s799_s12 + $0x44] sm:$0x1] }
  0x46   : > { %v300_v9 = vmax.bf16 %v964_v8, %v283_v1  ;;  %v411_v14 = vsel %vm815_vm2, %v406_v57, %v410_v53  ;;  %v576_v15 = vrot.slane %v575_v4, 4  ;;  %v248_v18 = vrot.slane %v246_v5, 5 }
  0x47   : > { %v622_v19 = vmax.bf16 %v567_v0, %v486_v43  ;;  %v415_v21 = vrot.slane %v413_v11, 4  ;;  %v416_v8 = vshll.u32 %v993_v62, 16  ;;  %v254_v26 = vrot.slane %v252_v6, 5 }
  0x48   : > { %v317_v20 = vmax.bf16 %v720_v3, %v300_v9  ;;  %v249_v25 = vor.u32 %v248_v18, %v245_v10  ;;  %v422_v28 = vshll.u32 %v729_v49, 16  ;;  %v583_v29 = vshrl.u32 %v1005_v12, 16  ;;  %v745_v18 = vld [vmem:[%s799_s12 + $0x80] sm:$0xf] }
  0x49   : > { %631 = vst.msk [vmem:[%s880_s16 + $0x10] sm:$0xf] %vm626_vm3, %v622_v19  ;;  %v145_v31 = vmax.bf16 %v705_v17, %v984_v51  ;;  %v418_v32 = vrot.slane %v416_v8, 5  ;;  %v586_v34 = vshll.u32 %v1005_v12, 16  ;;  %v581_v36 = vsel %vm815_vm2, %v576_v15, %v580_v16 }
  0x4a   : > { %v453_v30 = vmax.bf16 %v411_v14, %v317_v20  ;;  %v250_v37 = vrot.slane %v249_v25, 4  ;;  %v585_v33 = vrot.slane %v583_v29, 4  ;;  %v592_v39 = vshll.u32 %v753_v22, 16 }
  0x4b   : > { %v419_v42 = vor.u32 %v418_v32, %v415_v21  ;;  %v424_v44 = vrot.slane %v422_v28, 5  ;;  %v588_v45 = vrot.slane %v586_v34, 5  ;;  %v257_v47 = vshrl.u32 %v129_v13, 16  ;;  %v722_v28 = vld [vmem:[%s799_s12 + $0x110] sm:$0xf] }
  0x4c   : > { %v470_v41 = vmax.bf16 %v977_v7, %v453_v30  ;;  %v255_v38 = vsel %vm815_vm2, %v250_v37, %v254_v26  ;;  %v260_v27 = vshll.u32 %v129_v13, 16  ;;  %v266_v48 = vshll.u32 %v154_v35, 16  ;;  %v746_v37 = vld [vmem:[%s799_s12 + $0x88] sm:$0xf] }
  0x4d   : > { %v284_v51 = vmax.bf16 %v255_v38, %v145_v31  ;;  %v420_v53 = vrot.slane %v419_v42, 4  ;;  %v146_v54 = vmax.bf16 %v706_v40, %v129_v13  ;;  %v589_v7 = vor.u32 %v588_v45, %v585_v33 }
  0x4e   : > { %v487_v50 = vmax.bf16 %v744_v24, %v470_v41  ;;  %v259_v56 = vrot.slane %v257_v47, 4  ;;  %v262_v58 = vrot.slane %v260_v27, 5  ;;  %v427_v59 = vshrl.u32 %v714_v46, 16 }
  0x4f   : > { %v301_v63 = vmax.bf16 %v993_v62, %v284_v51  ;;  %v425_v0 = vsel %vm815_vm2, %v420_v53, %v424_v44  ;;  %v268_v1 = vrot.slane %v266_v48, 5  ;;  %v430_v4 = vshll.u32 %v714_v46, 16 }
  0x50   : > { %v623_v61 = vmax.bf16 %v581_v36, %v487_v50  ;;  %v263_v3 = vor.u32 %v262_v58, %v259_v56  ;;  %v429_v57 = vrot.slane %v427_v59, 4  ;;  %v436_v5 = vshll.u32 %v730_v55, 16 }
  0x51   : > { %v318_v6 = vmax.bf16 %v721_v52, %v301_v63  ;;  %v594_v43 = vrot.slane %v592_v39, 5  ;;  %v597_v9 = vshrl.u32 %v738_v60, 16  ;;  %v600_v10 = vshll.u32 %v738_v60, 16 }
  0x52   : > { %632 = vst.msk [vmem:[%s880_s16 + $0x14] sm:$0xf] %vm626_vm3, %v623_v61  ;;  %v590_v49 = vrot.slane %v589_v7, 4  ;;  %v264_v11 = vrot.slane %v263_v3, 4  ;;  %v432_v62 = vrot.slane %v430_v4, 5  ;;  %v606_v14 = vshll.u32 %v754_v2, 16 }
  0x53   : > { %v454_v15 = vmax.bf16 %v425_v0, %v318_v6  ;;  %v599_v16 = vrot.slane %v597_v9, 4  ;;  %v602_v17 = vrot.slane %v600_v10, 5  ;;  %v438_v21 = vrot.slane %v436_v5, 5 }
  0x54   : > { %v269_v19 = vsel %vm815_vm2, %v264_v11, %v268_v1  ;;  %v433_v20 = vor.u32 %v432_v62, %v429_v57  ;;  %v608_v25 = vrot.slane %v606_v14, 5  ;;  %v595_v26 = vsel %vm815_vm2, %v590_v49, %v594_v43 }
  0x55   : > { %v471_v8 = vmax.bf16 %v1005_v12, %v454_v15  ;;  %v285_v22 = vmax.bf16 %v269_v19, %v146_v54  ;;  %v603_v24 = vor.u32 %v602_v17, %v599_v16 }
  0x56   : > { %v434_v29 = vrot.slane %v433_v20, 4 }
  0x57   : > { %v488_v30 = vmax.bf16 %v745_v18, %v471_v8  ;;  %v302_v31 = vmax.bf16 %v714_v46, %v285_v22  ;;  %v604_v32 = vrot.slane %v603_v24, 4 }
  0x58   : > { %v439_v34 = vsel %vm815_vm2, %v434_v29, %v438_v21 }
  0x59   : > { %v624_v13 = vmax.bf16 %v595_v26, %v488_v30  ;;  %v319_v35 = vmax.bf16 %v722_v28, %v302_v31  ;;  %v609_v12 = vsel %vm815_vm2, %v604_v32, %v608_v25 }
  0x5b   : > { %633 = vst.msk [vmem:[%s880_s16 + $0x18] sm:$0xf] %vm626_vm3, %v624_v13  ;;  %v455_v36 = vmax.bf16 %v439_v34, %v319_v35 }
  0x5d   : > { %v472_v33 = vmax.bf16 %v738_v60, %v455_v36 }
  0x5f   : > { %v489_v39 = vmax.bf16 %v746_v37, %v472_v33 }
  0x61   : > { %v625_v40 = vmax.bf16 %v609_v12, %v489_v39 }
  0x63   : > { %634 = vst.msk [vmem:[%s880_s16 + $0x1c] sm:$0xf] %vm626_vm3, %v625_v40 }
  0x64 PF: > { %s11_s6 = sadd.s32 1, %s773_s6  }
  0x65   : > { %p8_p5 = scmp.ge.s32.totalorder %s11_s6, 4  }
  0x67   :  { %10 = sbr.rel (!%p8_p5) target bundleno = 1 (0x1), region = 59 }

// kernel: cnn_network_forward.27
= control target key start
LH: loop header
LB: loop body
LE: loop exit
PB: predicated region body
PF: predicated region fallthrough
CT: control target
= control target key end

     0   :  { %vm593_vm0 = vcmask 523264   ;;  %s2063_s1 = inlined_call_operand.vmem [shape: bf16[576,128], index: 1, kind: input, shape index: {}]   ;;  %s2064_s0 = inlined_call_operand.vmem [shape: bf16[128,576], index: 0, kind: input, shape index: {}]   ;;  %s2065_s4 = inlined_call_operand.vmem [shape: bf16[128,128], index: 4, kind: input, shape index: {}]   ;;  %s2066_s2 = inlined_call_operand.vmem [shape: f32[1,128], index: 2, kind: input, shape index: {}]   ;;  %s2067_s3 = inlined_call_operand.vmem [shape: f32[1,128], index: 3, kind: input, shape index: {}]   ;;  %s2068_s5 = inlined_call_operand.vmem [shape: bf16[128,128], index: 5, kind: output, shape index: {}]  }
   0x1   :  { %v1530_v0 = vld [vmem:[%s2063_s1 + $0x40] sm:$0xff]   ;;  %v1534_v4 = vld [vmem:[%s2063_s1 + $0x48] sm:$0xff]   ;;  %v1538_v8 = vld [vmem:[%s2063_s1 + $0x50] sm:$0xff]  }
   0x2   :  { %v1531_v1 = vld [vmem:[%s2063_s1 + $0xc0] sm:$0xff]   ;;  %1358 = vmatprep.subr.bf16.mxu0 %v1530_v0  ;;  %v1535_v5 = vld [vmem:[%s2063_s1 + $0xc8] sm:$0xff]   ;;  %v1539_v9 = vld [vmem:[%s2063_s1 + $0xd0] sm:$0xff]  }
   0x3   :  { %v1532_v2 = vld [vmem:[%s2063_s1] sm:$0xff]   ;;  %1422 = vmatprep.subr.bf16.mxu1 %v1531_v1  ;;  %v1536_v6 = vld [vmem:[%s2063_s1 + $0x8] sm:$0xff]   ;;  %v1540_v10 = vld [vmem:[%s2063_s1 + $0x10] sm:$0xff]  }
   0x4   :  { %v1533_v3 = vld [vmem:[%s2063_s1 + $0x80] sm:$0xff]   ;;  %1359 = vmatpush3.bf16.msra.mxu0 %v1532_v2  ;;  %v1537_v7 = vld [vmem:[%s2063_s1 + $0x88] sm:$0xff]   ;;  %v1541_v11 = vld [vmem:[%s2063_s1 + $0x90] sm:$0xff]  }
   0x5   :  { %1423 = vmatpush3.bf16.msra.mxu1 %v1533_v3  ;;  %1360 = vmatprep.subr.bf16.mxu0 %v1534_v4  ;;  %v1542_v12 = vld [vmem:[%s2063_s1 + $0x58] sm:$0xff]   ;;  %v1546_v16 = vld [vmem:[%s2063_s1 + $0x60] sm:$0xff]   ;;  %v1550_v20 = vld [vmem:[%s2063_s1 + $0x68] sm:$0xff]  }
   0x6   :  { %1424 = vmatprep.subr.bf16.mxu1 %v1535_v5  ;;  %v1543_v13 = vld [vmem:[%s2063_s1 + $0xd8] sm:$0xff]   ;;  %v1547_v17 = vld [vmem:[%s2063_s1 + $0xe0] sm:$0xff]   ;;  %v1551_v21 = vld [vmem:[%s2063_s1 + $0xe8] sm:$0xff]  }
   0x7   :  { %v1544_v14 = vld [vmem:[%s2063_s1 + $0x18] sm:$0xff]   ;;  %v1548_v18 = vld [vmem:[%s2063_s1 + $0x20] sm:$0xff]   ;;  %v1552_v22 = vld [vmem:[%s2063_s1 + $0x28] sm:$0xff]  }
   0x8   :  { %1361 = vmatpush3.bf16.msra.mxu0 %v1536_v6  ;;  %v1545_v15 = vld [vmem:[%s2063_s1 + $0x98] sm:$0xff]   ;;  %v1549_v19 = vld [vmem:[%s2063_s1 + $0xa0] sm:$0xff]   ;;  %v1553_v23 = vld [vmem:[%s2063_s1 + $0xa8] sm:$0xff]  }
   0x9   :  { %1425 = vmatpush3.bf16.msra.mxu1 %v1537_v7  ;;  %1362 = vmatprep.subr.bf16.mxu0 %v1538_v8  ;;  %v1554_v24 = vld [vmem:[%s2063_s1 + $0x70] sm:$0xff]   ;;  %v1558_v28 = vld [vmem:[%s2063_s1 + $0x78] sm:$0xff]   ;;  %v1567_v35 = vld [vmem:[%s2064_s0 + $0xc] ss:$20 sps:$4 sm:$0xff]  }
   0xa   :  { %1426 = vmatprep.subr.bf16.mxu1 %v1539_v9  ;;  %v1555_v25 = vld [vmem:[%s2063_s1 + $0xf0] sm:$0xff]   ;;  %v1559_v29 = vld [vmem:[%s2063_s1 + $0xf8] sm:$0xff]   ;;  %v1568_v36 = vld [vmem:[%s2063_s1 + $0x100] sm:$0xff]   ;;  %747 = vmatprep.mubr.bf16.mxu1 %v1567_v35 }
   0xb   :  { %v1556_v26 = vld [vmem:[%s2063_s1 + $0x30] sm:$0xff]   ;;  %v1560_v30 = vld [vmem:[%s2063_s1 + $0x38] sm:$0xff]   ;;  %v1569_v37 = vld [vmem:[%s2064_s0 + $0x2c] ss:$20 sps:$4 sm:$0xff]  }
   0xc   :  { %1363 = vmatpush3.bf16.msra.mxu0 %v1540_v10  ;;  %v1557_v27 = vld [vmem:[%s2063_s1 + $0xb0] sm:$0xff]   ;;  %v1561_v31 = vld [vmem:[%s2063_s1 + $0xb8] sm:$0xff]   ;;  %v1581_v42 = vld [vmem:[%s2063_s1 + $0x108] sm:$0xff]  }
   0xd   :  { %1427 = vmatpush3.bf16.msra.mxu1 %v1541_v11  ;;  %1364 = vmatprep.subr.bf16.mxu0 %v1542_v12  ;;  %v1562_v32 = vld [vmem:[%s2064_s0] ss:$20 sps:$4 sm:$0xff]   ;;  %v1564_v33 = vld [vmem:[%s2064_s0 + $0x4] ss:$20 sps:$4 sm:$0xff]   ;;  %v1565_v34 = vld [vmem:[%s2064_s0 + $0x8] ss:$20 sps:$4 sm:$0xff]  }
   0xe   :  { %1428 = vmatprep.subr.bf16.mxu1 %v1543_v13  ;;  %650 = vmatprep.mubr.bf16.mxu0 %v1564_v33  ;;  %v1571_v38 = vld [vmem:[%s2064_s0 + $0x34] ss:$20 sps:$4 sm:$0xff]   ;;  %v1574_v40 = vld [vmem:[%s2064_s0 + $0x30] ss:$20 sps:$4 sm:$0xff]   ;;  %v1580_v45 = vld [vmem:[%s2064_s0 + $0x58] ss:$20 sps:$4 sm:$0xff]  }
   0xf   :  { %v1573_v39 = vld [vmem:[%s2064_s0 + $0x28] ss:$20 sps:$4 sm:$0xff]   ;;  %v1579_v44 = vld [vmem:[%s2064_s0 + $0x50] ss:$20 sps:$4 sm:$0xff]   ;;  %v1586_v50 = vld [vmem:[%s2064_s0 + $0x78] ss:$20 sps:$4 sm:$0xff]  }
  0x10   :  { %1365 = vmatpush3.bf16.msra.mxu0 %v1544_v14  ;;  %v1575_v41 = vld [vmem:[%s2064_s0 + $0x54] ss:$20 sps:$4 sm:$0xff]   ;;  %v1577_v43 = vld [vmem:[%s2064_s0 + $0x5c] ss:$20 sps:$4 sm:$0xff]   ;;  %v1584_v48 = vld [vmem:[%s2064_s0 + $0x84] ss:$20 sps:$4 sm:$0xff]  }
  0x11   :  { %1429 = vmatpush3.bf16.msra.mxu1 %v1545_v15  ;;  %1366 = vmatprep.subr.bf16.mxu0 %v1546_v16  ;;  %v1594_v46 = vld [vmem:[%s2063_s1 + $0x110] sm:$0xff]   ;;  %v1607_v49 = vld [vmem:[%s2063_s1 + $0x118] sm:$0xff]   ;;  %v1590_v53 = vld [vmem:[%s2064_s0 + $0xac] ss:$20 sps:$4 sm:$0xff]  }
  0x12   :  { %1430 = vmatprep.subr.bf16.mxu1 %v1547_v17  ;;  %v1582_v47 = vld [vmem:[%s2064_s0 + $0x7c] ss:$20 sps:$4 sm:$0xff]   ;;  %v1587_v51 = vld [vmem:[%s2064_s0 + $0x80] ss:$20 sps:$4 sm:$0xff]   ;;  %v1588_v52 = vld [vmem:[%s2064_s0 + $0xa4] ss:$20 sps:$4 sm:$0xff]  }
  0x13   :  { %v1592_v54 = vld [vmem:[%s2064_s0 + $0xa0] ss:$20 sps:$4 sm:$0xff]   ;;  %v1593_v55 = vld [vmem:[%s2064_s0 + $0xa8] ss:$20 sps:$4 sm:$0xff]   ;;  %v1600_v59 = vld [vmem:[%s2064_s0 + $0xd0] ss:$20 sps:$4 sm:$0xff]  }
  0x14   :  { %1367 = vmatpush3.bf16.msra.mxu0 %v1548_v18  ;;  %v1595_v56 = vld [vmem:[%s2064_s0 + $0xcc] ss:$20 sps:$4 sm:$0xff]   ;;  %v1597_v57 = vld [vmem:[%s2064_s0 + $0xd4] ss:$20 sps:$4 sm:$0xff]   ;;  %v1603_v61 = vld [vmem:[%s2064_s0 + $0xfc] ss:$20 sps:$4 sm:$0xff]  }
  0x15   :  { %1431 = vmatpush3.bf16.msra.mxu1 %v1549_v19  ;;  %1368 = vmatprep.subr.bf16.mxu0 %v1550_v20  ;;  %v1599_v58 = vld [vmem:[%s2064_s0 + $0xc8] ss:$20 sps:$4 sm:$0xff]   ;;  %v1605_v62 = vld [vmem:[%s2064_s0 + $0xf0] ss:$20 sps:$4 sm:$0xff]   ;;  %v1606_v63 = vld [vmem:[%s2064_s0 + $0xf8] ss:$20 sps:$4 sm:$0xff]  }
  0x16   :  { %1432 = vmatprep.subr.bf16.mxu1 %v1551_v21  ;;  %v1601_v60 = vld [vmem:[%s2064_s0 + $0xf4] ss:$20 sps:$4 sm:$0xff]   ;;  %v1608_v0 = vld [vmem:[%s2064_s0 + $0x11c] ss:$20 sps:$4 sm:$0xff]   ;;  %v1610_v1 = vld [vmem:[%s2064_s0 + $0x124] ss:$20 sps:$4 sm:$0xff]  }
  0x17   :  { %v1612_v2 = vld [vmem:[%s2064_s0 + $0x118] ss:$20 sps:$4 sm:$0xff]   ;;  %v1613_v3 = vld [vmem:[%s2064_s0 + $0x120] ss:$20 sps:$4 sm:$0xff]   ;;  %v1614_v4 = vld [vmem:[%s2064_s0 + $0x10] ss:$20 sps:$4 sm:$0xff]  }
  0x18   :  { %1369 = vmatpush3.bf16.msra.mxu0 %v1552_v22  ;;  %v1615_v5 = vld [vmem:[%s2064_s0 + $0xb0] ss:$20 sps:$4 sm:$0xff]   ;;  %v1616_v6 = vld [vmem:[%s2064_s0 + $0x38] ss:$20 sps:$4 sm:$0xff]   ;;  %v1618_v8 = vld [vmem:[%s2064_s0 + $0x60] ss:$20 sps:$4 sm:$0xff]  }
  0x19   :  { %1433 = vmatpush3.bf16.msra.mxu1 %v1553_v23  ;;  %1370 = vmatprep.subr.bf16.mxu0 %v1554_v24  ;;  %v1617_v7 = vld [vmem:[%s2064_s0 + $0xd8] ss:$20 sps:$4 sm:$0xff]   ;;  %v1619_v9 = vld [vmem:[%s2064_s0 + $0x100] ss:$20 sps:$4 sm:$0xff]   ;;  %v1620_v10 = vld [vmem:[%s2064_s0 + $0x88] ss:$20 sps:$4 sm:$0xff]  }
  0x1a   :  { %1434 = vmatprep.subr.bf16.mxu1 %v1555_v25  ;;  %v1621_v11 = vld [vmem:[%s2064_s0 + $0x128] ss:$20 sps:$4 sm:$0xff]  }
  0x1c   :  { %1371 = vmatpush3.bf16.msra.mxu0 %v1556_v26 }
  0x1d   :  { %1435 = vmatpush3.bf16.msra.mxu1 %v1557_v27  ;;  %1372 = vmatprep.subr.bf16.mxu0 %v1558_v28 }
  0x1e   :  { %1436 = vmatprep.subr.bf16.mxu1 %v1559_v29 }
  0x20   :  { %1373 = vmatpush3.bf16.msra.mxu0 %v1560_v30 }
  0x21   :  { %1437 = vmatpush3.bf16.msra.mxu1 %v1561_v31  ;;  %1498 = vmatprep.subr.bf16.mxu0 %v1568_v36 }
  0x22   :  { %1522 = vmatprep.subr.bf16.mxu1 %v1568_v36 }
  0x23   :  { %651 = vmatmul.mubr.bf16.vlgmr.msra.gmra.mrb[0].mxu0 %v1562_v32 }
  0x24   :  { %748 = vmatmul.mubr.bf16.vlgmr.msra.gmra.mrb[0].mxu1 %v1565_v34  ;;  %1499 = vmatpush3.bf16.msra.mxu0 %v1568_v36 }
  0x25   :  { %1526 = vmatpush3.bf16.msra.mxu1 %v1568_v36  ;;  %658 = vmatprep.mubr.bf16.mxu0 %v1569_v37 }
  0x26   :  { %755 = vmatprep.mubr.bf16.mxu1 %v1571_v38  ;;  %1500 = vmatprep.subr.bf16.mxu0 %v1581_v42 }
  0x27   :  { %1523 = vmatprep.subr.bf16.mxu1 %v1581_v42 }
  0x28   :  { %1501 = vmatpush3.bf16.msra.mxu0 %v1581_v42 }
  0x29   :  { %1527 = vmatpush3.bf16.msra.mxu1 %v1581_v42  ;;  %1502 = vmatprep.subr.bf16.mxu0 %v1594_v46 }
  0x2a   :  { %1524 = vmatprep.subr.bf16.mxu1 %v1594_v46 }
  0x2b   :  { %659 = vmatmul.mubr.bf16.gmra.mrb[4].mxu0 %v1573_v39 }
  0x2c   :  { %756 = vmatmul.mubr.bf16.gmra.mrb[4].mxu1 %v1574_v40  ;;  %666 = vmatprep.mubr.bf16.mxu0 %v1575_v41 }
  0x2d   :  { %763 = vmatprep.mubr.bf16.mxu1 %v1577_v43  ;;  %1503 = vmatpush3.bf16.msra.mxu0 %v1594_v46 }
  0x2e   :  { %1528 = vmatpush3.bf16.msra.mxu1 %v1594_v46  ;;  %1504 = vmatprep.subr.bf16.mxu0 %v1607_v49 }
  0x2f   :  { %1525 = vmatprep.subr.bf16.mxu1 %v1607_v49 }
  0x31   :  { %1505 = vmatpush3.bf16.msra.mxu0 %v1607_v49 }
  0x32   :  { %1529 = vmatpush3.bf16.msra.mxu1 %v1607_v49 }
  0x33   :  { %667 = vmatmul.mubr.bf16.gmra.mrb[8].mxu0 %v1579_v44 }
  0x34   :  { %764 = vmatmul.mubr.bf16.gmra.mrb[8].mxu1 %v1580_v45  ;;  %674 = vmatprep.mubr.bf16.mxu0 %v1582_v47 }
  0x35   :  { %771 = vmatprep.mubr.bf16.mxu1 %v1584_v48 }
  0x3b   :  { %675 = vmatmul.mubr.bf16.gmra.mrb[12].mxu0 %v1586_v50 }
  0x3c   :  { %772 = vmatmul.mubr.bf16.gmra.mrb[12].mxu1 %v1587_v51  ;;  %682 = vmatprep.mubr.bf16.mxu0 %v1588_v52 }
  0x3d   :  { %779 = vmatprep.mubr.bf16.mxu1 %v1590_v53 }
  0x43   :  { %683 = vmatmul.mubr.bf16.gmra.mrb[16].mxu0 %v1592_v54 }
  0x44   :  { %780 = vmatmul.mubr.bf16.gmra.mrb[16].mxu1 %v1593_v55  ;;  %690 = vmatprep.mubr.bf16.mxu0 %v1595_v56 }
  0x45   :  { %787 = vmatprep.mubr.bf16.mxu1 %v1597_v57 }
  0x4b   :  { %691 = vmatmul.mubr.bf16.gmra.mrb[20].mxu0 %v1599_v58 }
  0x4c   :  { %788 = vmatmul.mubr.bf16.gmra.mrb[20].mxu1 %v1600_v59  ;;  %698 = vmatprep.mubr.bf16.mxu0 %v1601_v60 }
  0x4d   :  { %795 = vmatprep.mubr.bf16.mxu1 %v1603_v61 }
  0x53   :  { %699 = vmatmul.mubr.bf16.gmra.mrb[24].mxu0 %v1605_v62 }
  0x54   :  { %796 = vmatmul.mubr.bf16.gmra.mrb[24].mxu1 %v1606_v63  ;;  %706 = vmatprep.mubr.bf16.mxu0 %v1608_v0 }
  0x55   :  { %803 = vmatprep.mubr.bf16.mxu1 %v1610_v1 }
  0x5b   :  { %707 = vmatmul.mubr.bf16.gmra.mrb[28].mxu0 %v1612_v2 }
  0x5c   :  { %804 = vmatmul.mubr.bf16.gmra.mrb[28].mxu1 %v1613_v3  ;;  %1506 = vmatprep.mubr.msk.bf16.mxu0 %vm593_vm0, %v1614_v4 }
  0x5d   :  { %1514 = vmatprep.mubr.msk.bf16.mxu1 %vm593_vm0, %v1615_v5 }
  0x63   :  { %1507 = vmatmul.mubr.msk.bf16.vlgmr.msra.gmra.mrb[32].mxu0 %vm593_vm0, %v1616_v6 }
  0x64   :  { %1515 = vmatmul.mubr.msk.bf16.vlgmr.msra.gmra.mrb[32].mxu1 %vm593_vm0, %v1617_v7  ;;  %1510 = vmatprep.mubr.msk.bf16.mxu0 %vm593_vm0, %v1618_v8 }
  0x65   :  { %1518 = vmatprep.mubr.msk.bf16.mxu1 %vm593_vm0, %v1619_v9 }
  0x6b   :  { %1511 = vmatmul.mubr.msk.bf16.gmra.mrb[36].mxu0 %vm593_vm0, %v1620_v10 }
  0x6c   :  { %1519 = vmatmul.mubr.msk.bf16.gmra.mrb[36].mxu1 %vm593_vm0, %v1621_v11 }
  0xf6   :  { %v1374_v12 = vpop.f32.mrb[0].mxu0 }
  0xf7   :  { %v1438_v13 = vpop.f32.mrb[0].mxu1  ;;  %v1375_v14 = vpop.f32.mrb[1].mxu0 }
  0xf8   :  { %v1376_v15 = vadd.f32 %v1375_v14, %v1374_v12  ;;  %v1439_v16 = vpop.f32.mrb[1].mxu1  ;;  %v1377_v17 = vpop.f32.mrb[2].mxu0 }
  0xf9   :  { %v1440_v18 = vadd.f32 %v1439_v16, %v1438_v13  ;;  %v1441_v19 = vpop.f32.mrb[2].mxu1  ;;  %v1378_v20 = vpop.f32.mrb[3].mxu0 }
  0xfa   :  { %v1379_v21 = vadd.f32 %v1378_v20, %v1377_v17  ;;  %v1442_v22 = vpop.f32.mrb[3].mxu1 }
  0xfb   :  { %v1443_v23 = vadd.f32 %v1442_v22, %v1441_v19  ;;  %v1888_v24 = vadd.f32 %v1440_v18, %v1376_v15 }
  0xfd   :  { %v1890_v25 = vadd.f32 %v1443_v23, %v1379_v21 }
  0xfe   :  { %v1380_v26 = vpop.f32.mrb[4].mxu0 }
  0xff   :  { %v1444_v27 = vpop.f32.mrb[4].mxu1  ;;  %v1381_v28 = vpop.f32.mrb[5].mxu0 }
 0x100   :  { %v1382_v29 = vadd.f32 %v1381_v28, %v1380_v26  ;;  %v1445_v30 = vpop.f32.mrb[5].mxu1  ;;  %v1383_v31 = vpop.f32.mrb[6].mxu0 }
 0x101   :  { %v1446_v32 = vadd.f32 %v1445_v30, %v1444_v27  ;;  %v1447_v33 = vpop.f32.mrb[6].mxu1  ;;  %v1384_v34 = vpop.f32.mrb[7].mxu0 }
 0x102   :  { %v1385_v35 = vadd.f32 %v1384_v34, %v1383_v31  ;;  %v1448_v36 = vpop.f32.mrb[7].mxu1 }
 0x103   :  { %v1449_v37 = vadd.f32 %v1448_v36, %v1447_v33  ;;  %v1892_v38 = vadd.f32 %v1446_v32, %v1382_v29 }
 0x105   :  { %v1894_v39 = vadd.f32 %v1449_v37, %v1385_v35 }
 0x106   :  { %v1386_v40 = vpop.f32.mrb[8].mxu0 }
 0x107   :  { %v1450_v41 = vpop.f32.mrb[8].mxu1  ;;  %v1387_v42 = vpop.f32.mrb[9].mxu0 }
 0x108   :  { %v1388_v43 = vadd.f32 %v1387_v42, %v1386_v40  ;;  %v1451_v44 = vpop.f32.mrb[9].mxu1  ;;  %v1389_v45 = vpop.f32.mrb[10].mxu0 }
 0x109   :  { %v1452_v46 = vadd.f32 %v1451_v44, %v1450_v41  ;;  %v1453_v47 = vpop.f32.mrb[10].mxu1  ;;  %v1390_v48 = vpop.f32.mrb[11].mxu0 }
 0x10a   :  { %v1391_v49 = vadd.f32 %v1390_v48, %v1389_v45  ;;  %v1454_v50 = vpop.f32.mrb[11].mxu1 }
 0x10b   :  { %v1455_v51 = vadd.f32 %v1454_v50, %v1453_v47  ;;  %v1896_v52 = vadd.f32 %v1452_v46, %v1388_v43 }
 0x10d   :  { %v1898_v53 = vadd.f32 %v1455_v51, %v1391_v49 }
 0x10e   :  { %v1392_v54 = vpop.f32.mrb[12].mxu0 }
 0x10f   :  { %v1456_v55 = vpop.f32.mrb[12].mxu1  ;;  %v1393_v56 = vpop.f32.mrb[13].mxu0 }
 0x110   :  { %v1394_v57 = vadd.f32 %v1393_v56, %v1392_v54  ;;  %v1457_v58 = vpop.f32.mrb[13].mxu1  ;;  %v1395_v59 = vpop.f32.mrb[14].mxu0 }
 0x111   :  { %v1458_v60 = vadd.f32 %v1457_v58, %v1456_v55  ;;  %v1459_v61 = vpop.f32.mrb[14].mxu1  ;;  %v1396_v62 = vpop.f32.mrb[15].mxu0 }
 0x112   :  { %v1397_v63 = vadd.f32 %v1396_v62, %v1395_v59  ;;  %v1460_v0 = vpop.f32.mrb[15].mxu1 }
 0x113   :  { %v1461_v1 = vadd.f32 %v1460_v0, %v1459_v61  ;;  %v1900_v2 = vadd.f32 %v1458_v60, %v1394_v57  ;;  %v1922_v0 = vld [vmem:[%s2065_s4 + $0x28] sm:$0xff]  }
 0x115   :  { %v1902_v3 = vadd.f32 %v1461_v1, %v1397_v63  ;;  %v1917_v63 = vld [vmem:[%s2065_s4 + $0x8] sm:$0xff]  }
 0x116   :  { %v1398_v4 = vpop.f32.mrb[16].mxu0 }
 0x117   :  { %v1462_v5 = vpop.f32.mrb[16].mxu1  ;;  %v1399_v6 = vpop.f32.mrb[17].mxu0 }
 0x118   :  { %v1400_v7 = vadd.f32 %v1399_v6, %v1398_v4  ;;  %v1463_v8 = vpop.f32.mrb[17].mxu1  ;;  %v1401_v9 = vpop.f32.mrb[18].mxu0  ;;  %v1927_v4 = vld [vmem:[%s2065_s4] sm:$0xff]  }
 0x119   :  { %v1464_v10 = vadd.f32 %v1463_v8, %v1462_v5  ;;  %v1465_v11 = vpop.f32.mrb[18].mxu1  ;;  %v1402_v12 = vpop.f32.mrb[19].mxu0  ;;  %v1932_v5 = vld [vmem:[%s2065_s4 + $0x20] sm:$0xff]   ;;  %v1278_v8 = vunpack.c.l.bf16 %v1917_v63 }
 0x11a   :  { %v1403_v13 = vadd.f32 %v1402_v12, %v1401_v9  ;;  %v1466_v14 = vpop.f32.mrb[19].mxu1  ;;  %v1294_v9 = vunpack.c.l.bf16 %v1922_v0 }
 0x11b   :  { %v1467_v15 = vadd.f32 %v1466_v14, %v1465_v11  ;;  %v1904_v16 = vadd.f32 %v1464_v10, %v1400_v7  ;;  %v1939_v7 = vld [vmem:[%s2065_s4 + $0x18] sm:$0xff]   ;;  %v1951_v11 = vld [vmem:[%s2065_s4 + $0x10] sm:$0xff]   ;;  %v1958_v14 = vld [vmem:[%s2066_s2] ss:$0 sm:$0xff] }
 0x11c   :  { %v1946_v10 = vld [vmem:[%s2065_s4 + $0x38] sm:$0xff]  }
 0x11d   :  { %v1906_v17 = vadd.f32 %v1467_v15, %v1403_v13  ;;  %v1274_v15 = vunpack.c.l.bf16 %v1927_v4 }
 0x11e   :  { %v1404_v18 = vpop.f32.mrb[20].mxu0 }
 0x11f   :  { %v1468_v19 = vpop.f32.mrb[20].mxu1  ;;  %v1405_v20 = vpop.f32.mrb[21].mxu0 }
 0x120   :  { %v1406_v21 = vadd.f32 %v1405_v20, %v1404_v18  ;;  %v1469_v22 = vpop.f32.mrb[21].mxu1  ;;  %v1407_v23 = vpop.f32.mrb[22].mxu0  ;;  %v1290_v18 = vunpack.c.l.bf16 %v1932_v5  ;;  %v1295_v20 = vunpack.c.h.bf16 %v1922_v0 }
 0x121   :  { %v1470_v26 = vadd.f32 %v1469_v22, %v1468_v19  ;;  %v1471_v27 = vpop.f32.mrb[22].mxu1  ;;  %v1408_v28 = vpop.f32.mrb[23].mxu0  ;;  %v1279_v19 = vunpack.c.h.bf16 %v1917_v63 }
 0x122   :  { %v1409_v29 = vadd.f32 %v1408_v28, %v1407_v23  ;;  %v1472_v30 = vpop.f32.mrb[23].mxu1  ;;  %v1291_v28 = vunpack.c.h.bf16 %v1932_v5 }
 0x123   :  { %v1473_v31 = vadd.f32 %v1472_v30, %v1471_v27  ;;  %v790_v32 = vadd.f32 %v1470_v26, %v1406_v21  ;;  %v1967_v21 = vld [vmem:[%s2065_s4 + $0x30] sm:$0xff]   ;;  %v1275_v27 = vunpack.c.h.bf16 %v1927_v4  ;;  %v1976_v30 = vld [vmem:[%s2067_s3] ss:$0 sm:$0xff] }
 0x125   :  { %v1908_v33 = vadd.f32 %v1473_v31, %v1409_v29  ;;  %v1286_v29 = vunpack.c.l.bf16 %v1939_v7 }
 0x126   :  { %v1410_v34 = vpop.f32.mrb[24].mxu0 }
 0x127   :  { %v1474_v35 = vpop.f32.mrb[24].mxu1  ;;  %v1411_v36 = vpop.f32.mrb[25].mxu0 }
 0x128   :  { %v1412_v37 = vadd.f32 %v1411_v36, %v1410_v34  ;;  %v1475_v40 = vpop.f32.mrb[25].mxu1  ;;  %v1413_v41 = vpop.f32.mrb[26].mxu0 }
 0x129   :  { %v1476_v42 = vadd.f32 %v1475_v40, %v1474_v35  ;;  %v1477_v43 = vpop.f32.mrb[26].mxu1  ;;  %v1414_v44 = vpop.f32.mrb[27].mxu0 }
 0x12a   :  { %v1415_v45 = vadd.f32 %v1414_v44, %v1413_v41  ;;  %v1478_v46 = vpop.f32.mrb[27].mxu1 }
 0x12b   :  { %v1479_v47 = vadd.f32 %v1478_v46, %v1477_v43  ;;  %v1910_v48 = vadd.f32 %v1476_v42, %v1412_v37  ;;  %v1282_v37 = vunpack.c.l.bf16 %v1951_v11 }
 0x12d   :  { %v1912_v49 = vadd.f32 %v1479_v47, %v1415_v45  ;;  %v1298_v45 = vunpack.c.l.bf16 %v1967_v21 }
 0x12e   :  { %v1416_v50 = vpop.f32.mrb[28].mxu0 }
 0x12f   :  { %v1480_v51 = vpop.f32.mrb[28].mxu1  ;;  %v1417_v54 = vpop.f32.mrb[29].mxu0 }
 0x130   :  { %v1418_v55 = vadd.f32 %v1417_v54, %v1416_v50  ;;  %v1481_v56 = vpop.f32.mrb[29].mxu1  ;;  %v1419_v57 = vpop.f32.mrb[30].mxu0 }
 0x131   :  { %v1482_v58 = vadd.f32 %v1481_v56, %v1480_v51  ;;  %v1483_v59 = vpop.f32.mrb[30].mxu1  ;;  %v1420_v60 = vpop.f32.mrb[31].mxu0 }
 0x132   :  { %v1421_v61 = vadd.f32 %v1420_v60, %v1419_v57  ;;  %v1484_v62 = vpop.f32.mrb[31].mxu1 }
 0x133   :  { %v1485_v1 = vadd.f32 %v1484_v62, %v1483_v59  ;;  %v1934_v6 = vadd.f32 %v1482_v58, %v1418_v55 }
 0x135   :  { %v1953_v12 = vadd.f32 %v1485_v1, %v1421_v61 }
 0x136   :  { %v1508_v13 = vpop.f32.mrb[32].mxu0 }
 0x137   :  { %v855_v22 = vadd.f32 %v1508_v13, %v1892_v38  ;;  %v1516_v23 = vpop.f32.mrb[32].mxu1  ;;  %v846_v26 = vpop.f32.mrb[33].mxu0  ;;  %v1302_v38 = vunpack.c.l.bf16 %v1946_v10 }
 0x138   :  { %v887_v31 = vadd.f32 %v1516_v23, %v790_v32  ;;  %v847_v34 = vadd.f32 %v846_v26, %v1888_v24  ;;  %v878_v35 = vpop.f32.mrb[33].mxu1  ;;  %v1509_v36 = vpop.f32.mrb[34].mxu0 }
 0x139   :  { %v969_v40 = vmul.f32 %v1958_v14, %v855_v22  ;;  %v879_v41 = vadd.f32 %v878_v35, %v1904_v16  ;;  %v858_v42 = vadd.f32 %v1509_v36, %v1894_v39  ;;  %v1517_v43 = vpop.f32.mrb[34].mxu1  ;;  %v849_v44 = vpop.f32.mrb[35].mxu0 }
 0x13a   :  { %v977_v32 = vmul.f32 %v1958_v14, %v887_v31  ;;  %v967_v24 = vmul.f32 %v1958_v14, %v847_v34  ;;  %v890_v46 = vadd.f32 %v1517_v43, %v1908_v33  ;;  %v850_v47 = vadd.f32 %v849_v44, %v1890_v25  ;;  %v881_v50 = vpop.f32.mrb[35].mxu1 }
 0x13b   :  { %v992_v51 = vadd.f32 %v1976_v30, %v969_v40  ;;  %v975_v54 = vmul.f32 %v1958_v14, %v879_v41  ;;  %v970_v16 = vmul.f32 %v1958_v14, %v858_v42  ;;  %v882_v39 = vadd.f32 %v881_v50, %v1906_v17 }
 0x13c   :  { %v1000_v55 = vadd.f32 %v1976_v30, %v977_v32  ;;  %v990_v56 = vadd.f32 %v1976_v30, %v967_v24  ;;  %v978_v57 = vmul.f32 %v1958_v14, %v890_v46  ;;  %v968_v58 = vmul.f32 %v1958_v14, %v850_v47 }
 0x13d   :  { %v1040_v33 = vadd.f32 %v1278_v8, %v992_v51  ;;  %v998_v25 = vadd.f32 %v1976_v30, %v975_v54  ;;  %v993_v59 = vadd.f32 %v1976_v30, %v970_v16  ;;  %v976_v60 = vmul.f32 %v1958_v14, %v882_v39 }
 0x13e   :  { %v1048_v61 = vadd.f32 %v1294_v9, %v1000_v55  ;;  %v1038_v62 = vadd.f32 %v1274_v15, %v990_v56  ;;  %v1001_v63 = vadd.f32 %v1976_v30, %v978_v57  ;;  %v991_v17 = vadd.f32 %v1976_v30, %v968_v58  ;;  %v1512_v0 = vpop.f32.mrb[36].mxu0 }
 0x13f   :  { %v1056_v1 = vmax.f32 %v1040_v33, 0.0  ;;  %v1046_v4 = vadd.f32 %v1290_v18, %v998_v25  ;;  %v1041_v5 = vadd.f32 %v1279_v19, %v993_v59  ;;  %v999_v13 = vadd.f32 %v1976_v30, %v976_v60  ;;  %v1520_v22 = vpop.f32.mrb[36].mxu1  ;;  %v862_v8 = vpop.f32.mrb[37].mxu0 }
 0x140   :  { %v1064_v23 = vmax.f32 %v1048_v61, 0.0  ;;  %v1054_v26 = vmax.f32 %v1038_v62, 0.0  ;;  %v1049_v31 = vadd.f32 %v1295_v20, %v1001_v63  ;;  %v1039_v34 = vadd.f32 %v1275_v27, %v991_v17  ;;  %v894_v35 = vpop.f32.mrb[37].mxu1  ;;  %v1513_v36 = vpop.f32.mrb[38].mxu0 }
 0x141   :  { %v1062_v9 = vmax.f32 %v1046_v4, 0.0  ;;  %v1057_v15 = vmax.f32 %v1041_v5, 0.0  ;;  %v1047_v40 = vadd.f32 %v1291_v28, %v999_v13  ;;  %v871_v41 = vadd.f32 %v1512_v0, %v1900_v2  ;;  %v1521_v42 = vpop.f32.mrb[38].mxu1  ;;  %v865_v43 = vpop.f32.mrb[39].mxu0 }
 0x142   :  { %v1065_v44 = vmax.f32 %v1049_v31, 0.0  ;;  %v1055_v18 = vmax.f32 %v1039_v34, 0.0  ;;  %v903_v19 = vadd.f32 %v1520_v22, %v1934_v6  ;;  %v863_v32 = vadd.f32 %v862_v8, %v1896_v52  ;;  %v897_v24 = vpop.f32.mrb[39].mxu1 }
 0x143   :  { %v1312_v46 = vpack.c.bf16 %v1057_v15, %v1056_v1  ;;  %v1063_v47 = vmax.f32 %v1047_v40, 0.0  ;;  %v973_v20 = vmul.f32 %v1958_v14, %v871_v41  ;;  %v895_v27 = vadd.f32 %v894_v35, %v1910_v48 }
 0x144   :  { %v1332_v50 = vpack.c.bf16 %v1065_v44, %v1064_v23  ;;  %v1307_v51 = vpack.c.bf16 %v1055_v18, %v1054_v26  ;;  %v981_v28 = vmul.f32 %v1958_v14, %v903_v19  ;;  %v971_v2 = vmul.f32 %v1958_v14, %v863_v32 }
 0x145   :  { %1351 = vst [vmem:[%s2068_s5 + $0x8] sm:$0xff] %v1312_v46   ;;  %v1327_v6 = vpack.c.bf16 %v1063_v47, %v1062_v9  ;;  %v996_v52 = vadd.f32 %v1976_v30, %v973_v20  ;;  %v979_v54 = vmul.f32 %v1958_v14, %v895_v27  ;;  %v874_v16 = vadd.f32 %v1513_v36, %v1902_v3 }
 0x146   :  { %1355 = vst [vmem:[%s2068_s5 + $0x28] sm:$0xff] %v1332_v50   ;;  %1308 = vst [vmem:[%s2068_s5] sm:$0xff] %v1307_v51   ;;  %v1004_v48 = vadd.f32 %v1976_v30, %v981_v28  ;;  %v994_v39 = vadd.f32 %v1976_v30, %v971_v2  ;;  %v906_v55 = vadd.f32 %v1521_v42, %v1953_v12  ;;  %v1287_v58 = vunpack.c.h.bf16 %v1939_v7 }
 0x147   :  { %v866_v56 = vadd.f32 %v865_v43, %v1898_v53  ;;  %1354 = vst [vmem:[%s2068_s5 + $0x20] sm:$0xff] %v1327_v6   ;;  %v1002_v3 = vadd.f32 %v1976_v30, %v979_v54  ;;  %v974_v57 = vmul.f32 %v1958_v14, %v874_v16  ;;  %v898_v33 = vadd.f32 %v897_v24, %v1912_v49 }
 0x148   :  { %v982_v25 = vmul.f32 %v1958_v14, %v906_v55  ;;  %v1303_v59 = vunpack.c.h.bf16 %v1946_v10  ;;  %v1283_v53 = vunpack.c.h.bf16 %v1951_v11  ;;  %v1044_v60 = vadd.f32 %v1286_v29, %v996_v52 }
 0x149   :  { %v972_v12 = vmul.f32 %v1958_v14, %v866_v56  ;;  %v997_v61 = vadd.f32 %v1976_v30, %v974_v57  ;;  %v980_v62 = vmul.f32 %v1958_v14, %v898_v33  ;;  %v1299_v63 = vunpack.c.h.bf16 %v1967_v21 }
 0x14a   :  { %v1052_v49 = vadd.f32 %v1302_v38, %v1004_v48  ;;  %v1042_v17 = vadd.f32 %v1282_v37, %v994_v39  ;;  %v1005_v0 = vadd.f32 %v1976_v30, %v982_v25  ;;  %v1050_v7 = vadd.f32 %v1298_v45, %v1002_v3 }
 0x14b   :  { %v995_v1 = vadd.f32 %v1976_v30, %v972_v12  ;;  %v1045_v29 = vadd.f32 %v1287_v58, %v997_v61  ;;  %v1003_v4 = vadd.f32 %v1976_v30, %v980_v62  ;;  %v1060_v13 = vmax.f32 %v1044_v60, 0.0 }
 0x14c   :  { %v1053_v5 = vadd.f32 %v1303_v59, %v1005_v0  ;;  %v1068_v10 = vmax.f32 %v1052_v49, 0.0  ;;  %v1058_v38 = vmax.f32 %v1042_v17, 0.0  ;;  %v1066_v37 = vmax.f32 %v1050_v7, 0.0 }
 0x14d   :  { %v1043_v14 = vadd.f32 %v1283_v53, %v995_v1  ;;  %v1061_v22 = vmax.f32 %v1045_v29, 0.0  ;;  %v1051_v8 = vadd.f32 %v1299_v63, %v1003_v4 }
 0x14e   :  { %v1069_v23 = vmax.f32 %v1053_v5, 0.0 }
 0x14f   :  { %v1059_v11 = vmax.f32 %v1043_v14, 0.0  ;;  %v1322_v26 = vpack.c.bf16 %v1061_v22, %v1060_v13  ;;  %v1067_v31 = vmax.f32 %v1051_v8, 0.0 }
 0x150   :  { %v1342_v34 = vpack.c.bf16 %v1069_v23, %v1068_v10 }
 0x151   :  { %v1317_v35 = vpack.c.bf16 %v1059_v11, %v1058_v38  ;;  %1353 = vst [vmem:[%s2068_s5 + $0x18] sm:$0xff] %v1322_v26   ;;  %v1337_v21 = vpack.c.bf16 %v1067_v31, %v1066_v37 }
 0x152   :  { %1357 = vst [vmem:[%s2068_s5 + $0x38] sm:$0xff] %v1342_v34  }
 0x153   :  { %1352 = vst [vmem:[%s2068_s5 + $0x10] sm:$0xff] %v1317_v35   ;;  %1356 = vst [vmem:[%s2068_s5 + $0x30] sm:$0xff] %v1337_v21  }

// kernel: cnn_network_forward.26
= control target key start
LH: loop header
LB: loop body
LE: loop exit
PB: predicated region body
PF: predicated region fallthrough
CT: control target
= control target key end

     0   :  { %vm590_vm0 = vcmask 523264   ;;  %s1895_s1 = inlined_call_operand.vmem [shape: bf16[576,128], index: 1, kind: input, shape index: {}]   ;;  %s1896_s0 = inlined_call_operand.vmem [shape: bf16[128,576], index: 0, kind: input, shape index: {}]   ;;  %s1897_s2 = inlined_call_operand.vmem [shape: f32[1,128], index: 2, kind: input, shape index: {}]   ;;  %s1898_s3 = inlined_call_operand.vmem [shape: f32[1,128], index: 3, kind: input, shape index: {}]   ;;  %s1899_s4 = inlined_call_operand.vmem [shape: bf16[128,128], index: 4, kind: output, shape index: {}]  }
   0x1   :  { %v1440_v0 = vld [vmem:[%s1895_s1 + $0x40] sm:$0xff]   ;;  %v1444_v4 = vld [vmem:[%s1895_s1 + $0x48] sm:$0xff]   ;;  %v1448_v8 = vld [vmem:[%s1895_s1 + $0x50] sm:$0xff]  }
   0x2   :  { %v1441_v1 = vld [vmem:[%s1895_s1 + $0xc0] sm:$0xff]   ;;  %1268 = vmatprep.subr.bf16.mxu0 %v1440_v0  ;;  %v1445_v5 = vld [vmem:[%s1895_s1 + $0xc8] sm:$0xff]   ;;  %v1449_v9 = vld [vmem:[%s1895_s1 + $0xd0] sm:$0xff]  }
   0x3   :  { %v1442_v2 = vld [vmem:[%s1895_s1] sm:$0xff]   ;;  %1332 = vmatprep.subr.bf16.mxu1 %v1441_v1  ;;  %v1446_v6 = vld [vmem:[%s1895_s1 + $0x8] sm:$0xff]   ;;  %v1450_v10 = vld [vmem:[%s1895_s1 + $0x10] sm:$0xff]  }
   0x4   :  { %v1443_v3 = vld [vmem:[%s1895_s1 + $0x80] sm:$0xff]   ;;  %1269 = vmatpush3.bf16.msra.mxu0 %v1442_v2  ;;  %v1447_v7 = vld [vmem:[%s1895_s1 + $0x88] sm:$0xff]   ;;  %v1451_v11 = vld [vmem:[%s1895_s1 + $0x90] sm:$0xff]  }
   0x5   :  { %1333 = vmatpush3.bf16.msra.mxu1 %v1443_v3  ;;  %1270 = vmatprep.subr.bf16.mxu0 %v1444_v4  ;;  %v1452_v12 = vld [vmem:[%s1895_s1 + $0x58] sm:$0xff]   ;;  %v1456_v16 = vld [vmem:[%s1895_s1 + $0x60] sm:$0xff]   ;;  %v1460_v20 = vld [vmem:[%s1895_s1 + $0x68] sm:$0xff]  }
   0x6   :  { %1334 = vmatprep.subr.bf16.mxu1 %v1445_v5  ;;  %v1453_v13 = vld [vmem:[%s1895_s1 + $0xd8] sm:$0xff]   ;;  %v1457_v17 = vld [vmem:[%s1895_s1 + $0xe0] sm:$0xff]   ;;  %v1461_v21 = vld [vmem:[%s1895_s1 + $0xe8] sm:$0xff]  }
   0x7   :  { %v1454_v14 = vld [vmem:[%s1895_s1 + $0x18] sm:$0xff]   ;;  %v1458_v18 = vld [vmem:[%s1895_s1 + $0x20] sm:$0xff]   ;;  %v1462_v22 = vld [vmem:[%s1895_s1 + $0x28] sm:$0xff]  }
   0x8   :  { %1271 = vmatpush3.bf16.msra.mxu0 %v1446_v6  ;;  %v1455_v15 = vld [vmem:[%s1895_s1 + $0x98] sm:$0xff]   ;;  %v1459_v19 = vld [vmem:[%s1895_s1 + $0xa0] sm:$0xff]   ;;  %v1463_v23 = vld [vmem:[%s1895_s1 + $0xa8] sm:$0xff]  }
   0x9   :  { %1335 = vmatpush3.bf16.msra.mxu1 %v1447_v7  ;;  %1272 = vmatprep.subr.bf16.mxu0 %v1448_v8  ;;  %v1464_v24 = vld [vmem:[%s1895_s1 + $0x70] sm:$0xff]   ;;  %v1468_v28 = vld [vmem:[%s1895_s1 + $0x78] sm:$0xff]   ;;  %v1477_v35 = vld [vmem:[%s1896_s0 + $0xc] ss:$20 sps:$4 sm:$0xff]  }
   0xa   :  { %1336 = vmatprep.subr.bf16.mxu1 %v1449_v9  ;;  %v1465_v25 = vld [vmem:[%s1895_s1 + $0xf0] sm:$0xff]   ;;  %v1469_v29 = vld [vmem:[%s1895_s1 + $0xf8] sm:$0xff]   ;;  %v1478_v36 = vld [vmem:[%s1895_s1 + $0x100] sm:$0xff]   ;;  %744 = vmatprep.mubr.bf16.mxu1 %v1477_v35 }
   0xb   :  { %v1466_v26 = vld [vmem:[%s1895_s1 + $0x30] sm:$0xff]   ;;  %v1470_v30 = vld [vmem:[%s1895_s1 + $0x38] sm:$0xff]   ;;  %v1479_v37 = vld [vmem:[%s1896_s0 + $0x2c] ss:$20 sps:$4 sm:$0xff]  }
   0xc   :  { %1273 = vmatpush3.bf16.msra.mxu0 %v1450_v10  ;;  %v1467_v27 = vld [vmem:[%s1895_s1 + $0xb0] sm:$0xff]   ;;  %v1471_v31 = vld [vmem:[%s1895_s1 + $0xb8] sm:$0xff]   ;;  %v1491_v42 = vld [vmem:[%s1895_s1 + $0x108] sm:$0xff]  }
   0xd   :  { %1337 = vmatpush3.bf16.msra.mxu1 %v1451_v11  ;;  %1274 = vmatprep.subr.bf16.mxu0 %v1452_v12  ;;  %v1472_v32 = vld [vmem:[%s1896_s0] ss:$20 sps:$4 sm:$0xff]   ;;  %v1474_v33 = vld [vmem:[%s1896_s0 + $0x4] ss:$20 sps:$4 sm:$0xff]   ;;  %v1475_v34 = vld [vmem:[%s1896_s0 + $0x8] ss:$20 sps:$4 sm:$0xff]  }
   0xe   :  { %1338 = vmatprep.subr.bf16.mxu1 %v1453_v13  ;;  %647 = vmatprep.mubr.bf16.mxu0 %v1474_v33  ;;  %v1481_v38 = vld [vmem:[%s1896_s0 + $0x34] ss:$20 sps:$4 sm:$0xff]   ;;  %v1484_v40 = vld [vmem:[%s1896_s0 + $0x30] ss:$20 sps:$4 sm:$0xff]   ;;  %v1490_v45 = vld [vmem:[%s1896_s0 + $0x58] ss:$20 sps:$4 sm:$0xff]  }
   0xf   :  { %v1483_v39 = vld [vmem:[%s1896_s0 + $0x28] ss:$20 sps:$4 sm:$0xff]   ;;  %v1489_v44 = vld [vmem:[%s1896_s0 + $0x50] ss:$20 sps:$4 sm:$0xff]   ;;  %v1496_v50 = vld [vmem:[%s1896_s0 + $0x78] ss:$20 sps:$4 sm:$0xff]  }
  0x10   :  { %1275 = vmatpush3.bf16.msra.mxu0 %v1454_v14  ;;  %v1485_v41 = vld [vmem:[%s1896_s0 + $0x54] ss:$20 sps:$4 sm:$0xff]   ;;  %v1487_v43 = vld [vmem:[%s1896_s0 + $0x5c] ss:$20 sps:$4 sm:$0xff]   ;;  %v1494_v48 = vld [vmem:[%s1896_s0 + $0x84] ss:$20 sps:$4 sm:$0xff]  }
  0x11   :  { %1339 = vmatpush3.bf16.msra.mxu1 %v1455_v15  ;;  %1276 = vmatprep.subr.bf16.mxu0 %v1456_v16  ;;  %v1504_v46 = vld [vmem:[%s1895_s1 + $0x110] sm:$0xff]   ;;  %v1517_v49 = vld [vmem:[%s1895_s1 + $0x118] sm:$0xff]   ;;  %v1500_v53 = vld [vmem:[%s1896_s0 + $0xac] ss:$20 sps:$4 sm:$0xff]  }
  0x12   :  { %1340 = vmatprep.subr.bf16.mxu1 %v1457_v17  ;;  %v1492_v47 = vld [vmem:[%s1896_s0 + $0x7c] ss:$20 sps:$4 sm:$0xff]   ;;  %v1497_v51 = vld [vmem:[%s1896_s0 + $0x80] ss:$20 sps:$4 sm:$0xff]   ;;  %v1498_v52 = vld [vmem:[%s1896_s0 + $0xa4] ss:$20 sps:$4 sm:$0xff]  }
  0x13   :  { %v1502_v54 = vld [vmem:[%s1896_s0 + $0xa0] ss:$20 sps:$4 sm:$0xff]   ;;  %v1503_v55 = vld [vmem:[%s1896_s0 + $0xa8] ss:$20 sps:$4 sm:$0xff]   ;;  %v1510_v59 = vld [vmem:[%s1896_s0 + $0xd0] ss:$20 sps:$4 sm:$0xff]  }
  0x14   :  { %1277 = vmatpush3.bf16.msra.mxu0 %v1458_v18  ;;  %v1505_v56 = vld [vmem:[%s1896_s0 + $0xcc] ss:$20 sps:$4 sm:$0xff]   ;;  %v1507_v57 = vld [vmem:[%s1896_s0 + $0xd4] ss:$20 sps:$4 sm:$0xff]   ;;  %v1513_v61 = vld [vmem:[%s1896_s0 + $0xfc] ss:$20 sps:$4 sm:$0xff]  }
  0x15   :  { %1341 = vmatpush3.bf16.msra.mxu1 %v1459_v19  ;;  %1278 = vmatprep.subr.bf16.mxu0 %v1460_v20  ;;  %v1509_v58 = vld [vmem:[%s1896_s0 + $0xc8] ss:$20 sps:$4 sm:$0xff]   ;;  %v1515_v62 = vld [vmem:[%s1896_s0 + $0xf0] ss:$20 sps:$4 sm:$0xff]   ;;  %v1516_v63 = vld [vmem:[%s1896_s0 + $0xf8] ss:$20 sps:$4 sm:$0xff]  }
  0x16   :  { %1342 = vmatprep.subr.bf16.mxu1 %v1461_v21  ;;  %v1511_v60 = vld [vmem:[%s1896_s0 + $0xf4] ss:$20 sps:$4 sm:$0xff]   ;;  %v1518_v0 = vld [vmem:[%s1896_s0 + $0x11c] ss:$20 sps:$4 sm:$0xff]   ;;  %v1520_v1 = vld [vmem:[%s1896_s0 + $0x124] ss:$20 sps:$4 sm:$0xff]  }
  0x17   :  { %v1522_v2 = vld [vmem:[%s1896_s0 + $0x118] ss:$20 sps:$4 sm:$0xff]   ;;  %v1523_v3 = vld [vmem:[%s1896_s0 + $0x120] ss:$20 sps:$4 sm:$0xff]   ;;  %v1524_v4 = vld [vmem:[%s1896_s0 + $0x10] ss:$20 sps:$4 sm:$0xff]  }
  0x18   :  { %1279 = vmatpush3.bf16.msra.mxu0 %v1462_v22  ;;  %v1525_v5 = vld [vmem:[%s1896_s0 + $0xb0] ss:$20 sps:$4 sm:$0xff]   ;;  %v1526_v6 = vld [vmem:[%s1896_s0 + $0x38] ss:$20 sps:$4 sm:$0xff]   ;;  %v1528_v8 = vld [vmem:[%s1896_s0 + $0x60] ss:$20 sps:$4 sm:$0xff]  }
  0x19   :  { %1343 = vmatpush3.bf16.msra.mxu1 %v1463_v23  ;;  %1280 = vmatprep.subr.bf16.mxu0 %v1464_v24  ;;  %v1527_v7 = vld [vmem:[%s1896_s0 + $0xd8] ss:$20 sps:$4 sm:$0xff]   ;;  %v1529_v9 = vld [vmem:[%s1896_s0 + $0x100] ss:$20 sps:$4 sm:$0xff]   ;;  %v1530_v10 = vld [vmem:[%s1896_s0 + $0x88] ss:$20 sps:$4 sm:$0xff]  }
  0x1a   :  { %1344 = vmatprep.subr.bf16.mxu1 %v1465_v25  ;;  %v1531_v11 = vld [vmem:[%s1896_s0 + $0x128] ss:$20 sps:$4 sm:$0xff]  }
  0x1c   :  { %1281 = vmatpush3.bf16.msra.mxu0 %v1466_v26 }
  0x1d   :  { %1345 = vmatpush3.bf16.msra.mxu1 %v1467_v27  ;;  %1282 = vmatprep.subr.bf16.mxu0 %v1468_v28 }
  0x1e   :  { %1346 = vmatprep.subr.bf16.mxu1 %v1469_v29 }
  0x20   :  { %1283 = vmatpush3.bf16.msra.mxu0 %v1470_v30 }
  0x21   :  { %1347 = vmatpush3.bf16.msra.mxu1 %v1471_v31  ;;  %1408 = vmatprep.subr.bf16.mxu0 %v1478_v36 }
  0x22   :  { %1432 = vmatprep.subr.bf16.mxu1 %v1478_v36 }
  0x23   :  { %648 = vmatmul.mubr.bf16.vlgmr.msra.gmra.mrb[0].mxu0 %v1472_v32 }
  0x24   :  { %745 = vmatmul.mubr.bf16.vlgmr.msra.gmra.mrb[0].mxu1 %v1475_v34  ;;  %1409 = vmatpush3.bf16.msra.mxu0 %v1478_v36 }
  0x25   :  { %1436 = vmatpush3.bf16.msra.mxu1 %v1478_v36  ;;  %655 = vmatprep.mubr.bf16.mxu0 %v1479_v37 }
  0x26   :  { %752 = vmatprep.mubr.bf16.mxu1 %v1481_v38  ;;  %1410 = vmatprep.subr.bf16.mxu0 %v1491_v42 }
  0x27   :  { %1433 = vmatprep.subr.bf16.mxu1 %v1491_v42 }
  0x28   :  { %1411 = vmatpush3.bf16.msra.mxu0 %v1491_v42 }
  0x29   :  { %1437 = vmatpush3.bf16.msra.mxu1 %v1491_v42  ;;  %1412 = vmatprep.subr.bf16.mxu0 %v1504_v46 }
  0x2a   :  { %1434 = vmatprep.subr.bf16.mxu1 %v1504_v46 }
  0x2b   :  { %656 = vmatmul.mubr.bf16.gmra.mrb[4].mxu0 %v1483_v39 }
  0x2c   :  { %753 = vmatmul.mubr.bf16.gmra.mrb[4].mxu1 %v1484_v40  ;;  %663 = vmatprep.mubr.bf16.mxu0 %v1485_v41 }
  0x2d   :  { %760 = vmatprep.mubr.bf16.mxu1 %v1487_v43  ;;  %1413 = vmatpush3.bf16.msra.mxu0 %v1504_v46 }
  0x2e   :  { %1438 = vmatpush3.bf16.msra.mxu1 %v1504_v46  ;;  %1414 = vmatprep.subr.bf16.mxu0 %v1517_v49 }
  0x2f   :  { %1435 = vmatprep.subr.bf16.mxu1 %v1517_v49 }
  0x31   :  { %1415 = vmatpush3.bf16.msra.mxu0 %v1517_v49 }
  0x32   :  { %1439 = vmatpush3.bf16.msra.mxu1 %v1517_v49 }
  0x33   :  { %664 = vmatmul.mubr.bf16.gmra.mrb[8].mxu0 %v1489_v44 }
  0x34   :  { %761 = vmatmul.mubr.bf16.gmra.mrb[8].mxu1 %v1490_v45  ;;  %671 = vmatprep.mubr.bf16.mxu0 %v1492_v47 }
  0x35   :  { %768 = vmatprep.mubr.bf16.mxu1 %v1494_v48 }
  0x3b   :  { %672 = vmatmul.mubr.bf16.gmra.mrb[12].mxu0 %v1496_v50 }
  0x3c   :  { %769 = vmatmul.mubr.bf16.gmra.mrb[12].mxu1 %v1497_v51  ;;  %679 = vmatprep.mubr.bf16.mxu0 %v1498_v52 }
  0x3d   :  { %776 = vmatprep.mubr.bf16.mxu1 %v1500_v53 }
  0x43   :  { %680 = vmatmul.mubr.bf16.gmra.mrb[16].mxu0 %v1502_v54 }
  0x44   :  { %777 = vmatmul.mubr.bf16.gmra.mrb[16].mxu1 %v1503_v55  ;;  %687 = vmatprep.mubr.bf16.mxu0 %v1505_v56 }
  0x45   :  { %784 = vmatprep.mubr.bf16.mxu1 %v1507_v57 }
  0x4b   :  { %688 = vmatmul.mubr.bf16.gmra.mrb[20].mxu0 %v1509_v58 }
  0x4c   :  { %785 = vmatmul.mubr.bf16.gmra.mrb[20].mxu1 %v1510_v59  ;;  %695 = vmatprep.mubr.bf16.mxu0 %v1511_v60 }
  0x4d   :  { %792 = vmatprep.mubr.bf16.mxu1 %v1513_v61 }
  0x53   :  { %696 = vmatmul.mubr.bf16.gmra.mrb[24].mxu0 %v1515_v62 }
  0x54   :  { %793 = vmatmul.mubr.bf16.gmra.mrb[24].mxu1 %v1516_v63  ;;  %703 = vmatprep.mubr.bf16.mxu0 %v1518_v0 }
  0x55   :  { %800 = vmatprep.mubr.bf16.mxu1 %v1520_v1 }
  0x5b   :  { %704 = vmatmul.mubr.bf16.gmra.mrb[28].mxu0 %v1522_v2 }
  0x5c   :  { %801 = vmatmul.mubr.bf16.gmra.mrb[28].mxu1 %v1523_v3  ;;  %1416 = vmatprep.mubr.msk.bf16.mxu0 %vm590_vm0, %v1524_v4 }
  0x5d   :  { %1424 = vmatprep.mubr.msk.bf16.mxu1 %vm590_vm0, %v1525_v5 }
  0x63   :  { %1417 = vmatmul.mubr.msk.bf16.vlgmr.msra.gmra.mrb[32].mxu0 %vm590_vm0, %v1526_v6 }
  0x64   :  { %1425 = vmatmul.mubr.msk.bf16.vlgmr.msra.gmra.mrb[32].mxu1 %vm590_vm0, %v1527_v7  ;;  %1420 = vmatprep.mubr.msk.bf16.mxu0 %vm590_vm0, %v1528_v8 }
  0x65   :  { %1428 = vmatprep.mubr.msk.bf16.mxu1 %vm590_vm0, %v1529_v9 }
  0x6b   :  { %1421 = vmatmul.mubr.msk.bf16.gmra.mrb[36].mxu0 %vm590_vm0, %v1530_v10 }
  0x6c   :  { %1429 = vmatmul.mubr.msk.bf16.gmra.mrb[36].mxu1 %vm590_vm0, %v1531_v11 }
  0xf6   :  { %v1284_v12 = vpop.f32.mrb[0].mxu0 }
  0xf7   :  { %v1348_v13 = vpop.f32.mrb[0].mxu1  ;;  %v1285_v14 = vpop.f32.mrb[1].mxu0 }
  0xf8   :  { %v1286_v15 = vadd.f32 %v1285_v14, %v1284_v12  ;;  %v1349_v16 = vpop.f32.mrb[1].mxu1  ;;  %v1287_v17 = vpop.f32.mrb[2].mxu0 }
  0xf9   :  { %v1350_v18 = vadd.f32 %v1349_v16, %v1348_v13  ;;  %v1351_v19 = vpop.f32.mrb[2].mxu1  ;;  %v1288_v20 = vpop.f32.mrb[3].mxu0 }
  0xfa   :  { %v1289_v21 = vadd.f32 %v1288_v20, %v1287_v17  ;;  %v1352_v22 = vpop.f32.mrb[3].mxu1 }
  0xfb   :  { %v1353_v23 = vadd.f32 %v1352_v22, %v1351_v19  ;;  %v1793_v24 = vadd.f32 %v1350_v18, %v1286_v15 }
  0xfd   :  { %v1795_v25 = vadd.f32 %v1353_v23, %v1289_v21 }
  0xfe   :  { %v1290_v26 = vpop.f32.mrb[4].mxu0 }
  0xff   :  { %v1354_v27 = vpop.f32.mrb[4].mxu1  ;;  %v1291_v28 = vpop.f32.mrb[5].mxu0 }
 0x100   :  { %v1292_v29 = vadd.f32 %v1291_v28, %v1290_v26  ;;  %v1355_v30 = vpop.f32.mrb[5].mxu1  ;;  %v1293_v31 = vpop.f32.mrb[6].mxu0 }
 0x101   :  { %v1356_v32 = vadd.f32 %v1355_v30, %v1354_v27  ;;  %v1357_v33 = vpop.f32.mrb[6].mxu1  ;;  %v1294_v34 = vpop.f32.mrb[7].mxu0 }
 0x102   :  { %v1295_v35 = vadd.f32 %v1294_v34, %v1293_v31  ;;  %v1358_v36 = vpop.f32.mrb[7].mxu1 }
 0x103   :  { %v1359_v37 = vadd.f32 %v1358_v36, %v1357_v33  ;;  %v1797_v38 = vadd.f32 %v1356_v32, %v1292_v29 }
 0x105   :  { %v1799_v39 = vadd.f32 %v1359_v37, %v1295_v35 }
 0x106   :  { %v1296_v40 = vpop.f32.mrb[8].mxu0 }
 0x107   :  { %v1360_v41 = vpop.f32.mrb[8].mxu1  ;;  %v1297_v42 = vpop.f32.mrb[9].mxu0 }
 0x108   :  { %v1298_v43 = vadd.f32 %v1297_v42, %v1296_v40  ;;  %v1361_v44 = vpop.f32.mrb[9].mxu1  ;;  %v1299_v45 = vpop.f32.mrb[10].mxu0 }
 0x109   :  { %v1362_v46 = vadd.f32 %v1361_v44, %v1360_v41  ;;  %v1363_v47 = vpop.f32.mrb[10].mxu1  ;;  %v1300_v48 = vpop.f32.mrb[11].mxu0 }
 0x10a   :  { %v1301_v49 = vadd.f32 %v1300_v48, %v1299_v45  ;;  %v1364_v50 = vpop.f32.mrb[11].mxu1 }
 0x10b   :  { %v1365_v51 = vadd.f32 %v1364_v50, %v1363_v47  ;;  %v1801_v52 = vadd.f32 %v1362_v46, %v1298_v43 }
 0x10d   :  { %v1803_v53 = vadd.f32 %v1365_v51, %v1301_v49 }
 0x10e   :  { %v1302_v54 = vpop.f32.mrb[12].mxu0 }
 0x10f   :  { %v1366_v55 = vpop.f32.mrb[12].mxu1  ;;  %v1303_v56 = vpop.f32.mrb[13].mxu0 }
 0x110   :  { %v1304_v57 = vadd.f32 %v1303_v56, %v1302_v54  ;;  %v1367_v58 = vpop.f32.mrb[13].mxu1  ;;  %v1305_v59 = vpop.f32.mrb[14].mxu0 }
 0x111   :  { %v1368_v60 = vadd.f32 %v1367_v58, %v1366_v55  ;;  %v1369_v61 = vpop.f32.mrb[14].mxu1  ;;  %v1306_v62 = vpop.f32.mrb[15].mxu0 }
 0x112   :  { %v1307_v63 = vadd.f32 %v1306_v62, %v1305_v59  ;;  %v1370_v0 = vpop.f32.mrb[15].mxu1 }
 0x113   :  { %v1371_v1 = vadd.f32 %v1370_v0, %v1369_v61  ;;  %v1805_v2 = vadd.f32 %v1368_v60, %v1304_v57 }
 0x115   :  { %v1807_v3 = vadd.f32 %v1371_v1, %v1307_v63 }
 0x116   :  { %v1308_v4 = vpop.f32.mrb[16].mxu0 }
 0x117   :  { %v1372_v5 = vpop.f32.mrb[16].mxu1  ;;  %v1309_v6 = vpop.f32.mrb[17].mxu0 }
 0x118   :  { %v1310_v7 = vadd.f32 %v1309_v6, %v1308_v4  ;;  %v1373_v8 = vpop.f32.mrb[17].mxu1  ;;  %v1311_v9 = vpop.f32.mrb[18].mxu0 }
 0x119   :  { %v1374_v10 = vadd.f32 %v1373_v8, %v1372_v5  ;;  %v1375_v11 = vpop.f32.mrb[18].mxu1  ;;  %v1312_v12 = vpop.f32.mrb[19].mxu0  ;;  %v1820_v5 = vld [vmem:[%s1897_s2] ss:$0 sm:$0xff] }
 0x11a   :  { %v1313_v13 = vadd.f32 %v1312_v12, %v1311_v9  ;;  %v1376_v14 = vpop.f32.mrb[19].mxu1  ;;  %v1826_v9 = vld [vmem:[%s1898_s3] ss:$0 sm:$0xff] }
 0x11b   :  { %v1377_v15 = vadd.f32 %v1376_v14, %v1375_v11  ;;  %v779_v16 = vadd.f32 %v1374_v10, %v1310_v7 }
 0x11d   :  { %v1809_v17 = vadd.f32 %v1377_v15, %v1313_v13 }
 0x11e   :  { %v1314_v18 = vpop.f32.mrb[20].mxu0 }
 0x11f   :  { %v1378_v19 = vpop.f32.mrb[20].mxu1  ;;  %v1315_v20 = vpop.f32.mrb[21].mxu0 }
 0x120   :  { %v1316_v21 = vadd.f32 %v1315_v20, %v1314_v18  ;;  %v1379_v22 = vpop.f32.mrb[21].mxu1  ;;  %v1317_v23 = vpop.f32.mrb[22].mxu0 }
 0x121   :  { %v1380_v26 = vadd.f32 %v1379_v22, %v1378_v19  ;;  %v1381_v27 = vpop.f32.mrb[22].mxu1  ;;  %v1318_v28 = vpop.f32.mrb[23].mxu0 }
 0x122   :  { %v1319_v29 = vadd.f32 %v1318_v28, %v1317_v23  ;;  %v1382_v30 = vpop.f32.mrb[23].mxu1 }
 0x123   :  { %v1383_v31 = vadd.f32 %v1382_v30, %v1381_v27  ;;  %v787_v32 = vadd.f32 %v1380_v26, %v1316_v21 }
 0x125   :  { %v790_v33 = vadd.f32 %v1383_v31, %v1319_v29 }
 0x126   :  { %v1320_v34 = vpop.f32.mrb[24].mxu0 }
 0x127   :  { %v1384_v35 = vpop.f32.mrb[24].mxu1  ;;  %v1321_v36 = vpop.f32.mrb[25].mxu0 }
 0x128   :  { %v1322_v37 = vadd.f32 %v1321_v36, %v1320_v34  ;;  %v1385_v40 = vpop.f32.mrb[25].mxu1  ;;  %v1323_v41 = vpop.f32.mrb[26].mxu0 }
 0x129   :  { %v1386_v42 = vadd.f32 %v1385_v40, %v1384_v35  ;;  %v1387_v43 = vpop.f32.mrb[26].mxu1  ;;  %v1324_v44 = vpop.f32.mrb[27].mxu0 }
 0x12a   :  { %v1325_v45 = vadd.f32 %v1324_v44, %v1323_v41  ;;  %v1388_v46 = vpop.f32.mrb[27].mxu1 }
 0x12b   :  { %v1389_v47 = vadd.f32 %v1388_v46, %v1387_v43  ;;  %v1811_v48 = vadd.f32 %v1386_v42, %v1322_v37 }
 0x12d   :  { %v1813_v49 = vadd.f32 %v1389_v47, %v1325_v45 }
 0x12e   :  { %v1326_v50 = vpop.f32.mrb[28].mxu0 }
 0x12f   :  { %v1390_v51 = vpop.f32.mrb[28].mxu1  ;;  %v1327_v54 = vpop.f32.mrb[29].mxu0 }
 0x130   :  { %v1328_v55 = vadd.f32 %v1327_v54, %v1326_v50  ;;  %v1391_v56 = vpop.f32.mrb[29].mxu1  ;;  %v1329_v57 = vpop.f32.mrb[30].mxu0 }
 0x131   :  { %v1392_v58 = vadd.f32 %v1391_v56, %v1390_v51  ;;  %v1393_v59 = vpop.f32.mrb[30].mxu1  ;;  %v1330_v60 = vpop.f32.mrb[31].mxu0 }
 0x132   :  { %v1331_v61 = vadd.f32 %v1330_v60, %v1329_v57  ;;  %v1394_v62 = vpop.f32.mrb[31].mxu1 }
 0x133   :  { %v1395_v63 = vadd.f32 %v1394_v62, %v1393_v59  ;;  %v803_v0 = vadd.f32 %v1392_v58, %v1328_v55 }
 0x135   :  { %v1815_v1 = vadd.f32 %v1395_v63, %v1331_v61 }
 0x136   :  { %v1418_v4 = vpop.f32.mrb[32].mxu0 }
 0x137   :  { %v852_v6 = vadd.f32 %v1418_v4, %v1797_v38  ;;  %v1426_v7 = vpop.f32.mrb[32].mxu1  ;;  %v843_v8 = vpop.f32.mrb[33].mxu0 }
 0x138   :  { %v884_v10 = vadd.f32 %v1426_v7, %v787_v32  ;;  %v844_v11 = vadd.f32 %v843_v8, %v1793_v24  ;;  %v875_v12 = vpop.f32.mrb[33].mxu1  ;;  %v1419_v13 = vpop.f32.mrb[34].mxu0 }
 0x139   :  { %v966_v14 = vmul.f32 %v1820_v5, %v852_v6  ;;  %v876_v15 = vadd.f32 %v875_v12, %v779_v16  ;;  %v855_v18 = vadd.f32 %v1419_v13, %v1799_v39  ;;  %v1427_v19 = vpop.f32.mrb[34].mxu1  ;;  %v846_v20 = vpop.f32.mrb[35].mxu0 }
 0x13a   :  { %v974_v38 = vmul.f32 %v1820_v5, %v884_v10  ;;  %v964_v21 = vmul.f32 %v1820_v5, %v844_v11  ;;  %v887_v22 = vadd.f32 %v1427_v19, %v790_v33  ;;  %v847_v23 = vadd.f32 %v846_v20, %v1795_v25  ;;  %v878_v26 = vpop.f32.mrb[35].mxu1 }
 0x13b   :  { %v989_v27 = vadd.f32 %v1826_v9, %v966_v14  ;;  %v972_v24 = vmul.f32 %v1820_v5, %v876_v15  ;;  %v967_v28 = vmul.f32 %v1820_v5, %v855_v18  ;;  %v879_v16 = vadd.f32 %v878_v26, %v1809_v17 }
 0x13c   :  { %v997_v39 = vadd.f32 %v1826_v9, %v974_v38  ;;  %v987_v29 = vadd.f32 %v1826_v9, %v964_v21  ;;  %v975_v30 = vmul.f32 %v1820_v5, %v887_v22  ;;  %v965_v31 = vmul.f32 %v1820_v5, %v847_v23 }
 0x13d   :  { %v1005_v32 = vmax.f32 %v989_v27, 0.0  ;;  %v995_v25 = vadd.f32 %v1826_v9, %v972_v24  ;;  %v990_v33 = vadd.f32 %v1826_v9, %v967_v28  ;;  %v973_v34 = vmul.f32 %v1820_v5, %v879_v16 }
 0x13e   :  { %v1013_v35 = vmax.f32 %v997_v39, 0.0  ;;  %v1003_v36 = vmax.f32 %v987_v29, 0.0  ;;  %v998_v37 = vadd.f32 %v1826_v9, %v975_v30  ;;  %v988_v17 = vadd.f32 %v1826_v9, %v965_v31  ;;  %v1422_v40 = vpop.f32.mrb[36].mxu0 }
 0x13f   :  { %v1011_v41 = vmax.f32 %v995_v25, 0.0  ;;  %v1006_v42 = vmax.f32 %v990_v33, 0.0  ;;  %v996_v43 = vadd.f32 %v1826_v9, %v973_v34  ;;  %v868_v44 = vadd.f32 %v1422_v40, %v1805_v2  ;;  %v1430_v45 = vpop.f32.mrb[36].mxu1  ;;  %v859_v46 = vpop.f32.mrb[37].mxu0 }
 0x140   :  { %v1014_v47 = vmax.f32 %v998_v37, 0.0  ;;  %v1004_v50 = vmax.f32 %v988_v17, 0.0  ;;  %v900_v51 = vadd.f32 %v1430_v45, %v803_v0  ;;  %v860_v54 = vadd.f32 %v859_v46, %v1801_v52  ;;  %v891_v55 = vpop.f32.mrb[37].mxu1  ;;  %v1423_v56 = vpop.f32.mrb[38].mxu0 }
 0x141   :  { %v1229_v57 = vpack.c.bf16 %v1006_v42, %v1005_v32  ;;  %v1012_v58 = vmax.f32 %v996_v43, 0.0  ;;  %v970_v59 = vmul.f32 %v1820_v5, %v868_v44  ;;  %v892_v60 = vadd.f32 %v891_v55, %v1811_v48  ;;  %v1431_v61 = vpop.f32.mrb[38].mxu1  ;;  %v862_v62 = vpop.f32.mrb[39].mxu0 }
 0x142   :  { %v1249_v63 = vpack.c.bf16 %v1014_v47, %v1013_v35  ;;  %v1224_v4 = vpack.c.bf16 %v1004_v50, %v1003_v36  ;;  %v978_v2 = vmul.f32 %v1820_v5, %v900_v51  ;;  %v968_v6 = vmul.f32 %v1820_v5, %v860_v54  ;;  %v894_v7 = vpop.f32.mrb[39].mxu1 }
 0x143   :  { %1261 = vst [vmem:[%s1899_s4 + $0x8] sm:$0xff] %v1229_v57   ;;  %v1244_v52 = vpack.c.bf16 %v1012_v58, %v1011_v41  ;;  %v976_v0 = vmul.f32 %v1820_v5, %v892_v60  ;;  %v871_v8 = vadd.f32 %v1423_v56, %v1807_v3  ;;  %v903_v48 = vadd.f32 %v1431_v61, %v1815_v1 }
 0x144   :  { %1265 = vst [vmem:[%s1899_s4 + $0x28] sm:$0xff] %v1249_v63   ;;  %1225 = vst [vmem:[%s1899_s4] sm:$0xff] %v1224_v4   ;;  %v863_v10 = vadd.f32 %v862_v62, %v1803_v53  ;;  %v993_v11 = vadd.f32 %v1826_v9, %v970_v59  ;;  %v895_v12 = vadd.f32 %v894_v7, %v1813_v49 }
 0x145   :  { %1264 = vst [vmem:[%s1899_s4 + $0x20] sm:$0xff] %v1244_v52   ;;  %v971_v3 = vmul.f32 %v1820_v5, %v871_v8  ;;  %v1001_v13 = vadd.f32 %v1826_v9, %v978_v2  ;;  %v991_v14 = vadd.f32 %v1826_v9, %v968_v6  ;;  %v979_v15 = vmul.f32 %v1820_v5, %v903_v48 }
 0x146   :  { %v969_v1 = vmul.f32 %v1820_v5, %v863_v10  ;;  %v999_v53 = vadd.f32 %v1826_v9, %v976_v0  ;;  %v977_v19 = vmul.f32 %v1820_v5, %v895_v12  ;;  %v1009_v21 = vmax.f32 %v993_v11, 0.0 }
 0x147   :  { %v994_v18 = vadd.f32 %v1826_v9, %v971_v3  ;;  %v1002_v20 = vadd.f32 %v1826_v9, %v979_v15  ;;  %v1017_v23 = vmax.f32 %v1001_v13, 0.0  ;;  %v1007_v26 = vmax.f32 %v991_v14, 0.0 }
 0x148   :  { %v992_v38 = vadd.f32 %v1826_v9, %v969_v1  ;;  %v1000_v22 = vadd.f32 %v1826_v9, %v977_v19  ;;  %v1015_v28 = vmax.f32 %v999_v53, 0.0 }
 0x149   :  { %v1010_v49 = vmax.f32 %v994_v18, 0.0  ;;  %v1018_v27 = vmax.f32 %v1002_v20, 0.0 }
 0x14a   :  { %v1008_v24 = vmax.f32 %v992_v38, 0.0  ;;  %v1016_v39 = vmax.f32 %v1000_v22, 0.0 }
 0x14b   :  { %v1239_v16 = vpack.c.bf16 %v1010_v49, %v1009_v21  ;;  %v1259_v29 = vpack.c.bf16 %v1018_v27, %v1017_v23 }
 0x14c   :  { %v1234_v30 = vpack.c.bf16 %v1008_v24, %v1007_v26  ;;  %v1254_v5 = vpack.c.bf16 %v1016_v39, %v1015_v28 }
 0x14d   :  { %1263 = vst [vmem:[%s1899_s4 + $0x18] sm:$0xff] %v1239_v16   ;;  %1267 = vst [vmem:[%s1899_s4 + $0x38] sm:$0xff] %v1259_v29  }
 0x14e   :  { %1262 = vst [vmem:[%s1899_s4 + $0x10] sm:$0xff] %v1234_v30   ;;  %1266 = vst [vmem:[%s1899_s4 + $0x30] sm:$0xff] %v1254_v5  }

// kernel: cnn_network_forward.30
= control target key start
LH: loop header
LB: loop body
LE: loop exit
PB: predicated region body
PF: predicated region fallthrough
CT: control target
= control target key end

     0   :  { %vm380_vm0 = vcmask 523264   ;;  %s967_s1 = inlined_call_operand.vmem [shape: bf16[576,128], index: 1, kind: input, shape index: {}]   ;;  %s968_s0 = inlined_call_operand.vmem [shape: bf16[32,576], index: 0, kind: input, shape index: {}]   ;;  %s969_s2 = inlined_call_operand.vmem [shape: f32[1,128], index: 2, kind: input, shape index: {}]   ;;  %s970_s3 = inlined_call_operand.vmem [shape: f32[1,128], index: 3, kind: input, shape index: {}]   ;;  %s971_s4 = inlined_call_operand.vmem [shape: bf16[32,128], index: 4, kind: output, shape index: {}]  }
   0x1   :  { %v742_v0 = vld [vmem:[%s967_s1 + $0x40] sm:$0xff]   ;;  %v746_v4 = vld [vmem:[%s967_s1 + $0x48] sm:$0xff]   ;;  %v750_v8 = vld [vmem:[%s967_s1 + $0x50] sm:$0xff]  }
   0x2   :  { %v743_v1 = vld [vmem:[%s967_s1 + $0xc0] sm:$0xff]   ;;  %668 = vmatprep.subr.bf16.mxu0 %v742_v0  ;;  %v747_v5 = vld [vmem:[%s967_s1 + $0xc8] sm:$0xff]   ;;  %v751_v9 = vld [vmem:[%s967_s1 + $0xd0] sm:$0xff]  }
   0x3   :  { %v744_v2 = vld [vmem:[%s967_s1] sm:$0xff]   ;;  %696 = vmatprep.subr.bf16.mxu1 %v743_v1  ;;  %v748_v6 = vld [vmem:[%s967_s1 + $0x8] sm:$0xff]   ;;  %v752_v10 = vld [vmem:[%s967_s1 + $0x10] sm:$0xff]  }
   0x4   :  { %v745_v3 = vld [vmem:[%s967_s1 + $0x80] sm:$0xff]   ;;  %669 = vmatpush3.bf16.msra.mxu0 %v744_v2  ;;  %v749_v7 = vld [vmem:[%s967_s1 + $0x88] sm:$0xff]   ;;  %v753_v11 = vld [vmem:[%s967_s1 + $0x90] sm:$0xff]  }
   0x5   :  { %697 = vmatpush3.bf16.msra.mxu1 %v745_v3  ;;  %670 = vmatprep.subr.bf16.mxu0 %v746_v4  ;;  %v754_v12 = vld [vmem:[%s967_s1 + $0x58] sm:$0xff]   ;;  %v758_v16 = vld [vmem:[%s967_s1 + $0x60] sm:$0xff]   ;;  %v762_v20 = vld [vmem:[%s967_s1 + $0x68] sm:$0xff]  }
   0x6   :  { %698 = vmatprep.subr.bf16.mxu1 %v747_v5  ;;  %v755_v13 = vld [vmem:[%s967_s1 + $0xd8] sm:$0xff]   ;;  %v759_v17 = vld [vmem:[%s967_s1 + $0xe0] sm:$0xff]   ;;  %v763_v21 = vld [vmem:[%s967_s1 + $0xe8] sm:$0xff]  }
   0x7   :  { %v756_v14 = vld [vmem:[%s967_s1 + $0x18] sm:$0xff]   ;;  %v760_v18 = vld [vmem:[%s967_s1 + $0x20] sm:$0xff]   ;;  %v764_v22 = vld [vmem:[%s967_s1 + $0x28] sm:$0xff]  }
   0x8   :  { %671 = vmatpush3.bf16.msra.mxu0 %v748_v6  ;;  %v757_v15 = vld [vmem:[%s967_s1 + $0x98] sm:$0xff]   ;;  %v761_v19 = vld [vmem:[%s967_s1 + $0xa0] sm:$0xff]   ;;  %v765_v23 = vld [vmem:[%s967_s1 + $0xa8] sm:$0xff]  }
   0x9   :  { %699 = vmatpush3.bf16.msra.mxu1 %v749_v7  ;;  %672 = vmatprep.subr.bf16.mxu0 %v750_v8  ;;  %v766_v24 = vld [vmem:[%s967_s1 + $0x70] sm:$0xff]   ;;  %v770_v28 = vld [vmem:[%s967_s1 + $0x78] sm:$0xff]   ;;  %v779_v35 = vld [vmem:[%s968_s0 + $0xc] ss:$20 sps:$4 sm:$0xff]  }
   0xa   :  { %700 = vmatprep.subr.bf16.mxu1 %v751_v9  ;;  %v767_v25 = vld [vmem:[%s967_s1 + $0xf0] sm:$0xff]   ;;  %v771_v29 = vld [vmem:[%s967_s1 + $0xf8] sm:$0xff]   ;;  %v780_v36 = vld [vmem:[%s967_s1 + $0x100] sm:$0xff]   ;;  %468 = vmatprep.mubr.bf16.mxu1 %v779_v35 }
   0xb   :  { %v768_v26 = vld [vmem:[%s967_s1 + $0x30] sm:$0xff]   ;;  %v772_v30 = vld [vmem:[%s967_s1 + $0x38] sm:$0xff]   ;;  %v781_v37 = vld [vmem:[%s967_s1 + $0x108] sm:$0xff]  }
   0xc   :  { %673 = vmatpush3.bf16.msra.mxu0 %v752_v10  ;;  %v769_v27 = vld [vmem:[%s967_s1 + $0xb0] sm:$0xff]   ;;  %v773_v31 = vld [vmem:[%s967_s1 + $0xb8] sm:$0xff]   ;;  %v782_v38 = vld [vmem:[%s968_s0 + $0x2c] ss:$20 sps:$4 sm:$0xff]  }
   0xd   :  { %701 = vmatpush3.bf16.msra.mxu1 %v753_v11  ;;  %674 = vmatprep.subr.bf16.mxu0 %v754_v12  ;;  %v774_v32 = vld [vmem:[%s968_s0] ss:$20 sps:$4 sm:$0xff]   ;;  %v776_v33 = vld [vmem:[%s968_s0 + $0x4] ss:$20 sps:$4 sm:$0xff]   ;;  %v777_v34 = vld [vmem:[%s968_s0 + $0x8] ss:$20 sps:$4 sm:$0xff]  }
   0xe   :  { %702 = vmatprep.subr.bf16.mxu1 %v755_v13  ;;  %419 = vmatprep.mubr.bf16.mxu0 %v776_v33  ;;  %v784_v39 = vld [vmem:[%s968_s0 + $0x34] ss:$20 sps:$4 sm:$0xff]   ;;  %v787_v42 = vld [vmem:[%s968_s0 + $0x30] ss:$20 sps:$4 sm:$0xff]   ;;  %v789_v44 = vld [vmem:[%s967_s1 + $0x118] sm:$0xff]  }
   0xf   :  { %v786_v40 = vld [vmem:[%s968_s0 + $0x28] ss:$20 sps:$4 sm:$0xff]   ;;  %v788_v41 = vld [vmem:[%s967_s1 + $0x110] sm:$0xff]   ;;  %v791_v45 = vld [vmem:[%s968_s0 + $0x38] ss:$20 sps:$4 sm:$0xff]  }
  0x10   :  { %675 = vmatpush3.bf16.msra.mxu0 %v756_v14  ;;  %v790_v43 = vld [vmem:[%s968_s0 + $0x10] ss:$20 sps:$4 sm:$0xff]   ;;  %v647_v11 = vld [vmem:[%s969_s2] ss:$0 sm:$0xff] }
  0x11   :  { %703 = vmatpush3.bf16.msra.mxu1 %v757_v15  ;;  %676 = vmatprep.subr.bf16.mxu0 %v758_v16  ;;  %v648_v14 = vld [vmem:[%s970_s3] ss:$0 sm:$0xff] }
  0x12   :  { %704 = vmatprep.subr.bf16.mxu1 %v759_v17 }
  0x14   :  { %677 = vmatpush3.bf16.msra.mxu0 %v760_v18 }
  0x15   :  { %705 = vmatpush3.bf16.msra.mxu1 %v761_v19  ;;  %678 = vmatprep.subr.bf16.mxu0 %v762_v20 }
  0x16   :  { %706 = vmatprep.subr.bf16.mxu1 %v763_v21 }
  0x18   :  { %679 = vmatpush3.bf16.msra.mxu0 %v764_v22 }
  0x19   :  { %707 = vmatpush3.bf16.msra.mxu1 %v765_v23  ;;  %680 = vmatprep.subr.bf16.mxu0 %v766_v24 }
  0x1a   :  { %708 = vmatprep.subr.bf16.mxu1 %v767_v25 }
  0x1c   :  { %681 = vmatpush3.bf16.msra.mxu0 %v768_v26 }
  0x1d   :  { %709 = vmatpush3.bf16.msra.mxu1 %v769_v27  ;;  %682 = vmatprep.subr.bf16.mxu0 %v770_v28 }
  0x1e   :  { %710 = vmatprep.subr.bf16.mxu1 %v771_v29 }
  0x20   :  { %683 = vmatpush3.bf16.msra.mxu0 %v772_v30 }
  0x21   :  { %711 = vmatpush3.bf16.msra.mxu1 %v773_v31  ;;  %730 = vmatprep.subr.bf16.mxu0 %v780_v36 }
  0x23   :  { %420 = vmatmul.mubr.bf16.vlgmr.msra.gmra.mrb[0].mxu0 %v774_v32 }
  0x24   :  { %469 = vmatmul.mubr.bf16.vlgmr.msra.gmra.mrb[0].mxu1 %v777_v34  ;;  %731 = vmatpush3.bf16.msra.mxu0 %v780_v36 }
  0x25   :  { %732 = vmatprep.subr.bf16.mxu0 %v781_v37  ;;  %427 = vmatprep.mubr.bf16.mxu0 %v782_v38 }
  0x26   :  { %476 = vmatprep.mubr.bf16.mxu1 %v784_v39 }
  0x28   :  { %733 = vmatpush3.bf16.msra.mxu0 %v781_v37 }
  0x29   :  { %734 = vmatprep.subr.bf16.mxu0 %v788_v41 }
  0x2b   :  { %428 = vmatmul.mubr.bf16.gmra.mrb[4].mxu0 %v786_v40 }
  0x2c   :  { %477 = vmatmul.mubr.bf16.gmra.mrb[4].mxu1 %v787_v42  ;;  %738 = vmatprep.mubr.msk.bf16.mxu0 %vm380_vm0, %v790_v43 }
  0x2d   :  { %735 = vmatpush3.bf16.msra.mxu0 %v788_v41 }
  0x2e   :  { %736 = vmatprep.subr.bf16.mxu0 %v789_v44 }
  0x31   :  { %737 = vmatpush3.bf16.msra.mxu0 %v789_v44 }
  0x34   :  { %739 = vmatmul.mubr.msk.bf16.vlgmr.msra.gmra.mrb[8].mxu0 %vm380_vm0, %v791_v45 }
  0xf6   :  { %v684_v46 = vpop.f32.mrb[0].mxu0 }
  0xf7   :  { %v712_v47 = vpop.f32.mrb[0].mxu1  ;;  %v685_v48 = vpop.f32.mrb[1].mxu0 }
  0xf8   :  { %v686_v49 = vadd.f32 %v685_v48, %v684_v46  ;;  %v713_v50 = vpop.f32.mrb[1].mxu1  ;;  %v687_v51 = vpop.f32.mrb[2].mxu0 }
  0xf9   :  { %v714_v52 = vadd.f32 %v713_v50, %v712_v47  ;;  %v715_v53 = vpop.f32.mrb[2].mxu1  ;;  %v688_v54 = vpop.f32.mrb[3].mxu0 }
  0xfa   :  { %v689_v55 = vadd.f32 %v688_v54, %v687_v51  ;;  %v716_v56 = vpop.f32.mrb[3].mxu1 }
  0xfb   :  { %v717_v57 = vadd.f32 %v716_v56, %v715_v53  ;;  %v471_v58 = vadd.f32 %v714_v52, %v686_v49 }
  0xfd   :  { %v474_v59 = vadd.f32 %v717_v57, %v689_v55 }
  0xfe   :  { %v690_v60 = vpop.f32.mrb[4].mxu0 }
  0xff   :  { %v718_v61 = vpop.f32.mrb[4].mxu1  ;;  %v691_v62 = vpop.f32.mrb[5].mxu0 }
 0x100   :  { %v692_v63 = vadd.f32 %v691_v62, %v690_v60  ;;  %v719_v0 = vpop.f32.mrb[5].mxu1  ;;  %v693_v1 = vpop.f32.mrb[6].mxu0 }
 0x101   :  { %v720_v2 = vadd.f32 %v719_v0, %v718_v61  ;;  %v721_v3 = vpop.f32.mrb[6].mxu1  ;;  %v694_v4 = vpop.f32.mrb[7].mxu0 }
 0x102   :  { %v695_v5 = vadd.f32 %v694_v4, %v693_v1  ;;  %v722_v6 = vpop.f32.mrb[7].mxu1 }
 0x103   :  { %v723_v7 = vadd.f32 %v722_v6, %v721_v3  ;;  %v479_v8 = vadd.f32 %v720_v2, %v692_v63 }
 0x105   :  { %v482_v9 = vadd.f32 %v723_v7, %v695_v5 }
 0x107   :  { %v740_v10 = vpop.f32.mrb[8].mxu0 }
 0x108   :  { %v528_v12 = vadd.f32 %v740_v10, %v479_v8  ;;  %v519_v13 = vpop.f32.mrb[9].mxu0 }
 0x109   :  { %v520_v15 = vadd.f32 %v519_v13, %v471_v58  ;;  %v741_v16 = vpop.f32.mrb[10].mxu0 }
 0x10a   :  { %v558_v17 = vmul.f32 %v647_v11, %v528_v12  ;;  %v531_v18 = vadd.f32 %v741_v16, %v482_v9  ;;  %v522_v19 = vpop.f32.mrb[11].mxu0 }
 0x10b   :  { %v556_v20 = vmul.f32 %v647_v11, %v520_v15  ;;  %v523_v21 = vadd.f32 %v522_v19, %v474_v59 }
 0x10c   :  { %v569_v22 = vadd.f32 %v648_v14, %v558_v17  ;;  %v559_v23 = vmul.f32 %v647_v11, %v531_v18 }
 0x10d   :  { %v567_v24 = vadd.f32 %v648_v14, %v556_v20  ;;  %v557_v25 = vmul.f32 %v647_v11, %v523_v21 }
 0x10e   :  { %v570_v26 = vadd.f32 %v648_v14, %v559_v23  ;;  %v573_v28 = vmax.f32 %v569_v22, 0.0 }
 0x10f   :  { %v568_v27 = vadd.f32 %v648_v14, %v557_v25  ;;  %v571_v30 = vmax.f32 %v567_v24, 0.0 }
 0x110   :  { %v574_v29 = vmax.f32 %v570_v26, 0.0 }
 0x111   :  { %v572_v31 = vmax.f32 %v568_v27, 0.0 }
 0x112   :  { %v665_v32 = vpack.c.bf16 %v574_v29, %v573_v28 }
 0x113   :  { %v660_v33 = vpack.c.bf16 %v572_v31, %v571_v30 }
 0x114   :  { %667 = vst [vmem:[%s971_s4 + $0x8] sm:$0xff] %v665_v32  }
 0x115   :  { %661 = vst [vmem:[%s971_s4] sm:$0xff] %v660_v33  }

// kernel: cnn_network_forward.31
= control target key start
LH: loop header
LB: loop body
LE: loop exit
PB: predicated region body
PF: predicated region fallthrough
CT: control target
= control target key end

     0   :  { %vm76_vm0 = vcmask 523264   ;;  %s301_s1 = inlined_call_operand.vmem [shape: bf16[64,128], index: 1, kind: input, shape index: {}]   ;;  %s302_s0 = inlined_call_operand.vmem [shape: bf16[32,64], index: 0, kind: input, shape index: {}]   ;;  %s303_s2 = inlined_call_operand.vmem [shape: f32[1,128], index: 2, kind: input, shape index: {}]   ;;  %s304_s3 = inlined_call_operand.vmem [shape: f32[1,128], index: 3, kind: input, shape index: {}]   ;;  %s305_s4 = inlined_call_operand.vmem [shape: bf16[32,128], index: 4, kind: output, shape index: {}]  }
   0x1   :  { %v240_v0 = vld [vmem:[%s301_s1] sm:$0xff]   ;;  %v241_v1 = vld [vmem:[%s301_s1 + $0x8] sm:$0xff]   ;;  %v242_v2 = vld [vmem:[%s301_s1 + $0x10] sm:$0xff]  }
   0x2   :  { %228 = vmatprep.subr.bf16.mxu0 %v240_v0  ;;  %v244_v3 = vld [vmem:[%s302_s0] sm:$0xff]   ;;  %v243_v4 = vld [vmem:[%s301_s1 + $0x18] sm:$0xff]   ;;  %v245_v5 = vld [vmem:[%s302_s0 + $0x8] sm:$0xff]  }
   0x3   :  { %229 = vmatpush3.bf16.msra.mxu0 %v240_v0  ;;  %236 = vmatprep.mubr.msk.bf16.mxu0 %vm76_vm0, %v244_v3  ;;  %v201_v6 = vld [vmem:[%s303_s2] ss:$0 sm:$0xff] }
   0x4   :  { %230 = vmatprep.subr.bf16.mxu0 %v241_v1  ;;  %v202_v10 = vld [vmem:[%s304_s3] ss:$0 sm:$0xff] }
   0x7   :  { %231 = vmatpush3.bf16.msra.mxu0 %v241_v1 }
   0x8   :  { %232 = vmatprep.subr.bf16.mxu0 %v242_v2 }
   0xb   :  { %233 = vmatpush3.bf16.msra.mxu0 %v242_v2 }
   0xc   :  { %234 = vmatprep.subr.bf16.mxu0 %v243_v4 }
   0xf   :  { %235 = vmatpush3.bf16.msra.mxu0 %v243_v4 }
  0x12   :  { %237 = vmatmul.mubr.msk.bf16.vlgmr.msra.gmra.mrb[0].mxu0 %vm76_vm0, %v245_v5 }
  0xe5   :  { %v238_v7 = vpop.f32.mrb[0].mxu0 }
  0xe6   :  { %v156_v8 = vmul.f32 %v238_v7, %v201_v6  ;;  %v117_v9 = vpop.f32.mrb[1].mxu0 }
  0xe7   :  { %v154_v11 = vmul.f32 %v201_v6, %v117_v9  ;;  %v239_v12 = vpop.f32.mrb[2].mxu0 }
  0xe8   :  { %v157_v13 = vmul.f32 %v239_v12, %v201_v6  ;;  %v120_v14 = vpop.f32.mrb[3].mxu0  ;;  %v167_v16 = vadd.f32 %v202_v10, %v156_v8 }
  0xe9   :  { %v155_v15 = vmul.f32 %v201_v6, %v120_v14  ;;  %v165_v18 = vadd.f32 %v202_v10, %v154_v11 }
  0xea   :  { %v168_v17 = vadd.f32 %v202_v10, %v157_v13 }
  0xeb   :  { %v166_v19 = vadd.f32 %v202_v10, %v155_v15 }
  0xec   :  { %v219_v20 = vpack.c.bf16 %v168_v17, %v167_v16 }
  0xed   :  { %v214_v21 = vpack.c.bf16 %v166_v19, %v165_v18 }
  0xee   :  { %221 = vst [vmem:[%s305_s4 + $0x8] sm:$0xff] %v219_v20  }
  0xef   :  { %215 = vst [vmem:[%s305_s4] sm:$0xff] %v214_v21  }

// kernel: cnn_network_forward.32
= control target key start
LH: loop header
LB: loop body
LE: loop exit
PB: predicated region body
PF: predicated region fallthrough
CT: control target
= control target key end

     0   :  { %s1247_s18 = smov 0   ;;  %s1249_s19 = smov 0   ;;  %s1366_s0 = inlined_call_operand.vmem [shape: bf16[32,1152], index: 0, kind: input, shape index: {}]   ;;  %s1367_s1 = inlined_call_operand.vmem [shape: bf16[1152,128], index: 1, kind: input, shape index: {}]   ;;  %s1368_s2 = inlined_call_operand.vmem [shape: f32[1,128], index: 2, kind: input, shape index: {}]   ;;  %s1369_s3 = inlined_call_operand.vmem [shape: f32[1,128], index: 3, kind: input, shape index: {}]   ;;  %s1370_s4 = inlined_call_operand.vmem [shape: bf16[32,128], index: 4, kind: input, shape index: {}]   ;;  %s1371_s5 = inlined_call_operand.vmem [shape: bf16[32,128], index: 5, kind: output, shape index: {}]  }
   0x1   :  { %s1251_s20 = smov 0   ;;  %s1253_s21 = smov 0  }
   0x2   :  { %s1255_s22 = smov 0  }
   0x3 LB: > { %s27_s23 = sadd.s32 1, %s1210_s21  ;;  %p50_p1 = scmp.ne.s32.totalorder %s1202_s19, %s1198_s18  ;;  %s1214_s22 = sphi %s1255_s22, %s15_s22   ;;  %s1210_s21 = sphi %s1253_s21, %s1375_s21   ;;  %s1206_s20 = sphi %s1251_s20, %s1374_s20   ;;  %s1202_s19 = sphi %s1249_s19, %s1373_s19   ;;  %s1198_s18 = sphi %s1247_s18, %s1372_s18  }
   0x4   : > { %p28_p0 = scmp.ge.s32.totalorder %s27_s23, 3  ;;  %p51_p2 = scmp.eq.s32.totalorder %s1214_s22, 0 }
   0x5   : > { %s43_s25 = sadd.s32 1, %s1202_s19  ;;  %p964_p5 = scmp.ge.s32.totalorder %s1214_s22, 3 }
   0x6   : > { %s1377_s23 = smov (%p28_p0, %s27_s23), 0  ;;  %p52_p3 = por %p51_p2, %p50_p1 }
   0x7   : > { %s39_s24 = ssub.s32 %s1210_s21, %s1377_s23  ;;  %236 = sbr.rel (%p964_p5) target bundleno = 23 (0x17), region = 28 }
   0x8   : > { %p41_p4 = scmp.eq.s32.totalorder %s39_s24, 0 }
   0xa   : > { %s1282_s26 = scalar_select %p41_p4, %s1202_s19, %s43_s25  }
   0xe   : > { %239 = sbr.rel (!%p52_p3) target bundleno = 23 (0x17), region = 32  ;;  %s241_s27 = sand.u32 (%p52_p3), 1, %s1202_s19  }
   0xf   : > { %s1018_s28 = smul.u32 (%p52_p3), 12, %s1210_s21 }
  0x10   : > { %s1101_s29 = smul.u32 (%p52_p3), 48, %s241_s27 }
  0x11   : > { %s249_s7 = scalar_lea.vmem (%p52_p3), %s1366_s0, %s1018_s28 }
  0x12   : > { %v264_v0 = vld [vmem:[%s249_s7] sm:$0xff] (%p52_p3)  ;;  %v268_v2 = vld [vmem:[%s249_s7 + $0x48] sm:$0xff] (%p52_p3)  ;;  %s243_s8 = scalar_lea.vmem (%p52_p3), [#allocation3], %s1101_s29  ;;  %v970_v6 = vld [vmem:[%s249_s7 + $0x50] sm:$0xf] (%p52_p3) }
  0x13   : > { %v266_v1 = vld [vmem:[%s249_s7 + $0x24] sm:$0xff] (%p52_p3)  ;;  %265 = vst [vmem:[%s243_s8] sm:$0xff] (%p52_p3), %v264_v0  ;;  %269 = vst [vmem:[%s243_s8 + $0x18] sm:$0xff] (%p52_p3), %v268_v2  ;;  %v270_v3 = vld [vmem:[%s249_s7 + $0x6c] sm:$0xff] (%p52_p3) }
  0x14   : > { %267 = vst [vmem:[%s243_s8 + $0xc] sm:$0xff] (%p52_p3), %v266_v1  ;;  %v966_v4 = vld [vmem:[%s249_s7 + $0x8] sm:$0xf] (%p52_p3)  ;;  %v968_v5 = vld [vmem:[%s249_s7 + $0x2c] sm:$0xf] (%p52_p3)  ;;  %271 = vst [vmem:[%s243_s8 + $0x24] sm:$0xff] (%p52_p3), %v270_v3 }
  0x15   : > { %967 = vst [vmem:[%s243_s8 + $0x8] sm:$0xf] %v966_v4  ;;  %969 = vst [vmem:[%s243_s8 + $0x14] sm:$0xf] %v968_v5  ;;  %v972_v7 = vld [vmem:[%s249_s7 + $0x74] sm:$0xf] }
  0x16   : > { %971 = vst [vmem:[%s243_s8 + $0x20] sm:$0xf] %v970_v6  ;;  %973 = vst [vmem:[%s243_s8 + $0x2c] sm:$0xf] %v972_v7 }
  0x17 PF: > { %p974_p6 = scmp.ge.s32.totalorder %s1214_s22, 1  ;;  %p303_p7 = scmp.lt.s32.totalorder %s1214_s22, 4 }
  0x19   : > { %p304_p8 = pnand %p974_p6, %p303_p7 }
  0x1a   : > { %s310_s9 = sand.u32 (!%p304_p8), 1, %s1198_s18   ;;  %s364_s10 = smul.u32 (!%p304_p8), 48, %s1206_s20 }
  0x1b   : > { %307 = sbr.rel (%p304_p8) target bundleno = 322 (0x142), region = 62  ;;  %p976_p10 = scmp.ne.s32.totalorder (!%p304_p8), %s1206_s20, 0 }
  0x1c   : > { %s1102_s11 = smul.u32 (!%p304_p8), 48, %s310_s9  ;;  %p365_p9 = scmp.lt.s32.totalorder (!%p304_p8), %s364_s10, 143 }
  0x1e   : > { %s1299_s16 = scalar_lea.vmem (!%p304_p8), [#allocation3], %s1102_s11 }
  0x22   : > { %s1379_s10 = smov (!%p365_p9, %s364_s10), 143  ;;  %401 = sbr.rel (%p976_p10) target bundleno = 41 (0x29), region = 70 }
  0x23   : > { %s975_s12 = sshll.u32 %s1379_s10, 2  ;;  %v1216_v8 = vmov (!%p976_p10), 0.0  }
  0x24   : > { %s1297_s15 = scalar_lea.vmem %s1367_s1, %s975_s12  ;;  %402 = vst [vmem:[#allocation2] sm:$0xff] (!%p976_p10), %v1216_v8  ;;  %403 = vst [vmem:[#allocation2 + $0x8] sm:$0xff] (!%p976_p10), %v1216_v8 }
  0x25   : > { %404 = vst [vmem:[#allocation2 + $0x10] sm:$0xff] (!%p976_p10), %v1216_v8  ;;  %405 = vst [vmem:[#allocation2 + $0x18] sm:$0xff] (!%p976_p10), %v1216_v8 }
  0x29 PF: > { %v1144_v9 = vld [vmem:[%s1297_s15 + $0x40] sm:$0xff]   ;;  %v1147_v12 = vld [vmem:[%s1297_s15 + $0x48] sm:$0xff]   ;;  %v1150_v15 = vld [vmem:[%s1297_s15 + $0x50] sm:$0xff]   ;;  %p1007_p11 = scmp.ne.s32.totalorder %s1206_s20, 2 }
  0x2a   : > { %v1145_v10 = vld [vmem:[%s1297_s15] sm:$0xff]   ;;  %1043 = vmatprep.subr.bf16.mxu0 %v1144_v9  ;;  %v1148_v13 = vld [vmem:[%s1297_s15 + $0x8] sm:$0xff]   ;;  %v1151_v16 = vld [vmem:[%s1297_s15 + $0x10] sm:$0xff]  }
  0x2b   : > { %v1146_v11 = vld [vmem:[%s1297_s15 + $0x80] sm:$0xff]   ;;  %1044 = vmatpush3.bf16.msra.mxu0 %v1145_v10  ;;  %v1149_v14 = vld [vmem:[%s1297_s15 + $0x88] sm:$0xff]   ;;  %v1152_v17 = vld [vmem:[%s1297_s15 + $0x90] sm:$0xff]  }
  0x2c   : > { %1081 = vmatprep.subr.bf16.mxu1 %v1146_v11  ;;  %1045 = vmatprep.subr.bf16.mxu0 %v1147_v12  ;;  %v1153_v18 = vld [vmem:[%s1297_s15 + $0x58] sm:$0xff]   ;;  %v1156_v21 = vld [vmem:[%s1297_s15 + $0x60] sm:$0xff]   ;;  %v1159_v24 = vld [vmem:[%s1297_s15 + $0x68] sm:$0xff]  }
  0x2d   : > { %1082 = vmatpush3.bf16.msra.mxu1 %v1146_v11  ;;  %v1154_v19 = vld [vmem:[%s1297_s15 + $0x18] sm:$0xff]   ;;  %v1158_v22 = vld [vmem:[%s1297_s15 + $0xa0] sm:$0xff]   ;;  %v1161_v25 = vld [vmem:[%s1297_s15 + $0xa8] sm:$0xff]  }
  0x2e   : > { %1083 = vmatprep.subr.bf16.mxu1 %v1149_v14  ;;  %v1155_v20 = vld [vmem:[%s1297_s15 + $0x98] sm:$0xff]   ;;  %v1157_v23 = vld [vmem:[%s1297_s15 + $0x20] sm:$0xff]   ;;  %v1160_v26 = vld [vmem:[%s1297_s15 + $0x28] sm:$0xff]  }
  0x2f   : > { %1046 = vmatpush3.bf16.msra.mxu0 %v1148_v13  ;;  %v1162_v27 = vld [vmem:[%s1297_s15 + $0x70] sm:$0xff]   ;;  %v1165_v30 = vld [vmem:[%s1297_s15 + $0x78] sm:$0xff]   ;;  %v406_v45 = vld [vmem:[#allocation2] sm:$0xff] }
  0x30   : > { %1047 = vmatprep.subr.bf16.mxu0 %v1150_v15  ;;  %v1163_v28 = vld [vmem:[%s1297_s15 + $0x30] sm:$0xff]   ;;  %v1167_v31 = vld [vmem:[%s1297_s15 + $0xb8] sm:$0xff]   ;;  %v407_v50 = vld [vmem:[#allocation2 + $0x8] sm:$0xff] }
  0x31   : > { %1084 = vmatpush3.bf16.msra.mxu1 %v1149_v14  ;;  %v1164_v29 = vld [vmem:[%s1297_s15 + $0xb0] sm:$0xff]   ;;  %v1166_v34 = vld [vmem:[%s1297_s15 + $0x38] sm:$0xff]   ;;  %v1008_v5 = vld [vmem:[%s1368_s2] ss:$0 sm:$0xff] (!%p1007_p11) }
  0x32   : > { %1085 = vmatprep.subr.bf16.mxu1 %v1152_v17  ;;  %v1170_v32 = vld [vmem:[%s1299_s16 + $0x4] ss:$12 sps:$4 sm:$0xff]   ;;  %v1171_v33 = vld [vmem:[%s1299_s16 + $0x8] ss:$12 sps:$4 sm:$0xff]   ;;  %v1168_v35 = vld [vmem:[%s1299_s16] ss:$12 sps:$4 sm:$0xff]  }
  0x33   : > { %1048 = vmatpush3.bf16.msra.mxu0 %v1151_v16  ;;  %674 = vmatprep.mubr.bf16.mxu0 %v1170_v32  ;;  %v1173_v36 = vld [vmem:[%s1299_s16 + $0x1c] ss:$12 sps:$4 sm:$0xff]   ;;  %v1172_v37 = vld [vmem:[%s1299_s16 + $0x20] ss:$12 sps:$4 sm:$0xff]   ;;  %v1175_v38 = vld [vmem:[%s1299_s16 + $0x18] ss:$12 sps:$4 sm:$0xff]  }
  0x34   : > { %1049 = vmatprep.subr.bf16.mxu0 %v1153_v18  ;;  %1097 = vmatprep.mubr.bf16.mxu1 %v1171_v33  ;;  %v408_v59 = vld [vmem:[#allocation2 + $0x10] sm:$0xff]  ;;  %v409_v63 = vld [vmem:[#allocation2 + $0x18] sm:$0xff]  ;;  %v1009_v8 = vld [vmem:[%s1369_s3] ss:$0 sm:$0xff] (!%p1007_p11) }
  0x35   : > { %1086 = vmatpush3.bf16.msra.mxu1 %v1152_v17  ;;  %v1024_v9 = vld [vmem:[%s1370_s4] sm:$0xff] (!%p1007_p11)   ;;  %v1041_v15 = vld [vmem:[%s1370_s4 + $0x8] sm:$0xff] (!%p1007_p11)  }
  0x36   : > { %1087 = vmatprep.subr.bf16.mxu1 %v1155_v20  ;;  %v1025_v11 = vunpack.c.l.bf16 (!%p1007_p11), %v1024_v9  ;;  %v1026_v12 = vunpack.c.h.bf16 (!%p1007_p11), %v1024_v9 }
  0x37   : > { %1050 = vmatpush3.bf16.msra.mxu0 %v1154_v19  ;;  %v1029_v19 = vunpack.c.l.bf16 (!%p1007_p11), %v1041_v15 }
  0x38   : > { %1051 = vmatprep.subr.bf16.mxu0 %v1156_v21  ;;  %v1030_v21 = vunpack.c.h.bf16 (!%p1007_p11), %v1041_v15 }
  0x39   : > { %1088 = vmatpush3.bf16.msra.mxu1 %v1155_v20 }
  0x3a   : > { %1089 = vmatprep.subr.bf16.mxu1 %v1158_v22 }
  0x3b   : > { %1052 = vmatpush3.bf16.msra.mxu0 %v1157_v23 }
  0x3c   : > { %1053 = vmatprep.subr.bf16.mxu0 %v1159_v24 }
  0x3d   : > { %1090 = vmatpush3.bf16.msra.mxu1 %v1158_v22 }
  0x3e   : > { %1091 = vmatprep.subr.bf16.mxu1 %v1161_v25 }
  0x3f   : > { %1054 = vmatpush3.bf16.msra.mxu0 %v1160_v26 }
  0x40   : > { %1055 = vmatprep.subr.bf16.mxu0 %v1162_v27 }
  0x41   : > { %1092 = vmatpush3.bf16.msra.mxu1 %v1161_v25 }
  0x42   : > { %1093 = vmatprep.subr.bf16.mxu1 %v1164_v29 }
  0x43   : > { %1056 = vmatpush3.bf16.msra.mxu0 %v1163_v28 }
  0x44   : > { %1057 = vmatprep.subr.bf16.mxu0 %v1165_v30 }
  0x45   : > { %1094 = vmatpush3.bf16.msra.mxu1 %v1164_v29 }
  0x46   : > { %1095 = vmatprep.subr.bf16.mxu1 %v1167_v31 }
  0x47   : > { %1058 = vmatpush3.bf16.msra.mxu0 %v1166_v34 }
  0x49   : > { %1096 = vmatpush3.bf16.msra.mxu1 %v1167_v31 }
  0x4a   : > { %675 = vmatmul.mubr.bf16.vlgmr.msra.gmra.mrb[0].mxu0 %v1168_v35 }
  0x4b   : > { %682 = vmatprep.mubr.bf16.mxu0 %v1173_v36 }
  0x4c   : > { %1098 = vmatmul.mubr.bf16.vlgmr.msra.gmra.mrb[0].mxu1 %v1172_v37 }
  0x52   : > { %683 = vmatmul.mubr.bf16.gmra.mrb[4].mxu0 %v1175_v38 }
 0x11d   : > { %v1059_v39 = vpop.f32.mrb[0].mxu0 }
 0x11e   : > { %v1060_v40 = vpop.f32.mrb[1].mxu0 }
 0x11f   : > { %v1061_v41 = vadd.f32 %v1060_v40, %v1059_v39  ;;  %v1062_v42 = vpop.f32.mrb[2].mxu0  ;;  %v1099_v43 = vpop.f32.mrb[0].mxu1 }
 0x120   : > { %v1063_v44 = vpop.f32.mrb[3].mxu0  ;;  %v725_v46 = vpop.f32.mrb[1].mxu1 }
 0x121   : > { %v1064_v47 = vadd.f32 %v1063_v44, %v1062_v42  ;;  %v726_v48 = vadd.f32 %v1061_v41, %v725_v46  ;;  %v1100_v49 = vpop.f32.mrb[2].mxu1 }
 0x122   : > { %v728_v51 = vpop.f32.mrb[3].mxu1 }
 0x123   : > { %v740_v52 = vadd.f32 %v726_v48, %v406_v45  ;;  %v729_v53 = vadd.f32 %v1064_v47, %v728_v51 }
 0x125   : > { %744 = vst [vmem:[#allocation2] sm:$0xff] %v740_v52  ;;  %v741_v54 = vadd.f32 %v729_v53, %v407_v50  ;;  %v1065_v55 = vpop.f32.mrb[4].mxu0 }
 0x126   : > { %v1066_v56 = vpop.f32.mrb[5].mxu0 }
 0x127   : > { %745 = vst [vmem:[#allocation2 + $0x8] sm:$0xff] %v741_v54  ;;  %v1067_v57 = vadd.f32 %v1066_v56, %v1065_v55  ;;  %v1068_v58 = vpop.f32.mrb[6].mxu0 }
 0x128   : > { %v1069_v60 = vpop.f32.mrb[7].mxu0 }
 0x129   : > { %v734_v61 = vadd.f32 %v1099_v43, %v1067_v57  ;;  %v1070_v62 = vadd.f32 %v1069_v60, %v1068_v58  ;;  %751 = sbr.rel (%p1007_p11) target bundleno = 322 (0x142), region = 74 }
 0x12b   : > { %v742_v0 = vadd.f32 %v734_v61, %v408_v59  ;;  %v737_v1 = vadd.f32 %v1100_v49, %v1070_v62 }
 0x12c   : > { %v752_v3 = vld [vmem:[#allocation2] sm:$0xff] (!%p1007_p11) }
 0x12d   : > { %746 = vst [vmem:[#allocation2 + $0x10] sm:$0xff] %v742_v0  ;;  %v743_v2 = vadd.f32 %v737_v1, %v409_v63  ;;  %v763_v6 = vmul.f32 (!%p1007_p11), %v1008_v5, %v752_v3 }
 0x12e   : > { %v753_v4 = vld [vmem:[#allocation2 + $0x8] sm:$0xff] (!%p1007_p11) }
 0x12f   : > { %747 = vst [vmem:[#allocation2 + $0x18] sm:$0xff] %v743_v2  ;;  %v764_v7 = vmul.f32 (!%p1007_p11), %v1008_v5, %v753_v4  ;;  %v774_v16 = vadd.f32 (!%p1007_p11), %v1009_v8, %v763_v6 }
 0x131   : > { %v775_v17 = vadd.f32 %v1009_v8, %v764_v7  ;;  %v786_v22 = vadd.f32 %v1025_v11, %v774_v16 }
 0x133   : > { %v787_v23 = vadd.f32 %v1026_v12, %v775_v17  ;;  %v790_v26 = vmax.f32 %v786_v22, 0.0 }
 0x134   : > { %v754_v10 = vld [vmem:[#allocation2 + $0x10] sm:$0xff] }
 0x135   : > { %v765_v14 = vmul.f32 %v1008_v5, %v754_v10  ;;  %v791_v27 = vmax.f32 %v787_v23, 0.0 }
 0x136   : > { %v755_v13 = vld [vmem:[#allocation2 + $0x18] sm:$0xff] }
 0x137   : > { %v766_v18 = vmul.f32 %v1008_v5, %v755_v13  ;;  %v776_v20 = vadd.f32 %v1009_v8, %v765_v14  ;;  %v1034_v30 = vpack.c.bf16 %v791_v27, %v790_v26 }
 0x139   : > { %v777_v24 = vadd.f32 %v1009_v8, %v766_v18  ;;  %v788_v25 = vadd.f32 %v1029_v19, %v776_v20  ;;  %1035 = vst [vmem:[%s1371_s5] sm:$0xff] %v1034_v30  }
 0x13b   : > { %v789_v28 = vadd.f32 %v1030_v21, %v777_v24  ;;  %v792_v29 = vmax.f32 %v788_v25, 0.0 }
 0x13d   : > { %v793_v31 = vmax.f32 %v789_v28, 0.0 }
 0x13f   : > { %v1039_v32 = vpack.c.bf16 %v793_v31, %v792_v29 }
 0x141   : > { %1042 = vst [vmem:[%s1371_s5 + $0x8] sm:$0xff] %v1039_v32  }
 0x142 PF: > { %s15_s22 = sadd.s32 1, %s1214_s22   ;;  %s1372_s18 = smov %s1202_s19 }
 0x143   : > { %p12_p12 = scmp.ge.s32.totalorder %s15_s22, 5   ;;  %s1373_s19 = smov %s1282_s26 }
 0x144   : > { %s1374_s20 = smov %s1210_s21  ;;  %s1375_s21 = smov %s1377_s23 }
 0x145   :  { %14 = sbr.rel (!%p12_p12) target bundleno = 3 (0x3), region = 127 }

// kernel: cnn_network_forward.33
= control target key start
LH: loop header
LB: loop body
LE: loop exit
PB: predicated region body
PF: predicated region fallthrough
CT: control target
= control target key end

     0   :  { %s1142_s15 = smov 0   ;;  %s1144_s16 = smov 0   ;;  %s1255_s0 = inlined_call_operand.vmem [shape: bf16[32,1152], index: 0, kind: input, shape index: {}]   ;;  %s1256_s1 = inlined_call_operand.vmem [shape: bf16[1152,128], index: 1, kind: input, shape index: {}]   ;;  %s1257_s2 = inlined_call_operand.vmem [shape: f32[1,128], index: 2, kind: input, shape index: {}]   ;;  %s1258_s3 = inlined_call_operand.vmem [shape: f32[1,128], index: 3, kind: input, shape index: {}]   ;;  %s1259_s4 = inlined_call_operand.vmem [shape: bf16[32,128], index: 4, kind: output, shape index: {}]  }
   0x1   :  { %s1146_s17 = smov 0   ;;  %s1148_s18 = smov 0  }
   0x2   :  { %s1150_s19 = smov 0  }
   0x3 LB: > { %s26_s20 = sadd.s32 1, %s1110_s18  ;;  %p49_p1 = scmp.ne.s32.totalorder %s1102_s16, %s1098_s15  ;;  %s1114_s19 = sphi %s1150_s19, %s14_s19   ;;  %s1110_s18 = sphi %s1148_s18, %s1263_s18   ;;  %s1106_s17 = sphi %s1146_s17, %s1262_s17   ;;  %s1102_s16 = sphi %s1144_s16, %s1261_s16   ;;  %s1098_s15 = sphi %s1142_s15, %s1260_s15  }
   0x4   : > { %p27_p0 = scmp.ge.s32.totalorder %s26_s20, 3  ;;  %p50_p2 = scmp.eq.s32.totalorder %s1114_s19, 0 }
   0x5   : > { %s42_s22 = sadd.s32 1, %s1102_s16  ;;  %p873_p5 = scmp.ge.s32.totalorder %s1114_s19, 3 }
   0x6   : > { %s1265_s20 = smov (%p27_p0, %s26_s20), 0  ;;  %p51_p3 = por %p50_p2, %p49_p1 }
   0x7   : > { %s38_s21 = ssub.s32 %s1110_s18, %s1265_s20  ;;  %195 = sbr.rel (%p873_p5) target bundleno = 23 (0x17), region = 24 }
   0x8   : > { %p40_p4 = scmp.eq.s32.totalorder %s38_s21, 0 }
   0xa   : > { %s1177_s23 = scalar_select %p40_p4, %s1102_s16, %s42_s22  }
   0xe   : > { %198 = sbr.rel (!%p51_p3) target bundleno = 23 (0x17), region = 28  ;;  %s200_s24 = sand.u32 (%p51_p3), 1, %s1102_s16  }
   0xf   : > { %s927_s25 = smul.u32 (%p51_p3), 12, %s1110_s18 }
  0x10   : > { %s1001_s26 = smul.u32 (%p51_p3), 48, %s200_s24 }
  0x11   : > { %s208_s29 = scalar_lea.vmem (%p51_p3), %s1255_s0, %s927_s25 }
  0x12   : > { %v223_v0 = vld [vmem:[%s208_s29] sm:$0xff] (%p51_p3)  ;;  %v227_v2 = vld [vmem:[%s208_s29 + $0x48] sm:$0xff] (%p51_p3)  ;;  %s202_s30 = scalar_lea.vmem (%p51_p3), [#allocation3], %s1001_s26  ;;  %v879_v6 = vld [vmem:[%s208_s29 + $0x50] sm:$0xf] (%p51_p3) }
  0x13   : > { %v225_v1 = vld [vmem:[%s208_s29 + $0x24] sm:$0xff] (%p51_p3)  ;;  %224 = vst [vmem:[%s202_s30] sm:$0xff] (%p51_p3), %v223_v0  ;;  %228 = vst [vmem:[%s202_s30 + $0x18] sm:$0xff] (%p51_p3), %v227_v2  ;;  %v229_v3 = vld [vmem:[%s208_s29 + $0x6c] sm:$0xff] (%p51_p3) }
  0x14   : > { %226 = vst [vmem:[%s202_s30 + $0xc] sm:$0xff] (%p51_p3), %v225_v1  ;;  %v875_v4 = vld [vmem:[%s208_s29 + $0x8] sm:$0xf] (%p51_p3)  ;;  %v877_v5 = vld [vmem:[%s208_s29 + $0x2c] sm:$0xf] (%p51_p3)  ;;  %230 = vst [vmem:[%s202_s30 + $0x24] sm:$0xff] (%p51_p3), %v229_v3 }
  0x15   : > { %876 = vst [vmem:[%s202_s30 + $0x8] sm:$0xf] %v875_v4  ;;  %878 = vst [vmem:[%s202_s30 + $0x14] sm:$0xf] %v877_v5  ;;  %v881_v7 = vld [vmem:[%s208_s29 + $0x74] sm:$0xf] }
  0x16   : > { %880 = vst [vmem:[%s202_s30 + $0x20] sm:$0xf] %v879_v6  ;;  %882 = vst [vmem:[%s202_s30 + $0x2c] sm:$0xf] %v881_v7 }
  0x17 PF: > { %p883_p6 = scmp.ge.s32.totalorder %s1114_s19, 1  ;;  %p262_p7 = scmp.lt.s32.totalorder %s1114_s19, 4 }
  0x19   : > { %p263_p8 = pnand %p883_p6, %p262_p7 }
  0x1a   : > { %s269_s5 = sand.u32 (!%p263_p8), 1, %s1098_s15   ;;  %s313_s6 = smul.u32 (!%p263_p8), 48, %s1106_s17 }
  0x1b   : > { %266 = sbr.rel (%p263_p8) target bundleno = 320 (0x140), region = 58  ;;  %p885_p10 = scmp.ne.s32.totalorder (!%p263_p8), %s1106_s17, 0 }
  0x1c   : > { %s1002_s7 = smul.u32 (!%p263_p8), 48, %s269_s5  ;;  %p314_p9 = scmp.lt.s32.totalorder (!%p263_p8), %s313_s6, 143 }
  0x1e   : > { %s1194_s12 = scalar_lea.vmem (!%p263_p8), [#allocation3], %s1002_s7 }
  0x22   : > { %s1267_s6 = smov (!%p314_p9, %s313_s6), 143  ;;  %341 = sbr.rel (%p885_p10) target bundleno = 41 (0x29), region = 66 }
  0x23   : > { %s884_s8 = sshll.u32 %s1267_s6, 2  ;;  %v1116_v8 = vmov (!%p885_p10), 0.0  }
  0x24   : > { %s1192_s11 = scalar_lea.vmem %s1256_s1, %s884_s8  ;;  %342 = vst [vmem:[#allocation2] sm:$0xff] (!%p885_p10), %v1116_v8  ;;  %343 = vst [vmem:[#allocation2 + $0x8] sm:$0xff] (!%p885_p10), %v1116_v8 }
  0x25   : > { %344 = vst [vmem:[#allocation2 + $0x10] sm:$0xff] (!%p885_p10), %v1116_v8  ;;  %345 = vst [vmem:[#allocation2 + $0x18] sm:$0xff] (!%p885_p10), %v1116_v8 }
  0x29 PF: > { %v1044_v9 = vld [vmem:[%s1192_s11 + $0x40] sm:$0xff]   ;;  %v1047_v12 = vld [vmem:[%s1192_s11 + $0x48] sm:$0xff]   ;;  %v1050_v15 = vld [vmem:[%s1192_s11 + $0x50] sm:$0xff]   ;;  %p916_p11 = scmp.ne.s32.totalorder %s1106_s17, 2 }
  0x2a   : > { %v1045_v10 = vld [vmem:[%s1192_s11] sm:$0xff]   ;;  %943 = vmatprep.subr.bf16.mxu0 %v1044_v9  ;;  %v1048_v13 = vld [vmem:[%s1192_s11 + $0x8] sm:$0xff]   ;;  %v1051_v16 = vld [vmem:[%s1192_s11 + $0x10] sm:$0xff]  }
  0x2b   : > { %v1046_v11 = vld [vmem:[%s1192_s11 + $0x80] sm:$0xff]   ;;  %944 = vmatpush3.bf16.msra.mxu0 %v1045_v10  ;;  %v1049_v14 = vld [vmem:[%s1192_s11 + $0x88] sm:$0xff]   ;;  %v1052_v17 = vld [vmem:[%s1192_s11 + $0x90] sm:$0xff]  }
  0x2c   : > { %981 = vmatprep.subr.bf16.mxu1 %v1046_v11  ;;  %945 = vmatprep.subr.bf16.mxu0 %v1047_v12  ;;  %v1053_v18 = vld [vmem:[%s1192_s11 + $0x58] sm:$0xff]   ;;  %v1056_v21 = vld [vmem:[%s1192_s11 + $0x60] sm:$0xff]   ;;  %v1059_v24 = vld [vmem:[%s1192_s11 + $0x68] sm:$0xff]  }
  0x2d   : > { %982 = vmatpush3.bf16.msra.mxu1 %v1046_v11  ;;  %v1054_v19 = vld [vmem:[%s1192_s11 + $0x18] sm:$0xff]   ;;  %v1058_v22 = vld [vmem:[%s1192_s11 + $0xa0] sm:$0xff]   ;;  %v1061_v25 = vld [vmem:[%s1192_s11 + $0xa8] sm:$0xff]  }
  0x2e   : > { %983 = vmatprep.subr.bf16.mxu1 %v1049_v14  ;;  %v1055_v20 = vld [vmem:[%s1192_s11 + $0x98] sm:$0xff]   ;;  %v1057_v23 = vld [vmem:[%s1192_s11 + $0x20] sm:$0xff]   ;;  %v1060_v26 = vld [vmem:[%s1192_s11 + $0x28] sm:$0xff]  }
  0x2f   : > { %946 = vmatpush3.bf16.msra.mxu0 %v1048_v13  ;;  %v1062_v27 = vld [vmem:[%s1192_s11 + $0x70] sm:$0xff]   ;;  %v1065_v30 = vld [vmem:[%s1192_s11 + $0x78] sm:$0xff]   ;;  %v346_v45 = vld [vmem:[#allocation2] sm:$0xff] }
  0x30   : > { %947 = vmatprep.subr.bf16.mxu0 %v1050_v15  ;;  %v1063_v28 = vld [vmem:[%s1192_s11 + $0x30] sm:$0xff]   ;;  %v1067_v31 = vld [vmem:[%s1192_s11 + $0xb8] sm:$0xff]   ;;  %v347_v50 = vld [vmem:[#allocation2 + $0x8] sm:$0xff] }
  0x31   : > { %984 = vmatpush3.bf16.msra.mxu1 %v1049_v14  ;;  %v1064_v29 = vld [vmem:[%s1192_s11 + $0xb0] sm:$0xff]   ;;  %v1066_v34 = vld [vmem:[%s1192_s11 + $0x38] sm:$0xff]   ;;  %v917_v5 = vld [vmem:[%s1257_s2] ss:$0 sm:$0xff] (!%p916_p11) }
  0x32   : > { %985 = vmatprep.subr.bf16.mxu1 %v1052_v17  ;;  %v1070_v32 = vld [vmem:[%s1194_s12 + $0x4] ss:$12 sps:$4 sm:$0xff]   ;;  %v1071_v33 = vld [vmem:[%s1194_s12 + $0x8] ss:$12 sps:$4 sm:$0xff]   ;;  %v1068_v35 = vld [vmem:[%s1194_s12] ss:$12 sps:$4 sm:$0xff]  }
  0x33   : > { %948 = vmatpush3.bf16.msra.mxu0 %v1051_v16  ;;  %614 = vmatprep.mubr.bf16.mxu0 %v1070_v32  ;;  %v1073_v36 = vld [vmem:[%s1194_s12 + $0x1c] ss:$12 sps:$4 sm:$0xff]   ;;  %v1072_v37 = vld [vmem:[%s1194_s12 + $0x20] ss:$12 sps:$4 sm:$0xff]   ;;  %v1075_v38 = vld [vmem:[%s1194_s12 + $0x18] ss:$12 sps:$4 sm:$0xff]  }
  0x34   : > { %949 = vmatprep.subr.bf16.mxu0 %v1053_v18  ;;  %997 = vmatprep.mubr.bf16.mxu1 %v1071_v33  ;;  %v348_v59 = vld [vmem:[#allocation2 + $0x10] sm:$0xff]  ;;  %v349_v63 = vld [vmem:[#allocation2 + $0x18] sm:$0xff]  ;;  %v918_v8 = vld [vmem:[%s1258_s3] ss:$0 sm:$0xff] (!%p916_p11) }
  0x35   : > { %986 = vmatpush3.bf16.msra.mxu1 %v1052_v17 }
  0x36   : > { %987 = vmatprep.subr.bf16.mxu1 %v1055_v20 }
  0x37   : > { %950 = vmatpush3.bf16.msra.mxu0 %v1054_v19 }
  0x38   : > { %951 = vmatprep.subr.bf16.mxu0 %v1056_v21 }
  0x39   : > { %988 = vmatpush3.bf16.msra.mxu1 %v1055_v20 }
  0x3a   : > { %989 = vmatprep.subr.bf16.mxu1 %v1058_v22 }
  0x3b   : > { %952 = vmatpush3.bf16.msra.mxu0 %v1057_v23 }
  0x3c   : > { %953 = vmatprep.subr.bf16.mxu0 %v1059_v24 }
  0x3d   : > { %990 = vmatpush3.bf16.msra.mxu1 %v1058_v22 }
  0x3e   : > { %991 = vmatprep.subr.bf16.mxu1 %v1061_v25 }
  0x3f   : > { %954 = vmatpush3.bf16.msra.mxu0 %v1060_v26 }
  0x40   : > { %955 = vmatprep.subr.bf16.mxu0 %v1062_v27 }
  0x41   : > { %992 = vmatpush3.bf16.msra.mxu1 %v1061_v25 }
  0x42   : > { %993 = vmatprep.subr.bf16.mxu1 %v1064_v29 }
  0x43   : > { %956 = vmatpush3.bf16.msra.mxu0 %v1063_v28 }
  0x44   : > { %957 = vmatprep.subr.bf16.mxu0 %v1065_v30 }
  0x45   : > { %994 = vmatpush3.bf16.msra.mxu1 %v1064_v29 }
  0x46   : > { %995 = vmatprep.subr.bf16.mxu1 %v1067_v31 }
  0x47   : > { %958 = vmatpush3.bf16.msra.mxu0 %v1066_v34 }
  0x49   : > { %996 = vmatpush3.bf16.msra.mxu1 %v1067_v31 }
  0x4a   : > { %615 = vmatmul.mubr.bf16.vlgmr.msra.gmra.mrb[0].mxu0 %v1068_v35 }
  0x4b   : > { %622 = vmatprep.mubr.bf16.mxu0 %v1073_v36 }
  0x4c   : > { %998 = vmatmul.mubr.bf16.vlgmr.msra.gmra.mrb[0].mxu1 %v1072_v37 }
  0x52   : > { %623 = vmatmul.mubr.bf16.gmra.mrb[4].mxu0 %v1075_v38 }
 0x11d   : > { %v959_v39 = vpop.f32.mrb[0].mxu0 }
 0x11e   : > { %v960_v40 = vpop.f32.mrb[1].mxu0 }
 0x11f   : > { %v961_v41 = vadd.f32 %v960_v40, %v959_v39  ;;  %v962_v42 = vpop.f32.mrb[2].mxu0  ;;  %v999_v43 = vpop.f32.mrb[0].mxu1 }
 0x120   : > { %v963_v44 = vpop.f32.mrb[3].mxu0  ;;  %v665_v46 = vpop.f32.mrb[1].mxu1 }
 0x121   : > { %v964_v47 = vadd.f32 %v963_v44, %v962_v42  ;;  %v666_v48 = vadd.f32 %v961_v41, %v665_v46  ;;  %v1000_v49 = vpop.f32.mrb[2].mxu1 }
 0x122   : > { %v668_v51 = vpop.f32.mrb[3].mxu1 }
 0x123   : > { %v680_v52 = vadd.f32 %v666_v48, %v346_v45  ;;  %v669_v53 = vadd.f32 %v964_v47, %v668_v51 }
 0x125   : > { %684 = vst [vmem:[#allocation2] sm:$0xff] %v680_v52  ;;  %v681_v54 = vadd.f32 %v669_v53, %v347_v50  ;;  %v965_v55 = vpop.f32.mrb[4].mxu0 }
 0x126   : > { %v966_v56 = vpop.f32.mrb[5].mxu0 }
 0x127   : > { %685 = vst [vmem:[#allocation2 + $0x8] sm:$0xff] %v681_v54  ;;  %v967_v57 = vadd.f32 %v966_v56, %v965_v55  ;;  %v968_v58 = vpop.f32.mrb[6].mxu0 }
 0x128   : > { %v969_v60 = vpop.f32.mrb[7].mxu0 }
 0x129   : > { %v674_v61 = vadd.f32 %v999_v43, %v967_v57  ;;  %v970_v62 = vadd.f32 %v969_v60, %v968_v58  ;;  %691 = sbr.rel (%p916_p11) target bundleno = 320 (0x140), region = 70 }
 0x12b   : > { %v682_v0 = vadd.f32 %v674_v61, %v348_v59  ;;  %v677_v1 = vadd.f32 %v1000_v49, %v970_v62 }
 0x12c   : > { %v692_v3 = vld [vmem:[#allocation2] sm:$0xff] (!%p916_p11) }
 0x12d   : > { %686 = vst [vmem:[#allocation2 + $0x10] sm:$0xff] %v682_v0  ;;  %v683_v2 = vadd.f32 %v677_v1, %v349_v63  ;;  %v703_v6 = vmul.f32 (!%p916_p11), %v917_v5, %v692_v3 }
 0x12e   : > { %v693_v4 = vld [vmem:[#allocation2 + $0x8] sm:$0xff] (!%p916_p11) }
 0x12f   : > { %687 = vst [vmem:[#allocation2 + $0x18] sm:$0xff] %v683_v2  ;;  %v704_v7 = vmul.f32 (!%p916_p11), %v917_v5, %v693_v4  ;;  %v714_v13 = vadd.f32 (!%p916_p11), %v918_v8, %v703_v6 }
 0x131   : > { %v715_v14 = vadd.f32 %v918_v8, %v704_v7  ;;  %v718_v17 = vmax.f32 %v714_v13, 0.0 }
 0x133   : > { %v719_v18 = vmax.f32 %v715_v14, 0.0 }
 0x134   : > { %v694_v9 = vld [vmem:[#allocation2 + $0x10] sm:$0xff] }
 0x135   : > { %v705_v11 = vmul.f32 %v917_v5, %v694_v9  ;;  %v935_v21 = vpack.c.bf16 %v719_v18, %v718_v17 }
 0x136   : > { %v695_v10 = vld [vmem:[#allocation2 + $0x18] sm:$0xff] }
 0x137   : > { %v706_v12 = vmul.f32 %v917_v5, %v695_v10  ;;  %v716_v15 = vadd.f32 %v918_v8, %v705_v11  ;;  %936 = vst [vmem:[%s1259_s4] sm:$0xff] %v935_v21  }
 0x139   : > { %v717_v16 = vadd.f32 %v918_v8, %v706_v12  ;;  %v720_v19 = vmax.f32 %v716_v15, 0.0 }
 0x13b   : > { %v721_v20 = vmax.f32 %v717_v16, 0.0 }
 0x13d   : > { %v940_v22 = vpack.c.bf16 %v721_v20, %v720_v19 }
 0x13f   : > { %942 = vst [vmem:[%s1259_s4 + $0x8] sm:$0xff] %v940_v22  }
 0x140 PF: > { %s14_s19 = sadd.s32 1, %s1114_s19   ;;  %s1260_s15 = smov %s1102_s16 }
 0x141   : > { %p11_p12 = scmp.ge.s32.totalorder %s14_s19, 5   ;;  %s1261_s16 = smov %s1177_s23 }
 0x142   : > { %s1262_s17 = smov %s1110_s18  ;;  %s1263_s18 = smov %s1265_s20 }
 0x143   :  { %13 = sbr.rel (!%p11_p12) target bundleno = 3 (0x3), region = 120 }

// kernel: cnn_network_forward.35
= control target key start
LH: loop header
LB: loop body
LE: loop exit
PB: predicated region body
PF: predicated region fallthrough
CT: control target
= control target key end

     0   :  { %s1114_s15 = smov 0   ;;  %s1116_s16 = smov 0   ;;  %s1216_s0 = inlined_call_operand.vmem [shape: bf16[8,1152], index: 0, kind: input, shape index: {}]   ;;  %s1217_s1 = inlined_call_operand.vmem [shape: bf16[1152,256], index: 1, kind: input, shape index: {}]   ;;  %s1218_s2 = inlined_call_operand.vmem [shape: f32[1,256], index: 2, kind: input, shape index: {}]   ;;  %s1219_s3 = inlined_call_operand.vmem [shape: f32[1,256], index: 3, kind: input, shape index: {}]   ;;  %s1220_s4 = inlined_call_operand.vmem [shape: bf16[8,256], index: 4, kind: output, shape index: {}]  }
   0x1   :  { %s1118_s17 = smov 0  }
   0x2 LB: > { %s26_s18 = sadd.s32 1, %s1081_s16  ;;  %p898_p0 = scmp.ge.s32.totalorder %s1085_s17, 1  ;;  %s1085_s17 = sphi %s1118_s17, %s14_s17   ;;  %s1081_s16 = sphi %s1116_s16, %s1222_s16   ;;  %s1077_s15 = sphi %s1114_s15, %s1221_s15  }
   0x3   : > { %p27_p1 = scmp.ge.s32.totalorder %s26_s18, 3  ;;  %p229_p2 = scmp.lt.s32.totalorder %s1085_s17, 4 }
   0x5   : > { %s1224_s18 = smov (%p27_p1, %s26_s18), 0  ;;  %p230_p3 = pnand %p898_p0, %p229_p2 }
   0x6   : > { %s281_s19 = smul.u32 (!%p230_p3), 3, %s1077_s15  ;;  %p902_p6 = scmp.ne.s32.totalorder (!%p230_p3), %s1077_s15, 0 }
   0x7   : > { %233 = sbr.rel (%p230_p3) target bundleno = 323 (0x143), region = 36 }
   0x8   : > { %s291_s20 = smul.u32 (!%p230_p3), 48, %s1077_s15  ;;  %p284_p4 = scmp.lt.s32.totalorder (!%p230_p3), %s281_s19, 8 }
   0xa   : > { %p293_p5 = scmp.lt.s32.totalorder (!%p230_p3), %s291_s20, 143 }
   0xe   : > { %s1226_s19 = smov (!%p284_p4, %s281_s19), 8  ;;  %s1228_s20 = smov (!%p293_p5, %s291_s20), 143 }
   0xf   : > { %s899_s21 = sshll.u32 %s1226_s19, 2  ;;  %s960_s25 = sshll.u32 %s1228_s20, 3  ;;  %v1087_v0 = vmov (!%p902_p6), 0.0  }
  0x10   : > { %s1139_s24 = scalar_lea.vmem %s1216_s0, %s899_s21  ;;  %s1144_s28 = scalar_lea.vmem %s1217_s1, %s960_s25  ;;  %328 = vst [vmem:[#allocation2] sm:$0xff] (!%p902_p6), %v1087_v0  ;;  %329 = vst [vmem:[#allocation2 + $0x8] sm:$0xff] (!%p902_p6), %v1087_v0 }
  0x11   : > { %327 = sbr.rel (%p902_p6) target bundleno = 24 (0x18), region = 40 }
  0x18 PF: > { %v988_v1 = vld [vmem:[%s1144_s28 + $0x4] ss:$8 sps:$4 sm:$0xff]   ;;  %v990_v2 = vld [vmem:[%s1144_s28] ss:$8 sps:$4 sm:$0xff]   ;;  %v1088_v3 = vmov 0   ;;  %p954_p7 = scmp.ne.s32.totalorder %s1077_s15, 2 }
  0x19   : > { %706 = vmatprep.mubr.bf16.mxu1 %v1088_v3  ;;  %633 = vmatprep.subr.bf16.mxu0 %v988_v1  ;;  %v991_v4 = vld [vmem:[%s1144_s28 + $0x14] ss:$8 sps:$4 sm:$0xff]   ;;  %v993_v5 = vld [vmem:[%s1144_s28 + $0x10] ss:$8 sps:$4 sm:$0xff]   ;;  %v994_v6 = vld [vmem:[%s1144_s28 + $0x24] ss:$8 sps:$4 sm:$0xff]  }
  0x1a   : > { %634 = vmatpush1.bf16.msra.mxu0 %v990_v2  ;;  %v996_v7 = vld [vmem:[%s1144_s28 + $0x20] ss:$8 sps:$4 sm:$0xff]   ;;  %v997_v8 = vld [vmem:[%s1144_s28 + $0x34] ss:$8 sps:$4 sm:$0xff]   ;;  %v999_v9 = vld [vmem:[%s1144_s28 + $0x30] ss:$8 sps:$4 sm:$0xff]  }
  0x1b   : > { %635 = vmatprep.subr.bf16.mxu0 %v991_v4  ;;  %v1012_v10 = vld [vmem:[%s1144_s28 + $0x104] ss:$8 sps:$4 sm:$0xff]   ;;  %v1014_v11 = vld [vmem:[%s1144_s28 + $0x100] ss:$8 sps:$4 sm:$0xff]   ;;  %v1018_v13 = vld [vmem:[%s1144_s28 + $0x114] ss:$8 sps:$4 sm:$0xff]   ;;  %v727_v4 = vlaneseq (!%p954_p7) }
  0x1c   : > { %v1000_v12 = vld [vmem:[%s1144_s28 + $0x44] ss:$8 sps:$4 sm:$0xff]   ;;  %674 = vmatprep.subr.bf16.mxu1 %v1012_v10  ;;  %v1020_v14 = vld [vmem:[%s1144_s28 + $0x110] ss:$8 sps:$4 sm:$0xff]   ;;  %v1002_v15 = vld [vmem:[%s1144_s28 + $0x40] ss:$8 sps:$4 sm:$0xff]  }
  0x1d   : > { %675 = vmatpush1.bf16.msra.mxu1 %v1014_v11  ;;  %v1003_v16 = vld [vmem:[%s1144_s28 + $0x54] ss:$8 sps:$4 sm:$0xff]   ;;  %v1024_v17 = vld [vmem:[%s1144_s28 + $0x124] ss:$8 sps:$4 sm:$0xff]   ;;  %v1026_v18 = vld [vmem:[%s1144_s28 + $0x120] ss:$8 sps:$4 sm:$0xff]  }
  0x1e   : > { %636 = vmatpush1.bf16.msra.mxu0 %v993_v5  ;;  %676 = vmatprep.subr.bf16.mxu1 %v1018_v13  ;;  %v1005_v19 = vld [vmem:[%s1144_s28 + $0x50] ss:$8 sps:$4 sm:$0xff]   ;;  %v1030_v20 = vld [vmem:[%s1144_s28 + $0x134] ss:$8 sps:$4 sm:$0xff]   ;;  %v1006_v21 = vld [vmem:[%s1144_s28 + $0x64] ss:$8 sps:$4 sm:$0xff]  }
  0x1f   : > { %637 = vmatprep.subr.bf16.mxu0 %v994_v6  ;;  %v1032_v22 = vld [vmem:[%s1144_s28 + $0x130] ss:$8 sps:$4 sm:$0xff]   ;;  %v1008_v23 = vld [vmem:[%s1144_s28 + $0x60] ss:$8 sps:$4 sm:$0xff]   ;;  %v1036_v24 = vld [vmem:[%s1144_s28 + $0x144] ss:$8 sps:$4 sm:$0xff]  }
  0x20   : > { %v1009_v25 = vld [vmem:[%s1144_s28 + $0x74] ss:$8 sps:$4 sm:$0xff]   ;;  %v1038_v26 = vld [vmem:[%s1144_s28 + $0x140] ss:$8 sps:$4 sm:$0xff]   ;;  %v1011_v27 = vld [vmem:[%s1144_s28 + $0x70] ss:$8 sps:$4 sm:$0xff]  }
  0x21   : > { %677 = vmatpush1.bf16.msra.mxu1 %v1020_v14  ;;  %v1042_v28 = vld [vmem:[%s1144_s28 + $0x154] ss:$8 sps:$4 sm:$0xff]   ;;  %v1015_v29 = vld [vmem:[%s1144_s28 + $0x84] ss:$8 sps:$4 sm:$0xff]   ;;  %v1044_v30 = vld [vmem:[%s1144_s28 + $0x150] ss:$8 sps:$4 sm:$0xff]  }
  0x22   : > { %638 = vmatpush1.bf16.msra.mxu0 %v996_v7  ;;  %678 = vmatprep.subr.bf16.mxu1 %v1024_v17  ;;  %v1017_v31 = vld [vmem:[%s1144_s28 + $0x80] ss:$8 sps:$4 sm:$0xff]   ;;  %v1048_v32 = vld [vmem:[%s1144_s28 + $0x164] ss:$8 sps:$4 sm:$0xff]   ;;  %v1021_v33 = vld [vmem:[%s1144_s28 + $0x94] ss:$8 sps:$4 sm:$0xff]  }
  0x23   : > { %639 = vmatprep.subr.bf16.mxu0 %v997_v8  ;;  %v332_v34 = vld [vmem:[%s1139_s24] sm:$0xff]  ;;  %v1023_v37 = vld [vmem:[%s1144_s28 + $0x90] ss:$8 sps:$4 sm:$0xff]   ;;  %v1054_v38 = vld [vmem:[%s1144_s28 + $0x174] ss:$8 sps:$4 sm:$0xff]   ;;  %v728_v5 = vshrl.u32 (!%p954_p7), %v727_v4, 7 }
  0x24   : > { %v904_v35 = vcombine.high %v332_v34, %v332_v34  ;;  %v1050_v36 = vld [vmem:[%s1144_s28 + $0x160] ss:$8 sps:$4 sm:$0xff]   ;;  %v1027_v39 = vld [vmem:[%s1144_s28 + $0xa4] ss:$8 sps:$4 sm:$0xff]   ;;  %v1056_v40 = vld [vmem:[%s1144_s28 + $0x170] ss:$8 sps:$4 sm:$0xff]   ;;  %v903_v53 = vcombine.low %v332_v34, %v332_v34 }
  0x25   : > { %679 = vmatpush1.bf16.msra.mxu1 %v1026_v18  ;;  %v1029_v41 = vld [vmem:[%s1144_s28 + $0xa0] ss:$8 sps:$4 sm:$0xff]   ;;  %v1033_v42 = vld [vmem:[%s1144_s28 + $0xb4] ss:$8 sps:$4 sm:$0xff]   ;;  %v1035_v44 = vld [vmem:[%s1144_s28 + $0xb0] ss:$8 sps:$4 sm:$0xff]  }
  0x26   : > { %640 = vmatpush1.bf16.msra.mxu0 %v999_v9  ;;  %680 = vmatprep.subr.bf16.mxu1 %v1030_v20  ;;  %v1060_v43 = vld [vmem:[%s1139_s24 + $0x8] ss:$0 sps:$4 sm:$0xff]   ;;  %v1039_v45 = vld [vmem:[%s1144_s28 + $0xc4] ss:$8 sps:$4 sm:$0xff]   ;;  %v1045_v47 = vld [vmem:[%s1144_s28 + $0xd4] ss:$8 sps:$4 sm:$0xff]  }
  0x27   : > { %641 = vmatprep.subr.bf16.mxu0 %v1000_v12  ;;  %665 = vmatprep.mubr.bf16.mxu0 %v904_v35  ;;  %v1041_v46 = vld [vmem:[%s1144_s28 + $0xc0] ss:$8 sps:$4 sm:$0xff]   ;;  %v1047_v48 = vld [vmem:[%s1144_s28 + $0xd0] ss:$8 sps:$4 sm:$0xff]   ;;  %v1051_v49 = vld [vmem:[%s1144_s28 + $0xe4] ss:$8 sps:$4 sm:$0xff]  }
  0x28   : > { %v1053_v50 = vld [vmem:[%s1144_s28 + $0xe0] ss:$8 sps:$4 sm:$0xff]   ;;  %v1057_v51 = vld [vmem:[%s1144_s28 + $0xf4] ss:$8 sps:$4 sm:$0xff]   ;;  %v1059_v52 = vld [vmem:[%s1144_s28 + $0xf0] ss:$8 sps:$4 sm:$0xff]  }
  0x29   : > { %681 = vmatpush1.bf16.msra.mxu1 %v1032_v22  ;;  %v330_v58 = vld [vmem:[#allocation2] sm:$0xff]  ;;  %v331_v61 = vld [vmem:[#allocation2 + $0x8] sm:$0xff]  ;;  %v729_v8 = vsub.s32 (!%p954_p7), 0, %v728_v5  ;;  %v733_v9 = vsub.s32 (!%p954_p7), 1, %v728_v5 }
  0x2a   : > { %642 = vmatpush1.bf16.msra.mxu0 %v1002_v15  ;;  %682 = vmatprep.subr.bf16.mxu1 %v1036_v24  ;;  %v725_v6 = vld [vmem:[%s1218_s2] sm:$0x3] (!%p954_p7) }
  0x2b   : > { %643 = vmatprep.subr.bf16.mxu0 %v1003_v16  ;;  %v739_v7 = vld [vmem:[%s1219_s3] sm:$0x3] (!%p954_p7)  ;;  %v730_v12 = vrot.slane (!%p954_p7), %v725_v6, %v729_v8  ;;  %v734_v13 = vrot.slane (!%p954_p7), %v725_v6, %v733_v9 }
  0x2c   : > { %v744_v14 = vrot.slane (!%p954_p7), %v739_v7, %v729_v8  ;;  %v748_v15 = vrot.slane (!%p954_p7), %v739_v7, %v733_v9 }
  0x2d   : > { %683 = vmatpush1.bf16.msra.mxu1 %v1038_v26 }
  0x2e   : > { %644 = vmatpush1.bf16.msra.mxu0 %v1005_v19  ;;  %684 = vmatprep.subr.bf16.mxu1 %v1042_v28 }
  0x2f   : > { %645 = vmatprep.subr.bf16.mxu0 %v1006_v21 }
  0x31   : > { %685 = vmatpush1.bf16.msra.mxu1 %v1044_v30 }
  0x32   : > { %646 = vmatpush1.bf16.msra.mxu0 %v1008_v23  ;;  %686 = vmatprep.subr.bf16.mxu1 %v1048_v32 }
  0x33   : > { %647 = vmatprep.subr.bf16.mxu0 %v1009_v25 }
  0x35   : > { %687 = vmatpush1.bf16.msra.mxu1 %v1050_v36 }
  0x36   : > { %648 = vmatpush1.bf16.msra.mxu0 %v1011_v27  ;;  %688 = vmatprep.subr.bf16.mxu1 %v1054_v38 }
  0x37   : > { %649 = vmatprep.subr.bf16.mxu0 %v1015_v29 }
  0x39   : > { %689 = vmatpush1.bf16.msra.mxu1 %v1056_v40 }
  0x3a   : > { %650 = vmatpush1.bf16.msra.mxu0 %v1017_v31 }
  0x3b   : > { %651 = vmatprep.subr.bf16.mxu0 %v1021_v33 }
  0x3c   : > { %707 = vmatmul.mubr.bf16.vlgmr.msra.gmra.mrb[0].mxu1 %v1060_v43 }
  0x3e   : > { %652 = vmatpush1.bf16.msra.mxu0 %v1023_v37 }
  0x3f   : > { %653 = vmatprep.subr.bf16.mxu0 %v1027_v39 }
  0x42   : > { %654 = vmatpush1.bf16.msra.mxu0 %v1029_v41 }
  0x43   : > { %655 = vmatprep.subr.bf16.mxu0 %v1033_v42 }
  0x46   : > { %656 = vmatpush1.bf16.msra.mxu0 %v1035_v44 }
  0x47   : > { %657 = vmatprep.subr.bf16.mxu0 %v1039_v45 }
  0x4a   : > { %658 = vmatpush1.bf16.msra.mxu0 %v1041_v46 }
  0x4b   : > { %659 = vmatprep.subr.bf16.mxu0 %v1045_v47 }
  0x4e   : > { %660 = vmatpush1.bf16.msra.mxu0 %v1047_v48 }
  0x4f   : > { %661 = vmatprep.subr.bf16.mxu0 %v1051_v49 }
  0x52   : > { %662 = vmatpush1.bf16.msra.mxu0 %v1053_v50 }
  0x53   : > { %663 = vmatprep.subr.bf16.mxu0 %v1057_v51 }
  0x56   : > { %664 = vmatpush1.bf16.msra.mxu0 %v1059_v52 }
  0x59   : > { %666 = vmatmul.mubr.bf16.vlgmr.msra.gmra.mrb[0].mxu0 %v903_v53 }
 0x10f   : > { %v708_v54 = vpop.f32.mrb[0].mxu1 }
 0x110   : > { %v710_v55 = vpop.f32.mrb[1].mxu1 }
 0x111   : > { %v712_v56 = vpop.f32.mrb[2].mxu1 }
 0x112   : > { %v713_v57 = vpop.f32.mrb[3].mxu1 }
 0x12c   : > { %v667_v59 = vpop.f32.mrb[0].mxu0  ;;  %722 = sbr.rel (%p954_p7) target bundleno = 323 (0x143), region = 44 }
 0x12d   : > { %v709_v60 = vadd.f32 %v708_v54, %v667_v59  ;;  %v669_v62 = vpop.f32.mrb[1].mxu0 }
 0x12e   : > { %v711_v63 = vadd.f32 %v710_v55, %v669_v62  ;;  %v671_v0 = vpop.f32.mrb[2].mxu0 }
 0x12f   : > { %v715_v1 = vadd.f32 %v709_v60, %v330_v58  ;;  %v672_v2 = vpop.f32.mrb[3].mxu0 }
 0x130   : > { %v716_v3 = vadd.f32 %v711_v63, %v331_v61 }
 0x131   : > { %717 = vst [vmem:[#allocation2] sm:$0xff] %v715_v1 }
 0x132   : > { %718 = vst [vmem:[#allocation2 + $0x8] sm:$0xff] %v716_v3 }
 0x138   : > { %v723_v10 = vld [vmem:[#allocation2] sm:$0xff] }
 0x139   : > { %v724_v11 = vld [vmem:[#allocation2 + $0x8] sm:$0xff]  ;;  %v737_v16 = vmul.f32 %v730_v12, %v723_v10 }
 0x13a   : > { %v738_v17 = vmul.f32 %v734_v13, %v724_v11 }
 0x13b   : > { %v751_v18 = vadd.f32 %v744_v14, %v737_v16 }
 0x13c   : > { %v752_v19 = vadd.f32 %v748_v15, %v738_v17 }
 0x13d   : > { %v753_v20 = vmax.f32 %v751_v18, 0.0 }
 0x13e   : > { %v754_v21 = vmax.f32 %v752_v19, 0.0 }
 0x140   : > { %v961_v22 = vpack.c.bf16 %v754_v21, %v753_v20 }
 0x142   : > { %763 = vst [vmem:[%s1220_s4] sm:$0xff] %v961_v22 }
 0x143 PF: > { %s14_s17 = sadd.s32 1, %s1085_s17   ;;  %s1221_s15 = smov %s1081_s16 }
 0x144   : > { %p11_p8 = scmp.ge.s32.totalorder %s14_s17, 5   ;;  %s1222_s16 = smov %s1224_s18 }
 0x146   :  { %13 = sbr.rel (!%p11_p8) target bundleno = 2 (0x2), region = 83 }

// kernel: cnn_network_forward.36
= control target key start
LH: loop header
LB: loop body
LE: loop exit
PB: predicated region body
PF: predicated region fallthrough
CT: control target
= control target key end

     0   :  { %v257_v1 = vmov 0   ;;  %v175_v18 = vlaneseq  ;;  %s343_s1 = inlined_call_operand.vmem [shape: bf16[128,256], index: 1, kind: input, shape index: {}]   ;;  %s344_s0 = inlined_call_operand.vmem [shape: bf16[8,128], index: 0, kind: input, shape index: {}]   ;;  %s345_s2 = inlined_call_operand.vmem [shape: f32[1,256], index: 2, kind: input, shape index: {}]   ;;  %s346_s3 = inlined_call_operand.vmem [shape: f32[1,256], index: 3, kind: input, shape index: {}]   ;;  %s347_s4 = inlined_call_operand.vmem [shape: bf16[8,256], index: 4, kind: output, shape index: {}]  }
   0x1   :  { %v233_v0 = vld [vmem:[%s343_s1 + $0x4] ss:$8 sps:$4 sm:$0xff]   ;;  %155 = vmatprep.mubr.bf16.mxu0 %v257_v1  ;;  %v235_v2 = vld [vmem:[%s343_s1] ss:$8 sps:$4 sm:$0xff]   ;;  %v236_v3 = vld [vmem:[%s343_s1 + $0x14] ss:$8 sps:$4 sm:$0xff]  }
   0x2   :  { %123 = vmatprep.subr.bf16.mxu0 %v233_v0  ;;  %v238_v4 = vld [vmem:[%s343_s1 + $0x10] ss:$8 sps:$4 sm:$0xff]   ;;  %v239_v5 = vld [vmem:[%s343_s1 + $0x24] ss:$8 sps:$4 sm:$0xff]   ;;  %v241_v6 = vld [vmem:[%s343_s1 + $0x20] ss:$8 sps:$4 sm:$0xff]  }
   0x3   :  { %124 = vmatpush1.bf16.msra.mxu0 %v235_v2  ;;  %v242_v7 = vld [vmem:[%s343_s1 + $0x34] ss:$8 sps:$4 sm:$0xff]   ;;  %v244_v8 = vld [vmem:[%s343_s1 + $0x30] ss:$8 sps:$4 sm:$0xff]   ;;  %v245_v9 = vld [vmem:[%s343_s1 + $0x44] ss:$8 sps:$4 sm:$0xff]  }
   0x4   :  { %125 = vmatprep.subr.bf16.mxu0 %v236_v3  ;;  %v247_v10 = vld [vmem:[%s343_s1 + $0x40] ss:$8 sps:$4 sm:$0xff]   ;;  %v248_v11 = vld [vmem:[%s343_s1 + $0x54] ss:$8 sps:$4 sm:$0xff]   ;;  %v250_v12 = vld [vmem:[%s343_s1 + $0x50] ss:$8 sps:$4 sm:$0xff]  }
   0x5   :  { %v251_v13 = vld [vmem:[%s343_s1 + $0x64] ss:$8 sps:$4 sm:$0xff]   ;;  %v253_v14 = vld [vmem:[%s343_s1 + $0x60] ss:$8 sps:$4 sm:$0xff]   ;;  %v254_v15 = vld [vmem:[%s343_s1 + $0x74] ss:$8 sps:$4 sm:$0xff]  }
   0x6   :  { %v256_v16 = vld [vmem:[%s343_s1 + $0x70] ss:$8 sps:$4 sm:$0xff]   ;;  %v26_v17 = vld [vmem:[%s344_s0] sm:$0xf]  ;;  %v176_v19 = vshrl.u32 %v175_v18, 7 }
   0x7   :  { %126 = vmatpush1.bf16.msra.mxu0 %v238_v4  ;;  %v173_v21 = vld [vmem:[%s345_s2] sm:$0x3] }
   0x8   :  { %127 = vmatprep.subr.bf16.mxu0 %v239_v5  ;;  %v177_v20 = vsub.s32 0, %v176_v19  ;;  %v181_v22 = vsub.s32 1, %v176_v19  ;;  %v187_v23 = vld [vmem:[%s346_s3] sm:$0x3] }
   0xa   :  { %v178_v24 = vrot.slane %v173_v21, %v177_v20  ;;  %v182_v25 = vrot.slane %v173_v21, %v181_v22  ;;  %v192_v26 = vrot.slane %v187_v23, %v177_v20  ;;  %v196_v28 = vrot.slane %v187_v23, %v181_v22 }
   0xb   :  { %128 = vmatpush1.bf16.msra.mxu0 %v241_v6 }
   0xc   :  { %129 = vmatprep.subr.bf16.mxu0 %v242_v7 }
   0xf   :  { %130 = vmatpush1.bf16.msra.mxu0 %v244_v8 }
  0x10   :  { %131 = vmatprep.subr.bf16.mxu0 %v245_v9 }
  0x13   :  { %132 = vmatpush1.bf16.msra.mxu0 %v247_v10 }
  0x14   :  { %133 = vmatprep.subr.bf16.mxu0 %v248_v11 }
  0x17   :  { %134 = vmatpush1.bf16.msra.mxu0 %v250_v12 }
  0x18   :  { %135 = vmatprep.subr.bf16.mxu0 %v251_v13 }
  0x1b   :  { %136 = vmatpush1.bf16.msra.mxu0 %v253_v14 }
  0x1c   :  { %137 = vmatprep.subr.bf16.mxu0 %v254_v15 }
  0x1f   :  { %138 = vmatpush1.bf16.msra.mxu0 %v256_v16 }
  0x22   :  { %156 = vmatmul.mubr.bf16.vlgmr.msra.gmra.mrb[0].mxu0 %v26_v17 }
  0xf5   :  { %v157_v27 = vpop.f32.mrb[0].mxu0 }
  0xf6   :  { %v185_v29 = vmul.f32 %v178_v24, %v157_v27  ;;  %v159_v30 = vpop.f32.mrb[1].mxu0 }
  0xf7   :  { %v186_v31 = vmul.f32 %v182_v25, %v159_v30  ;;  %v161_v32 = vpop.f32.mrb[2].mxu0 }
  0xf8   :  { %v199_v33 = vadd.f32 %v192_v26, %v185_v29  ;;  %v162_v34 = vpop.f32.mrb[3].mxu0 }
  0xf9   :  { %v200_v35 = vadd.f32 %v196_v28, %v186_v31 }
  0xfb   :  { %v231_v36 = vpack.c.bf16 %v200_v35, %v199_v33 }
  0xfd   :  { %209 = vst [vmem:[%s347_s4] sm:$0xff] %v231_v36 }

// kernel: cnn_network_forward.37
= control target key start
LH: loop header
LB: loop body
LE: loop exit
PB: predicated region body
PF: predicated region fallthrough
CT: control target
= control target key end

     0   :  { %s1209_s18 = smov 0   ;;  %s1211_s19 = smov 0   ;;  %s1314_s0 = inlined_call_operand.vmem [shape: bf16[8,2304], index: 0, kind: input, shape index: {}]   ;;  %s1315_s1 = inlined_call_operand.vmem [shape: bf16[2304,256], index: 1, kind: input, shape index: {}]   ;;  %s1316_s2 = inlined_call_operand.vmem [shape: f32[1,256], index: 2, kind: input, shape index: {}]   ;;  %s1317_s3 = inlined_call_operand.vmem [shape: f32[1,256], index: 3, kind: input, shape index: {}]   ;;  %s1318_s4 = inlined_call_operand.vmem [shape: bf16[8,256], index: 4, kind: input, shape index: {}]   ;;  %s1319_s5 = inlined_call_operand.vmem [shape: bf16[8,256], index: 5, kind: output, shape index: {}]  }
   0x1   :  { %s1213_s20 = smov 0  }
   0x2 LB: > { %s27_s21 = sadd.s32 1, %s1171_s19  ;;  %p988_p0 = scmp.ge.s32.totalorder %s1175_s20, 1  ;;  %s1175_s20 = sphi %s1213_s20, %s15_s20   ;;  %s1171_s19 = sphi %s1211_s19, %s1321_s19   ;;  %s1167_s18 = sphi %s1209_s18, %s1320_s18  }
   0x3   : > { %p28_p1 = scmp.ge.s32.totalorder %s27_s21, 6  ;;  %p271_p2 = scmp.lt.s32.totalorder %s1175_s20, 7 }
   0x5   : > { %s1323_s21 = smov (%p28_p1, %s27_s21), 0  ;;  %p272_p3 = pnand %p988_p0, %p271_p2 }
   0x6   : > { %s334_s22 = smul.u32 (!%p272_p3), 3, %s1167_s18  ;;  %p992_p6 = scmp.ne.s32.totalorder (!%p272_p3), %s1167_s18, 0 }
   0x7   : > { %275 = sbr.rel (%p272_p3) target bundleno = 325 (0x145), region = 40 }
   0x8   : > { %s344_s23 = smul.u32 (!%p272_p3), 48, %s1167_s18  ;;  %p337_p4 = scmp.lt.s32.totalorder (!%p272_p3), %s334_s22, 17 }
   0xa   : > { %p346_p5 = scmp.lt.s32.totalorder (!%p272_p3), %s344_s23, 287 }
   0xe   : > { %s1325_s22 = smov (!%p337_p4, %s334_s22), 17  ;;  %s1327_s23 = smov (!%p346_p5, %s344_s23), 287 }
   0xf   : > { %s989_s24 = sshll.u32 %s1325_s22, 2  ;;  %s1050_s28 = sshll.u32 %s1327_s23, 3  ;;  %v1177_v0 = vmov (!%p992_p6), 0.0  }
  0x10   : > { %s1234_s27 = scalar_lea.vmem %s1314_s0, %s989_s24  ;;  %s1239_s6 = scalar_lea.vmem %s1315_s1, %s1050_s28  ;;  %391 = vst [vmem:[#allocation2] sm:$0xff] (!%p992_p6), %v1177_v0  ;;  %392 = vst [vmem:[#allocation2 + $0x8] sm:$0xff] (!%p992_p6), %v1177_v0 }
  0x11   : > { %390 = sbr.rel (%p992_p6) target bundleno = 24 (0x18), region = 44 }
  0x18 PF: > { %v1078_v1 = vld [vmem:[%s1239_s6 + $0x4] ss:$8 sps:$4 sm:$0xff]   ;;  %v1080_v2 = vld [vmem:[%s1239_s6] ss:$8 sps:$4 sm:$0xff]   ;;  %v1178_v3 = vmov 0   ;;  %p1044_p7 = scmp.ne.s32.totalorder %s1167_s18, 5 }
  0x19   : > { %769 = vmatprep.mubr.bf16.mxu1 %v1178_v3  ;;  %696 = vmatprep.subr.bf16.mxu0 %v1078_v1  ;;  %v1081_v4 = vld [vmem:[%s1239_s6 + $0x14] ss:$8 sps:$4 sm:$0xff]   ;;  %v1083_v5 = vld [vmem:[%s1239_s6 + $0x10] ss:$8 sps:$4 sm:$0xff]   ;;  %v1084_v6 = vld [vmem:[%s1239_s6 + $0x24] ss:$8 sps:$4 sm:$0xff]  }
  0x1a   : > { %697 = vmatpush1.bf16.msra.mxu0 %v1080_v2  ;;  %v1086_v7 = vld [vmem:[%s1239_s6 + $0x20] ss:$8 sps:$4 sm:$0xff]   ;;  %v1087_v8 = vld [vmem:[%s1239_s6 + $0x34] ss:$8 sps:$4 sm:$0xff]   ;;  %v1089_v9 = vld [vmem:[%s1239_s6 + $0x30] ss:$8 sps:$4 sm:$0xff]  }
  0x1b   : > { %698 = vmatprep.subr.bf16.mxu0 %v1081_v4  ;;  %v1102_v10 = vld [vmem:[%s1239_s6 + $0x104] ss:$8 sps:$4 sm:$0xff]   ;;  %v1104_v11 = vld [vmem:[%s1239_s6 + $0x100] ss:$8 sps:$4 sm:$0xff]   ;;  %v1108_v13 = vld [vmem:[%s1239_s6 + $0x114] ss:$8 sps:$4 sm:$0xff]   ;;  %v790_v4 = vlaneseq (!%p1044_p7) }
  0x1c   : > { %v1090_v12 = vld [vmem:[%s1239_s6 + $0x44] ss:$8 sps:$4 sm:$0xff]   ;;  %737 = vmatprep.subr.bf16.mxu1 %v1102_v10  ;;  %v1110_v14 = vld [vmem:[%s1239_s6 + $0x110] ss:$8 sps:$4 sm:$0xff]   ;;  %v1092_v15 = vld [vmem:[%s1239_s6 + $0x40] ss:$8 sps:$4 sm:$0xff]  }
  0x1d   : > { %738 = vmatpush1.bf16.msra.mxu1 %v1104_v11  ;;  %v1093_v16 = vld [vmem:[%s1239_s6 + $0x54] ss:$8 sps:$4 sm:$0xff]   ;;  %v1114_v17 = vld [vmem:[%s1239_s6 + $0x124] ss:$8 sps:$4 sm:$0xff]   ;;  %v1116_v18 = vld [vmem:[%s1239_s6 + $0x120] ss:$8 sps:$4 sm:$0xff]  }
  0x1e   : > { %699 = vmatpush1.bf16.msra.mxu0 %v1083_v5  ;;  %739 = vmatprep.subr.bf16.mxu1 %v1108_v13  ;;  %v1095_v19 = vld [vmem:[%s1239_s6 + $0x50] ss:$8 sps:$4 sm:$0xff]   ;;  %v1120_v20 = vld [vmem:[%s1239_s6 + $0x134] ss:$8 sps:$4 sm:$0xff]   ;;  %v1096_v21 = vld [vmem:[%s1239_s6 + $0x64] ss:$8 sps:$4 sm:$0xff]  }
  0x1f   : > { %700 = vmatprep.subr.bf16.mxu0 %v1084_v6  ;;  %v1122_v22 = vld [vmem:[%s1239_s6 + $0x130] ss:$8 sps:$4 sm:$0xff]   ;;  %v1098_v23 = vld [vmem:[%s1239_s6 + $0x60] ss:$8 sps:$4 sm:$0xff]   ;;  %v1126_v24 = vld [vmem:[%s1239_s6 + $0x144] ss:$8 sps:$4 sm:$0xff]  }
  0x20   : > { %v1099_v25 = vld [vmem:[%s1239_s6 + $0x74] ss:$8 sps:$4 sm:$0xff]   ;;  %v1128_v26 = vld [vmem:[%s1239_s6 + $0x140] ss:$8 sps:$4 sm:$0xff]   ;;  %v1101_v27 = vld [vmem:[%s1239_s6 + $0x70] ss:$8 sps:$4 sm:$0xff]  }
  0x21   : > { %740 = vmatpush1.bf16.msra.mxu1 %v1110_v14  ;;  %v1132_v28 = vld [vmem:[%s1239_s6 + $0x154] ss:$8 sps:$4 sm:$0xff]   ;;  %v1105_v29 = vld [vmem:[%s1239_s6 + $0x84] ss:$8 sps:$4 sm:$0xff]   ;;  %v1134_v30 = vld [vmem:[%s1239_s6 + $0x150] ss:$8 sps:$4 sm:$0xff]  }
  0x22   : > { %701 = vmatpush1.bf16.msra.mxu0 %v1086_v7  ;;  %741 = vmatprep.subr.bf16.mxu1 %v1114_v17  ;;  %v1107_v31 = vld [vmem:[%s1239_s6 + $0x80] ss:$8 sps:$4 sm:$0xff]   ;;  %v1138_v32 = vld [vmem:[%s1239_s6 + $0x164] ss:$8 sps:$4 sm:$0xff]   ;;  %v1111_v33 = vld [vmem:[%s1239_s6 + $0x94] ss:$8 sps:$4 sm:$0xff]  }
  0x23   : > { %702 = vmatprep.subr.bf16.mxu0 %v1087_v8  ;;  %v395_v34 = vld [vmem:[%s1234_s27] sm:$0xff]  ;;  %v1113_v37 = vld [vmem:[%s1239_s6 + $0x90] ss:$8 sps:$4 sm:$0xff]   ;;  %v1144_v38 = vld [vmem:[%s1239_s6 + $0x174] ss:$8 sps:$4 sm:$0xff]   ;;  %v791_v5 = vshrl.u32 (!%p1044_p7), %v790_v4, 7 }
  0x24   : > { %v994_v35 = vcombine.high %v395_v34, %v395_v34  ;;  %v1140_v36 = vld [vmem:[%s1239_s6 + $0x160] ss:$8 sps:$4 sm:$0xff]   ;;  %v1117_v39 = vld [vmem:[%s1239_s6 + $0xa4] ss:$8 sps:$4 sm:$0xff]   ;;  %v1146_v40 = vld [vmem:[%s1239_s6 + $0x170] ss:$8 sps:$4 sm:$0xff]   ;;  %v993_v53 = vcombine.low %v395_v34, %v395_v34 }
  0x25   : > { %742 = vmatpush1.bf16.msra.mxu1 %v1116_v18  ;;  %v1119_v41 = vld [vmem:[%s1239_s6 + $0xa0] ss:$8 sps:$4 sm:$0xff]   ;;  %v1123_v42 = vld [vmem:[%s1239_s6 + $0xb4] ss:$8 sps:$4 sm:$0xff]   ;;  %v1125_v44 = vld [vmem:[%s1239_s6 + $0xb0] ss:$8 sps:$4 sm:$0xff]  }
  0x26   : > { %703 = vmatpush1.bf16.msra.mxu0 %v1089_v9  ;;  %743 = vmatprep.subr.bf16.mxu1 %v1120_v20  ;;  %v1150_v43 = vld [vmem:[%s1234_s27 + $0x8] ss:$0 sps:$4 sm:$0xff]   ;;  %v1129_v45 = vld [vmem:[%s1239_s6 + $0xc4] ss:$8 sps:$4 sm:$0xff]   ;;  %v1135_v47 = vld [vmem:[%s1239_s6 + $0xd4] ss:$8 sps:$4 sm:$0xff]  }
  0x27   : > { %704 = vmatprep.subr.bf16.mxu0 %v1090_v12  ;;  %728 = vmatprep.mubr.bf16.mxu0 %v994_v35  ;;  %v1131_v46 = vld [vmem:[%s1239_s6 + $0xc0] ss:$8 sps:$4 sm:$0xff]   ;;  %v1137_v48 = vld [vmem:[%s1239_s6 + $0xd0] ss:$8 sps:$4 sm:$0xff]   ;;  %v1141_v49 = vld [vmem:[%s1239_s6 + $0xe4] ss:$8 sps:$4 sm:$0xff]  }
  0x28   : > { %v1143_v50 = vld [vmem:[%s1239_s6 + $0xe0] ss:$8 sps:$4 sm:$0xff]   ;;  %v1147_v51 = vld [vmem:[%s1239_s6 + $0xf4] ss:$8 sps:$4 sm:$0xff]   ;;  %v1149_v52 = vld [vmem:[%s1239_s6 + $0xf0] ss:$8 sps:$4 sm:$0xff]  }
  0x29   : > { %744 = vmatpush1.bf16.msra.mxu1 %v1122_v22  ;;  %v393_v58 = vld [vmem:[#allocation2] sm:$0xff]  ;;  %v394_v61 = vld [vmem:[#allocation2 + $0x8] sm:$0xff]  ;;  %v792_v8 = vsub.s32 (!%p1044_p7), 0, %v791_v5  ;;  %v796_v9 = vsub.s32 (!%p1044_p7), 1, %v791_v5 }
  0x2a   : > { %705 = vmatpush1.bf16.msra.mxu0 %v1092_v15  ;;  %745 = vmatprep.subr.bf16.mxu1 %v1126_v24  ;;  %v788_v6 = vld [vmem:[%s1316_s2] sm:$0x3] (!%p1044_p7) }
  0x2b   : > { %706 = vmatprep.subr.bf16.mxu0 %v1093_v16  ;;  %v802_v7 = vld [vmem:[%s1317_s3] sm:$0x3] (!%p1044_p7)  ;;  %v793_v13 = vrot.slane (!%p1044_p7), %v788_v6, %v792_v8  ;;  %v797_v14 = vrot.slane (!%p1044_p7), %v788_v6, %v796_v9 }
  0x2c   : > { %v816_v12 = vld [vmem:[%s1318_s4] sm:$0xff] (!%p1044_p7)  ;;  %v807_v15 = vrot.slane (!%p1044_p7), %v802_v7, %v792_v8  ;;  %v811_v16 = vrot.slane (!%p1044_p7), %v802_v7, %v796_v9 }
  0x2d   : > { %746 = vmatpush1.bf16.msra.mxu1 %v1128_v26  ;;  %v818_v20 = vunpack.c.h.bf16 (!%p1044_p7), %v816_v12 }
  0x2e   : > { %707 = vmatpush1.bf16.msra.mxu0 %v1095_v19  ;;  %747 = vmatprep.subr.bf16.mxu1 %v1132_v28  ;;  %v817_v19 = vunpack.c.l.bf16 (!%p1044_p7), %v816_v12 }
  0x2f   : > { %708 = vmatprep.subr.bf16.mxu0 %v1096_v21 }
  0x31   : > { %748 = vmatpush1.bf16.msra.mxu1 %v1134_v30 }
  0x32   : > { %709 = vmatpush1.bf16.msra.mxu0 %v1098_v23  ;;  %749 = vmatprep.subr.bf16.mxu1 %v1138_v32 }
  0x33   : > { %710 = vmatprep.subr.bf16.mxu0 %v1099_v25 }
  0x35   : > { %750 = vmatpush1.bf16.msra.mxu1 %v1140_v36 }
  0x36   : > { %711 = vmatpush1.bf16.msra.mxu0 %v1101_v27  ;;  %751 = vmatprep.subr.bf16.mxu1 %v1144_v38 }
  0x37   : > { %712 = vmatprep.subr.bf16.mxu0 %v1105_v29 }
  0x39   : > { %752 = vmatpush1.bf16.msra.mxu1 %v1146_v40 }
  0x3a   : > { %713 = vmatpush1.bf16.msra.mxu0 %v1107_v31 }
  0x3b   : > { %714 = vmatprep.subr.bf16.mxu0 %v1111_v33 }
  0x3c   : > { %770 = vmatmul.mubr.bf16.vlgmr.msra.gmra.mrb[0].mxu1 %v1150_v43 }
  0x3e   : > { %715 = vmatpush1.bf16.msra.mxu0 %v1113_v37 }
  0x3f   : > { %716 = vmatprep.subr.bf16.mxu0 %v1117_v39 }
  0x42   : > { %717 = vmatpush1.bf16.msra.mxu0 %v1119_v41 }
  0x43   : > { %718 = vmatprep.subr.bf16.mxu0 %v1123_v42 }
  0x46   : > { %719 = vmatpush1.bf16.msra.mxu0 %v1125_v44 }
  0x47   : > { %720 = vmatprep.subr.bf16.mxu0 %v1129_v45 }
  0x4a   : > { %721 = vmatpush1.bf16.msra.mxu0 %v1131_v46 }
  0x4b   : > { %722 = vmatprep.subr.bf16.mxu0 %v1135_v47 }
  0x4e   : > { %723 = vmatpush1.bf16.msra.mxu0 %v1137_v48 }
  0x4f   : > { %724 = vmatprep.subr.bf16.mxu0 %v1141_v49 }
  0x52   : > { %725 = vmatpush1.bf16.msra.mxu0 %v1143_v50 }
  0x53   : > { %726 = vmatprep.subr.bf16.mxu0 %v1147_v51 }
  0x56   : > { %727 = vmatpush1.bf16.msra.mxu0 %v1149_v52 }
  0x59   : > { %729 = vmatmul.mubr.bf16.vlgmr.msra.gmra.mrb[0].mxu0 %v993_v53 }
 0x10f   : > { %v771_v54 = vpop.f32.mrb[0].mxu1 }
 0x110   : > { %v773_v55 = vpop.f32.mrb[1].mxu1 }
 0x111   : > { %v775_v56 = vpop.f32.mrb[2].mxu1 }
 0x112   : > { %v776_v57 = vpop.f32.mrb[3].mxu1 }
 0x12c   : > { %v730_v59 = vpop.f32.mrb[0].mxu0  ;;  %785 = sbr.rel (%p1044_p7) target bundleno = 325 (0x145), region = 48 }
 0x12d   : > { %v772_v60 = vadd.f32 %v771_v54, %v730_v59  ;;  %v732_v62 = vpop.f32.mrb[1].mxu0 }
 0x12e   : > { %v774_v63 = vadd.f32 %v773_v55, %v732_v62  ;;  %v734_v0 = vpop.f32.mrb[2].mxu0 }
 0x12f   : > { %v778_v1 = vadd.f32 %v772_v60, %v393_v58  ;;  %v735_v2 = vpop.f32.mrb[3].mxu0 }
 0x130   : > { %v779_v3 = vadd.f32 %v774_v63, %v394_v61 }
 0x131   : > { %780 = vst [vmem:[#allocation2] sm:$0xff] %v778_v1 }
 0x132   : > { %781 = vst [vmem:[#allocation2 + $0x8] sm:$0xff] %v779_v3 }
 0x138   : > { %v786_v10 = vld [vmem:[#allocation2] sm:$0xff] }
 0x139   : > { %v787_v11 = vld [vmem:[#allocation2 + $0x8] sm:$0xff]  ;;  %v800_v17 = vmul.f32 %v793_v13, %v786_v10 }
 0x13a   : > { %v801_v18 = vmul.f32 %v797_v14, %v787_v11 }
 0x13b   : > { %v814_v21 = vadd.f32 %v807_v15, %v800_v17 }
 0x13c   : > { %v815_v22 = vadd.f32 %v811_v16, %v801_v18 }
 0x13d   : > { %v819_v23 = vadd.f32 %v817_v19, %v814_v21 }
 0x13e   : > { %v820_v24 = vadd.f32 %v818_v20, %v815_v22 }
 0x13f   : > { %v821_v25 = vmax.f32 %v819_v23, 0.0 }
 0x140   : > { %v822_v26 = vmax.f32 %v820_v24, 0.0 }
 0x142   : > { %v1051_v27 = vpack.c.bf16 %v822_v26, %v821_v25 }
 0x144   : > { %831 = vst [vmem:[%s1319_s5] sm:$0xff] %v1051_v27 }
 0x145 PF: > { %s15_s20 = sadd.s32 1, %s1175_s20   ;;  %s1320_s18 = smov %s1171_s19 }
 0x146   : > { %p12_p8 = scmp.ge.s32.totalorder %s15_s20, 8   ;;  %s1321_s19 = smov %s1323_s21 }
 0x148   :  { %14 = sbr.rel (!%p12_p8) target bundleno = 2 (0x2), region = 90 }

// kernel: cnn_network_forward.38
= control target key start
LH: loop header
LB: loop body
LE: loop exit
PB: predicated region body
PF: predicated region fallthrough
CT: control target
= control target key end

     0   :  { %s1114_s15 = smov 0   ;;  %s1116_s16 = smov 0   ;;  %s1216_s0 = inlined_call_operand.vmem [shape: bf16[8,2304], index: 0, kind: input, shape index: {}]   ;;  %s1217_s1 = inlined_call_operand.vmem [shape: bf16[2304,256], index: 1, kind: input, shape index: {}]   ;;  %s1218_s2 = inlined_call_operand.vmem [shape: f32[1,256], index: 2, kind: input, shape index: {}]   ;;  %s1219_s3 = inlined_call_operand.vmem [shape: f32[1,256], index: 3, kind: input, shape index: {}]   ;;  %s1220_s4 = inlined_call_operand.vmem [shape: bf16[8,256], index: 4, kind: output, shape index: {}]  }
   0x1   :  { %s1118_s17 = smov 0  }
   0x2 LB: > { %s26_s18 = sadd.s32 1, %s1081_s16  ;;  %p898_p0 = scmp.ge.s32.totalorder %s1085_s17, 1  ;;  %s1085_s17 = sphi %s1118_s17, %s14_s17   ;;  %s1081_s16 = sphi %s1116_s16, %s1222_s16   ;;  %s1077_s15 = sphi %s1114_s15, %s1221_s15  }
   0x3   : > { %p27_p1 = scmp.ge.s32.totalorder %s26_s18, 6  ;;  %p229_p2 = scmp.lt.s32.totalorder %s1085_s17, 7 }
   0x5   : > { %s1224_s18 = smov (%p27_p1, %s26_s18), 0  ;;  %p230_p3 = pnand %p898_p0, %p229_p2 }
   0x6   : > { %s281_s19 = smul.u32 (!%p230_p3), 3, %s1077_s15  ;;  %p902_p6 = scmp.ne.s32.totalorder (!%p230_p3), %s1077_s15, 0 }
   0x7   : > { %233 = sbr.rel (%p230_p3) target bundleno = 323 (0x143), region = 36 }
   0x8   : > { %s291_s20 = smul.u32 (!%p230_p3), 48, %s1077_s15  ;;  %p284_p4 = scmp.lt.s32.totalorder (!%p230_p3), %s281_s19, 17 }
   0xa   : > { %p293_p5 = scmp.lt.s32.totalorder (!%p230_p3), %s291_s20, 287 }
   0xe   : > { %s1226_s19 = smov (!%p284_p4, %s281_s19), 17  ;;  %s1228_s20 = smov (!%p293_p5, %s291_s20), 287 }
   0xf   : > { %s899_s21 = sshll.u32 %s1226_s19, 2  ;;  %s960_s25 = sshll.u32 %s1228_s20, 3  ;;  %v1087_v0 = vmov (!%p902_p6), 0.0  }
  0x10   : > { %s1139_s24 = scalar_lea.vmem %s1216_s0, %s899_s21  ;;  %s1144_s28 = scalar_lea.vmem %s1217_s1, %s960_s25  ;;  %328 = vst [vmem:[#allocation2] sm:$0xff] (!%p902_p6), %v1087_v0  ;;  %329 = vst [vmem:[#allocation2 + $0x8] sm:$0xff] (!%p902_p6), %v1087_v0 }
  0x11   : > { %327 = sbr.rel (%p902_p6) target bundleno = 24 (0x18), region = 40 }
  0x18 PF: > { %v988_v1 = vld [vmem:[%s1144_s28 + $0x4] ss:$8 sps:$4 sm:$0xff]   ;;  %v990_v2 = vld [vmem:[%s1144_s28] ss:$8 sps:$4 sm:$0xff]   ;;  %v1088_v3 = vmov 0   ;;  %p954_p7 = scmp.ne.s32.totalorder %s1077_s15, 5 }
  0x19   : > { %706 = vmatprep.mubr.bf16.mxu1 %v1088_v3  ;;  %633 = vmatprep.subr.bf16.mxu0 %v988_v1  ;;  %v991_v4 = vld [vmem:[%s1144_s28 + $0x14] ss:$8 sps:$4 sm:$0xff]   ;;  %v993_v5 = vld [vmem:[%s1144_s28 + $0x10] ss:$8 sps:$4 sm:$0xff]   ;;  %v994_v6 = vld [vmem:[%s1144_s28 + $0x24] ss:$8 sps:$4 sm:$0xff]  }
  0x1a   : > { %634 = vmatpush1.bf16.msra.mxu0 %v990_v2  ;;  %v996_v7 = vld [vmem:[%s1144_s28 + $0x20] ss:$8 sps:$4 sm:$0xff]   ;;  %v997_v8 = vld [vmem:[%s1144_s28 + $0x34] ss:$8 sps:$4 sm:$0xff]   ;;  %v999_v9 = vld [vmem:[%s1144_s28 + $0x30] ss:$8 sps:$4 sm:$0xff]  }
  0x1b   : > { %635 = vmatprep.subr.bf16.mxu0 %v991_v4  ;;  %v1012_v10 = vld [vmem:[%s1144_s28 + $0x104] ss:$8 sps:$4 sm:$0xff]   ;;  %v1014_v11 = vld [vmem:[%s1144_s28 + $0x100] ss:$8 sps:$4 sm:$0xff]   ;;  %v1018_v13 = vld [vmem:[%s1144_s28 + $0x114] ss:$8 sps:$4 sm:$0xff]   ;;  %v727_v4 = vlaneseq (!%p954_p7) }
  0x1c   : > { %v1000_v12 = vld [vmem:[%s1144_s28 + $0x44] ss:$8 sps:$4 sm:$0xff]   ;;  %674 = vmatprep.subr.bf16.mxu1 %v1012_v10  ;;  %v1020_v14 = vld [vmem:[%s1144_s28 + $0x110] ss:$8 sps:$4 sm:$0xff]   ;;  %v1002_v15 = vld [vmem:[%s1144_s28 + $0x40] ss:$8 sps:$4 sm:$0xff]  }
  0x1d   : > { %675 = vmatpush1.bf16.msra.mxu1 %v1014_v11  ;;  %v1003_v16 = vld [vmem:[%s1144_s28 + $0x54] ss:$8 sps:$4 sm:$0xff]   ;;  %v1024_v17 = vld [vmem:[%s1144_s28 + $0x124] ss:$8 sps:$4 sm:$0xff]   ;;  %v1026_v18 = vld [vmem:[%s1144_s28 + $0x120] ss:$8 sps:$4 sm:$0xff]  }
  0x1e   : > { %636 = vmatpush1.bf16.msra.mxu0 %v993_v5  ;;  %676 = vmatprep.subr.bf16.mxu1 %v1018_v13  ;;  %v1005_v19 = vld [vmem:[%s1144_s28 + $0x50] ss:$8 sps:$4 sm:$0xff]   ;;  %v1030_v20 = vld [vmem:[%s1144_s28 + $0x134] ss:$8 sps:$4 sm:$0xff]   ;;  %v1006_v21 = vld [vmem:[%s1144_s28 + $0x64] ss:$8 sps:$4 sm:$0xff]  }
  0x1f   : > { %637 = vmatprep.subr.bf16.mxu0 %v994_v6  ;;  %v1032_v22 = vld [vmem:[%s1144_s28 + $0x130] ss:$8 sps:$4 sm:$0xff]   ;;  %v1008_v23 = vld [vmem:[%s1144_s28 + $0x60] ss:$8 sps:$4 sm:$0xff]   ;;  %v1036_v24 = vld [vmem:[%s1144_s28 + $0x144] ss:$8 sps:$4 sm:$0xff]  }
  0x20   : > { %v1009_v25 = vld [vmem:[%s1144_s28 + $0x74] ss:$8 sps:$4 sm:$0xff]   ;;  %v1038_v26 = vld [vmem:[%s1144_s28 + $0x140] ss:$8 sps:$4 sm:$0xff]   ;;  %v1011_v27 = vld [vmem:[%s1144_s28 + $0x70] ss:$8 sps:$4 sm:$0xff]  }
  0x21   : > { %677 = vmatpush1.bf16.msra.mxu1 %v1020_v14  ;;  %v1042_v28 = vld [vmem:[%s1144_s28 + $0x154] ss:$8 sps:$4 sm:$0xff]   ;;  %v1015_v29 = vld [vmem:[%s1144_s28 + $0x84] ss:$8 sps:$4 sm:$0xff]   ;;  %v1044_v30 = vld [vmem:[%s1144_s28 + $0x150] ss:$8 sps:$4 sm:$0xff]  }
  0x22   : > { %638 = vmatpush1.bf16.msra.mxu0 %v996_v7  ;;  %678 = vmatprep.subr.bf16.mxu1 %v1024_v17  ;;  %v1017_v31 = vld [vmem:[%s1144_s28 + $0x80] ss:$8 sps:$4 sm:$0xff]   ;;  %v1048_v32 = vld [vmem:[%s1144_s28 + $0x164] ss:$8 sps:$4 sm:$0xff]   ;;  %v1021_v33 = vld [vmem:[%s1144_s28 + $0x94] ss:$8 sps:$4 sm:$0xff]  }
  0x23   : > { %639 = vmatprep.subr.bf16.mxu0 %v997_v8  ;;  %v332_v34 = vld [vmem:[%s1139_s24] sm:$0xff]  ;;  %v1023_v37 = vld [vmem:[%s1144_s28 + $0x90] ss:$8 sps:$4 sm:$0xff]   ;;  %v1054_v38 = vld [vmem:[%s1144_s28 + $0x174] ss:$8 sps:$4 sm:$0xff]   ;;  %v728_v5 = vshrl.u32 (!%p954_p7), %v727_v4, 7 }
  0x24   : > { %v904_v35 = vcombine.high %v332_v34, %v332_v34  ;;  %v1050_v36 = vld [vmem:[%s1144_s28 + $0x160] ss:$8 sps:$4 sm:$0xff]   ;;  %v1027_v39 = vld [vmem:[%s1144_s28 + $0xa4] ss:$8 sps:$4 sm:$0xff]   ;;  %v1056_v40 = vld [vmem:[%s1144_s28 + $0x170] ss:$8 sps:$4 sm:$0xff]   ;;  %v903_v53 = vcombine.low %v332_v34, %v332_v34 }
  0x25   : > { %679 = vmatpush1.bf16.msra.mxu1 %v1026_v18  ;;  %v1029_v41 = vld [vmem:[%s1144_s28 + $0xa0] ss:$8 sps:$4 sm:$0xff]   ;;  %v1033_v42 = vld [vmem:[%s1144_s28 + $0xb4] ss:$8 sps:$4 sm:$0xff]   ;;  %v1035_v44 = vld [vmem:[%s1144_s28 + $0xb0] ss:$8 sps:$4 sm:$0xff]  }
  0x26   : > { %640 = vmatpush1.bf16.msra.mxu0 %v999_v9  ;;  %680 = vmatprep.subr.bf16.mxu1 %v1030_v20  ;;  %v1060_v43 = vld [vmem:[%s1139_s24 + $0x8] ss:$0 sps:$4 sm:$0xff]   ;;  %v1039_v45 = vld [vmem:[%s1144_s28 + $0xc4] ss:$8 sps:$4 sm:$0xff]   ;;  %v1045_v47 = vld [vmem:[%s1144_s28 + $0xd4] ss:$8 sps:$4 sm:$0xff]  }
  0x27   : > { %641 = vmatprep.subr.bf16.mxu0 %v1000_v12  ;;  %665 = vmatprep.mubr.bf16.mxu0 %v904_v35  ;;  %v1041_v46 = vld [vmem:[%s1144_s28 + $0xc0] ss:$8 sps:$4 sm:$0xff]   ;;  %v1047_v48 = vld [vmem:[%s1144_s28 + $0xd0] ss:$8 sps:$4 sm:$0xff]   ;;  %v1051_v49 = vld [vmem:[%s1144_s28 + $0xe4] ss:$8 sps:$4 sm:$0xff]  }
  0x28   : > { %v1053_v50 = vld [vmem:[%s1144_s28 + $0xe0] ss:$8 sps:$4 sm:$0xff]   ;;  %v1057_v51 = vld [vmem:[%s1144_s28 + $0xf4] ss:$8 sps:$4 sm:$0xff]   ;;  %v1059_v52 = vld [vmem:[%s1144_s28 + $0xf0] ss:$8 sps:$4 sm:$0xff]  }
  0x29   : > { %681 = vmatpush1.bf16.msra.mxu1 %v1032_v22  ;;  %v330_v58 = vld [vmem:[#allocation2] sm:$0xff]  ;;  %v331_v61 = vld [vmem:[#allocation2 + $0x8] sm:$0xff]  ;;  %v729_v8 = vsub.s32 (!%p954_p7), 0, %v728_v5  ;;  %v733_v9 = vsub.s32 (!%p954_p7), 1, %v728_v5 }
  0x2a   : > { %642 = vmatpush1.bf16.msra.mxu0 %v1002_v15  ;;  %682 = vmatprep.subr.bf16.mxu1 %v1036_v24  ;;  %v725_v6 = vld [vmem:[%s1218_s2] sm:$0x3] (!%p954_p7) }
  0x2b   : > { %643 = vmatprep.subr.bf16.mxu0 %v1003_v16  ;;  %v739_v7 = vld [vmem:[%s1219_s3] sm:$0x3] (!%p954_p7)  ;;  %v730_v12 = vrot.slane (!%p954_p7), %v725_v6, %v729_v8  ;;  %v734_v13 = vrot.slane (!%p954_p7), %v725_v6, %v733_v9 }
  0x2c   : > { %v744_v14 = vrot.slane (!%p954_p7), %v739_v7, %v729_v8  ;;  %v748_v15 = vrot.slane (!%p954_p7), %v739_v7, %v733_v9 }
  0x2d   : > { %683 = vmatpush1.bf16.msra.mxu1 %v1038_v26 }
  0x2e   : > { %644 = vmatpush1.bf16.msra.mxu0 %v1005_v19  ;;  %684 = vmatprep.subr.bf16.mxu1 %v1042_v28 }
  0x2f   : > { %645 = vmatprep.subr.bf16.mxu0 %v1006_v21 }
  0x31   : > { %685 = vmatpush1.bf16.msra.mxu1 %v1044_v30 }
  0x32   : > { %646 = vmatpush1.bf16.msra.mxu0 %v1008_v23  ;;  %686 = vmatprep.subr.bf16.mxu1 %v1048_v32 }
  0x33   : > { %647 = vmatprep.subr.bf16.mxu0 %v1009_v25 }
  0x35   : > { %687 = vmatpush1.bf16.msra.mxu1 %v1050_v36 }
  0x36   : > { %648 = vmatpush1.bf16.msra.mxu0 %v1011_v27  ;;  %688 = vmatprep.subr.bf16.mxu1 %v1054_v38 }
  0x37   : > { %649 = vmatprep.subr.bf16.mxu0 %v1015_v29 }
  0x39   : > { %689 = vmatpush1.bf16.msra.mxu1 %v1056_v40 }
  0x3a   : > { %650 = vmatpush1.bf16.msra.mxu0 %v1017_v31 }
  0x3b   : > { %651 = vmatprep.subr.bf16.mxu0 %v1021_v33 }
  0x3c   : > { %707 = vmatmul.mubr.bf16.vlgmr.msra.gmra.mrb[0].mxu1 %v1060_v43 }
  0x3e   : > { %652 = vmatpush1.bf16.msra.mxu0 %v1023_v37 }
  0x3f   : > { %653 = vmatprep.subr.bf16.mxu0 %v1027_v39 }
  0x42   : > { %654 = vmatpush1.bf16.msra.mxu0 %v1029_v41 }
  0x43   : > { %655 = vmatprep.subr.bf16.mxu0 %v1033_v42 }
  0x46   : > { %656 = vmatpush1.bf16.msra.mxu0 %v1035_v44 }
  0x47   : > { %657 = vmatprep.subr.bf16.mxu0 %v1039_v45 }
  0x4a   : > { %658 = vmatpush1.bf16.msra.mxu0 %v1041_v46 }
  0x4b   : > { %659 = vmatprep.subr.bf16.mxu0 %v1045_v47 }
  0x4e   : > { %660 = vmatpush1.bf16.msra.mxu0 %v1047_v48 }
  0x4f   : > { %661 = vmatprep.subr.bf16.mxu0 %v1051_v49 }
  0x52   : > { %662 = vmatpush1.bf16.msra.mxu0 %v1053_v50 }
  0x53   : > { %663 = vmatprep.subr.bf16.mxu0 %v1057_v51 }
  0x56   : > { %664 = vmatpush1.bf16.msra.mxu0 %v1059_v52 }
  0x59   : > { %666 = vmatmul.mubr.bf16.vlgmr.msra.gmra.mrb[0].mxu0 %v903_v53 }
 0x10f   : > { %v708_v54 = vpop.f32.mrb[0].mxu1 }
 0x110   : > { %v710_v55 = vpop.f32.mrb[1].mxu1 }
 0x111   : > { %v712_v56 = vpop.f32.mrb[2].mxu1 }
 0x112   : > { %v713_v57 = vpop.f32.mrb[3].mxu1 }
 0x12c   : > { %v667_v59 = vpop.f32.mrb[0].mxu0  ;;  %722 = sbr.rel (%p954_p7) target bundleno = 323 (0x143), region = 44 }
 0x12d   : > { %v709_v60 = vadd.f32 %v708_v54, %v667_v59  ;;  %v669_v62 = vpop.f32.mrb[1].mxu0 }
 0x12e   : > { %v711_v63 = vadd.f32 %v710_v55, %v669_v62  ;;  %v671_v0 = vpop.f32.mrb[2].mxu0 }
 0x12f   : > { %v715_v1 = vadd.f32 %v709_v60, %v330_v58  ;;  %v672_v2 = vpop.f32.mrb[3].mxu0 }
 0x130   : > { %v716_v3 = vadd.f32 %v711_v63, %v331_v61 }
 0x131   : > { %717 = vst [vmem:[#allocation2] sm:$0xff] %v715_v1 }
 0x132   : > { %718 = vst [vmem:[#allocation2 + $0x8] sm:$0xff] %v716_v3 }
 0x138   : > { %v723_v10 = vld [vmem:[#allocation2] sm:$0xff] }
 0x139   : > { %v724_v11 = vld [vmem:[#allocation2 + $0x8] sm:$0xff]  ;;  %v737_v16 = vmul.f32 %v730_v12, %v723_v10 }
 0x13a   : > { %v738_v17 = vmul.f32 %v734_v13, %v724_v11 }
 0x13b   : > { %v751_v18 = vadd.f32 %v744_v14, %v737_v16 }
 0x13c   : > { %v752_v19 = vadd.f32 %v748_v15, %v738_v17 }
 0x13d   : > { %v753_v20 = vmax.f32 %v751_v18, 0.0 }
 0x13e   : > { %v754_v21 = vmax.f32 %v752_v19, 0.0 }
 0x140   : > { %v961_v22 = vpack.c.bf16 %v754_v21, %v753_v20 }
 0x142   : > { %763 = vst [vmem:[%s1220_s4] sm:$0xff] %v961_v22 }
 0x143 PF: > { %s14_s17 = sadd.s32 1, %s1085_s17   ;;  %s1221_s15 = smov %s1081_s16 }
 0x144   : > { %p11_p8 = scmp.ge.s32.totalorder %s14_s17, 8   ;;  %s1222_s16 = smov %s1224_s18 }
 0x146   :  { %13 = sbr.rel (!%p11_p8) target bundleno = 2 (0x2), region = 83 }

// kernel: cnn_network_forward.40
= control target key start
LH: loop header
LB: loop body
LE: loop exit
PB: predicated region body
PF: predicated region fallthrough
CT: control target
= control target key end

     0   :  { %s1150_s15 = smov 0   ;;  %s1152_s16 = smov 0   ;;  %s1347_s0 = inlined_call_operand.vmem [shape: bf16[2,256], index: 0, kind: input, shape index: {}]   ;;  %s1348_s1 = inlined_call_operand.vmem [shape: bf16[256,512], index: 1, kind: input, shape index: {}]   ;;  %s1349_s2 = inlined_call_operand.vmem [shape: f32[1,512], index: 2, kind: input, shape index: {}]   ;;  %s1350_s3 = inlined_call_operand.vmem [shape: f32[1,512], index: 3, kind: input, shape index: {}]   ;;  %s1351_s4 = inlined_call_operand.vmem [shape: bf16[2,512], index: 4, kind: output, shape index: {}]  }
   0x1   :  { %s1154_s17 = smov 0   ;;  %s1156_s18 = smov 0  }
   0x2   :  { %s1158_s19 = smov 0  }
   0x3 LB: > { %s29_s20 = sadd.s32 1, %s1116_s18  ;;  %p77_p1 = scmp.ne.s32.totalorder %s1108_s16, %s1104_s15  ;;  %s1120_s19 = sphi %s1158_s19, %s14_s19   ;;  %s1116_s18 = sphi %s1156_s18, %s1355_s18   ;;  %s1112_s17 = sphi %s1154_s17, %s1354_s17   ;;  %s1108_s16 = sphi %s1152_s16, %s1353_s16   ;;  %s1104_s15 = sphi %s1150_s15, %s1352_s15  }
   0x4   : > { %p31_p0 = scmp.ge.s32.totalorder %s29_s20, 2  ;;  %p78_p2 = scmp.eq.s32.totalorder %s1120_s19, 0 }
   0x5   : > { %s70_s22 = sadd.s32 1, %s1108_s16  ;;  %p944_p5 = scmp.ge.s32.totalorder %s1120_s19, 2 }
   0x6   : > { %s1357_s20 = smov (%p31_p0, %s29_s20), 0  ;;  %p79_p3 = por %p78_p2, %p77_p1 }
   0x7   : > { %s66_s21 = ssub.s32 %s1116_s18, %s1357_s20  ;;  %195 = sbr.rel (%p944_p5) target bundleno = 34 (0x22), region = 20 }
   0x8   : > { %p68_p4 = scmp.eq.s32.totalorder %s66_s21, 0 }
   0xa   : > { %s1185_s23 = scalar_select %p68_p4, %s1108_s16, %s70_s22  }
   0xe   : > { %198 = sbr.rel (!%p79_p3) target bundleno = 34 (0x22), region = 24  ;;  %s200_s24 = sand.u32 (%p79_p3), 1, %s1108_s16  }
   0xf   : > { %s990_s25 = sshll.u32 (%p79_p3), %s1116_s18, 3  ;;  %s945_s26 = sshll.u32 (%p79_p3), %s200_s24, 8 }
  0x10   : > { %s1193_s29 = scalar_lea.vmem (%p79_p3), %s1348_s1, %s990_s25  ;;  %s1198_s30 = scalar_lea.vmem (%p79_p3), [#allocation3], %s945_s26 }
  0x11   : > { %v298_v0 = vld [vmem:[%s1193_s29] sm:$0xff] (%p79_p3)  ;;  %v300_v1 = vld [vmem:[%s1193_s29 + $0x10] sm:$0xff] (%p79_p3) }
  0x12   : > { %v302_v2 = vld [vmem:[%s1193_s29 + $0x20] sm:$0xff] (%p79_p3)  ;;  %299 = vst [vmem:[%s1198_s30] sm:$0xff] (%p79_p3), %v298_v0  ;;  %301 = vst [vmem:[%s1198_s30 + $0x8] sm:$0xff] (%p79_p3), %v300_v1  ;;  %v304_v3 = vld [vmem:[%s1193_s29 + $0x30] sm:$0xff] (%p79_p3) }
  0x13   : > { %303 = vst [vmem:[%s1198_s30 + $0x10] sm:$0xff] (%p79_p3), %v302_v2  ;;  %v306_v4 = vld [vmem:[%s1193_s29 + $0x40] sm:$0xff] (%p79_p3)  ;;  %v308_v5 = vld [vmem:[%s1193_s29 + $0x50] sm:$0xff] (%p79_p3)  ;;  %305 = vst [vmem:[%s1198_s30 + $0x18] sm:$0xff] (%p79_p3), %v304_v3 }
  0x14   : > { %307 = vst [vmem:[%s1198_s30 + $0x20] sm:$0xff] (%p79_p3), %v306_v4  ;;  %309 = vst [vmem:[%s1198_s30 + $0x28] sm:$0xff] (%p79_p3), %v308_v5  ;;  %v310_v6 = vld [vmem:[%s1193_s29 + $0x60] sm:$0xff] (%p79_p3)  ;;  %v312_v7 = vld [vmem:[%s1193_s29 + $0x70] sm:$0xff] (%p79_p3) }
  0x15   : > { %v314_v8 = vld [vmem:[%s1193_s29 + $0x80] sm:$0xff]  ;;  %311 = vst [vmem:[%s1198_s30 + $0x30] sm:$0xff] %v310_v6  ;;  %313 = vst [vmem:[%s1198_s30 + $0x38] sm:$0xff] %v312_v7  ;;  %v316_v9 = vld [vmem:[%s1193_s29 + $0x90] sm:$0xff] }
  0x16   : > { %315 = vst [vmem:[%s1198_s30 + $0x40] sm:$0xff] %v314_v8  ;;  %v318_v10 = vld [vmem:[%s1193_s29 + $0xa0] sm:$0xff]  ;;  %v320_v11 = vld [vmem:[%s1193_s29 + $0xb0] sm:$0xff]  ;;  %317 = vst [vmem:[%s1198_s30 + $0x48] sm:$0xff] %v316_v9 }
  0x17   : > { %319 = vst [vmem:[%s1198_s30 + $0x50] sm:$0xff] %v318_v10  ;;  %321 = vst [vmem:[%s1198_s30 + $0x58] sm:$0xff] %v320_v11  ;;  %v322_v12 = vld [vmem:[%s1193_s29 + $0xc0] sm:$0xff]  ;;  %v324_v13 = vld [vmem:[%s1193_s29 + $0xd0] sm:$0xff] }
  0x18   : > { %v326_v14 = vld [vmem:[%s1193_s29 + $0xe0] sm:$0xff]  ;;  %323 = vst [vmem:[%s1198_s30 + $0x60] sm:$0xff] %v322_v12  ;;  %325 = vst [vmem:[%s1198_s30 + $0x68] sm:$0xff] %v324_v13  ;;  %v328_v15 = vld [vmem:[%s1193_s29 + $0xf0] sm:$0xff] }
  0x19   : > { %327 = vst [vmem:[%s1198_s30 + $0x70] sm:$0xff] %v326_v14  ;;  %v330_v16 = vld [vmem:[%s1193_s29 + $0x100] sm:$0xff]  ;;  %v332_v17 = vld [vmem:[%s1193_s29 + $0x110] sm:$0xff]  ;;  %329 = vst [vmem:[%s1198_s30 + $0x78] sm:$0xff] %v328_v15 }
  0x1a   : > { %331 = vst [vmem:[%s1198_s30 + $0x80] sm:$0xff] %v330_v16  ;;  %333 = vst [vmem:[%s1198_s30 + $0x88] sm:$0xff] %v332_v17  ;;  %v334_v18 = vld [vmem:[%s1193_s29 + $0x120] sm:$0xff]  ;;  %v336_v19 = vld [vmem:[%s1193_s29 + $0x130] sm:$0xff] }
  0x1b   : > { %v338_v20 = vld [vmem:[%s1193_s29 + $0x140] sm:$0xff]  ;;  %335 = vst [vmem:[%s1198_s30 + $0x90] sm:$0xff] %v334_v18  ;;  %337 = vst [vmem:[%s1198_s30 + $0x98] sm:$0xff] %v336_v19  ;;  %v340_v21 = vld [vmem:[%s1193_s29 + $0x150] sm:$0xff] }
  0x1c   : > { %339 = vst [vmem:[%s1198_s30 + $0xa0] sm:$0xff] %v338_v20  ;;  %v342_v22 = vld [vmem:[%s1193_s29 + $0x160] sm:$0xff]  ;;  %v344_v23 = vld [vmem:[%s1193_s29 + $0x170] sm:$0xff]  ;;  %341 = vst [vmem:[%s1198_s30 + $0xa8] sm:$0xff] %v340_v21 }
  0x1d   : > { %343 = vst [vmem:[%s1198_s30 + $0xb0] sm:$0xff] %v342_v22  ;;  %345 = vst [vmem:[%s1198_s30 + $0xb8] sm:$0xff] %v344_v23  ;;  %v346_v24 = vld [vmem:[%s1193_s29 + $0x180] sm:$0xff]  ;;  %v348_v25 = vld [vmem:[%s1193_s29 + $0x190] sm:$0xff] }
  0x1e   : > { %v350_v26 = vld [vmem:[%s1193_s29 + $0x1a0] sm:$0xff]  ;;  %347 = vst [vmem:[%s1198_s30 + $0xc0] sm:$0xff] %v346_v24  ;;  %349 = vst [vmem:[%s1198_s30 + $0xc8] sm:$0xff] %v348_v25  ;;  %v352_v27 = vld [vmem:[%s1193_s29 + $0x1b0] sm:$0xff] }
  0x1f   : > { %351 = vst [vmem:[%s1198_s30 + $0xd0] sm:$0xff] %v350_v26  ;;  %v354_v28 = vld [vmem:[%s1193_s29 + $0x1c0] sm:$0xff]  ;;  %v356_v29 = vld [vmem:[%s1193_s29 + $0x1d0] sm:$0xff]  ;;  %353 = vst [vmem:[%s1198_s30 + $0xd8] sm:$0xff] %v352_v27 }
  0x20   : > { %355 = vst [vmem:[%s1198_s30 + $0xe0] sm:$0xff] %v354_v28  ;;  %357 = vst [vmem:[%s1198_s30 + $0xe8] sm:$0xff] %v356_v29  ;;  %v358_v30 = vld [vmem:[%s1193_s29 + $0x1e0] sm:$0xff]  ;;  %v360_v31 = vld [vmem:[%s1193_s29 + $0x1f0] sm:$0xff] }
  0x21   : > { %359 = vst [vmem:[%s1198_s30 + $0xf0] sm:$0xff] %v358_v30  ;;  %361 = vst [vmem:[%s1198_s30 + $0xf8] sm:$0xff] %v360_v31 }
  0x22 PF: > { %p948_p6 = scmp.ge.s32.totalorder %s1120_s19, 1  ;;  %p382_p7 = scmp.lt.s32.totalorder %s1120_s19, 3 }
  0x24   : > { %p383_p8 = pnand %p948_p6, %p382_p7 }
  0x25   : > { %s389_s5 = sand.u32 (!%p383_p8), 1, %s1104_s15   ;;  %v1267_v32 = vld.sshfl [vmem:[%s1347_s0] sm:$0x11 pattern:$0x75316420] (!%p383_p8)  ;;  %v514_v33 = vlaneseq (!%p383_p8)  ;;  %v1123_v10 = vmov (!%p383_p8), 0.0  }
  0x26   : > { %386 = sbr.rel (%p383_p8) target bundleno = 345 (0x159), region = 70  ;;  %s949_s8 = sshll.u32 (!%p383_p8), %s389_s5, 8  ;;  %v1122_v34 = vmov (!%p383_p8), 1966171168   ;;  %v510_v39 = vcombine.high (!%p383_p8), %v1267_v32, %v1267_v32  ;;  %467 = vst [vmem:[#allocation2] sm:$0xf] (!%p383_p8), %v1123_v10 }
  0x27   : > { %v512_v35 = vunpack.c.l.s4 (!%p383_p8), %v1122_v34  ;;  %v1269_v36 = vshrl.u32 (!%p383_p8), %v514_v33, 7  ;;  %s1271_s9 = scalar_lea.vmem (!%p383_p8), [#allocation3], %s949_s8  ;;  %s950_s10 = sshll.u32 (!%p383_p8), %s1112_s17, 1  ;;  %v1124_v11 = vmov (!%p383_p8), 1983009808  }
  0x28   : > { %v1034_v37 = vld [vmem:[%s1271_s9 + $0x4] ss:$8 sps:$4 sm:$0xff] (!%p383_p8)   ;;  %v1036_v38 = vld [vmem:[%s1271_s9] ss:$8 sps:$4 sm:$0xff] (!%p383_p8)   ;;  %v1037_v41 = vld [vmem:[%s1271_s9 + $0x14] ss:$8 sps:$4 sm:$0xff] (!%p383_p8)   ;;  %v732_v12 = vunpack.c.l.s4 (!%p383_p8), %v1124_v11 }
  0x29   : > { %v513_v40 = vunpack.c.0.s8 (!%p383_p8), %v512_v35  ;;  %687 = vmatprep.subr.bf16.mxu0 (!%p383_p8), %v1034_v37  ;;  %v1039_v42 = vld [vmem:[%s1271_s9 + $0x10] ss:$8 sps:$4 sm:$0xff] (!%p383_p8)   ;;  %v1040_v44 = vld [vmem:[%s1271_s9 + $0x24] ss:$8 sps:$4 sm:$0xff] (!%p383_p8)   ;;  %v1042_v46 = vld [vmem:[%s1271_s9 + $0x20] ss:$8 sps:$4 sm:$0xff] (!%p383_p8)  }
  0x2a   : > { %688 = vmatpush1.bf16.msra.mxu0 (!%p383_p8), %v1036_v38  ;;  %v1043_v47 = vld [vmem:[%s1271_s9 + $0x34] ss:$8 sps:$4 sm:$0xff] (!%p383_p8)   ;;  %v1045_v48 = vld [vmem:[%s1271_s9 + $0x30] ss:$8 sps:$4 sm:$0xff] (!%p383_p8)   ;;  %v1046_v49 = vld [vmem:[%s1271_s9 + $0x44] ss:$8 sps:$4 sm:$0xff] (!%p383_p8)   ;;  %v733_v13 = vunpack.c.0.s8 (!%p383_p8), %v732_v12 }
  0x2b   : > { %v1280_v43 = vsub.s32 (!%p383_p8), %v513_v40, %v1269_v36  ;;  %689 = vmatprep.subr.bf16.mxu0 (!%p383_p8), %v1037_v41  ;;  %v1048_v50 = vld [vmem:[%s1271_s9 + $0x40] ss:$8 sps:$4 sm:$0xff] (!%p383_p8)   ;;  %v1049_v51 = vld [vmem:[%s1271_s9 + $0x54] ss:$8 sps:$4 sm:$0xff] (!%p383_p8)   ;;  %v1051_v52 = vld [vmem:[%s1271_s9 + $0x50] ss:$8 sps:$4 sm:$0xff] (!%p383_p8)  }
  0x2c   : > { %v1052_v53 = vld [vmem:[%s1271_s9 + $0x64] ss:$8 sps:$4 sm:$0xff] (!%p383_p8)   ;;  %v1054_v54 = vld [vmem:[%s1271_s9 + $0x60] ss:$8 sps:$4 sm:$0xff] (!%p383_p8)   ;;  %v1055_v55 = vld [vmem:[%s1271_s9 + $0x74] ss:$8 sps:$4 sm:$0xff] (!%p383_p8)   ;;  %v736_v17 = vsub.s32 (!%p383_p8), %v733_v13, %v1269_v36 }
  0x2d   : > { %v524_v45 = vrot.slane %v510_v39, %v1280_v43  ;;  %v1057_v56 = vld [vmem:[%s1271_s9 + $0x70] ss:$8 sps:$4 sm:$0xff]   ;;  %v1058_v57 = vld [vmem:[%s1271_s9 + $0x84] ss:$8 sps:$4 sm:$0xff]   ;;  %v1060_v58 = vld [vmem:[%s1271_s9 + $0x80] ss:$8 sps:$4 sm:$0xff]   ;;  %v517_v9 = vrot.slane %v1267_v32, %v1280_v43 }
  0x2e   : > { %690 = vmatpush1.bf16.msra.mxu0 %v1039_v42  ;;  %v1061_v59 = vld [vmem:[%s1271_s9 + $0x94] ss:$8 sps:$4 sm:$0xff]   ;;  %v1063_v60 = vld [vmem:[%s1271_s9 + $0x90] ss:$8 sps:$4 sm:$0xff]   ;;  %v1064_v61 = vld [vmem:[%s1271_s9 + $0xa4] ss:$8 sps:$4 sm:$0xff]  }
  0x2f   : > { %719 = vmatprep.mubr.bf16.mxu0 %v524_v45  ;;  %691 = vmatprep.subr.bf16.mxu0 %v1040_v44  ;;  %v1066_v62 = vld [vmem:[%s1271_s9 + $0xa0] ss:$8 sps:$4 sm:$0xff]   ;;  %v1067_v63 = vld [vmem:[%s1271_s9 + $0xb4] ss:$8 sps:$4 sm:$0xff]   ;;  %v1069_v0 = vld [vmem:[%s1271_s9 + $0xb0] ss:$8 sps:$4 sm:$0xff]  }
  0x30   : > { %v1070_v1 = vld [vmem:[%s1271_s9 + $0xc4] ss:$8 sps:$4 sm:$0xff]   ;;  %v1072_v2 = vld [vmem:[%s1271_s9 + $0xc0] ss:$8 sps:$4 sm:$0xff]   ;;  %v1073_v3 = vld [vmem:[%s1271_s9 + $0xd4] ss:$8 sps:$4 sm:$0xff]  }
  0x31   : > { %v1075_v4 = vld [vmem:[%s1271_s9 + $0xd0] ss:$8 sps:$4 sm:$0xff]   ;;  %v1076_v5 = vld [vmem:[%s1271_s9 + $0xe4] ss:$8 sps:$4 sm:$0xff]   ;;  %v1078_v6 = vld [vmem:[%s1271_s9 + $0xe0] ss:$8 sps:$4 sm:$0xff]  }
  0x32   : > { %692 = vmatpush1.bf16.msra.mxu0 %v1042_v46  ;;  %v1079_v7 = vld [vmem:[%s1271_s9 + $0xf4] ss:$8 sps:$4 sm:$0xff]   ;;  %v1081_v8 = vld [vmem:[%s1271_s9 + $0xf0] ss:$8 sps:$4 sm:$0xff]   ;;  %p445_p9 = scmp.lt.s32.totalorder %s950_s10, 3  ;;  %v749_v14 = vsub.s32 0, %v1269_v36 }
  0x33   : > { %693 = vmatprep.subr.bf16.mxu0 %v1043_v47  ;;  %v753_v15 = vsub.s32 1, %v1269_v36  ;;  %v468_v22 = vld [vmem:[#allocation2] sm:$0xf] }
  0x34   : > { %s1359_s10 = smov (!%p445_p9, %s950_s10), 3 }
  0x35   : > { %s447_s13 = scalar_lea.vmem %s1349_s2, %s1359_s10  ;;  %s452_s17 = scalar_lea.vmem %s1350_s3, %s1359_s10 }
  0x36   : > { %694 = vmatpush1.bf16.msra.mxu0 %v1045_v48  ;;  %v745_v19 = vld [vmem:[%s447_s13] sm:$0x3]  ;;  %s461_s24 = scalar_lea.vmem %s1351_s4, %s1359_s10 }
  0x37   : > { %695 = vmatprep.subr.bf16.mxu0 %v1046_v49  ;;  %v765_v23 = vld [vmem:[%s452_s17] sm:$0x3]  ;;  %v750_v26 = vrot.slane %v745_v19, %v749_v14  ;;  %v754_v27 = vrot.slane %v745_v19, %v753_v15 }
  0x38   : > { %v770_v29 = vrot.slane %v765_v23, %v749_v14  ;;  %v774_v30 = vrot.slane %v765_v23, %v753_v15 }
  0x39   : > { %v755_v31 = vcombine.low %v750_v26, %v754_v27 }
  0x3a   : > { %696 = vmatpush1.bf16.msra.mxu0 %v1048_v50  ;;  %v775_v32 = vcombine.low %v770_v29, %v774_v30 }
  0x3b   : > { %697 = vmatprep.subr.bf16.mxu0 %v1049_v51  ;;  %v762_v33 = vrot.slane %v755_v31, %v736_v17 }
  0x3c   : > { %v782_v34 = vrot.slane %v775_v32, %v736_v17 }
  0x3e   : > { %698 = vmatpush1.bf16.msra.mxu0 %v1051_v52 }
  0x3f   : > { %699 = vmatprep.subr.bf16.mxu0 %v1052_v53 }
  0x42   : > { %700 = vmatpush1.bf16.msra.mxu0 %v1054_v54 }
  0x43   : > { %701 = vmatprep.subr.bf16.mxu0 %v1055_v55 }
  0x46   : > { %702 = vmatpush1.bf16.msra.mxu0 %v1057_v56 }
  0x47   : > { %703 = vmatprep.subr.bf16.mxu0 %v1058_v57 }
  0x4a   : > { %704 = vmatpush1.bf16.msra.mxu0 %v1060_v58 }
  0x4b   : > { %705 = vmatprep.subr.bf16.mxu0 %v1061_v59 }
  0x4e   : > { %706 = vmatpush1.bf16.msra.mxu0 %v1063_v60 }
  0x4f   : > { %707 = vmatprep.subr.bf16.mxu0 %v1064_v61 }
  0x52   : > { %708 = vmatpush1.bf16.msra.mxu0 %v1066_v62 }
  0x53   : > { %709 = vmatprep.subr.bf16.mxu0 %v1067_v63 }
  0x56   : > { %710 = vmatpush1.bf16.msra.mxu0 %v1069_v0 }
  0x57   : > { %711 = vmatprep.subr.bf16.mxu0 %v1070_v1 }
  0x5a   : > { %712 = vmatpush1.bf16.msra.mxu0 %v1072_v2 }
  0x5b   : > { %713 = vmatprep.subr.bf16.mxu0 %v1073_v3 }
  0x5e   : > { %714 = vmatpush1.bf16.msra.mxu0 %v1075_v4 }
  0x5f   : > { %715 = vmatprep.subr.bf16.mxu0 %v1076_v5 }
  0x62   : > { %716 = vmatpush1.bf16.msra.mxu0 %v1078_v6 }
  0x63   : > { %717 = vmatprep.subr.bf16.mxu0 %v1079_v7 }
  0x66   : > { %718 = vmatpush1.bf16.msra.mxu0 %v1081_v8 }
  0x69   : > { %720 = vmatmul.mubr.bf16.vlgmr.msra.gmra.mrb[0].mxu0 %v517_v9 }
 0x13c   : > { %v721_v16 = vpop.f32.mrb[0].mxu0 }
 0x13d   : > { %v723_v18 = vpop.f32.mrb[1].mxu0 }
 0x13e   : > { %v730_v20 = vcombine.low %v721_v16, %v723_v18  ;;  %v725_v21 = vpop.f32.mrb[2].mxu0 }
 0x13f   : > { %v726_v24 = vpop.f32.mrb[3].mxu0 }
 0x140   : > { %v737_v25 = vrot.slane %v730_v20, %v736_v17 }
 0x142   : > { %v739_v28 = vadd.f32 %v737_v25, %v468_v22 }
 0x144   : > { %740 = vst [vmem:[#allocation2] sm:$0xf] %v739_v28 }
 0x14b   : > { %v744_v35 = vld [vmem:[#allocation2] sm:$0xf] }
 0x14c   : > { %v764_v36 = vmul.f32 %v762_v33, %v744_v35 }
 0x14e   : > { %v784_v37 = vadd.f32 %v782_v34, %v764_v36 }
 0x150   : > { %v792_v38 = vrot.slane %v784_v37, %v736_v17 }
 0x152   : > { %v793_v39 = vcombine.high %v792_v38, %v792_v38 }
 0x154   : > { %v986_v40 = vpack.c.bf16 %v793_v39, %v792_v38 }
 0x156   : > { %v807_v41 = vrot.slane %v986_v40, %v1280_v43 }
 0x158   : > { %987 = vst.sshfl [vmem:[%s461_s24] sm:$0x5 pattern:$0x73625140] %v807_v41 }
 0x159 PF: > { %s14_s19 = sadd.s32 1, %s1120_s19   ;;  %s1352_s15 = smov %s1108_s16 }
 0x15a   : > { %p11_p10 = scmp.ge.s32.totalorder %s14_s19, 4   ;;  %s1353_s16 = smov %s1185_s23 }
 0x15b   : > { %s1354_s17 = smov %s1116_s18  ;;  %s1355_s18 = smov %s1357_s20 }
 0x15c   :  { %13 = sbr.rel (!%p11_p10) target bundleno = 3 (0x3), region = 126 }

// kernel: cnn_network_forward.41
= control target key start
LH: loop header
LB: loop body
LE: loop exit
PB: predicated region body
PF: predicated region fallthrough
CT: control target
= control target key end

     0   :  { %s1719_s18 = smov 0   ;;  %s1721_s19 = smov 0   ;;  %s2065_s0 = inlined_call_operand.vmem [shape: bf16[2,4608], index: 0, kind: input, shape index: {}]   ;;  %s2066_s1 = inlined_call_operand.vmem [shape: bf16[4608,512], index: 1, kind: input, shape index: {}]   ;;  %s2067_s2 = inlined_call_operand.vmem [shape: f32[1,512], index: 2, kind: input, shape index: {}]   ;;  %s2068_s3 = inlined_call_operand.vmem [shape: f32[1,512], index: 3, kind: input, shape index: {}]   ;;  %s2069_s4 = inlined_call_operand.vmem [shape: bf16[2,512], index: 4, kind: input, shape index: {}]   ;;  %s2070_s5 = inlined_call_operand.vmem [shape: bf16[2,512], index: 5, kind: output, shape index: {}]  }
   0x1   :  { %s1723_s20 = smov 0   ;;  %s1725_s21 = smov 0  }
   0x2   :  { %s1727_s22 = smov 0   ;;  %s1729_s23 = smov 0  }
   0x3   :  { %s1731_s24 = smov 0  }
   0x4 LB: > { %s27_s25 = sadd.s32 1, %s1676_s22  ;;  %s30_s26 = sadd.s32 1, %s1680_s23  ;;  %s1684_s24 = sphi %s1731_s24, %s15_s24   ;;  %s1680_s23 = sphi %s1729_s23, %s2076_s23   ;;  %s1676_s22 = sphi %s1727_s22, %s2075_s22   ;;  %s1672_s21 = sphi %s1725_s21, %s2074_s21   ;;  %s1668_s20 = sphi %s1723_s20, %s2073_s20   ;;  %s1664_s19 = sphi %s1721_s19, %s2072_s19   ;;  %s1660_s18 = sphi %s1719_s18, %s2071_s18  }
   0x5   : > { %p28_p0 = scmp.ge.s32.totalorder %s27_s25, 9  ;;  %p78_p1 = scmp.ne.s32.totalorder %s1664_s19, %s1660_s18 }
   0x6   : > { %p79_p2 = scmp.eq.s32.totalorder %s1684_s24, 0  ;;  %s71_s30 = sadd.s32 1, %s1664_s19 }
   0x7   : > { %s2078_s25 = smov (%p28_p0, %s27_s25), 0  ;;  %s2080_s26 = smov (!%p28_p0, %s30_s26), %s1680_s23 }
   0x8   : > { %p80_p3 = por %p79_p2, %p78_p1  ;;  %p32_p4 = scmp.ge.s32.totalorder %s2080_s26, 2 }
   0x9   : > { %s66_s27 = ssub.s32 %s1676_s22, %s2078_s25  ;;  %p1388_p6 = scmp.ge.s32.totalorder %s1684_s24, 18 }
   0xa   : > { %s2082_s26 = smov (%p32_p4, %s2080_s26), 0 }
   0xb   : > { %s67_s28 = ssub.s32 %s1680_s23, %s2082_s26  ;;  %212 = sbr.rel (%p1388_p6) target bundleno = 57 (0x39), region = 16 }
   0xc   : > { %s68_s29 = sor.u32 %s67_s28, %s66_s27 }
   0xd   : > { %p69_p5 = scmp.eq.s32.totalorder %s68_s29, 0 }
   0xf   : > { %s1770_s6 = scalar_select %p69_p5, %s1664_s19, %s71_s30  }
  0x12   : > { %227 = sbr.rel (!%p80_p3) target bundleno = 57 (0x39), region = 24  ;;  %s229_s7 = sand.u32 (%p80_p3), 1, %s1664_s19  }
  0x13   : > { %s1391_s8 = sshll.u32 (%p80_p3), %s1680_s23, 1  ;;  %s1389_s9 = sshll.u32 (%p80_p3), %s229_s7, 9 }
  0x14   : > { %s1472_s10 = sshll.u32 (%p80_p3), %s1676_s22, 8  ;;  %s1784_s16 = scalar_lea.vmem (%p80_p3), [#allocation3], %s1389_s9 }
  0x15   : > { %s235_s11 = sadd.s32 (%p80_p3), %s1472_s10, %s1391_s8 }
  0x16   : > { %s1393_s12 = sshll.u32 (%p80_p3), %s235_s11, 2 }
  0x17   : > { %s1779_s15 = scalar_lea.vmem (%p80_p3), %s2066_s1, %s1393_s12 }
  0x18   : > { %v391_v0 = vld [vmem:[%s1779_s15] sm:$0xff] (%p80_p3)  ;;  %v393_v1 = vld [vmem:[%s1779_s15 + $0x10] sm:$0xff] (%p80_p3) }
  0x19   : > { %v395_v2 = vld [vmem:[%s1779_s15 + $0x20] sm:$0xff]  ;;  %392 = vst [vmem:[%s1784_s16] sm:$0xff] %v391_v0  ;;  %394 = vst [vmem:[%s1784_s16 + $0x8] sm:$0xff] %v393_v1  ;;  %v397_v3 = vld [vmem:[%s1779_s15 + $0x30] sm:$0xff] }
  0x1a   : > { %396 = vst [vmem:[%s1784_s16 + $0x10] sm:$0xff] %v395_v2  ;;  %v399_v4 = vld [vmem:[%s1779_s15 + $0x40] sm:$0xff]  ;;  %v401_v5 = vld [vmem:[%s1779_s15 + $0x50] sm:$0xff]  ;;  %398 = vst [vmem:[%s1784_s16 + $0x18] sm:$0xff] %v397_v3 }
  0x1b   : > { %400 = vst [vmem:[%s1784_s16 + $0x20] sm:$0xff] %v399_v4  ;;  %402 = vst [vmem:[%s1784_s16 + $0x28] sm:$0xff] %v401_v5  ;;  %v403_v6 = vld [vmem:[%s1779_s15 + $0x60] sm:$0xff]  ;;  %v405_v7 = vld [vmem:[%s1779_s15 + $0x70] sm:$0xff] }
  0x1c   : > { %v407_v8 = vld [vmem:[%s1779_s15 + $0x80] sm:$0xff]  ;;  %404 = vst [vmem:[%s1784_s16 + $0x30] sm:$0xff] %v403_v6  ;;  %406 = vst [vmem:[%s1784_s16 + $0x38] sm:$0xff] %v405_v7  ;;  %v409_v9 = vld [vmem:[%s1779_s15 + $0x90] sm:$0xff] }
  0x1d   : > { %408 = vst [vmem:[%s1784_s16 + $0x40] sm:$0xff] %v407_v8  ;;  %v411_v10 = vld [vmem:[%s1779_s15 + $0xa0] sm:$0xff]  ;;  %v413_v11 = vld [vmem:[%s1779_s15 + $0xb0] sm:$0xff]  ;;  %410 = vst [vmem:[%s1784_s16 + $0x48] sm:$0xff] %v409_v9 }
  0x1e   : > { %412 = vst [vmem:[%s1784_s16 + $0x50] sm:$0xff] %v411_v10  ;;  %414 = vst [vmem:[%s1784_s16 + $0x58] sm:$0xff] %v413_v11  ;;  %v415_v12 = vld [vmem:[%s1779_s15 + $0xc0] sm:$0xff]  ;;  %v417_v13 = vld [vmem:[%s1779_s15 + $0xd0] sm:$0xff] }
  0x1f   : > { %v419_v14 = vld [vmem:[%s1779_s15 + $0xe0] sm:$0xff]  ;;  %416 = vst [vmem:[%s1784_s16 + $0x60] sm:$0xff] %v415_v12  ;;  %418 = vst [vmem:[%s1784_s16 + $0x68] sm:$0xff] %v417_v13  ;;  %v421_v15 = vld [vmem:[%s1779_s15 + $0xf0] sm:$0xff] }
  0x20   : > { %420 = vst [vmem:[%s1784_s16 + $0x70] sm:$0xff] %v419_v14  ;;  %v423_v16 = vld [vmem:[%s1779_s15 + $0x100] sm:$0xff]  ;;  %v425_v17 = vld [vmem:[%s1779_s15 + $0x110] sm:$0xff]  ;;  %422 = vst [vmem:[%s1784_s16 + $0x78] sm:$0xff] %v421_v15 }
  0x21   : > { %424 = vst [vmem:[%s1784_s16 + $0x80] sm:$0xff] %v423_v16  ;;  %426 = vst [vmem:[%s1784_s16 + $0x88] sm:$0xff] %v425_v17  ;;  %v427_v18 = vld [vmem:[%s1779_s15 + $0x120] sm:$0xff]  ;;  %v429_v19 = vld [vmem:[%s1779_s15 + $0x130] sm:$0xff] }
  0x22   : > { %v431_v20 = vld [vmem:[%s1779_s15 + $0x140] sm:$0xff]  ;;  %428 = vst [vmem:[%s1784_s16 + $0x90] sm:$0xff] %v427_v18  ;;  %430 = vst [vmem:[%s1784_s16 + $0x98] sm:$0xff] %v429_v19  ;;  %v433_v21 = vld [vmem:[%s1779_s15 + $0x150] sm:$0xff] }
  0x23   : > { %432 = vst [vmem:[%s1784_s16 + $0xa0] sm:$0xff] %v431_v20  ;;  %v435_v22 = vld [vmem:[%s1779_s15 + $0x160] sm:$0xff]  ;;  %v437_v23 = vld [vmem:[%s1779_s15 + $0x170] sm:$0xff]  ;;  %434 = vst [vmem:[%s1784_s16 + $0xa8] sm:$0xff] %v433_v21 }
  0x24   : > { %436 = vst [vmem:[%s1784_s16 + $0xb0] sm:$0xff] %v435_v22  ;;  %438 = vst [vmem:[%s1784_s16 + $0xb8] sm:$0xff] %v437_v23  ;;  %v439_v24 = vld [vmem:[%s1779_s15 + $0x180] sm:$0xff]  ;;  %v441_v25 = vld [vmem:[%s1779_s15 + $0x190] sm:$0xff] }
  0x25   : > { %v443_v26 = vld [vmem:[%s1779_s15 + $0x1a0] sm:$0xff]  ;;  %440 = vst [vmem:[%s1784_s16 + $0xc0] sm:$0xff] %v439_v24  ;;  %442 = vst [vmem:[%s1784_s16 + $0xc8] sm:$0xff] %v441_v25  ;;  %v445_v27 = vld [vmem:[%s1779_s15 + $0x1b0] sm:$0xff] }
  0x26   : > { %444 = vst [vmem:[%s1784_s16 + $0xd0] sm:$0xff] %v443_v26  ;;  %v447_v28 = vld [vmem:[%s1779_s15 + $0x1c0] sm:$0xff]  ;;  %v449_v29 = vld [vmem:[%s1779_s15 + $0x1d0] sm:$0xff]  ;;  %446 = vst [vmem:[%s1784_s16 + $0xd8] sm:$0xff] %v445_v27 }
  0x27   : > { %448 = vst [vmem:[%s1784_s16 + $0xe0] sm:$0xff] %v447_v28  ;;  %450 = vst [vmem:[%s1784_s16 + $0xe8] sm:$0xff] %v449_v29  ;;  %v451_v30 = vld [vmem:[%s1779_s15 + $0x1e0] sm:$0xff]  ;;  %v453_v31 = vld [vmem:[%s1779_s15 + $0x1f0] sm:$0xff] }
  0x28   : > { %v455_v32 = vld [vmem:[%s1779_s15 + $0x200] sm:$0xff]  ;;  %452 = vst [vmem:[%s1784_s16 + $0xf0] sm:$0xff] %v451_v30  ;;  %454 = vst [vmem:[%s1784_s16 + $0xf8] sm:$0xff] %v453_v31  ;;  %v457_v33 = vld [vmem:[%s1779_s15 + $0x210] sm:$0xff] }
  0x29   : > { %456 = vst [vmem:[%s1784_s16 + $0x100] sm:$0xff] %v455_v32  ;;  %v459_v34 = vld [vmem:[%s1779_s15 + $0x220] sm:$0xff]  ;;  %v461_v35 = vld [vmem:[%s1779_s15 + $0x230] sm:$0xff]  ;;  %458 = vst [vmem:[%s1784_s16 + $0x108] sm:$0xff] %v457_v33 }
  0x2a   : > { %460 = vst [vmem:[%s1784_s16 + $0x110] sm:$0xff] %v459_v34  ;;  %462 = vst [vmem:[%s1784_s16 + $0x118] sm:$0xff] %v461_v35  ;;  %v463_v36 = vld [vmem:[%s1779_s15 + $0x240] sm:$0xff]  ;;  %v465_v37 = vld [vmem:[%s1779_s15 + $0x250] sm:$0xff] }
  0x2b   : > { %v467_v38 = vld [vmem:[%s1779_s15 + $0x260] sm:$0xff]  ;;  %464 = vst [vmem:[%s1784_s16 + $0x120] sm:$0xff] %v463_v36  ;;  %466 = vst [vmem:[%s1784_s16 + $0x128] sm:$0xff] %v465_v37  ;;  %v469_v39 = vld [vmem:[%s1779_s15 + $0x270] sm:$0xff] }
  0x2c   : > { %468 = vst [vmem:[%s1784_s16 + $0x130] sm:$0xff] %v467_v38  ;;  %v471_v40 = vld [vmem:[%s1779_s15 + $0x280] sm:$0xff]  ;;  %v473_v41 = vld [vmem:[%s1779_s15 + $0x290] sm:$0xff]  ;;  %470 = vst [vmem:[%s1784_s16 + $0x138] sm:$0xff] %v469_v39 }
  0x2d   : > { %472 = vst [vmem:[%s1784_s16 + $0x140] sm:$0xff] %v471_v40  ;;  %474 = vst [vmem:[%s1784_s16 + $0x148] sm:$0xff] %v473_v41  ;;  %v475_v42 = vld [vmem:[%s1779_s15 + $0x2a0] sm:$0xff]  ;;  %v477_v43 = vld [vmem:[%s1779_s15 + $0x2b0] sm:$0xff] }
  0x2e   : > { %v479_v44 = vld [vmem:[%s1779_s15 + $0x2c0] sm:$0xff]  ;;  %476 = vst [vmem:[%s1784_s16 + $0x150] sm:$0xff] %v475_v42  ;;  %478 = vst [vmem:[%s1784_s16 + $0x158] sm:$0xff] %v477_v43  ;;  %v481_v45 = vld [vmem:[%s1779_s15 + $0x2d0] sm:$0xff] }
  0x2f   : > { %480 = vst [vmem:[%s1784_s16 + $0x160] sm:$0xff] %v479_v44  ;;  %v483_v46 = vld [vmem:[%s1779_s15 + $0x2e0] sm:$0xff]  ;;  %v485_v47 = vld [vmem:[%s1779_s15 + $0x2f0] sm:$0xff]  ;;  %482 = vst [vmem:[%s1784_s16 + $0x168] sm:$0xff] %v481_v45 }
  0x30   : > { %484 = vst [vmem:[%s1784_s16 + $0x170] sm:$0xff] %v483_v46  ;;  %486 = vst [vmem:[%s1784_s16 + $0x178] sm:$0xff] %v485_v47  ;;  %v487_v48 = vld [vmem:[%s1779_s15 + $0x300] sm:$0xff]  ;;  %v489_v49 = vld [vmem:[%s1779_s15 + $0x310] sm:$0xff] }
  0x31   : > { %v491_v50 = vld [vmem:[%s1779_s15 + $0x320] sm:$0xff]  ;;  %488 = vst [vmem:[%s1784_s16 + $0x180] sm:$0xff] %v487_v48  ;;  %490 = vst [vmem:[%s1784_s16 + $0x188] sm:$0xff] %v489_v49  ;;  %v493_v51 = vld [vmem:[%s1779_s15 + $0x330] sm:$0xff] }
  0x32   : > { %492 = vst [vmem:[%s1784_s16 + $0x190] sm:$0xff] %v491_v50  ;;  %v495_v52 = vld [vmem:[%s1779_s15 + $0x340] sm:$0xff]  ;;  %v497_v53 = vld [vmem:[%s1779_s15 + $0x350] sm:$0xff]  ;;  %494 = vst [vmem:[%s1784_s16 + $0x198] sm:$0xff] %v493_v51 }
  0x33   : > { %496 = vst [vmem:[%s1784_s16 + $0x1a0] sm:$0xff] %v495_v52  ;;  %498 = vst [vmem:[%s1784_s16 + $0x1a8] sm:$0xff] %v497_v53  ;;  %v499_v54 = vld [vmem:[%s1779_s15 + $0x360] sm:$0xff]  ;;  %v501_v55 = vld [vmem:[%s1779_s15 + $0x370] sm:$0xff] }
  0x34   : > { %v503_v56 = vld [vmem:[%s1779_s15 + $0x380] sm:$0xff]  ;;  %500 = vst [vmem:[%s1784_s16 + $0x1b0] sm:$0xff] %v499_v54  ;;  %502 = vst [vmem:[%s1784_s16 + $0x1b8] sm:$0xff] %v501_v55  ;;  %v505_v57 = vld [vmem:[%s1779_s15 + $0x390] sm:$0xff] }
  0x35   : > { %504 = vst [vmem:[%s1784_s16 + $0x1c0] sm:$0xff] %v503_v56  ;;  %v507_v58 = vld [vmem:[%s1779_s15 + $0x3a0] sm:$0xff]  ;;  %v509_v59 = vld [vmem:[%s1779_s15 + $0x3b0] sm:$0xff]  ;;  %506 = vst [vmem:[%s1784_s16 + $0x1c8] sm:$0xff] %v505_v57 }
  0x36   : > { %508 = vst [vmem:[%s1784_s16 + $0x1d0] sm:$0xff] %v507_v58  ;;  %510 = vst [vmem:[%s1784_s16 + $0x1d8] sm:$0xff] %v509_v59  ;;  %v511_v60 = vld [vmem:[%s1779_s15 + $0x3c0] sm:$0xff]  ;;  %v513_v61 = vld [vmem:[%s1779_s15 + $0x3d0] sm:$0xff] }
  0x37   : > { %v515_v62 = vld [vmem:[%s1779_s15 + $0x3e0] sm:$0xff]  ;;  %512 = vst [vmem:[%s1784_s16 + $0x1e0] sm:$0xff] %v511_v60  ;;  %514 = vst [vmem:[%s1784_s16 + $0x1e8] sm:$0xff] %v513_v61  ;;  %v517_v63 = vld [vmem:[%s1779_s15 + $0x3f0] sm:$0xff] }
  0x38   : > { %516 = vst [vmem:[%s1784_s16 + $0x1f0] sm:$0xff] %v515_v62  ;;  %518 = vst [vmem:[%s1784_s16 + $0x1f8] sm:$0xff] %v517_v63 }
  0x39 PF: > { %p1394_p7 = scmp.ge.s32.totalorder %s1684_s24, 1  ;;  %p551_p8 = scmp.lt.s32.totalorder %s1684_s24, 19 }
  0x3b   : > { %p552_p9 = pnand %p1394_p7, %p551_p8 }
  0x3c   : > { %s558_s17 = sand.u32 (!%p552_p9), 1, %s1660_s18   ;;  %s1396_s27 = sshll.u32 (!%p552_p9), %s1668_s20, 2 }
  0x3d   : > { %555 = sbr.rel (%p552_p9) target bundleno = 390 (0x186), region = 74  ;;  %s1395_s28 = sshll.u32 (!%p552_p9), %s558_s17, 9 }
  0x3e   : > { %p615_p10 = scmp.lt.s32.totalorder (!%p552_p9), %s1396_s27, 35  ;;  %s1397_s29 = sshll.u32 (!%p552_p9), %s1672_s21, 1 }
  0x3f   : > { %p624_p11 = scmp.lt.s32.totalorder (!%p552_p9), %s1397_s29, 3  ;;  %s1940_s7 = scalar_lea.vmem (!%p552_p9), [#allocation3], %s1395_s28 }
  0x40   : > { %p1401_p12 = scmp.ne.s32.totalorder (!%p552_p9), %s1668_s20, 0 }
  0x44   : > { %s2084_s27 = smov (!%p615_p10, %s1396_s27), 35  ;;  %s2086_s29 = smov (!%p624_p11, %s1397_s29), 3 }
  0x45   : > { %s619_s8 = scalar_lea.vmem %s2065_s0, %s2084_s27  ;;  %s626_s18 = scalar_lea.vmem %s2067_s2, %s2086_s29  ;;  %v1686_v0 = vmov (!%p1401_p12), 0.0  }
  0x46   : > { %s631_s12 = scalar_lea.vmem %s2068_s3, %s2086_s29  ;;  %s640_s15 = scalar_lea.vmem %s2069_s4, %s2086_s29  ;;  %655 = vst [vmem:[#allocation2] sm:$0xf] (!%p1401_p12), %v1686_v0 }
  0x47   : > { %s649_s30 = scalar_lea.vmem %s2070_s5, %s2086_s29  ;;  %654 = sbr.rel (%p1401_p12) target bundleno = 78 (0x4e), region = 82 }
  0x4e PF: > { %v1534_v1 = vld [vmem:[%s1940_s7 + $0x4] ss:$8 sps:$4 sm:$0xff]   ;;  %v1538_v3 = vld [vmem:[%s1940_s7] ss:$8 sps:$4 sm:$0xff]   ;;  %v1540_v5 = vld [vmem:[%s1940_s7 + $0x14] ss:$8 sps:$4 sm:$0xff]   ;;  %v734_v41 = vlaneseq }
  0x4f   : > { %v1536_v2 = vld [vmem:[%s1940_s7 + $0x104] ss:$8 sps:$4 sm:$0xff]   ;;  %1071 = vmatprep.subr.bf16.mxu1 %v1534_v1  ;;  %v1539_v4 = vld [vmem:[%s1940_s7 + $0x100] ss:$8 sps:$4 sm:$0xff]   ;;  %v1542_v6 = vld [vmem:[%s1940_s7 + $0x114] ss:$8 sps:$4 sm:$0xff]  }
  0x50   : > { %1112 = vmatprep.subr.bf16.mxu0 %v1536_v2  ;;  %1072 = vmatpush1.bf16.msra.mxu1 %v1538_v3  ;;  %v1544_v7 = vld [vmem:[%s1940_s7 + $0x10] ss:$8 sps:$4 sm:$0xff]   ;;  %v1546_v9 = vld [vmem:[%s1940_s7 + $0x24] ss:$8 sps:$4 sm:$0xff]   ;;  %v1550_v11 = vld [vmem:[%s1940_s7 + $0x20] ss:$8 sps:$4 sm:$0xff]  }
  0x51   : > { %1113 = vmatpush1.bf16.msra.mxu0 %v1539_v4  ;;  %1073 = vmatprep.subr.bf16.mxu1 %v1540_v5  ;;  %v1545_v8 = vld [vmem:[%s1940_s7 + $0x110] ss:$8 sps:$4 sm:$0xff]   ;;  %v1548_v10 = vld [vmem:[%s1940_s7 + $0x124] ss:$8 sps:$4 sm:$0xff]   ;;  %v1551_v12 = vld [vmem:[%s1940_s7 + $0x120] ss:$8 sps:$4 sm:$0xff]  }
  0x52   : > { %1114 = vmatprep.subr.bf16.mxu0 %v1542_v6  ;;  %v1552_v13 = vld [vmem:[%s1940_s7 + $0x34] ss:$8 sps:$4 sm:$0xff]   ;;  %v1556_v15 = vld [vmem:[%s1940_s7 + $0x30] ss:$8 sps:$4 sm:$0xff]   ;;  %v1558_v17 = vld [vmem:[%s1940_s7 + $0x44] ss:$8 sps:$4 sm:$0xff]  }
  0x53   : > { %v1554_v14 = vld [vmem:[%s1940_s7 + $0x134] ss:$8 sps:$4 sm:$0xff]   ;;  %v1557_v16 = vld [vmem:[%s1940_s7 + $0x130] ss:$8 sps:$4 sm:$0xff]   ;;  %v1560_v18 = vld [vmem:[%s1940_s7 + $0x144] ss:$8 sps:$4 sm:$0xff]  }
  0x54   : > { %1074 = vmatpush1.bf16.msra.mxu1 %v1544_v7  ;;  %v1562_v19 = vld [vmem:[%s1940_s7 + $0x40] ss:$8 sps:$4 sm:$0xff]   ;;  %v1564_v21 = vld [vmem:[%s1940_s7 + $0x54] ss:$8 sps:$4 sm:$0xff]   ;;  %v1568_v23 = vld [vmem:[%s1940_s7 + $0x50] ss:$8 sps:$4 sm:$0xff]  }
  0x55   : > { %1115 = vmatpush1.bf16.msra.mxu0 %v1545_v8  ;;  %1075 = vmatprep.subr.bf16.mxu1 %v1546_v9  ;;  %v1563_v20 = vld [vmem:[%s1940_s7 + $0x140] ss:$8 sps:$4 sm:$0xff]   ;;  %v1566_v22 = vld [vmem:[%s1940_s7 + $0x154] ss:$8 sps:$4 sm:$0xff]   ;;  %v1569_v24 = vld [vmem:[%s1940_s7 + $0x150] ss:$8 sps:$4 sm:$0xff]  }
  0x56   : > { %1116 = vmatprep.subr.bf16.mxu0 %v1548_v10  ;;  %v1570_v25 = vld [vmem:[%s1940_s7 + $0x64] ss:$8 sps:$4 sm:$0xff]   ;;  %v1574_v27 = vld [vmem:[%s1940_s7 + $0x60] ss:$8 sps:$4 sm:$0xff]   ;;  %v1576_v29 = vld [vmem:[%s1940_s7 + $0x74] ss:$8 sps:$4 sm:$0xff]  }
  0x57   : > { %v1572_v26 = vld [vmem:[%s1940_s7 + $0x164] ss:$8 sps:$4 sm:$0xff]   ;;  %v1575_v28 = vld [vmem:[%s1940_s7 + $0x160] ss:$8 sps:$4 sm:$0xff]   ;;  %v1578_v30 = vld [vmem:[%s1940_s7 + $0x174] ss:$8 sps:$4 sm:$0xff]  }
  0x58   : > { %1076 = vmatpush1.bf16.msra.mxu1 %v1550_v11  ;;  %v1580_v31 = vld [vmem:[%s1940_s7 + $0x70] ss:$8 sps:$4 sm:$0xff]   ;;  %v1582_v33 = vld [vmem:[%s1940_s7 + $0x84] ss:$8 sps:$4 sm:$0xff]   ;;  %v1586_v35 = vld [vmem:[%s1940_s7 + $0x80] ss:$8 sps:$4 sm:$0xff]  }
  0x59   : > { %1117 = vmatpush1.bf16.msra.mxu0 %v1551_v12  ;;  %1077 = vmatprep.subr.bf16.mxu1 %v1552_v13  ;;  %v1581_v32 = vld [vmem:[%s1940_s7 + $0x170] ss:$8 sps:$4 sm:$0xff]   ;;  %v1584_v34 = vld [vmem:[%s1940_s7 + $0x184] ss:$8 sps:$4 sm:$0xff]   ;;  %v1587_v36 = vld [vmem:[%s1940_s7 + $0x180] ss:$8 sps:$4 sm:$0xff]  }
  0x5a   : > { %1118 = vmatprep.subr.bf16.mxu0 %v1554_v14  ;;  %v1588_v37 = vld [vmem:[%s1940_s7 + $0x94] ss:$8 sps:$4 sm:$0xff]   ;;  %v1687_v39 = vmov 1966171168   ;;  %v1592_v42 = vld [vmem:[%s1940_s7 + $0x90] ss:$8 sps:$4 sm:$0xff]  }
  0x5b   : > { %v1590_v38 = vld [vmem:[%s1940_s7 + $0x194] ss:$8 sps:$4 sm:$0xff]   ;;  %v732_v40 = vunpack.c.l.s4 %v1687_v39  ;;  %v1593_v43 = vld [vmem:[%s1940_s7 + $0x190] ss:$8 sps:$4 sm:$0xff]   ;;  %v1594_v44 = vld [vmem:[%s1940_s7 + $0xa4] ss:$8 sps:$4 sm:$0xff]  }
  0x5c   : > { %1078 = vmatpush1.bf16.msra.mxu1 %v1556_v15  ;;  %v1596_v45 = vld [vmem:[%s1940_s7 + $0x1a4] ss:$8 sps:$4 sm:$0xff]   ;;  %v1985_v47 = vshrl.u32 %v734_v41, 7  ;;  %v1598_v48 = vld [vmem:[%s1940_s7 + $0xa0] ss:$8 sps:$4 sm:$0xff]   ;;  %p1467_p13 = scmp.ne.s32.totalorder %s1668_s20, 8 }
  0x5d   : > { %1119 = vmatpush1.bf16.msra.mxu0 %v1557_v16  ;;  %1079 = vmatprep.subr.bf16.mxu1 %v1558_v17  ;;  %v733_v46 = vunpack.c.0.s8 %v732_v40  ;;  %v1599_v49 = vld [vmem:[%s1940_s7 + $0x1a0] ss:$8 sps:$4 sm:$0xff]   ;;  %v1600_v50 = vld [vmem:[%s1940_s7 + $0xb4] ss:$8 sps:$4 sm:$0xff]   ;;  %v1604_v54 = vld [vmem:[%s1940_s7 + $0xb0] ss:$8 sps:$4 sm:$0xff]  }
  0x5e   : > { %1120 = vmatprep.subr.bf16.mxu0 %v1560_v18  ;;  %v1602_v51 = vld [vmem:[%s1940_s7 + $0x1b4] ss:$8 sps:$4 sm:$0xff]   ;;  %v1605_v55 = vld [vmem:[%s1940_s7 + $0x1b0] ss:$8 sps:$4 sm:$0xff]   ;;  %v1606_v57 = vld [vmem:[%s1940_s7 + $0xc4] ss:$8 sps:$4 sm:$0xff]  }
  0x5f   : > { %v1992_v52 = vsub.s32 %v733_v46, %v1985_v47  ;;  %v1402_v53 = vld.sshfl [vmem:[%s619_s8] sm:$0x33 pattern:$0x75316420]  ;;  %v1608_v58 = vld [vmem:[%s1940_s7 + $0x1c4] ss:$8 sps:$4 sm:$0xff]  }
  0x60   : > { %1080 = vmatpush1.bf16.msra.mxu1 %v1562_v19  ;;  %v730_v56 = vcombine.high %v1402_v53, %v1402_v53  ;;  %v1610_v60 = vld [vmem:[%s1940_s7 + $0xc0] ss:$8 sps:$4 sm:$0xff]   ;;  %v1612_v63 = vld [vmem:[%s1940_s7 + $0xd4] ss:$8 sps:$4 sm:$0xff]   ;;  %v1616_v1 = vld [vmem:[%s1940_s7 + $0xd0] ss:$8 sps:$4 sm:$0xff]  }
  0x61   : > { %1121 = vmatpush1.bf16.msra.mxu0 %v1563_v20  ;;  %1081 = vmatprep.subr.bf16.mxu1 %v1564_v21  ;;  %v1611_v61 = vld [vmem:[%s1940_s7 + $0x1c0] ss:$8 sps:$4 sm:$0xff]   ;;  %v1614_v0 = vld [vmem:[%s1940_s7 + $0x1d4] ss:$8 sps:$4 sm:$0xff]   ;;  %v1617_v2 = vld [vmem:[%s1940_s7 + $0x1d0] ss:$8 sps:$4 sm:$0xff]   ;;  %v737_v9 = vrot.slane %v1402_v53, %v1992_v52 }
  0x62   : > { %1122 = vmatprep.subr.bf16.mxu0 %v1566_v22  ;;  %v744_v59 = vrot.slane %v730_v56, %v1992_v52  ;;  %v1618_v3 = vld [vmem:[%s1940_s7 + $0xe4] ss:$8 sps:$4 sm:$0xff]   ;;  %v1622_v5 = vld [vmem:[%s1940_s7 + $0xe0] ss:$8 sps:$4 sm:$0xff]   ;;  %v1624_v7 = vld [vmem:[%s1940_s7 + $0xf4] ss:$8 sps:$4 sm:$0xff]  }
  0x63   : > { %v1620_v4 = vld [vmem:[%s1940_s7 + $0x1e4] ss:$8 sps:$4 sm:$0xff]   ;;  %v1623_v6 = vld [vmem:[%s1940_s7 + $0x1e0] ss:$8 sps:$4 sm:$0xff]   ;;  %v1626_v8 = vld [vmem:[%s1940_s7 + $0x1f4] ss:$8 sps:$4 sm:$0xff]   ;;  %v745_v12 = vcombine.high %v737_v9, %v737_v9 }
  0x64   : > { %1082 = vmatpush1.bf16.msra.mxu1 %v1568_v23  ;;  %v746_v62 = vcombine.high %v744_v59, %v744_v59  ;;  %1103 = vmatprep.mubr.bf16.mxu1 %v744_v59  ;;  %v1628_v10 = vld [vmem:[%s1940_s7 + $0xf0] ss:$8 sps:$4 sm:$0xff]   ;;  %v1688_v13 = vmov 1983009808  }
  0x65   : > { %1123 = vmatpush1.bf16.msra.mxu0 %v1569_v24  ;;  %1083 = vmatprep.subr.bf16.mxu1 %v1570_v25  ;;  %v1629_v11 = vld [vmem:[%s1940_s7 + $0x1f0] ss:$8 sps:$4 sm:$0xff]   ;;  %v1157_v14 = vunpack.c.l.s4 %v1688_v13 }
  0x66   : > { %1124 = vmatprep.subr.bf16.mxu0 %v1572_v26  ;;  %1144 = vmatprep.mubr.bf16.mxu0 %v746_v62 }
  0x67   : > { %v1158_v15 = vunpack.c.0.s8 %v1157_v14 }
  0x68   : > { %1084 = vmatpush1.bf16.msra.mxu1 %v1574_v27 }
  0x69   : > { %1125 = vmatpush1.bf16.msra.mxu0 %v1575_v28  ;;  %1085 = vmatprep.subr.bf16.mxu1 %v1576_v29  ;;  %v1161_v22 = vsub.s32 %v1158_v15, %v1985_v47  ;;  %v656_v28 = vld [vmem:[#allocation2] sm:$0xf] }
  0x6a   : > { %1126 = vmatprep.subr.bf16.mxu0 %v1578_v30 }
  0x6c   : > { %1086 = vmatpush1.bf16.msra.mxu1 %v1580_v31  ;;  %v1171_v31 = vld [vmem:[%s626_s18] sm:$0x3] (!%p1467_p13) }
  0x6d   : > { %1127 = vmatpush1.bf16.msra.mxu0 %v1581_v32  ;;  %1087 = vmatprep.subr.bf16.mxu1 %v1582_v33  ;;  %v1175_v32 = vsub.s32 (!%p1467_p13), 0, %v1985_v47  ;;  %v1179_v33 = vsub.s32 (!%p1467_p13), 1, %v1985_v47 }
  0x6e   : > { %1128 = vmatprep.subr.bf16.mxu0 %v1584_v34  ;;  %v1191_v34 = vld [vmem:[%s631_s12] sm:$0x3] (!%p1467_p13) }
  0x70   : > { %1088 = vmatpush1.bf16.msra.mxu1 %v1586_v35  ;;  %v1176_v35 = vrot.slane (!%p1467_p13), %v1171_v31, %v1175_v32 }
  0x71   : > { %1129 = vmatpush1.bf16.msra.mxu0 %v1587_v36  ;;  %1089 = vmatprep.subr.bf16.mxu1 %v1588_v37  ;;  %v1180_v36 = vrot.slane (!%p1467_p13), %v1171_v31, %v1179_v33  ;;  %v1196_v37 = vrot.slane (!%p1467_p13), %v1191_v34, %v1175_v32 }
  0x72   : > { %1130 = vmatprep.subr.bf16.mxu0 %v1590_v38  ;;  %v1200_v38 = vrot.slane (!%p1467_p13), %v1191_v34, %v1179_v33 }
  0x73   : > { %v1181_v39 = vcombine.low (!%p1467_p13), %v1176_v35, %v1180_v36 }
  0x74   : > { %1090 = vmatpush1.bf16.msra.mxu1 %v1592_v42  ;;  %v1201_v40 = vcombine.low (!%p1467_p13), %v1196_v37, %v1200_v38  ;;  %v1211_v42 = vld [vmem:[%s640_s15] sm:$0x3] (!%p1467_p13) }
  0x75   : > { %1131 = vmatpush1.bf16.msra.mxu0 %v1593_v43  ;;  %1091 = vmatprep.subr.bf16.mxu1 %v1594_v44  ;;  %v1188_v43 = vrot.slane (!%p1467_p13), %v1181_v39, %v1161_v22  ;;  %v1212_v46 = vunpack.c.l.bf16 (!%p1467_p13), %v1211_v42 }
  0x76   : > { %1132 = vmatprep.subr.bf16.mxu0 %v1596_v45  ;;  %v1208_v44 = vrot.slane (!%p1467_p13), %v1201_v40, %v1161_v22 }
  0x78   : > { %1092 = vmatpush1.bf16.msra.mxu1 %v1598_v48 }
  0x79   : > { %1133 = vmatpush1.bf16.msra.mxu0 %v1599_v49  ;;  %1093 = vmatprep.subr.bf16.mxu1 %v1600_v50 }
  0x7a   : > { %1134 = vmatprep.subr.bf16.mxu0 %v1602_v51 }
  0x7c   : > { %1094 = vmatpush1.bf16.msra.mxu1 %v1604_v54 }
  0x7d   : > { %1135 = vmatpush1.bf16.msra.mxu0 %v1605_v55  ;;  %1095 = vmatprep.subr.bf16.mxu1 %v1606_v57 }
  0x7e   : > { %1136 = vmatprep.subr.bf16.mxu0 %v1608_v58 }
  0x80   : > { %1096 = vmatpush1.bf16.msra.mxu1 %v1610_v60 }
  0x81   : > { %1137 = vmatpush1.bf16.msra.mxu0 %v1611_v61  ;;  %1097 = vmatprep.subr.bf16.mxu1 %v1612_v63 }
  0x82   : > { %1138 = vmatprep.subr.bf16.mxu0 %v1614_v0 }
  0x84   : > { %1098 = vmatpush1.bf16.msra.mxu1 %v1616_v1 }
  0x85   : > { %1139 = vmatpush1.bf16.msra.mxu0 %v1617_v2  ;;  %1099 = vmatprep.subr.bf16.mxu1 %v1618_v3 }
  0x86   : > { %1140 = vmatprep.subr.bf16.mxu0 %v1620_v4 }
  0x88   : > { %1100 = vmatpush1.bf16.msra.mxu1 %v1622_v5 }
  0x89   : > { %1141 = vmatpush1.bf16.msra.mxu0 %v1623_v6  ;;  %1101 = vmatprep.subr.bf16.mxu1 %v1624_v7 }
  0x8a   : > { %1142 = vmatprep.subr.bf16.mxu0 %v1626_v8 }
  0x8c   : > { %1102 = vmatpush1.bf16.msra.mxu1 %v1628_v10 }
  0x8d   : > { %1143 = vmatpush1.bf16.msra.mxu0 %v1629_v11 }
  0x8f   : > { %1104 = vmatmul.mubr.bf16.vlgmr.msra.gmra.mrb[0].mxu1 %v737_v9 }
  0x90   : > { %1145 = vmatmul.mubr.bf16.vlgmr.msra.gmra.mrb[0].mxu0 %v745_v12 }
 0x162   : > { %v1105_v16 = vpop.f32.mrb[0].mxu1 }
 0x163   : > { %v1146_v17 = vpop.f32.mrb[0].mxu0  ;;  %v1107_v19 = vpop.f32.mrb[1].mxu1 }
 0x164   : > { %v1147_v18 = vadd.f32 %v1146_v17, %v1105_v16  ;;  %v1148_v20 = vpop.f32.mrb[1].mxu0  ;;  %v1109_v23 = vpop.f32.mrb[2].mxu1 }
 0x165   : > { %v1149_v21 = vadd.f32 %v1148_v20, %v1107_v19  ;;  %v1150_v24 = vpop.f32.mrb[2].mxu0  ;;  %v1110_v25 = vpop.f32.mrb[3].mxu1 }
 0x166   : > { %v1151_v26 = vpop.f32.mrb[3].mxu0 }
 0x167   : > { %v1155_v27 = vcombine.low %v1147_v18, %v1149_v21  ;;  %1169 = sbr.rel (%p1467_p13) target bundleno = 390 (0x186), region = 86 }
 0x169   : > { %v1162_v29 = vrot.slane %v1155_v27, %v1161_v22 }
 0x16b   : > { %v1164_v30 = vadd.f32 %v1162_v29, %v656_v28 }
 0x16d   : > { %1165 = vst [vmem:[#allocation2] sm:$0xf] %v1164_v30 }
 0x174   : > { %v1170_v41 = vld [vmem:[#allocation2] sm:$0xf] }
 0x175   : > { %v1190_v45 = vmul.f32 %v1188_v43, %v1170_v41 }
 0x177   : > { %v1210_v47 = vadd.f32 %v1208_v44, %v1190_v45 }
 0x179   : > { %v1213_v48 = vadd.f32 %v1212_v46, %v1210_v47 }
 0x17b   : > { %v1214_v49 = vmax.f32 %v1213_v48, 0.0 }
 0x17d   : > { %v1222_v50 = vrot.slane %v1214_v49, %v1161_v22 }
 0x17f   : > { %v1223_v51 = vcombine.high %v1222_v50, %v1222_v50 }
 0x181   : > { %v1468_v53 = vpack.c.bf16 %v1223_v51, %v1222_v50 }
 0x183   : > { %v1237_v54 = vrot.slane %v1468_v53, %v1992_v52 }
 0x185   : > { %1469 = vst.sshfl [vmem:[%s649_s30] sm:$0x5 pattern:$0x73625140] %v1237_v54 }
 0x186 PF: > { %s15_s24 = sadd.s32 1, %s1684_s24   ;;  %s2071_s18 = smov %s1664_s19 }
 0x187   : > { %p12_p0 = scmp.ge.s32.totalorder %s15_s24, 20   ;;  %s2072_s19 = smov %s1770_s6 }
 0x188   : > { %s2073_s20 = smov %s1676_s22  ;;  %s2074_s21 = smov %s1680_s23 }
 0x189   : > { %s2075_s22 = smov %s2078_s25  ;;  %s2076_s23 = smov %s2082_s26 }
 0x18a   :  { %14 = sbr.rel (!%p12_p0) target bundleno = 4 (0x4), region = 133 }

// kernel: cnn_network_forward.44
= control target key start
LH: loop header
LB: loop body
LE: loop exit
PB: predicated region body
PF: predicated region fallthrough
CT: control target
= control target key end

     0   :  { %s1824_s0 = inlined_call_operand.vmem [shape: bf16[2,1,1,9,512], index: 0, kind: input, shape index: {}, may-alias: {0,5}]   ;;  %s1825_s1 = inlined_call_operand.vmem [shape: bf16[2,2304], index: 1, kind: input, shape index: {}]   ;;  %s1826_s2 = inlined_call_operand.vmem [shape: bf16[2304,512], index: 2, kind: input, shape index: {}]   ;;  %s1827_s3 = inlined_call_operand.vmem [shape: f32[1,512], index: 3, kind: input, shape index: {}]   ;;  %s1828_s4 = inlined_call_operand.vmem [shape: f32[1,512], index: 4, kind: input, shape index: {}]   ;;  %s1829_s5 = inlined_call_operand.vmem [shape: bf16[2,1,1,9,512], index: 5, kind: output, shape index: {}, may-alias: {0,5}]  }
   0x1   :  { %1830 = sst [smem:[#allocation5_spill]] %s1826_s2 }
   0x2   :  { %s1493_s18 = smov 0   ;;  %s1495_s19 = smov 0  }
   0x3   :  { %s1497_s0 = smov 0   ;;  %s1499_s20 = smov 0  }
   0x4   :  { %s1501_s21 = smov 0   ;;  %s1503_s22 = smov 0  }
   0x5   :  { %s1505_s23 = smov 0   ;;  %s1507_s24 = smov 0  }
   0x6   :  { %s1509_s25 = smov 0  }
   0x7 LB: > { %s28_s26 = sadd.s32 1, %s1449_s23  ;;  %s31_s27 = sadd.s32 1, %s1453_s24  ;;  %s1457_s25 = sphi %s1509_s25, %s16_s25   ;;  %s1453_s24 = sphi %s1507_s24, %s1841_s24   ;;  %s1449_s23 = sphi %s1505_s23, %s1840_s23   ;;  %s1445_s22 = sphi %s1503_s22, %s1839_s22   ;;  %s1441_s21 = sphi %s1501_s21, %s1838_s21   ;;  %s1437_s20 = sphi %s1499_s20, %s1837_s20   ;;  %s1433_s0 = sphi %s1497_s0, %s1836_s0   ;;  %s1429_s19 = sphi %s1495_s19, %s1835_s19   ;;  %s1425_s18 = sphi %s1493_s18, %s1834_s18  }
   0x8   : > { %p29_p0 = scmp.ge.s32.totalorder %s28_s26, 6  ;;  %p79_p1 = scmp.ne.s32.totalorder %s1437_s20, %s1433_s0 }
   0x9   : > { %s1165_s28 = sadd.s32 4294967295, %s1457_s25   ;;  %p80_p2 = scmp.eq.s32.totalorder %s1457_s25, 0 }
   0xa   : > { %s1843_s26 = smov (%p29_p0, %s28_s26), 0  ;;  %s1845_s27 = smov (!%p29_p0, %s31_s27), %s1453_s24 }
   0xb   : > { %p33_p3 = scmp.ge.s32.totalorder %s1845_s27, 2  ;;  %s67_s29 = ssub.s32 %s1449_s23, %s1843_s26 }
   0xc   : > { %p1549_p4 = por %p80_p2, %p79_p1  ;;  %p162_p5 = scmp.ne.s32.totalorder %s1429_s19, %s1425_s18 }
   0xd   : > { %s1847_s27 = smov (%p33_p3, %s1845_s27), 0  ;;  %s72_s6 = sadd.s32 1, %s1437_s20 }
   0xe   : > { %p163_p6 = scmp.eq.s32.totalorder %s1165_s28, 11  ;;  %s68_s7 = ssub.s32 %s1453_s24, %s1847_s27 }
   0xf   : > { %s152_s8 = sadd.s32 1, %s1429_s19  ;;  %s69_s9 = sor.u32 %s68_s7, %s67_s29 }
  0x10   : > { %p150_p7 = scmp.eq.s32.totalorder %s68_s7, 0  ;;  %p70_p8 = scmp.eq.s32.totalorder %s69_s9, 0 }
  0x11   : > { %p1561_p9 = por %p163_p6, %p162_p5  ;;  %p1168_p10 = scmp.ge.s32.totalorder %s1457_s25, 12 }
  0x12   : > { %s1566_s11 = scalar_select %p150_p7, %s1429_s19, %s152_s8  }
  0x13   : > { %s1569_s12 = scalar_select %p70_p8, %s1437_s20, %s72_s6  }
  0x14   : > { %185 = sbr.rel (%p1168_p10) target bundleno = 61 (0x3d), region = 16 }
  0x1b   : > { %200 = sbr.rel (!%p1549_p4) target bundleno = 61 (0x3d), region = 24  ;;  %s202_s13 = sand.u32 (%p1549_p4), 1, %s1437_s20  }
  0x1c   : > { %s1237_s14 = smul.u32 (%p1549_p4), 384, %s202_s13  ;;  %s1169_s15 = sshll.u32 (%p1549_p4), %s1453_s24, 1 }
  0x1d   : > { %s1234_s16 = smul.u32 (%p1549_p4), 192, %s1449_s23  ;;  %s1833_s2 = sld [smem:[#allocation5_spill]] (%p1549_p4) }
  0x1e   : > { %s1585_s30 = scalar_lea.vmem (%p1549_p4), [#allocation3], %s1237_s14 }
  0x1f   : > { %s208_s17 = sadd.s32 (%p1549_p4), %s1234_s16, %s1169_s15 }
  0x20   : > { %s1171_s28 = sshll.u32 (%p1549_p4), %s208_s17, 2 }
  0x23   : > { %s1580_s6 = scalar_lea.vmem %s1833_s2, %s1171_s28 }
  0x24   : > { %v332_v0 = vld [vmem:[%s1580_s6] sm:$0xff]  ;;  %v334_v1 = vld [vmem:[%s1580_s6 + $0x10] sm:$0xff] }
  0x25   : > { %v336_v2 = vld [vmem:[%s1580_s6 + $0x20] sm:$0xff]  ;;  %333 = vst [vmem:[%s1585_s30] sm:$0xff] %v332_v0  ;;  %335 = vst [vmem:[%s1585_s30 + $0x8] sm:$0xff] %v334_v1  ;;  %v338_v3 = vld [vmem:[%s1580_s6 + $0x30] sm:$0xff] }
  0x26   : > { %337 = vst [vmem:[%s1585_s30 + $0x10] sm:$0xff] %v336_v2  ;;  %v340_v4 = vld [vmem:[%s1580_s6 + $0x40] sm:$0xff]  ;;  %v342_v5 = vld [vmem:[%s1580_s6 + $0x50] sm:$0xff]  ;;  %339 = vst [vmem:[%s1585_s30 + $0x18] sm:$0xff] %v338_v3 }
  0x27   : > { %341 = vst [vmem:[%s1585_s30 + $0x20] sm:$0xff] %v340_v4  ;;  %343 = vst [vmem:[%s1585_s30 + $0x28] sm:$0xff] %v342_v5  ;;  %v344_v6 = vld [vmem:[%s1580_s6 + $0x60] sm:$0xff]  ;;  %v346_v7 = vld [vmem:[%s1580_s6 + $0x70] sm:$0xff] }
  0x28   : > { %v348_v8 = vld [vmem:[%s1580_s6 + $0x80] sm:$0xff]  ;;  %345 = vst [vmem:[%s1585_s30 + $0x30] sm:$0xff] %v344_v6  ;;  %347 = vst [vmem:[%s1585_s30 + $0x38] sm:$0xff] %v346_v7  ;;  %v350_v9 = vld [vmem:[%s1580_s6 + $0x90] sm:$0xff] }
  0x29   : > { %349 = vst [vmem:[%s1585_s30 + $0x40] sm:$0xff] %v348_v8  ;;  %v352_v10 = vld [vmem:[%s1580_s6 + $0xa0] sm:$0xff]  ;;  %v354_v11 = vld [vmem:[%s1580_s6 + $0xb0] sm:$0xff]  ;;  %351 = vst [vmem:[%s1585_s30 + $0x48] sm:$0xff] %v350_v9 }
  0x2a   : > { %353 = vst [vmem:[%s1585_s30 + $0x50] sm:$0xff] %v352_v10  ;;  %355 = vst [vmem:[%s1585_s30 + $0x58] sm:$0xff] %v354_v11  ;;  %v356_v12 = vld [vmem:[%s1580_s6 + $0xc0] sm:$0xff]  ;;  %v358_v13 = vld [vmem:[%s1580_s6 + $0xd0] sm:$0xff] }
  0x2b   : > { %v360_v14 = vld [vmem:[%s1580_s6 + $0xe0] sm:$0xff]  ;;  %357 = vst [vmem:[%s1585_s30 + $0x60] sm:$0xff] %v356_v12  ;;  %359 = vst [vmem:[%s1585_s30 + $0x68] sm:$0xff] %v358_v13  ;;  %v362_v15 = vld [vmem:[%s1580_s6 + $0xf0] sm:$0xff] }
  0x2c   : > { %361 = vst [vmem:[%s1585_s30 + $0x70] sm:$0xff] %v360_v14  ;;  %v364_v16 = vld [vmem:[%s1580_s6 + $0x100] sm:$0xff]  ;;  %v366_v17 = vld [vmem:[%s1580_s6 + $0x110] sm:$0xff]  ;;  %363 = vst [vmem:[%s1585_s30 + $0x78] sm:$0xff] %v362_v15 }
  0x2d   : > { %365 = vst [vmem:[%s1585_s30 + $0x80] sm:$0xff] %v364_v16  ;;  %367 = vst [vmem:[%s1585_s30 + $0x88] sm:$0xff] %v366_v17  ;;  %v368_v18 = vld [vmem:[%s1580_s6 + $0x120] sm:$0xff]  ;;  %v370_v19 = vld [vmem:[%s1580_s6 + $0x130] sm:$0xff] }
  0x2e   : > { %v372_v20 = vld [vmem:[%s1580_s6 + $0x140] sm:$0xff]  ;;  %369 = vst [vmem:[%s1585_s30 + $0x90] sm:$0xff] %v368_v18  ;;  %371 = vst [vmem:[%s1585_s30 + $0x98] sm:$0xff] %v370_v19  ;;  %v374_v21 = vld [vmem:[%s1580_s6 + $0x150] sm:$0xff] }
  0x2f   : > { %373 = vst [vmem:[%s1585_s30 + $0xa0] sm:$0xff] %v372_v20  ;;  %v376_v22 = vld [vmem:[%s1580_s6 + $0x160] sm:$0xff]  ;;  %v378_v23 = vld [vmem:[%s1580_s6 + $0x170] sm:$0xff]  ;;  %375 = vst [vmem:[%s1585_s30 + $0xa8] sm:$0xff] %v374_v21 }
  0x30   : > { %377 = vst [vmem:[%s1585_s30 + $0xb0] sm:$0xff] %v376_v22  ;;  %379 = vst [vmem:[%s1585_s30 + $0xb8] sm:$0xff] %v378_v23  ;;  %v380_v24 = vld [vmem:[%s1580_s6 + $0x180] sm:$0xff]  ;;  %v382_v25 = vld [vmem:[%s1580_s6 + $0x190] sm:$0xff] }
  0x31   : > { %v384_v26 = vld [vmem:[%s1580_s6 + $0x1a0] sm:$0xff]  ;;  %381 = vst [vmem:[%s1585_s30 + $0xc0] sm:$0xff] %v380_v24  ;;  %383 = vst [vmem:[%s1585_s30 + $0xc8] sm:$0xff] %v382_v25  ;;  %v386_v27 = vld [vmem:[%s1580_s6 + $0x1b0] sm:$0xff] }
  0x32   : > { %385 = vst [vmem:[%s1585_s30 + $0xd0] sm:$0xff] %v384_v26  ;;  %v388_v28 = vld [vmem:[%s1580_s6 + $0x1c0] sm:$0xff]  ;;  %v390_v29 = vld [vmem:[%s1580_s6 + $0x1d0] sm:$0xff]  ;;  %387 = vst [vmem:[%s1585_s30 + $0xd8] sm:$0xff] %v386_v27 }
  0x33   : > { %389 = vst [vmem:[%s1585_s30 + $0xe0] sm:$0xff] %v388_v28  ;;  %391 = vst [vmem:[%s1585_s30 + $0xe8] sm:$0xff] %v390_v29  ;;  %v392_v30 = vld [vmem:[%s1580_s6 + $0x1e0] sm:$0xff]  ;;  %v394_v31 = vld [vmem:[%s1580_s6 + $0x1f0] sm:$0xff] }
  0x34   : > { %v396_v32 = vld [vmem:[%s1580_s6 + $0x200] sm:$0xff]  ;;  %393 = vst [vmem:[%s1585_s30 + $0xf0] sm:$0xff] %v392_v30  ;;  %395 = vst [vmem:[%s1585_s30 + $0xf8] sm:$0xff] %v394_v31  ;;  %v398_v33 = vld [vmem:[%s1580_s6 + $0x210] sm:$0xff] }
  0x35   : > { %397 = vst [vmem:[%s1585_s30 + $0x100] sm:$0xff] %v396_v32  ;;  %v400_v34 = vld [vmem:[%s1580_s6 + $0x220] sm:$0xff]  ;;  %v402_v35 = vld [vmem:[%s1580_s6 + $0x230] sm:$0xff]  ;;  %399 = vst [vmem:[%s1585_s30 + $0x108] sm:$0xff] %v398_v33 }
  0x36   : > { %401 = vst [vmem:[%s1585_s30 + $0x110] sm:$0xff] %v400_v34  ;;  %403 = vst [vmem:[%s1585_s30 + $0x118] sm:$0xff] %v402_v35  ;;  %v404_v36 = vld [vmem:[%s1580_s6 + $0x240] sm:$0xff]  ;;  %v406_v37 = vld [vmem:[%s1580_s6 + $0x250] sm:$0xff] }
  0x37   : > { %v408_v38 = vld [vmem:[%s1580_s6 + $0x260] sm:$0xff]  ;;  %405 = vst [vmem:[%s1585_s30 + $0x120] sm:$0xff] %v404_v36  ;;  %407 = vst [vmem:[%s1585_s30 + $0x128] sm:$0xff] %v406_v37  ;;  %v410_v39 = vld [vmem:[%s1580_s6 + $0x270] sm:$0xff] }
  0x38   : > { %409 = vst [vmem:[%s1585_s30 + $0x130] sm:$0xff] %v408_v38  ;;  %v412_v40 = vld [vmem:[%s1580_s6 + $0x280] sm:$0xff]  ;;  %v414_v41 = vld [vmem:[%s1580_s6 + $0x290] sm:$0xff]  ;;  %411 = vst [vmem:[%s1585_s30 + $0x138] sm:$0xff] %v410_v39 }
  0x39   : > { %413 = vst [vmem:[%s1585_s30 + $0x140] sm:$0xff] %v412_v40  ;;  %415 = vst [vmem:[%s1585_s30 + $0x148] sm:$0xff] %v414_v41  ;;  %v416_v42 = vld [vmem:[%s1580_s6 + $0x2a0] sm:$0xff]  ;;  %v418_v43 = vld [vmem:[%s1580_s6 + $0x2b0] sm:$0xff] }
  0x3a   : > { %v420_v44 = vld [vmem:[%s1580_s6 + $0x2c0] sm:$0xff]  ;;  %417 = vst [vmem:[%s1585_s30 + $0x150] sm:$0xff] %v416_v42  ;;  %419 = vst [vmem:[%s1585_s30 + $0x158] sm:$0xff] %v418_v43  ;;  %v422_v45 = vld [vmem:[%s1580_s6 + $0x2d0] sm:$0xff] }
  0x3b   : > { %421 = vst [vmem:[%s1585_s30 + $0x160] sm:$0xff] %v420_v44  ;;  %v424_v46 = vld [vmem:[%s1580_s6 + $0x2e0] sm:$0xff]  ;;  %v426_v47 = vld [vmem:[%s1580_s6 + $0x2f0] sm:$0xff]  ;;  %423 = vst [vmem:[%s1585_s30 + $0x168] sm:$0xff] %v422_v45 }
  0x3c   : > { %425 = vst [vmem:[%s1585_s30 + $0x170] sm:$0xff] %v424_v46  ;;  %427 = vst [vmem:[%s1585_s30 + $0x178] sm:$0xff] %v426_v47 }
  0x3d PF: > { %p1172_p11 = scmp.ge.s32.totalorder %s1457_s25, 1  ;;  %p448_p12 = scmp.lt.s32.totalorder %s1457_s25, 13 }
  0x3f   : > { %p449_p13 = pnand %p1172_p11, %p448_p12 }
  0x40   : > { %s455_s8 = sand.u32 (!%p449_p13), 1, %s1433_s0   ;;  %s492_s9 = sand.u32 (!%p449_p13), 1, %s1425_s18  }
  0x41   : > { %452 = sbr.rel (%p449_p13) target bundleno = 396 (0x18c), region = 70  ;;  %s1684_s14 = sshll.u32 (!%p449_p13), %s492_s9, 1 }
  0x42   : > { %s1238_s13 = smul.u32 (!%p449_p13), 384, %s455_s8  ;;  %s1688_s16 = sshll.u32 (!%p449_p13), %s1445_s22, 1 }
  0x43   : > { %s495_s15 = smul.u32 (!%p449_p13), 3, %s1441_s21  ;;  %p507_p1 = scmp.lt.s32.totalorder (!%p449_p13), %s1688_s16, 3 }
  0x44   : > { %s1708_s9 = scalar_lea.vmem (!%p449_p13), [#allocation3], %s1238_s13  ;;  %s494_s2 = scalar_lea.vmem (!%p449_p13), [#allocation4], %s1684_s14 }
  0x45   : > { %p498_p0 = scmp.lt.s32.totalorder (!%p449_p13), %s495_s15, 17  ;;  %p1176_p2 = scmp.ne.s32.totalorder (!%p449_p13), %s1441_s21, 0 }
  0x48   : > { %s1849_s15 = smov (!%p498_p0, %s495_s15), 17  ;;  %521 = sbr.rel (%p1176_p2) target bundleno = 79 (0x4f), region = 78 }
  0x49   : > { %s1694_s17 = scalar_select %p507_p1, %s1688_s16, 3 }
  0x4a   : > { %s502_s18 = scalar_lea.vmem %s1825_s1, %s1849_s15  ;;  %v1459_v48 = vmov (!%p1176_p2), 0.0  }
  0x4b   : > { %s509_s22 = scalar_lea.vmem %s1827_s3, %s1694_s17  ;;  %s514_s8 = scalar_lea.vmem %s1828_s4, %s1694_s17  ;;  %522 = vst [vmem:[#allocation2] sm:$0xf] (!%p1176_p2), %v1459_v48 }
  0x4f PF: > { %v1315_v49 = vld [vmem:[%s1708_s9 + $0x4] ss:$8 sps:$4 sm:$0xff]   ;;  %v1317_v50 = vld [vmem:[%s1708_s9] ss:$8 sps:$4 sm:$0xff]   ;;  %v1460_v51 = vmov 0   ;;  %v585_v12 = vlaneseq  ;;  %p1226_p3 = scmp.ne.s32.totalorder %s1441_s21, 5 }
  0x50   : > { %913 = vmatprep.mubr.bf16.mxu0 %v1460_v51  ;;  %840 = vmatprep.subr.bf16.mxu1 %v1315_v49  ;;  %v1318_v52 = vld [vmem:[%s1708_s9 + $0x14] ss:$8 sps:$4 sm:$0xff]   ;;  %v1320_v53 = vld [vmem:[%s1708_s9 + $0x10] ss:$8 sps:$4 sm:$0xff]   ;;  %v1321_v54 = vld [vmem:[%s1708_s9 + $0x24] ss:$8 sps:$4 sm:$0xff]  }
  0x51   : > { %841 = vmatpush1.bf16.msra.mxu1 %v1317_v50  ;;  %v1323_v55 = vld [vmem:[%s1708_s9 + $0x20] ss:$8 sps:$4 sm:$0xff]   ;;  %v1324_v56 = vld [vmem:[%s1708_s9 + $0x34] ss:$8 sps:$4 sm:$0xff]   ;;  %v1326_v57 = vld [vmem:[%s1708_s9 + $0x30] ss:$8 sps:$4 sm:$0xff]  }
  0x52   : > { %842 = vmatprep.subr.bf16.mxu1 %v1318_v52  ;;  %v1339_v58 = vld [vmem:[%s1708_s9 + $0x104] ss:$8 sps:$4 sm:$0xff]   ;;  %v1341_v59 = vld [vmem:[%s1708_s9 + $0x100] ss:$8 sps:$4 sm:$0xff]   ;;  %v1345_v61 = vld [vmem:[%s1708_s9 + $0x114] ss:$8 sps:$4 sm:$0xff]  }
  0x53   : > { %v1327_v60 = vld [vmem:[%s1708_s9 + $0x44] ss:$8 sps:$4 sm:$0xff]   ;;  %881 = vmatprep.subr.bf16.mxu0 %v1339_v58  ;;  %v1347_v62 = vld [vmem:[%s1708_s9 + $0x110] ss:$8 sps:$4 sm:$0xff]   ;;  %v1329_v63 = vld [vmem:[%s1708_s9 + $0x40] ss:$8 sps:$4 sm:$0xff]  }
  0x54   : > { %882 = vmatpush1.bf16.msra.mxu0 %v1341_v59  ;;  %v1330_v0 = vld [vmem:[%s1708_s9 + $0x54] ss:$8 sps:$4 sm:$0xff]   ;;  %v1351_v1 = vld [vmem:[%s1708_s9 + $0x124] ss:$8 sps:$4 sm:$0xff]   ;;  %v1353_v2 = vld [vmem:[%s1708_s9 + $0x120] ss:$8 sps:$4 sm:$0xff]  }
  0x55   : > { %843 = vmatpush1.bf16.msra.mxu1 %v1320_v53  ;;  %883 = vmatprep.subr.bf16.mxu0 %v1345_v61  ;;  %v1332_v3 = vld [vmem:[%s1708_s9 + $0x50] ss:$8 sps:$4 sm:$0xff]   ;;  %v1357_v4 = vld [vmem:[%s1708_s9 + $0x134] ss:$8 sps:$4 sm:$0xff]   ;;  %v1333_v5 = vld [vmem:[%s1708_s9 + $0x64] ss:$8 sps:$4 sm:$0xff]  }
  0x56   : > { %844 = vmatprep.subr.bf16.mxu1 %v1321_v54  ;;  %v1359_v6 = vld [vmem:[%s1708_s9 + $0x130] ss:$8 sps:$4 sm:$0xff]   ;;  %v1335_v7 = vld [vmem:[%s1708_s9 + $0x60] ss:$8 sps:$4 sm:$0xff]   ;;  %v1363_v8 = vld [vmem:[%s1708_s9 + $0x144] ss:$8 sps:$4 sm:$0xff]  }
  0x57   : > { %v1336_v9 = vld [vmem:[%s1708_s9 + $0x74] ss:$8 sps:$4 sm:$0xff]   ;;  %v1461_v10 = vmov 1966171168   ;;  %v1365_v13 = vld [vmem:[%s1708_s9 + $0x140] ss:$8 sps:$4 sm:$0xff]  }
  0x58   : > { %884 = vmatpush1.bf16.msra.mxu0 %v1347_v62  ;;  %v583_v11 = vunpack.c.l.s4 %v1461_v10  ;;  %v1338_v14 = vld [vmem:[%s1708_s9 + $0x70] ss:$8 sps:$4 sm:$0xff]   ;;  %v1369_v15 = vld [vmem:[%s1708_s9 + $0x154] ss:$8 sps:$4 sm:$0xff]   ;;  %v1342_v16 = vld [vmem:[%s1708_s9 + $0x84] ss:$8 sps:$4 sm:$0xff]  }
  0x59   : > { %845 = vmatpush1.bf16.msra.mxu1 %v1323_v55  ;;  %885 = vmatprep.subr.bf16.mxu0 %v1351_v1  ;;  %v1740_v18 = vshrl.u32 %v585_v12, 7  ;;  %v1371_v19 = vld [vmem:[%s1708_s9 + $0x150] ss:$8 sps:$4 sm:$0xff]   ;;  %v1344_v20 = vld [vmem:[%s1708_s9 + $0x80] ss:$8 sps:$4 sm:$0xff]  }
  0x5a   : > { %846 = vmatprep.subr.bf16.mxu1 %v1324_v56  ;;  %v584_v17 = vunpack.c.0.s8 %v583_v11  ;;  %v1375_v21 = vld [vmem:[%s1708_s9 + $0x164] ss:$8 sps:$4 sm:$0xff]   ;;  %v1348_v22 = vld [vmem:[%s1708_s9 + $0x94] ss:$8 sps:$4 sm:$0xff]   ;;  %v1377_v26 = vld [vmem:[%s1708_s9 + $0x160] ss:$8 sps:$4 sm:$0xff]  }
  0x5b   : > { %v1177_v23 = vld.sshfl [vmem:[%s502_s18] sm:$0x13 pattern:$0x75316420]  ;;  %v1350_v27 = vld [vmem:[%s1708_s9 + $0x90] ss:$8 sps:$4 sm:$0xff]  }
  0x5c   : > { %886 = vmatpush1.bf16.msra.mxu0 %v1353_v2  ;;  %v1752_v24 = vsub.s32 %v584_v17, %v1740_v18  ;;  %v581_v25 = vcombine.high %v1177_v23, %v1177_v23  ;;  %v1381_v28 = vld [vmem:[%s1708_s9 + $0x174] ss:$8 sps:$4 sm:$0xff]   ;;  %v1354_v30 = vld [vmem:[%s1708_s9 + $0xa4] ss:$8 sps:$4 sm:$0xff]   ;;  %v1383_v32 = vld [vmem:[%s1708_s9 + $0x170] ss:$8 sps:$4 sm:$0xff]  }
  0x5d   : > { %847 = vmatpush1.bf16.msra.mxu1 %v1326_v57  ;;  %887 = vmatprep.subr.bf16.mxu0 %v1357_v4  ;;  %v1356_v33 = vld [vmem:[%s1708_s9 + $0xa0] ss:$8 sps:$4 sm:$0xff]   ;;  %v1360_v34 = vld [vmem:[%s1708_s9 + $0xb4] ss:$8 sps:$4 sm:$0xff]   ;;  %v1362_v36 = vld [vmem:[%s1708_s9 + $0xb0] ss:$8 sps:$4 sm:$0xff]  }
  0x5e   : > { %848 = vmatprep.subr.bf16.mxu1 %v1327_v60  ;;  %v595_v29 = vrot.slane %v581_v25, %v1752_v24  ;;  %v588_v31 = vrot.slane %v1177_v23, %v1752_v24  ;;  %v1366_v37 = vld [vmem:[%s1708_s9 + $0xc4] ss:$8 sps:$4 sm:$0xff]   ;;  %v1368_v38 = vld [vmem:[%s1708_s9 + $0xc0] ss:$8 sps:$4 sm:$0xff]   ;;  %v1372_v39 = vld [vmem:[%s1708_s9 + $0xd4] ss:$8 sps:$4 sm:$0xff]  }
  0x5f   : > { %v1374_v40 = vld [vmem:[%s1708_s9 + $0xd0] ss:$8 sps:$4 sm:$0xff]   ;;  %v1378_v41 = vld [vmem:[%s1708_s9 + $0xe4] ss:$8 sps:$4 sm:$0xff]   ;;  %v1380_v42 = vld [vmem:[%s1708_s9 + $0xe0] ss:$8 sps:$4 sm:$0xff]  }
  0x60   : > { %888 = vmatpush1.bf16.msra.mxu0 %v1359_v6  ;;  %872 = vmatprep.mubr.bf16.mxu1 %v595_v29  ;;  %v596_v35 = vcombine.high %v588_v31, %v588_v31  ;;  %v1384_v43 = vld [vmem:[%s1708_s9 + $0xf4] ss:$8 sps:$4 sm:$0xff]   ;;  %v1386_v44 = vld [vmem:[%s1708_s9 + $0xf0] ss:$8 sps:$4 sm:$0xff]   ;;  %v1462_v49 = vmov 1983009808  }
  0x61   : > { %849 = vmatpush1.bf16.msra.mxu1 %v1329_v63  ;;  %889 = vmatprep.subr.bf16.mxu0 %v1363_v8  ;;  %v926_v50 = vunpack.c.l.s4 %v1462_v49  ;;  %v523_v60 = vld [vmem:[#allocation2] sm:$0xf]  ;;  %v948_v1 = vsub.s32 (!%p1226_p3), 1, %v1740_v18 }
  0x62   : > { %850 = vmatprep.subr.bf16.mxu1 %v1330_v0  ;;  %v940_v63 = vld [vmem:[%s509_s22] sm:$0x3] (!%p1226_p3)  ;;  %v944_v0 = vsub.s32 (!%p1226_p3), 0, %v1740_v18 }
  0x63   : > { %v927_v51 = vunpack.c.0.s8 %v926_v50  ;;  %v960_v2 = vld [vmem:[%s514_s8] sm:$0x3] (!%p1226_p3)  ;;  %v949_v4 = vrot.slane (!%p1226_p3), %v940_v63, %v948_v1 }
  0x64   : > { %890 = vmatpush1.bf16.msra.mxu0 %v1365_v13  ;;  %v969_v6 = vrot.slane (!%p1226_p3), %v960_v2, %v948_v1 }
  0x65   : > { %851 = vmatpush1.bf16.msra.mxu1 %v1332_v3  ;;  %891 = vmatprep.subr.bf16.mxu0 %v1369_v15  ;;  %v930_v56 = vsub.s32 %v927_v51, %v1740_v18  ;;  %v945_v3 = vrot.slane (!%p1226_p3), %v940_v63, %v944_v0 }
  0x66   : > { %852 = vmatprep.subr.bf16.mxu1 %v1333_v5  ;;  %v965_v5 = vrot.slane (!%p1226_p3), %v960_v2, %v944_v0 }
  0x68   : > { %892 = vmatpush1.bf16.msra.mxu0 %v1371_v19  ;;  %v970_v8 = vcombine.low (!%p1226_p3), %v965_v5, %v969_v6 }
  0x69   : > { %853 = vmatpush1.bf16.msra.mxu1 %v1335_v7  ;;  %893 = vmatprep.subr.bf16.mxu0 %v1375_v21  ;;  %v950_v7 = vcombine.low (!%p1226_p3), %v945_v3, %v949_v4 }
  0x6a   : > { %854 = vmatprep.subr.bf16.mxu1 %v1336_v9  ;;  %v977_v11 = vrot.slane (!%p1226_p3), %v970_v8, %v930_v56 }
  0x6b   : > { %v957_v10 = vrot.slane (!%p1226_p3), %v950_v7, %v930_v56 }
  0x6c   : > { %894 = vmatpush1.bf16.msra.mxu0 %v1377_v26 }
  0x6d   : > { %855 = vmatpush1.bf16.msra.mxu1 %v1338_v14  ;;  %895 = vmatprep.subr.bf16.mxu0 %v1381_v28 }
  0x6e   : > { %856 = vmatprep.subr.bf16.mxu1 %v1342_v16 }
  0x70   : > { %896 = vmatpush1.bf16.msra.mxu0 %v1383_v32 }
  0x71   : > { %857 = vmatpush1.bf16.msra.mxu1 %v1344_v20 }
  0x72   : > { %858 = vmatprep.subr.bf16.mxu1 %v1348_v22 }
  0x73   : > { %914 = vmatmul.mubr.bf16.vlgmr.msra.gmra.mrb[0].mxu0 %v596_v35 }
  0x75   : > { %859 = vmatpush1.bf16.msra.mxu1 %v1350_v27 }
  0x76   : > { %860 = vmatprep.subr.bf16.mxu1 %v1354_v30 }
  0x79   : > { %861 = vmatpush1.bf16.msra.mxu1 %v1356_v33 }
  0x7a   : > { %862 = vmatprep.subr.bf16.mxu1 %v1360_v34 }
  0x7d   : > { %863 = vmatpush1.bf16.msra.mxu1 %v1362_v36 }
  0x7e   : > { %864 = vmatprep.subr.bf16.mxu1 %v1366_v37 }
  0x81   : > { %865 = vmatpush1.bf16.msra.mxu1 %v1368_v38 }
  0x82   : > { %866 = vmatprep.subr.bf16.mxu1 %v1372_v39 }
  0x85   : > { %867 = vmatpush1.bf16.msra.mxu1 %v1374_v40 }
  0x86   : > { %868 = vmatprep.subr.bf16.mxu1 %v1378_v41 }
  0x89   : > { %869 = vmatpush1.bf16.msra.mxu1 %v1380_v42 }
  0x8a   : > { %870 = vmatprep.subr.bf16.mxu1 %v1384_v43 }
  0x8d   : > { %871 = vmatpush1.bf16.msra.mxu1 %v1386_v44 }
  0x90   : > { %873 = vmatmul.mubr.bf16.vlgmr.msra.gmra.mrb[0].mxu1 %v588_v31 }
 0x146   : > { %v915_v45 = vpop.f32.mrb[0].mxu0 }
 0x147   : > { %v917_v46 = vpop.f32.mrb[1].mxu0 }
 0x148   : > { %v919_v47 = vpop.f32.mrb[2].mxu0 }
 0x149   : > { %v920_v48 = vpop.f32.mrb[3].mxu0 }
 0x163   : > { %v874_v52 = vpop.f32.mrb[0].mxu1 }
 0x164   : > { %v916_v53 = vadd.f32 %v915_v45, %v874_v52  ;;  %v876_v54 = vpop.f32.mrb[1].mxu1 }
 0x165   : > { %v918_v55 = vadd.f32 %v917_v46, %v876_v54  ;;  %v878_v57 = vpop.f32.mrb[2].mxu1 }
 0x166   : > { %v879_v58 = vpop.f32.mrb[3].mxu1 }
 0x167   : > { %v924_v59 = vcombine.low %v916_v53, %v918_v55  ;;  %938 = sbr.rel (%p1226_p3) target bundleno = 388 (0x184), region = 82 }
 0x169   : > { %v931_v61 = vrot.slane %v924_v59, %v930_v56 }
 0x16b   : > { %v933_v62 = vadd.f32 %v931_v61, %v523_v60 }
 0x16d   : > { %934 = vst [vmem:[#allocation2] sm:$0xf] %v933_v62 }
 0x174   : > { %v939_v9 = vld [vmem:[#allocation2] sm:$0xf] }
 0x175   : > { %v959_v12 = vmul.f32 %v957_v10, %v939_v9 }
 0x177   : > { %v979_v13 = vadd.f32 %v977_v11, %v959_v12 }
 0x179   : > { %v980_v14 = vmax.f32 %v979_v13, 0.0 }
 0x17b   : > { %v988_v15 = vrot.slane %v980_v14, %v930_v56 }
 0x17d   : > { %v989_v16 = vcombine.high %v988_v15, %v988_v15 }
 0x17f   : > { %v1227_v17 = vpack.c.bf16 %v989_v16, %v988_v15 }
 0x181   : > { %v1003_v18 = vrot.slane %v1227_v17, %v1752_v24 }
 0x183   : > { %1228 = vst.sshfl [vmem:[%s494_s2] sm:$0x5 pattern:$0x73625140] %v1003_v18 }
 0x184 PF: > { %1019 = sbr.rel (!%p1561_p9) target bundleno = 396 (0x18c), region = 86  ;;  %s1100_s7 = scalar_lea.vmem (%p1561_p9), %s1829_s5, %s1688_s16 }
 0x18a   : > { %v1039_v19 = vld [vmem:[%s494_s2] sm:$0x3] (%p1561_p9) }
 0x18b   : > { %1231 = vst [vmem:[%s1100_s7 + $0x10] sm:$0x3] %v1039_v19 }
 0x18c PF: > { %s16_s25 = sadd.s32 1, %s1457_s25   ;;  %s1834_s18 = smov %s1429_s19 }
 0x18d   : > { %p13_p4 = scmp.ge.s32.totalorder %s16_s25, 14   ;;  %s1835_s19 = smov %s1566_s11 }
 0x18e   : > { %s1836_s0 = smov %s1437_s20  ;;  %s1837_s20 = smov %s1569_s12 }
 0x18f   : > { %s1838_s21 = smov %s1449_s23  ;;  %s1839_s22 = smov %s1453_s24 }
 0x190   : > { %s1840_s23 = smov %s1843_s26  ;;  %s1841_s24 = smov %s1847_s27 }
 0x191   :  { %15 = sbr.rel (!%p13_p4) target bundleno = 7 (0x7), region = 161 }

// kernel: cnn_network_forward.45
= control target key start
LH: loop header
LB: loop body
LE: loop exit
PB: predicated region body
PF: predicated region fallthrough
CT: control target
= control target key end

     0   :  { %s2073_s0 = inlined_call_operand.vmem [shape: bf16[2,1,1,9,512], index: 0, kind: input, shape index: {}, may-alias: {0,5}]   ;;  %s2074_s1 = inlined_call_operand.vmem [shape: bf16[2,4608], index: 1, kind: input, shape index: {}]   ;;  %s2075_s2 = inlined_call_operand.vmem [shape: bf16[4608,512], index: 2, kind: input, shape index: {}]   ;;  %s2076_s3 = inlined_call_operand.vmem [shape: f32[1,512], index: 3, kind: input, shape index: {}]   ;;  %s2077_s4 = inlined_call_operand.vmem [shape: f32[1,512], index: 4, kind: input, shape index: {}]   ;;  %s2078_s5 = inlined_call_operand.vmem [shape: bf16[2,1,1,9,512], index: 5, kind: output, shape index: {}, may-alias: {0,5}]  }
   0x1   :  { %2079 = sst [smem:[#allocation5_spill]] %s2075_s2 }
   0x2   :  { %s1694_s18 = smov 0   ;;  %s1696_s19 = smov 0  }
   0x3   :  { %s1698_s0 = smov 0   ;;  %s1700_s20 = smov 0  }
   0x4   :  { %s1702_s21 = smov 0   ;;  %s1704_s22 = smov 0  }
   0x5   :  { %s1706_s23 = smov 0   ;;  %s1708_s24 = smov 0  }
   0x6   :  { %s1710_s25 = smov 0  }
   0x7 LB: > { %s28_s26 = sadd.s32 1, %s1651_s23  ;;  %s31_s27 = sadd.s32 1, %s1655_s24  ;;  %s1659_s25 = sphi %s1710_s25, %s16_s25   ;;  %s1655_s24 = sphi %s1708_s24, %s2090_s24   ;;  %s1651_s23 = sphi %s1706_s23, %s2089_s23   ;;  %s1647_s22 = sphi %s1704_s22, %s2088_s22   ;;  %s1643_s21 = sphi %s1702_s21, %s2087_s21   ;;  %s1639_s20 = sphi %s1700_s20, %s2086_s20   ;;  %s1635_s0 = sphi %s1698_s0, %s2085_s0   ;;  %s1631_s19 = sphi %s1696_s19, %s2084_s19   ;;  %s1627_s18 = sphi %s1694_s18, %s2083_s18  }
   0x8   : > { %p29_p0 = scmp.ge.s32.totalorder %s28_s26, 9  ;;  %p79_p1 = scmp.ne.s32.totalorder %s1639_s20, %s1635_s0 }
   0x9   : > { %s1326_s28 = sadd.s32 4294967295, %s1659_s25   ;;  %p80_p2 = scmp.eq.s32.totalorder %s1659_s25, 0 }
   0xa   : > { %s2092_s26 = smov (%p29_p0, %s28_s26), 0  ;;  %s2094_s27 = smov (!%p29_p0, %s31_s27), %s1655_s24 }
   0xb   : > { %p33_p3 = scmp.ge.s32.totalorder %s2094_s27, 2  ;;  %s67_s29 = ssub.s32 %s1651_s23, %s2092_s26 }
   0xc   : > { %p1750_p4 = por %p80_p2, %p79_p1  ;;  %p162_p5 = scmp.ne.s32.totalorder %s1631_s19, %s1627_s18 }
   0xd   : > { %s2096_s27 = smov (%p33_p3, %s2094_s27), 0  ;;  %s72_s6 = sadd.s32 1, %s1639_s20 }
   0xe   : > { %p163_p6 = scmp.eq.s32.totalorder %s1326_s28, 17  ;;  %s68_s7 = ssub.s32 %s1655_s24, %s2096_s27 }
   0xf   : > { %s152_s8 = sadd.s32 1, %s1631_s19  ;;  %s69_s9 = sor.u32 %s68_s7, %s67_s29 }
  0x10   : > { %p150_p7 = scmp.eq.s32.totalorder %s68_s7, 0  ;;  %p70_p8 = scmp.eq.s32.totalorder %s69_s9, 0 }
  0x11   : > { %p1762_p9 = por %p163_p6, %p162_p5  ;;  %p1329_p10 = scmp.ge.s32.totalorder %s1659_s25, 18 }
  0x12   : > { %s1767_s11 = scalar_select %p150_p7, %s1631_s19, %s152_s8  }
  0x13   : > { %s1770_s12 = scalar_select %p70_p8, %s1639_s20, %s72_s6  }
  0x14   : > { %185 = sbr.rel (%p1329_p10) target bundleno = 69 (0x45), region = 16 }
  0x1b   : > { %200 = sbr.rel (!%p1750_p4) target bundleno = 69 (0x45), region = 24  ;;  %s202_s13 = sand.u32 (%p1750_p4), 1, %s1639_s20  }
  0x1c   : > { %s1332_s14 = sshll.u32 (%p1750_p4), %s1655_s24, 1  ;;  %s1330_s15 = sshll.u32 (%p1750_p4), %s202_s13, 9 }
  0x1d   : > { %s1415_s16 = sshll.u32 (%p1750_p4), %s1651_s23, 8  ;;  %s2082_s2 = sld [smem:[#allocation5_spill]] (%p1750_p4) }
  0x1e   : > { %s208_s17 = sadd.s32 (%p1750_p4), %s1415_s16, %s1332_s14  ;;  %s1786_s30 = scalar_lea.vmem (%p1750_p4), [#allocation3], %s1330_s15 }
  0x1f   : > { %s1334_s28 = sshll.u32 (%p1750_p4), %s208_s17, 2 }
  0x23   : > { %s1781_s6 = scalar_lea.vmem %s2082_s2, %s1334_s28 }
  0x24   : > { %v364_v0 = vld [vmem:[%s1781_s6] sm:$0xff]  ;;  %v366_v1 = vld [vmem:[%s1781_s6 + $0x10] sm:$0xff] }
  0x25   : > { %v368_v2 = vld [vmem:[%s1781_s6 + $0x20] sm:$0xff]  ;;  %365 = vst [vmem:[%s1786_s30] sm:$0xff] %v364_v0  ;;  %367 = vst [vmem:[%s1786_s30 + $0x8] sm:$0xff] %v366_v1  ;;  %v370_v3 = vld [vmem:[%s1781_s6 + $0x30] sm:$0xff] }
  0x26   : > { %369 = vst [vmem:[%s1786_s30 + $0x10] sm:$0xff] %v368_v2  ;;  %v372_v4 = vld [vmem:[%s1781_s6 + $0x40] sm:$0xff]  ;;  %v374_v5 = vld [vmem:[%s1781_s6 + $0x50] sm:$0xff]  ;;  %371 = vst [vmem:[%s1786_s30 + $0x18] sm:$0xff] %v370_v3 }
  0x27   : > { %373 = vst [vmem:[%s1786_s30 + $0x20] sm:$0xff] %v372_v4  ;;  %375 = vst [vmem:[%s1786_s30 + $0x28] sm:$0xff] %v374_v5  ;;  %v376_v6 = vld [vmem:[%s1781_s6 + $0x60] sm:$0xff]  ;;  %v378_v7 = vld [vmem:[%s1781_s6 + $0x70] sm:$0xff] }
  0x28   : > { %v380_v8 = vld [vmem:[%s1781_s6 + $0x80] sm:$0xff]  ;;  %377 = vst [vmem:[%s1786_s30 + $0x30] sm:$0xff] %v376_v6  ;;  %379 = vst [vmem:[%s1786_s30 + $0x38] sm:$0xff] %v378_v7  ;;  %v382_v9 = vld [vmem:[%s1781_s6 + $0x90] sm:$0xff] }
  0x29   : > { %381 = vst [vmem:[%s1786_s30 + $0x40] sm:$0xff] %v380_v8  ;;  %v384_v10 = vld [vmem:[%s1781_s6 + $0xa0] sm:$0xff]  ;;  %v386_v11 = vld [vmem:[%s1781_s6 + $0xb0] sm:$0xff]  ;;  %383 = vst [vmem:[%s1786_s30 + $0x48] sm:$0xff] %v382_v9 }
  0x2a   : > { %385 = vst [vmem:[%s1786_s30 + $0x50] sm:$0xff] %v384_v10  ;;  %387 = vst [vmem:[%s1786_s30 + $0x58] sm:$0xff] %v386_v11  ;;  %v388_v12 = vld [vmem:[%s1781_s6 + $0xc0] sm:$0xff]  ;;  %v390_v13 = vld [vmem:[%s1781_s6 + $0xd0] sm:$0xff] }
  0x2b   : > { %v392_v14 = vld [vmem:[%s1781_s6 + $0xe0] sm:$0xff]  ;;  %389 = vst [vmem:[%s1786_s30 + $0x60] sm:$0xff] %v388_v12  ;;  %391 = vst [vmem:[%s1786_s30 + $0x68] sm:$0xff] %v390_v13  ;;  %v394_v15 = vld [vmem:[%s1781_s6 + $0xf0] sm:$0xff] }
  0x2c   : > { %393 = vst [vmem:[%s1786_s30 + $0x70] sm:$0xff] %v392_v14  ;;  %v396_v16 = vld [vmem:[%s1781_s6 + $0x100] sm:$0xff]  ;;  %v398_v17 = vld [vmem:[%s1781_s6 + $0x110] sm:$0xff]  ;;  %395 = vst [vmem:[%s1786_s30 + $0x78] sm:$0xff] %v394_v15 }
  0x2d   : > { %397 = vst [vmem:[%s1786_s30 + $0x80] sm:$0xff] %v396_v16  ;;  %399 = vst [vmem:[%s1786_s30 + $0x88] sm:$0xff] %v398_v17  ;;  %v400_v18 = vld [vmem:[%s1781_s6 + $0x120] sm:$0xff]  ;;  %v402_v19 = vld [vmem:[%s1781_s6 + $0x130] sm:$0xff] }
  0x2e   : > { %v404_v20 = vld [vmem:[%s1781_s6 + $0x140] sm:$0xff]  ;;  %401 = vst [vmem:[%s1786_s30 + $0x90] sm:$0xff] %v400_v18  ;;  %403 = vst [vmem:[%s1786_s30 + $0x98] sm:$0xff] %v402_v19  ;;  %v406_v21 = vld [vmem:[%s1781_s6 + $0x150] sm:$0xff] }
  0x2f   : > { %405 = vst [vmem:[%s1786_s30 + $0xa0] sm:$0xff] %v404_v20  ;;  %v408_v22 = vld [vmem:[%s1781_s6 + $0x160] sm:$0xff]  ;;  %v410_v23 = vld [vmem:[%s1781_s6 + $0x170] sm:$0xff]  ;;  %407 = vst [vmem:[%s1786_s30 + $0xa8] sm:$0xff] %v406_v21 }
  0x30   : > { %409 = vst [vmem:[%s1786_s30 + $0xb0] sm:$0xff] %v408_v22  ;;  %411 = vst [vmem:[%s1786_s30 + $0xb8] sm:$0xff] %v410_v23  ;;  %v412_v24 = vld [vmem:[%s1781_s6 + $0x180] sm:$0xff]  ;;  %v414_v25 = vld [vmem:[%s1781_s6 + $0x190] sm:$0xff] }
  0x31   : > { %v416_v26 = vld [vmem:[%s1781_s6 + $0x1a0] sm:$0xff]  ;;  %413 = vst [vmem:[%s1786_s30 + $0xc0] sm:$0xff] %v412_v24  ;;  %415 = vst [vmem:[%s1786_s30 + $0xc8] sm:$0xff] %v414_v25  ;;  %v418_v27 = vld [vmem:[%s1781_s6 + $0x1b0] sm:$0xff] }
  0x32   : > { %417 = vst [vmem:[%s1786_s30 + $0xd0] sm:$0xff] %v416_v26  ;;  %v420_v28 = vld [vmem:[%s1781_s6 + $0x1c0] sm:$0xff]  ;;  %v422_v29 = vld [vmem:[%s1781_s6 + $0x1d0] sm:$0xff]  ;;  %419 = vst [vmem:[%s1786_s30 + $0xd8] sm:$0xff] %v418_v27 }
  0x33   : > { %421 = vst [vmem:[%s1786_s30 + $0xe0] sm:$0xff] %v420_v28  ;;  %423 = vst [vmem:[%s1786_s30 + $0xe8] sm:$0xff] %v422_v29  ;;  %v424_v30 = vld [vmem:[%s1781_s6 + $0x1e0] sm:$0xff]  ;;  %v426_v31 = vld [vmem:[%s1781_s6 + $0x1f0] sm:$0xff] }
  0x34   : > { %v428_v32 = vld [vmem:[%s1781_s6 + $0x200] sm:$0xff]  ;;  %425 = vst [vmem:[%s1786_s30 + $0xf0] sm:$0xff] %v424_v30  ;;  %427 = vst [vmem:[%s1786_s30 + $0xf8] sm:$0xff] %v426_v31  ;;  %v430_v33 = vld [vmem:[%s1781_s6 + $0x210] sm:$0xff] }
  0x35   : > { %429 = vst [vmem:[%s1786_s30 + $0x100] sm:$0xff] %v428_v32  ;;  %v432_v34 = vld [vmem:[%s1781_s6 + $0x220] sm:$0xff]  ;;  %v434_v35 = vld [vmem:[%s1781_s6 + $0x230] sm:$0xff]  ;;  %431 = vst [vmem:[%s1786_s30 + $0x108] sm:$0xff] %v430_v33 }
  0x36   : > { %433 = vst [vmem:[%s1786_s30 + $0x110] sm:$0xff] %v432_v34  ;;  %435 = vst [vmem:[%s1786_s30 + $0x118] sm:$0xff] %v434_v35  ;;  %v436_v36 = vld [vmem:[%s1781_s6 + $0x240] sm:$0xff]  ;;  %v438_v37 = vld [vmem:[%s1781_s6 + $0x250] sm:$0xff] }
  0x37   : > { %v440_v38 = vld [vmem:[%s1781_s6 + $0x260] sm:$0xff]  ;;  %437 = vst [vmem:[%s1786_s30 + $0x120] sm:$0xff] %v436_v36  ;;  %439 = vst [vmem:[%s1786_s30 + $0x128] sm:$0xff] %v438_v37  ;;  %v442_v39 = vld [vmem:[%s1781_s6 + $0x270] sm:$0xff] }
  0x38   : > { %441 = vst [vmem:[%s1786_s30 + $0x130] sm:$0xff] %v440_v38  ;;  %v444_v40 = vld [vmem:[%s1781_s6 + $0x280] sm:$0xff]  ;;  %v446_v41 = vld [vmem:[%s1781_s6 + $0x290] sm:$0xff]  ;;  %443 = vst [vmem:[%s1786_s30 + $0x138] sm:$0xff] %v442_v39 }
  0x39   : > { %445 = vst [vmem:[%s1786_s30 + $0x140] sm:$0xff] %v444_v40  ;;  %447 = vst [vmem:[%s1786_s30 + $0x148] sm:$0xff] %v446_v41  ;;  %v448_v42 = vld [vmem:[%s1781_s6 + $0x2a0] sm:$0xff]  ;;  %v450_v43 = vld [vmem:[%s1781_s6 + $0x2b0] sm:$0xff] }
  0x3a   : > { %v452_v44 = vld [vmem:[%s1781_s6 + $0x2c0] sm:$0xff]  ;;  %449 = vst [vmem:[%s1786_s30 + $0x150] sm:$0xff] %v448_v42  ;;  %451 = vst [vmem:[%s1786_s30 + $0x158] sm:$0xff] %v450_v43  ;;  %v454_v45 = vld [vmem:[%s1781_s6 + $0x2d0] sm:$0xff] }
  0x3b   : > { %453 = vst [vmem:[%s1786_s30 + $0x160] sm:$0xff] %v452_v44  ;;  %v456_v46 = vld [vmem:[%s1781_s6 + $0x2e0] sm:$0xff]  ;;  %v458_v47 = vld [vmem:[%s1781_s6 + $0x2f0] sm:$0xff]  ;;  %455 = vst [vmem:[%s1786_s30 + $0x168] sm:$0xff] %v454_v45 }
  0x3c   : > { %457 = vst [vmem:[%s1786_s30 + $0x170] sm:$0xff] %v456_v46  ;;  %459 = vst [vmem:[%s1786_s30 + $0x178] sm:$0xff] %v458_v47  ;;  %v460_v48 = vld [vmem:[%s1781_s6 + $0x300] sm:$0xff]  ;;  %v462_v49 = vld [vmem:[%s1781_s6 + $0x310] sm:$0xff] }
  0x3d   : > { %v464_v50 = vld [vmem:[%s1781_s6 + $0x320] sm:$0xff]  ;;  %461 = vst [vmem:[%s1786_s30 + $0x180] sm:$0xff] %v460_v48  ;;  %463 = vst [vmem:[%s1786_s30 + $0x188] sm:$0xff] %v462_v49  ;;  %v466_v51 = vld [vmem:[%s1781_s6 + $0x330] sm:$0xff] }
  0x3e   : > { %465 = vst [vmem:[%s1786_s30 + $0x190] sm:$0xff] %v464_v50  ;;  %v468_v52 = vld [vmem:[%s1781_s6 + $0x340] sm:$0xff]  ;;  %v470_v53 = vld [vmem:[%s1781_s6 + $0x350] sm:$0xff]  ;;  %467 = vst [vmem:[%s1786_s30 + $0x198] sm:$0xff] %v466_v51 }
  0x3f   : > { %469 = vst [vmem:[%s1786_s30 + $0x1a0] sm:$0xff] %v468_v52  ;;  %471 = vst [vmem:[%s1786_s30 + $0x1a8] sm:$0xff] %v470_v53  ;;  %v472_v54 = vld [vmem:[%s1781_s6 + $0x360] sm:$0xff]  ;;  %v474_v55 = vld [vmem:[%s1781_s6 + $0x370] sm:$0xff] }
  0x40   : > { %v476_v56 = vld [vmem:[%s1781_s6 + $0x380] sm:$0xff]  ;;  %473 = vst [vmem:[%s1786_s30 + $0x1b0] sm:$0xff] %v472_v54  ;;  %475 = vst [vmem:[%s1786_s30 + $0x1b8] sm:$0xff] %v474_v55  ;;  %v478_v57 = vld [vmem:[%s1781_s6 + $0x390] sm:$0xff] }
  0x41   : > { %477 = vst [vmem:[%s1786_s30 + $0x1c0] sm:$0xff] %v476_v56  ;;  %v480_v58 = vld [vmem:[%s1781_s6 + $0x3a0] sm:$0xff]  ;;  %v482_v59 = vld [vmem:[%s1781_s6 + $0x3b0] sm:$0xff]  ;;  %479 = vst [vmem:[%s1786_s30 + $0x1c8] sm:$0xff] %v478_v57 }
  0x42   : > { %481 = vst [vmem:[%s1786_s30 + $0x1d0] sm:$0xff] %v480_v58  ;;  %483 = vst [vmem:[%s1786_s30 + $0x1d8] sm:$0xff] %v482_v59  ;;  %v484_v60 = vld [vmem:[%s1781_s6 + $0x3c0] sm:$0xff]  ;;  %v486_v61 = vld [vmem:[%s1781_s6 + $0x3d0] sm:$0xff] }
  0x43   : > { %v488_v62 = vld [vmem:[%s1781_s6 + $0x3e0] sm:$0xff]  ;;  %485 = vst [vmem:[%s1786_s30 + $0x1e0] sm:$0xff] %v484_v60  ;;  %487 = vst [vmem:[%s1786_s30 + $0x1e8] sm:$0xff] %v486_v61  ;;  %v490_v63 = vld [vmem:[%s1781_s6 + $0x3f0] sm:$0xff] }
  0x44   : > { %489 = vst [vmem:[%s1786_s30 + $0x1f0] sm:$0xff] %v488_v62  ;;  %491 = vst [vmem:[%s1786_s30 + $0x1f8] sm:$0xff] %v490_v63 }
  0x45 PF: > { %p1335_p11 = scmp.ge.s32.totalorder %s1659_s25, 1  ;;  %p512_p12 = scmp.lt.s32.totalorder %s1659_s25, 19 }
  0x47   : > { %p513_p13 = pnand %p1335_p11, %p512_p12 }
  0x48   : > { %s519_s8 = sand.u32 (!%p513_p13), 1, %s1635_s0   ;;  %s556_s9 = sand.u32 (!%p513_p13), 1, %s1627_s18  }
  0x49   : > { %516 = sbr.rel (%p513_p13) target bundleno = 405 (0x195), region = 70  ;;  %s1336_s13 = sshll.u32 (!%p513_p13), %s519_s8, 9 }
  0x4a   : > { %s1917_s14 = sshll.u32 (!%p513_p13), %s556_s9, 1  ;;  %s1338_s15 = sshll.u32 (!%p513_p13), %s1643_s21, 2 }
  0x4b   : > { %s1921_s16 = sshll.u32 (!%p513_p13), %s1647_s22, 1  ;;  %p562_p0 = scmp.lt.s32.totalorder (!%p513_p13), %s1338_s15, 35 }
  0x4c   : > { %p571_p1 = scmp.lt.s32.totalorder (!%p513_p13), %s1921_s16, 3  ;;  %s1941_s9 = scalar_lea.vmem (!%p513_p13), [#allocation3], %s1336_s13 }
  0x4d   : > { %s558_s2 = scalar_lea.vmem (!%p513_p13), [#allocation4], %s1917_s14  ;;  %p1341_p2 = scmp.ne.s32.totalorder (!%p513_p13), %s1643_s21, 0 }
  0x50   : > { %s2098_s15 = smov (!%p562_p0, %s1338_s15), 35  ;;  %584 = sbr.rel (%p1341_p2) target bundleno = 87 (0x57), region = 78 }
  0x51   : > { %s1927_s17 = scalar_select %p571_p1, %s1921_s16, 3 }
  0x52   : > { %s566_s18 = scalar_lea.vmem %s2074_s1, %s2098_s15  ;;  %v1661_v0 = vmov (!%p1341_p2), 0.0  }
  0x53   : > { %s573_s22 = scalar_lea.vmem %s2076_s3, %s1927_s17  ;;  %s578_s8 = scalar_lea.vmem %s2077_s4, %s1927_s17  ;;  %585 = vst [vmem:[#allocation2] sm:$0xf] (!%p1341_p2), %v1661_v0 }
  0x57 PF: > { %v1493_v1 = vld [vmem:[%s1941_s9 + $0x4] ss:$8 sps:$4 sm:$0xff]   ;;  %v1497_v3 = vld [vmem:[%s1941_s9] ss:$8 sps:$4 sm:$0xff]   ;;  %v1499_v5 = vld [vmem:[%s1941_s9 + $0x14] ss:$8 sps:$4 sm:$0xff]   ;;  %v664_v41 = vlaneseq }
  0x58   : > { %v1495_v2 = vld [vmem:[%s1941_s9 + $0x104] ss:$8 sps:$4 sm:$0xff]   ;;  %1001 = vmatprep.subr.bf16.mxu1 %v1493_v1  ;;  %v1498_v4 = vld [vmem:[%s1941_s9 + $0x100] ss:$8 sps:$4 sm:$0xff]   ;;  %v1501_v6 = vld [vmem:[%s1941_s9 + $0x114] ss:$8 sps:$4 sm:$0xff]  }
  0x59   : > { %1042 = vmatprep.subr.bf16.mxu0 %v1495_v2  ;;  %1002 = vmatpush1.bf16.msra.mxu1 %v1497_v3  ;;  %v1503_v7 = vld [vmem:[%s1941_s9 + $0x10] ss:$8 sps:$4 sm:$0xff]   ;;  %v1505_v9 = vld [vmem:[%s1941_s9 + $0x24] ss:$8 sps:$4 sm:$0xff]   ;;  %v1509_v11 = vld [vmem:[%s1941_s9 + $0x20] ss:$8 sps:$4 sm:$0xff]  }
  0x5a   : > { %1043 = vmatpush1.bf16.msra.mxu0 %v1498_v4  ;;  %1003 = vmatprep.subr.bf16.mxu1 %v1499_v5  ;;  %v1504_v8 = vld [vmem:[%s1941_s9 + $0x110] ss:$8 sps:$4 sm:$0xff]   ;;  %v1507_v10 = vld [vmem:[%s1941_s9 + $0x124] ss:$8 sps:$4 sm:$0xff]   ;;  %v1510_v12 = vld [vmem:[%s1941_s9 + $0x120] ss:$8 sps:$4 sm:$0xff]  }
  0x5b   : > { %1044 = vmatprep.subr.bf16.mxu0 %v1501_v6  ;;  %v1511_v13 = vld [vmem:[%s1941_s9 + $0x34] ss:$8 sps:$4 sm:$0xff]   ;;  %v1515_v15 = vld [vmem:[%s1941_s9 + $0x30] ss:$8 sps:$4 sm:$0xff]   ;;  %v1517_v17 = vld [vmem:[%s1941_s9 + $0x44] ss:$8 sps:$4 sm:$0xff]  }
  0x5c   : > { %v1513_v14 = vld [vmem:[%s1941_s9 + $0x134] ss:$8 sps:$4 sm:$0xff]   ;;  %v1516_v16 = vld [vmem:[%s1941_s9 + $0x130] ss:$8 sps:$4 sm:$0xff]   ;;  %v1519_v18 = vld [vmem:[%s1941_s9 + $0x144] ss:$8 sps:$4 sm:$0xff]  }
  0x5d   : > { %1004 = vmatpush1.bf16.msra.mxu1 %v1503_v7  ;;  %v1521_v19 = vld [vmem:[%s1941_s9 + $0x40] ss:$8 sps:$4 sm:$0xff]   ;;  %v1523_v21 = vld [vmem:[%s1941_s9 + $0x54] ss:$8 sps:$4 sm:$0xff]   ;;  %v1527_v23 = vld [vmem:[%s1941_s9 + $0x50] ss:$8 sps:$4 sm:$0xff]  }
  0x5e   : > { %1045 = vmatpush1.bf16.msra.mxu0 %v1504_v8  ;;  %1005 = vmatprep.subr.bf16.mxu1 %v1505_v9  ;;  %v1522_v20 = vld [vmem:[%s1941_s9 + $0x140] ss:$8 sps:$4 sm:$0xff]   ;;  %v1525_v22 = vld [vmem:[%s1941_s9 + $0x154] ss:$8 sps:$4 sm:$0xff]   ;;  %v1528_v24 = vld [vmem:[%s1941_s9 + $0x150] ss:$8 sps:$4 sm:$0xff]  }
  0x5f   : > { %1046 = vmatprep.subr.bf16.mxu0 %v1507_v10  ;;  %v1529_v25 = vld [vmem:[%s1941_s9 + $0x64] ss:$8 sps:$4 sm:$0xff]   ;;  %v1533_v27 = vld [vmem:[%s1941_s9 + $0x60] ss:$8 sps:$4 sm:$0xff]   ;;  %v1535_v29 = vld [vmem:[%s1941_s9 + $0x74] ss:$8 sps:$4 sm:$0xff]  }
  0x60   : > { %v1531_v26 = vld [vmem:[%s1941_s9 + $0x164] ss:$8 sps:$4 sm:$0xff]   ;;  %v1534_v28 = vld [vmem:[%s1941_s9 + $0x160] ss:$8 sps:$4 sm:$0xff]   ;;  %v1537_v30 = vld [vmem:[%s1941_s9 + $0x174] ss:$8 sps:$4 sm:$0xff]  }
  0x61   : > { %1006 = vmatpush1.bf16.msra.mxu1 %v1509_v11  ;;  %v1539_v31 = vld [vmem:[%s1941_s9 + $0x70] ss:$8 sps:$4 sm:$0xff]   ;;  %v1541_v33 = vld [vmem:[%s1941_s9 + $0x84] ss:$8 sps:$4 sm:$0xff]   ;;  %v1545_v35 = vld [vmem:[%s1941_s9 + $0x80] ss:$8 sps:$4 sm:$0xff]  }
  0x62   : > { %1047 = vmatpush1.bf16.msra.mxu0 %v1510_v12  ;;  %1007 = vmatprep.subr.bf16.mxu1 %v1511_v13  ;;  %v1540_v32 = vld [vmem:[%s1941_s9 + $0x170] ss:$8 sps:$4 sm:$0xff]   ;;  %v1543_v34 = vld [vmem:[%s1941_s9 + $0x184] ss:$8 sps:$4 sm:$0xff]   ;;  %v1546_v36 = vld [vmem:[%s1941_s9 + $0x180] ss:$8 sps:$4 sm:$0xff]  }
  0x63   : > { %1048 = vmatprep.subr.bf16.mxu0 %v1513_v14  ;;  %v1547_v37 = vld [vmem:[%s1941_s9 + $0x94] ss:$8 sps:$4 sm:$0xff]   ;;  %v1662_v39 = vmov 1966171168   ;;  %v1551_v42 = vld [vmem:[%s1941_s9 + $0x90] ss:$8 sps:$4 sm:$0xff]  }
  0x64   : > { %v1549_v38 = vld [vmem:[%s1941_s9 + $0x194] ss:$8 sps:$4 sm:$0xff]   ;;  %v662_v40 = vunpack.c.l.s4 %v1662_v39  ;;  %v1552_v43 = vld [vmem:[%s1941_s9 + $0x190] ss:$8 sps:$4 sm:$0xff]   ;;  %v1553_v44 = vld [vmem:[%s1941_s9 + $0xa4] ss:$8 sps:$4 sm:$0xff]  }
  0x65   : > { %1008 = vmatpush1.bf16.msra.mxu1 %v1515_v15  ;;  %v1555_v45 = vld [vmem:[%s1941_s9 + $0x1a4] ss:$8 sps:$4 sm:$0xff]   ;;  %v1987_v47 = vshrl.u32 %v664_v41, 7  ;;  %v1557_v48 = vld [vmem:[%s1941_s9 + $0xa0] ss:$8 sps:$4 sm:$0xff]   ;;  %p1407_p3 = scmp.ne.s32.totalorder %s1643_s21, 8 }
  0x66   : > { %1049 = vmatpush1.bf16.msra.mxu0 %v1516_v16  ;;  %1009 = vmatprep.subr.bf16.mxu1 %v1517_v17  ;;  %v663_v46 = vunpack.c.0.s8 %v662_v40  ;;  %v1558_v49 = vld [vmem:[%s1941_s9 + $0x1a0] ss:$8 sps:$4 sm:$0xff]   ;;  %v1559_v50 = vld [vmem:[%s1941_s9 + $0xb4] ss:$8 sps:$4 sm:$0xff]   ;;  %v1563_v54 = vld [vmem:[%s1941_s9 + $0xb0] ss:$8 sps:$4 sm:$0xff]  }
  0x67   : > { %1050 = vmatprep.subr.bf16.mxu0 %v1519_v18  ;;  %v1561_v51 = vld [vmem:[%s1941_s9 + $0x1b4] ss:$8 sps:$4 sm:$0xff]   ;;  %v1564_v55 = vld [vmem:[%s1941_s9 + $0x1b0] ss:$8 sps:$4 sm:$0xff]   ;;  %v1565_v57 = vld [vmem:[%s1941_s9 + $0xc4] ss:$8 sps:$4 sm:$0xff]  }
  0x68   : > { %v1994_v52 = vsub.s32 %v663_v46, %v1987_v47  ;;  %v1342_v53 = vld.sshfl [vmem:[%s566_s18] sm:$0x33 pattern:$0x75316420]  ;;  %v1567_v58 = vld [vmem:[%s1941_s9 + $0x1c4] ss:$8 sps:$4 sm:$0xff]  }
  0x69   : > { %1010 = vmatpush1.bf16.msra.mxu1 %v1521_v19  ;;  %v660_v56 = vcombine.high %v1342_v53, %v1342_v53  ;;  %v1569_v60 = vld [vmem:[%s1941_s9 + $0xc0] ss:$8 sps:$4 sm:$0xff]   ;;  %v1571_v63 = vld [vmem:[%s1941_s9 + $0xd4] ss:$8 sps:$4 sm:$0xff]   ;;  %v1575_v1 = vld [vmem:[%s1941_s9 + $0xd0] ss:$8 sps:$4 sm:$0xff]  }
  0x6a   : > { %1051 = vmatpush1.bf16.msra.mxu0 %v1522_v20  ;;  %1011 = vmatprep.subr.bf16.mxu1 %v1523_v21  ;;  %v1570_v61 = vld [vmem:[%s1941_s9 + $0x1c0] ss:$8 sps:$4 sm:$0xff]   ;;  %v1573_v0 = vld [vmem:[%s1941_s9 + $0x1d4] ss:$8 sps:$4 sm:$0xff]   ;;  %v1576_v2 = vld [vmem:[%s1941_s9 + $0x1d0] ss:$8 sps:$4 sm:$0xff]   ;;  %v667_v9 = vrot.slane %v1342_v53, %v1994_v52 }
  0x6b   : > { %1052 = vmatprep.subr.bf16.mxu0 %v1525_v22  ;;  %v674_v59 = vrot.slane %v660_v56, %v1994_v52  ;;  %v1577_v3 = vld [vmem:[%s1941_s9 + $0xe4] ss:$8 sps:$4 sm:$0xff]   ;;  %v1581_v5 = vld [vmem:[%s1941_s9 + $0xe0] ss:$8 sps:$4 sm:$0xff]   ;;  %v1583_v7 = vld [vmem:[%s1941_s9 + $0xf4] ss:$8 sps:$4 sm:$0xff]  }
  0x6c   : > { %v1579_v4 = vld [vmem:[%s1941_s9 + $0x1e4] ss:$8 sps:$4 sm:$0xff]   ;;  %v1582_v6 = vld [vmem:[%s1941_s9 + $0x1e0] ss:$8 sps:$4 sm:$0xff]   ;;  %v1585_v8 = vld [vmem:[%s1941_s9 + $0x1f4] ss:$8 sps:$4 sm:$0xff]   ;;  %v675_v12 = vcombine.high %v667_v9, %v667_v9 }
  0x6d   : > { %1012 = vmatpush1.bf16.msra.mxu1 %v1527_v23  ;;  %v676_v62 = vcombine.high %v674_v59, %v674_v59  ;;  %1033 = vmatprep.mubr.bf16.mxu1 %v674_v59  ;;  %v1587_v10 = vld [vmem:[%s1941_s9 + $0xf0] ss:$8 sps:$4 sm:$0xff]   ;;  %v1663_v13 = vmov 1983009808  }
  0x6e   : > { %1053 = vmatpush1.bf16.msra.mxu0 %v1528_v24  ;;  %1013 = vmatprep.subr.bf16.mxu1 %v1529_v25  ;;  %v1588_v11 = vld [vmem:[%s1941_s9 + $0x1f0] ss:$8 sps:$4 sm:$0xff]   ;;  %v1087_v14 = vunpack.c.l.s4 %v1663_v13 }
  0x6f   : > { %1054 = vmatprep.subr.bf16.mxu0 %v1531_v26  ;;  %1074 = vmatprep.mubr.bf16.mxu0 %v676_v62 }
  0x70   : > { %v1088_v15 = vunpack.c.0.s8 %v1087_v14 }
  0x71   : > { %1014 = vmatpush1.bf16.msra.mxu1 %v1533_v27 }
  0x72   : > { %1055 = vmatpush1.bf16.msra.mxu0 %v1534_v28  ;;  %1015 = vmatprep.subr.bf16.mxu1 %v1535_v29  ;;  %v1091_v22 = vsub.s32 %v1088_v15, %v1987_v47  ;;  %v586_v28 = vld [vmem:[#allocation2] sm:$0xf] }
  0x73   : > { %1056 = vmatprep.subr.bf16.mxu0 %v1537_v30 }
  0x75   : > { %1016 = vmatpush1.bf16.msra.mxu1 %v1539_v31  ;;  %v1101_v31 = vld [vmem:[%s573_s22] sm:$0x3] (!%p1407_p3) }
  0x76   : > { %1057 = vmatpush1.bf16.msra.mxu0 %v1540_v32  ;;  %1017 = vmatprep.subr.bf16.mxu1 %v1541_v33  ;;  %v1105_v32 = vsub.s32 (!%p1407_p3), 0, %v1987_v47  ;;  %v1109_v33 = vsub.s32 (!%p1407_p3), 1, %v1987_v47 }
  0x77   : > { %1058 = vmatprep.subr.bf16.mxu0 %v1543_v34  ;;  %v1121_v34 = vld [vmem:[%s578_s8] sm:$0x3] (!%p1407_p3) }
  0x79   : > { %1018 = vmatpush1.bf16.msra.mxu1 %v1545_v35  ;;  %v1106_v35 = vrot.slane (!%p1407_p3), %v1101_v31, %v1105_v32 }
  0x7a   : > { %1059 = vmatpush1.bf16.msra.mxu0 %v1546_v36  ;;  %1019 = vmatprep.subr.bf16.mxu1 %v1547_v37  ;;  %v1110_v36 = vrot.slane (!%p1407_p3), %v1101_v31, %v1109_v33  ;;  %v1126_v37 = vrot.slane (!%p1407_p3), %v1121_v34, %v1105_v32 }
  0x7b   : > { %1060 = vmatprep.subr.bf16.mxu0 %v1549_v38  ;;  %v1130_v38 = vrot.slane (!%p1407_p3), %v1121_v34, %v1109_v33 }
  0x7c   : > { %v1111_v39 = vcombine.low (!%p1407_p3), %v1106_v35, %v1110_v36 }
  0x7d   : > { %1020 = vmatpush1.bf16.msra.mxu1 %v1551_v42  ;;  %v1131_v40 = vcombine.low (!%p1407_p3), %v1126_v37, %v1130_v38 }
  0x7e   : > { %1061 = vmatpush1.bf16.msra.mxu0 %v1552_v43  ;;  %1021 = vmatprep.subr.bf16.mxu1 %v1553_v44  ;;  %v1118_v42 = vrot.slane (!%p1407_p3), %v1111_v39, %v1091_v22 }
  0x7f   : > { %1062 = vmatprep.subr.bf16.mxu0 %v1555_v45  ;;  %v1138_v43 = vrot.slane (!%p1407_p3), %v1131_v40, %v1091_v22 }
  0x81   : > { %1022 = vmatpush1.bf16.msra.mxu1 %v1557_v48 }
  0x82   : > { %1063 = vmatpush1.bf16.msra.mxu0 %v1558_v49  ;;  %1023 = vmatprep.subr.bf16.mxu1 %v1559_v50 }
  0x83   : > { %1064 = vmatprep.subr.bf16.mxu0 %v1561_v51 }
  0x85   : > { %1024 = vmatpush1.bf16.msra.mxu1 %v1563_v54 }
  0x86   : > { %1065 = vmatpush1.bf16.msra.mxu0 %v1564_v55  ;;  %1025 = vmatprep.subr.bf16.mxu1 %v1565_v57 }
  0x87   : > { %1066 = vmatprep.subr.bf16.mxu0 %v1567_v58 }
  0x89   : > { %1026 = vmatpush1.bf16.msra.mxu1 %v1569_v60 }
  0x8a   : > { %1067 = vmatpush1.bf16.msra.mxu0 %v1570_v61  ;;  %1027 = vmatprep.subr.bf16.mxu1 %v1571_v63 }
  0x8b   : > { %1068 = vmatprep.subr.bf16.mxu0 %v1573_v0 }
  0x8d   : > { %1028 = vmatpush1.bf16.msra.mxu1 %v1575_v1 }
  0x8e   : > { %1069 = vmatpush1.bf16.msra.mxu0 %v1576_v2  ;;  %1029 = vmatprep.subr.bf16.mxu1 %v1577_v3 }
  0x8f   : > { %1070 = vmatprep.subr.bf16.mxu0 %v1579_v4 }
  0x91   : > { %1030 = vmatpush1.bf16.msra.mxu1 %v1581_v5 }
  0x92   : > { %1071 = vmatpush1.bf16.msra.mxu0 %v1582_v6  ;;  %1031 = vmatprep.subr.bf16.mxu1 %v1583_v7 }
  0x93   : > { %1072 = vmatprep.subr.bf16.mxu0 %v1585_v8 }
  0x95   : > { %1032 = vmatpush1.bf16.msra.mxu1 %v1587_v10 }
  0x96   : > { %1073 = vmatpush1.bf16.msra.mxu0 %v1588_v11 }
  0x98   : > { %1034 = vmatmul.mubr.bf16.vlgmr.msra.gmra.mrb[0].mxu1 %v667_v9 }
  0x99   : > { %1075 = vmatmul.mubr.bf16.vlgmr.msra.gmra.mrb[0].mxu0 %v675_v12 }
 0x16b   : > { %v1035_v16 = vpop.f32.mrb[0].mxu1 }
 0x16c   : > { %v1076_v17 = vpop.f32.mrb[0].mxu0  ;;  %v1037_v19 = vpop.f32.mrb[1].mxu1 }
 0x16d   : > { %v1077_v18 = vadd.f32 %v1076_v17, %v1035_v16  ;;  %v1078_v20 = vpop.f32.mrb[1].mxu0  ;;  %v1039_v23 = vpop.f32.mrb[2].mxu1 }
 0x16e   : > { %v1079_v21 = vadd.f32 %v1078_v20, %v1037_v19  ;;  %v1080_v24 = vpop.f32.mrb[2].mxu0  ;;  %v1040_v25 = vpop.f32.mrb[3].mxu1 }
 0x16f   : > { %v1081_v26 = vpop.f32.mrb[3].mxu0 }
 0x170   : > { %v1085_v27 = vcombine.low %v1077_v18, %v1079_v21  ;;  %1099 = sbr.rel (%p1407_p3) target bundleno = 397 (0x18d), region = 82 }
 0x172   : > { %v1092_v29 = vrot.slane %v1085_v27, %v1091_v22 }
 0x174   : > { %v1094_v30 = vadd.f32 %v1092_v29, %v586_v28 }
 0x176   : > { %1095 = vst [vmem:[#allocation2] sm:$0xf] %v1094_v30 }
 0x17d   : > { %v1100_v41 = vld [vmem:[#allocation2] sm:$0xf] }
 0x17e   : > { %v1120_v44 = vmul.f32 %v1118_v42, %v1100_v41 }
 0x180   : > { %v1140_v45 = vadd.f32 %v1138_v43, %v1120_v44 }
 0x182   : > { %v1141_v46 = vmax.f32 %v1140_v45, 0.0 }
 0x184   : > { %v1149_v48 = vrot.slane %v1141_v46, %v1091_v22 }
 0x186   : > { %v1150_v47 = vcombine.high %v1149_v48, %v1149_v48 }
 0x188   : > { %v1408_v49 = vpack.c.bf16 %v1150_v47, %v1149_v48 }
 0x18a   : > { %v1164_v50 = vrot.slane %v1408_v49, %v1994_v52 }
 0x18c   : > { %1409 = vst.sshfl [vmem:[%s558_s2] sm:$0x5 pattern:$0x73625140] %v1164_v50 }
 0x18d PF: > { %1180 = sbr.rel (!%p1762_p9) target bundleno = 405 (0x195), region = 86  ;;  %s1261_s7 = scalar_lea.vmem (%p1762_p9), %s2078_s5, %s1921_s16 }
 0x193   : > { %v1200_v51 = vld [vmem:[%s558_s2] sm:$0x3] (%p1762_p9) }
 0x194   : > { %1412 = vst [vmem:[%s1261_s7 + $0x10] sm:$0x3] %v1200_v51 }
 0x195 PF: > { %s16_s25 = sadd.s32 1, %s1659_s25   ;;  %s2083_s18 = smov %s1631_s19 }
 0x196   : > { %p13_p4 = scmp.ge.s32.totalorder %s16_s25, 20   ;;  %s2084_s19 = smov %s1767_s11 }
 0x197   : > { %s2085_s0 = smov %s1639_s20  ;;  %s2086_s20 = smov %s1770_s12 }
 0x198   : > { %s2087_s21 = smov %s1651_s23  ;;  %s2088_s22 = smov %s1655_s24 }
 0x199   : > { %s2089_s23 = smov %s2092_s26  ;;  %s2090_s24 = smov %s2096_s27 }
 0x19a   :  { %15 = sbr.rel (!%p13_p4) target bundleno = 7 (0x7), region = 161 }

// kernel: cnn_network_forward.43
= control target key start
LH: loop header
LB: loop body
LE: loop exit
PB: predicated region body
PF: predicated region fallthrough
CT: control target
= control target key end

     0   :  { %v826_v39 = vmov 0.0   ;;  %vm827_vm0 = vmmov 0   ;;  %s1030_s1 = inlined_call_operand.vmem [shape: bf16[512,128], index: 1, kind: input, shape index: {}]   ;;  %s1031_s0 = inlined_call_operand.vmem [shape: bf16[8,512], index: 0, kind: input, shape index: {}]   ;;  %s1032_s3 = inlined_call_operand.vmem [shape: bf16[128,128], index: 3, kind: input, shape index: {}]   ;;  %s1033_s5 = inlined_call_operand.vmem [shape: bf16[128,128], index: 5, kind: input, shape index: {}]   ;;  %s1034_s2 = inlined_call_operand.vmem [shape: f32[1,128], index: 2, kind: input, shape index: {}]   ;;  %s1035_s4 = inlined_call_operand.vmem [shape: f32[1,128], index: 4, kind: input, shape index: {}]   ;;  %s1036_s6 = inlined_call_operand.vmem [shape: f32[1,128], index: 6, kind: input, shape index: {}]   ;;  %s1037_s7 = inlined_call_operand.vmem [shape: f32[8,128], index: 7, kind: output, shape index: {}]  }
   0x1   :  { %v774_v0 = vld [vmem:[%s1030_s1 + $0x40] sm:$0xff]   ;;  %v778_v4 = vld [vmem:[%s1030_s1 + $0x48] sm:$0xff]   ;;  %v782_v8 = vld [vmem:[%s1030_s1 + $0x50] sm:$0xff]  }
   0x2   :  { %v775_v1 = vld [vmem:[%s1030_s1 + $0xc0] sm:$0xff]   ;;  %670 = vmatprep.subr.bf16.mxu0 %v774_v0  ;;  %v779_v5 = vld [vmem:[%s1030_s1 + $0xc8] sm:$0xff]   ;;  %v783_v9 = vld [vmem:[%s1030_s1 + $0xd0] sm:$0xff]  }
   0x3   :  { %v776_v2 = vld [vmem:[%s1030_s1] sm:$0xff]   ;;  %692 = vmatprep.subr.bf16.mxu1 %v775_v1  ;;  %v780_v6 = vld [vmem:[%s1030_s1 + $0x8] sm:$0xff]   ;;  %v784_v10 = vld [vmem:[%s1030_s1 + $0x10] sm:$0xff]  }
   0x4   :  { %v777_v3 = vld [vmem:[%s1030_s1 + $0x80] sm:$0xff]   ;;  %671 = vmatpush3.bf16.msra.mxu0 %v776_v2  ;;  %v781_v7 = vld [vmem:[%s1030_s1 + $0x88] sm:$0xff]   ;;  %v785_v11 = vld [vmem:[%s1030_s1 + $0x90] sm:$0xff]  }
   0x5   :  { %693 = vmatpush3.bf16.msra.mxu1 %v777_v3  ;;  %672 = vmatprep.subr.bf16.mxu0 %v778_v4  ;;  %v786_v12 = vld [vmem:[%s1030_s1 + $0x58] sm:$0xff]   ;;  %v790_v16 = vld [vmem:[%s1030_s1 + $0x60] sm:$0xff]   ;;  %v794_v20 = vld [vmem:[%s1030_s1 + $0x68] sm:$0xff]  }
   0x6   :  { %694 = vmatprep.subr.bf16.mxu1 %v779_v5  ;;  %v787_v13 = vld [vmem:[%s1030_s1 + $0xd8] sm:$0xff]   ;;  %v791_v17 = vld [vmem:[%s1030_s1 + $0xe0] sm:$0xff]   ;;  %v795_v21 = vld [vmem:[%s1030_s1 + $0xe8] sm:$0xff]  }
   0x7   :  { %v788_v14 = vld [vmem:[%s1030_s1 + $0x18] sm:$0xff]   ;;  %v792_v18 = vld [vmem:[%s1030_s1 + $0x20] sm:$0xff]   ;;  %v796_v22 = vld [vmem:[%s1030_s1 + $0x28] sm:$0xff]  }
   0x8   :  { %673 = vmatpush3.bf16.msra.mxu0 %v780_v6  ;;  %v789_v15 = vld [vmem:[%s1030_s1 + $0x98] sm:$0xff]   ;;  %v793_v19 = vld [vmem:[%s1030_s1 + $0xa0] sm:$0xff]   ;;  %v797_v23 = vld [vmem:[%s1030_s1 + $0xa8] sm:$0xff]  }
   0x9   :  { %695 = vmatpush3.bf16.msra.mxu1 %v781_v7  ;;  %674 = vmatprep.subr.bf16.mxu0 %v782_v8  ;;  %v798_v24 = vld [vmem:[%s1030_s1 + $0x70] sm:$0xff]   ;;  %v802_v28 = vld [vmem:[%s1030_s1 + $0x78] sm:$0xff]   ;;  %v27_v32 = vld [vmem:[%s1031_s0] sm:$0xff] }
   0xa   :  { %696 = vmatprep.subr.bf16.mxu1 %v783_v9  ;;  %v799_v25 = vld [vmem:[%s1030_s1 + $0xf0] sm:$0xff]   ;;  %v803_v29 = vld [vmem:[%s1030_s1 + $0xf8] sm:$0xff]   ;;  %v28_v33 = vld [vmem:[%s1031_s0 + $0x8] sm:$0xff]  ;;  %v616_v34 = vcombine.low %v27_v32, %v27_v32  ;;  %v617_v35 = vcombine.high %v27_v32, %v27_v32 }
   0xb   :  { %v800_v26 = vld [vmem:[%s1030_s1 + $0x30] sm:$0xff]   ;;  %v804_v30 = vld [vmem:[%s1030_s1 + $0x38] sm:$0xff]   ;;  %v618_v36 = vcombine.low %v28_v33, %v28_v33  ;;  %v619_v37 = vcombine.high %v28_v33, %v28_v33  ;;  %v810_v38 = vld [vmem:[%s1032_s3] sm:$0xff]  }
   0xc   :  { %675 = vmatpush3.bf16.msra.mxu0 %v784_v10  ;;  %v801_v27 = vld [vmem:[%s1030_s1 + $0xb0] sm:$0xff]   ;;  %v805_v31 = vld [vmem:[%s1030_s1 + $0xb8] sm:$0xff]   ;;  %338 = vmatprep.mubr.bf16.mxu0 %v617_v35  ;;  %v811_v40 = vld [vmem:[%s1032_s3 + $0x8] sm:$0xff]  }
   0xd   :  { %697 = vmatpush3.bf16.msra.mxu1 %v785_v11  ;;  %676 = vmatprep.subr.bf16.mxu0 %v786_v12  ;;  %v812_v41 = vld [vmem:[%s1032_s3 + $0x10] sm:$0xff]   ;;  %v813_v42 = vld [vmem:[%s1032_s3 + $0x18] sm:$0xff]   ;;  %v814_v43 = vld [vmem:[%s1032_s3 + $0x20] sm:$0xff]  }
   0xe   :  { %698 = vmatprep.subr.bf16.mxu1 %v787_v13  ;;  %378 = vmatprep.mubr.bf16.mxu1 %v619_v37  ;;  %v815_v44 = vld [vmem:[%s1032_s3 + $0x28] sm:$0xff]   ;;  %v816_v45 = vld [vmem:[%s1032_s3 + $0x30] sm:$0xff]   ;;  %v817_v46 = vld [vmem:[%s1032_s3 + $0x38] sm:$0xff]  }
   0xf   :  { %v818_v47 = vld [vmem:[%s1033_s5] sm:$0xff]   ;;  %v819_v48 = vld [vmem:[%s1033_s5 + $0x8] sm:$0xff]   ;;  %v820_v49 = vld [vmem:[%s1033_s5 + $0x10] sm:$0xff]  }
  0x10   :  { %677 = vmatpush3.bf16.msra.mxu0 %v788_v14  ;;  %v821_v50 = vld [vmem:[%s1033_s5 + $0x18] sm:$0xff]   ;;  %v822_v51 = vld [vmem:[%s1033_s5 + $0x20] sm:$0xff]   ;;  %v823_v52 = vld [vmem:[%s1033_s5 + $0x28] sm:$0xff]  }
  0x11   :  { %699 = vmatpush3.bf16.msra.mxu1 %v789_v15  ;;  %678 = vmatprep.subr.bf16.mxu0 %v790_v16  ;;  %v824_v53 = vld [vmem:[%s1033_s5 + $0x30] sm:$0xff]   ;;  %v615_v56 = vld [vmem:[%s1034_s2] ss:$0 sm:$0xff]  ;;  %v825_v4 = vld [vmem:[%s1033_s5 + $0x38] sm:$0xff]  }
  0x12   :  { %700 = vmatprep.subr.bf16.mxu1 %v791_v17  ;;  %v652_v5 = vld [vmem:[%s1035_s4] ss:$0 sm:$0xff] }
  0x13   :  { %v661_v12 = vld [vmem:[%s1036_s6] ss:$0 sm:$0xff] }
  0x14   :  { %679 = vmatpush3.bf16.msra.mxu0 %v792_v18 }
  0x15   :  { %701 = vmatpush3.bf16.msra.mxu1 %v793_v19  ;;  %680 = vmatprep.subr.bf16.mxu0 %v794_v20 }
  0x16   :  { %702 = vmatprep.subr.bf16.mxu1 %v795_v21 }
  0x18   :  { %681 = vmatpush3.bf16.msra.mxu0 %v796_v22 }
  0x19   :  { %703 = vmatpush3.bf16.msra.mxu1 %v797_v23  ;;  %682 = vmatprep.subr.bf16.mxu0 %v798_v24 }
  0x1a   :  { %704 = vmatprep.subr.bf16.mxu1 %v799_v25 }
  0x1c   :  { %683 = vmatpush3.bf16.msra.mxu0 %v800_v26 }
  0x1d   :  { %705 = vmatpush3.bf16.msra.mxu1 %v801_v27  ;;  %684 = vmatprep.subr.bf16.mxu0 %v802_v28 }
  0x1e   :  { %706 = vmatprep.subr.bf16.mxu1 %v803_v29 }
  0x20   :  { %685 = vmatpush3.bf16.msra.mxu0 %v804_v30 }
  0x21   :  { %707 = vmatpush3.bf16.msra.mxu1 %v805_v31  ;;  %732 = vmatprep.subr.bf16.mxu0 %v826_v39 }
  0x22   :  { %752 = vmatprep.subr.bf16.mxu1 %v826_v39 }
  0x23   :  { %339 = vmatmul.mubr.bf16.vlgmr.msra.gmra.mrb[0].mxu0 %v616_v34 }
  0x24   :  { %379 = vmatmul.mubr.bf16.vlgmr.msra.gmra.mrb[0].mxu1 %v618_v36  ;;  %733 = vmatpush3.bf16.msra.mxu0 %v810_v38 }
  0x25   :  { %734 = vmatprep.subr.bf16.mxu0 %v826_v39  ;;  %748 = vmatprep.mubr.msk.bf16.mxu0 %vm827_vm0, %v826_v39 }
  0x26   :  { %768 = vmatprep.mubr.msk.bf16.mxu1 %vm827_vm0, %v826_v39  ;;  %753 = vmatpush3.bf16.msra.mxu1 %v818_v47 }
  0x27   :  { %754 = vmatprep.subr.bf16.mxu1 %v826_v39 }
  0x28   :  { %735 = vmatpush3.bf16.msra.mxu0 %v811_v40 }
  0x29   :  { %736 = vmatprep.subr.bf16.mxu0 %v826_v39 }
  0x2a   :  { %755 = vmatpush3.bf16.msra.mxu1 %v819_v48 }
  0x2b   :  { %756 = vmatprep.subr.bf16.mxu1 %v826_v39 }
  0x2c   :  { %737 = vmatpush3.bf16.msra.mxu0 %v812_v41 }
  0x2d   :  { %738 = vmatprep.subr.bf16.mxu0 %v826_v39 }
  0x2e   :  { %757 = vmatpush3.bf16.msra.mxu1 %v820_v49 }
  0x2f   :  { %758 = vmatprep.subr.bf16.mxu1 %v826_v39 }
  0x30   :  { %739 = vmatpush3.bf16.msra.mxu0 %v813_v42 }
  0x31   :  { %740 = vmatprep.subr.bf16.mxu0 %v826_v39 }
  0x32   :  { %759 = vmatpush3.bf16.msra.mxu1 %v821_v50 }
  0x33   :  { %760 = vmatprep.subr.bf16.mxu1 %v826_v39 }
  0x34   :  { %741 = vmatpush3.bf16.msra.mxu0 %v814_v43 }
  0x35   :  { %742 = vmatprep.subr.bf16.mxu0 %v826_v39 }
  0x36   :  { %761 = vmatpush3.bf16.msra.mxu1 %v822_v51 }
  0x37   :  { %762 = vmatprep.subr.bf16.mxu1 %v826_v39 }
  0x38   :  { %743 = vmatpush3.bf16.msra.mxu0 %v815_v44 }
  0x39   :  { %744 = vmatprep.subr.bf16.mxu0 %v826_v39 }
  0x3a   :  { %763 = vmatpush3.bf16.msra.mxu1 %v823_v52 }
  0x3b   :  { %764 = vmatprep.subr.bf16.mxu1 %v826_v39 }
  0x3c   :  { %745 = vmatpush3.bf16.msra.mxu0 %v816_v45 }
  0x3d   :  { %746 = vmatprep.subr.bf16.mxu0 %v826_v39 }
  0x3e   :  { %765 = vmatpush3.bf16.msra.mxu1 %v824_v53 }
  0x3f   :  { %766 = vmatprep.subr.bf16.mxu1 %v826_v39 }
  0x40   :  { %747 = vmatpush3.bf16.msra.mxu0 %v817_v46 }
  0x42   :  { %767 = vmatpush3.bf16.msra.mxu1 %v825_v4 }
  0xf6   :  { %v686_v54 = vpop.f32.mrb[0].mxu0 }
  0xf7   :  { %v708_v55 = vpop.f32.mrb[0].mxu1  ;;  %v687_v57 = vpop.f32.mrb[1].mxu0 }
  0xf8   :  { %v709_v58 = vpop.f32.mrb[1].mxu1  ;;  %v688_v59 = vadd.f32 %v687_v57, %v686_v54  ;;  %v689_v61 = vpop.f32.mrb[2].mxu0 }
  0xf9   :  { %v710_v60 = vadd.f32 %v709_v58, %v708_v55  ;;  %v711_v62 = vpop.f32.mrb[2].mxu1  ;;  %v690_v63 = vpop.f32.mrb[3].mxu0 }
  0xfa   :  { %v712_v0 = vpop.f32.mrb[3].mxu1  ;;  %v341_v1 = vadd.f32 %v688_v59, %v615_v56 }
  0xfc   :  { %v381_v2 = vadd.f32 %v710_v60, %v341_v1 }
  0xfe   :  { %v386_v3 = vpack.c.bf16 %v381_v2, %v381_v2 }
 0x100   :  { %749 = vmatmul.mubr.bf16.vlgmr.msra.gmra.mrb[4].mxu0 %v386_v3 }
 0x1d3   :  { %v492_v6 = vpop.f32.mrb[4].mxu0 }
 0x1d4   :  { %v493_v7 = vadd.f32 %v652_v5, %v492_v6  ;;  %v750_v8 = vpop.f32.mrb[5].mxu0 }
 0x1d5   :  { %v495_v9 = vpop.f32.mrb[6].mxu0 }
 0x1d6   :  { %v498_v10 = vpack.c.bf16 %v493_v7, %v493_v7  ;;  %v751_v11 = vpop.f32.mrb[7].mxu0 }
 0x1d8   :  { %769 = vmatmul.mubr.bf16.vlgmr.msra.gmra.mrb[4].mxu1 %v498_v10 }
 0x2ab   :  { %v604_v13 = vpop.f32.mrb[4].mxu1 }
 0x2ac   :  { %v605_v14 = vadd.f32 %v661_v12, %v604_v13  ;;  %v770_v15 = vpop.f32.mrb[5].mxu1 }
 0x2ad   :  { %v607_v16 = vpop.f32.mrb[6].mxu1 }
 0x2ae   :  { %610 = vst [vmem:[%s1037_s7] sm:$0xff] %v605_v14  ;;  %v771_v17 = vpop.f32.mrb[7].mxu1 }

</bundles_post_ra>
